<compile_context>
chip_gen: v7x
topology: tpu7x:2x2x1
jax: 0.10.0
libtpu: 0.0.40
codegen_flags: <defaults>
</compile_context>

<pallas_src>
import functools

import jax
import jax.numpy as jnp
from jax.experimental import pallas as pl
from jax.experimental.pallas import tpu as pltpu


def _round_up(x, m):
    return (x + m - 1) // m * m


# ----------------------------------------------------------------------------
# Pallas kernels
# ----------------------------------------------------------------------------
def _conv1x1_kernel(x_ref, w_ref, y_ref, s_ref):
    """First layer (1x1 spatial ConvT) as a plain matmul + fused BN stats.

    x: (N, z) bf16, w: (z, 16*cp) bf16, y: (N, 16*cp) bf16,
    s: (2, 16*cp) f32 with row 0 = column sums, row 1 = column sum-of-squares.
    """
    y = jnp.dot(x_ref[...], w_ref[...], preferred_element_type=jnp.float32)
    y_ref[...] = y.astype(y_ref.dtype)
    s_ref[0:1, :] = jnp.sum(y, axis=0, keepdims=True)
    s_ref[1:2, :] = jnp.sum(y * y, axis=0, keepdims=True)


def _convt_s2_kernel(x_ref, w_ref, y_ref, *stats_ref,
                     Wp, W, HW2, HW2r, activation):
    """Stride-2 ConvTranspose2d (k=4, p=1) via sub-pixel decomposition.

    x_ref: (1, Rr, 4*cin)   bf16, 4-tap concatenated, spatially (1,1)-padded
                            input; row r holds taps [r, r+1, r+Wp, r+Wp+1].
    w_ref: (4, 4*cin, C4p)  bf16, per-parity weights; parity p only populates
                            lanes [p*cout, (p+1)*cout) so the 4 matmul results
                            can be summed into one lane-dense accumulator.
    y_ref: (1, HW2r, C4p)   bf16, row r = i*Wp + j is output pixel
                            (2i+rh, 2j+rw) in lane block p = rh*2 + rw.
    stats_ref[0]: (1, 2, C4p) f32, masked column sum / sum-of-squares.
    """
    acc = None
    for rh in range(2):
        for rw in range(2):
            p = rh * 2 + rw
            off = rh * Wp + rw                          # static row offset
            xs = x_ref[0, off:off + HW2r, :]            # (HW2r, 4*cin) bf16
            d = jnp.dot(xs, w_ref[p], preferred_element_type=jnp.float32)
            acc = d if acc is None else acc + d
    if activation == "tanh":
        acc = jnp.tanh(acc)
    y_ref[0, :, :] = acc.astype(y_ref.dtype)
    if stats_ref:
        rid = jax.lax.broadcasted_iota(jnp.int32, (HW2r, 1), 0)
        m = jnp.logical_and(rid % Wp < W, rid < HW2).astype(jnp.float32)
        am = acc * m
        stats_ref[0][0, 0:1, :] = jnp.sum(am, axis=0, keepdims=True)
        stats_ref[0][0, 1:2, :] = jnp.sum(am * acc, axis=0, keepdims=True)


# ----------------------------------------------------------------------------
# Pallas wrappers
# ----------------------------------------------------------------------------
def conv1x1(x2, wmat):
    N, Z = x2.shape
    C = wmat.shape[1]
    return pl.pallas_call(
        _conv1x1_kernel,
        out_shape=(jax.ShapeDtypeStruct((N, C), jnp.bfloat16),
                   jax.ShapeDtypeStruct((2, C), jnp.float32)),
        grid=(1,),
        in_specs=[pl.BlockSpec((N, Z), lambda i: (0, 0)),
                  pl.BlockSpec((Z, C), lambda i: (0, 0))],
        out_specs=(pl.BlockSpec((N, C), lambda i: (0, 0)),
                   pl.BlockSpec((2, C), lambda i: (0, 0))),
    )(x2, wmat)


def convt_s2(xcat, wpk, *, H, W, HW2, HW2r, activation, with_stats):
    N, Rr, K4 = xcat.shape
    C4p = wpk.shape[-1]
    Wp = W + 2
    kern = functools.partial(_convt_s2_kernel, Wp=Wp, W=W, HW2=HW2,
                             HW2r=HW2r, activation=activation)
    y_shape = jax.ShapeDtypeStruct((N, HW2r, C4p), jnp.bfloat16)
    y_spec = pl.BlockSpec((1, HW2r, C4p), lambda n: (n, 0, 0))
    if with_stats:
        out_shape = (y_shape, jax.ShapeDtypeStruct((N, 2, C4p), jnp.float32))
        out_specs = (y_spec, pl.BlockSpec((1, 2, C4p), lambda n: (n, 0, 0)))
    else:
        out_shape = y_shape
        out_specs = y_spec
    return pl.pallas_call(
        kern,
        out_shape=out_shape,
        grid=(N,),
        in_specs=[pl.BlockSpec((1, Rr, K4), lambda n: (n, 0, 0)),
                  pl.BlockSpec((4, K4, C4p), lambda n: (0, 0, 0))],
        out_specs=out_specs,
        compiler_params=pltpu.CompilerParams(
            dimension_semantics=("parallel",)),
    )(xcat, wpk)


# ----------------------------------------------------------------------------
# Weight preprocessing (plain JAX, tiny)
# ----------------------------------------------------------------------------
def _conv1_weight(w, cp):
    """(cin, cout, 4, 4) -> (cin, 16*cp), column = (oh*4+ow)*cp + co."""
    cin, cout = w.shape[0], w.shape[1]
    wp = jnp.pad(w, ((0, 0), (0, cp - cout), (0, 0), (0, 0)))
    return jnp.transpose(wp, (0, 2, 3, 1)).reshape(cin, 16 * cp).astype(
        jnp.bfloat16)


def _convt_s2_weight_packed(w, C4p):
    """(cin, cout, 4, 4) -> (4, 4*cin, C4p) per-parity, parity-lane-offset."""
    cin, cout = w.shape[0], w.shape[1]
    parities = []
    for rh in range(2):
        for rw in range(2):
            p = rh * 2 + rw
            taps = []
            for dh in range(2):
                for dw in range(2):
                    kh = 3 - (2 * dh + rh)
                    kw = 3 - (2 * dw + rw)
                    taps.append(w[:, :, kh, kw])         # (cin, cout)
            blk = jnp.concatenate(taps, axis=0)          # (4*cin, cout)
            parities.append(
                jnp.pad(blk, ((0, 0), (p * cout, C4p - (p + 1) * cout))))
    return jnp.stack(parities, axis=0).astype(jnp.bfloat16)  # (4,4cin,C4p)


# ----------------------------------------------------------------------------
# Generator: parameters + forward
# ----------------------------------------------------------------------------
def init_generator_params(key, z_dim, channels_img, feats_g):
    cfg = [
        (z_dim,        feats_g * 16, True),   # 1x1   -> 4x4   (s=1, p=0)
        (feats_g * 16, feats_g * 8,  True),   # 4x4   -> 8x8
        (feats_g * 8,  feats_g * 4,  True),   # 8x8   -> 16x16
        (feats_g * 4,  feats_g * 2,  True),   # 16x16 -> 32x32
        (feats_g * 2,  channels_img, False),  # 32x32 -> 64x64, tanh
    ]
    params = []
    for (cin, cout, has_bn) in cfg:
        key, wk = jax.random.split(key)
        w = 0.05 * jax.random.normal(wk, (cin, cout, 4, 4), jnp.float32)
        params.append(dict(
            w=w,
            gamma=jnp.ones((cout,), jnp.float32) if has_bn else None,
            beta=jnp.zeros((cout,), jnp.float32) if has_bn else None))
    return params


def generator_forward(x_nchw, params):
    """x: (N, z_dim, 1, 1) NCHW -> (N, channels_img, 64, 64) NCHW."""
    eps = 1e-5
    N = x_nchw.shape[0]

    # ---------------- layer 0: ConvT(z, f*16, k=4, s=1, p=0) ----------------
    w0 = params[0]["w"]
    c1 = w0.shape[1]
    cp1 = _round_up(c1, 8)                       # 16*cp1 is a multiple of 128
    x2 = x_nchw.reshape(N, -1).astype(jnp.bfloat16)
    y, st = conv1x1(x2, _conv1_weight(w0, cp1))  # (N,16cp1) bf16, (2,16cp1) f32
    cnt = N * 16
    csum = st[0].reshape(16, cp1).sum(0)[:c1]
    csq = st[1].reshape(16, cp1).sum(0)[:c1]
    mean = csum / cnt
    var = jnp.maximum(csq / cnt - mean * mean, 0.0)   # biased, clamped
    scale_c = params[0]["gamma"] * jax.lax.rsqrt(var + eps)
    shift_c = params[0]["beta"] - mean * scale_c
    x_raw = y.reshape(N, 4, 4, cp1)[..., :c1]    # NHWC bf16, un-normalized

    # ---------------- layers 1..4: ConvT(k=4, s=2, p=1) ---------------------
    for li in range(1, 5):
        w = params[li]["w"]
        cin, cout = w.shape[0], w.shape[1]
        H, W = x_raw.shape[1], x_raw.shape[2]
        Wp = W + 2
        HW2 = H * Wp
        HW2r = _round_up(HW2, 8)
        Rr = _round_up(HW2r + Wp + 2, 8)
        C4p = _round_up(4 * cout, 128)

        # previous layer's BN apply + ReLU fused into the layout glue (XLA
        # folds the pointwise work into the pad / concat copies), then the
        # 4-tap concatenated bf16 input for the conv kernel is built.
        xn = jnp.maximum(x_raw.astype(jnp.float32) * scale_c + shift_c, 0.0)
        xn = xn.astype(jnp.bfloat16)
        xp = jnp.pad(xn, ((0, 0), (1, 1), (1, 1), (0, 0)))       # (N,H+2,Wp,cin)
        xf = xp.reshape(N, (H + 2) * Wp, cin)
        xf = jnp.pad(xf, ((0, 0), (0, Rr + Wp + 1 - (H + 2) * Wp), (0, 0)))
        xcat = jnp.concatenate(
            [xf[:, o:o + Rr, :] for o in (0, 1, Wp, Wp + 1)], axis=-1)

        wpk = _convt_s2_weight_packed(w, C4p)
        is_last = li == 4
        if is_last:
            y = convt_s2(xcat, wpk, H=H, W=W, HW2=HW2, HW2r=HW2r,
                         activation="tanh", with_stats=False)
        else:
            y, st = convt_s2(xcat, wpk, H=H, W=W, HW2=HW2, HW2r=HW2r,
                             activation=None, with_stats=True)
            cnt = N * 4 * H * W                  # = N * (2H) * (2W)
            csum = st[:, 0, :4 * cout].sum(0).reshape(4, cout).sum(0)
            csq = st[:, 1, :4 * cout].sum(0).reshape(4, cout).sum(0)
            mean = csum / cnt
            var = jnp.maximum(csq / cnt - mean * mean, 0.0)
            scale_c = params[li]["gamma"] * jax.lax.rsqrt(var + eps)
            shift_c = params[li]["beta"] - mean * scale_c

        # parity de-interleave + junk drop (bf16 layout glue).
        yv = y[:, :HW2, :4 * cout].reshape(N, H, Wp, 2, 2, cout)[:, :, :W]
        yv = jnp.transpose(yv, (0, 1, 3, 2, 4, 5))           # (N,H,2,W,2,co)
        x_raw = yv.reshape(N, 2 * H, 2 * W, cout)

    return jnp.transpose(x_raw, (0, 3, 1, 2)).astype(jnp.float32)  # NCHW f32


# ----------------------------------------------------------------------------
# Pure-JAX reference (same math, XLA convs) for a numerical self-check
# ----------------------------------------------------------------------------
def _reference_forward(x_nchw, params):
    eps = 1e-5
    strides = [1, 2, 2, 2, 2]
    pads = [0, 1, 1, 1, 1]
    x = x_nchw.astype(jnp.float32)
    for li, lp in enumerate(params):
        w = lp["w"]                                          # (cin, cout, 4, 4)
        s, p = strides[li], pads[li]
        pad = 4 - 1 - p
        wconv = jnp.transpose(w[:, :, ::-1, ::-1], (1, 0, 2, 3))  # OIHW
        y = jax.lax.conv_general_dilated(
            x, wconv, window_strides=(1, 1),
            padding=((pad, pad), (pad, pad)), lhs_dilation=(s, s),
            dimension_numbers=("NCHW", "OIHW", "NCHW"))
        if lp["gamma"] is not None:
            mean = y.mean(axis=(0, 2, 3), keepdims=True)
            var = ((y - mean) ** 2).mean(axis=(0, 2, 3), keepdims=True)
            y = (y - mean) * jax.lax.rsqrt(var + eps)
            y = y * lp["gamma"].reshape(1, -1, 1, 1) + lp["beta"].reshape(1, -1, 1, 1)
            y = jnp.maximum(y, 0.0)
        else:
            y = jnp.tanh(y)
        x = y
    return x


# ----------------------------------------------------------------------------
if __name__ == "__main__":
    Z_DIM = 32
    CHANNELS_IMG = 3
    FEATS_G = 8
    BATCH = 2

    key = jax.random.PRNGKey(0)
    pkey, xkey = jax.random.split(key)

    params = init_generator_params(pkey, Z_DIM, CHANNELS_IMG, FEATS_G)
    x = jax.random.normal(xkey, (BATCH, Z_DIM, 1, 1), jnp.float32)  # NCHW

    out = jax.jit(generator_forward)(x, params)
    out = jax.block_until_ready(out)

    assert out.shape == (BATCH, CHANNELS_IMG, 64, 64), out.shape
    assert bool(jnp.all(jnp.isfinite(out)))
    assert bool(jnp.all(jnp.abs(out) <= 1.0 + 1e-6))        # tanh range

    ref = jax.block_until_ready(jax.jit(_reference_forward)(x, params))
    max_err = float(jnp.max(jnp.abs(out - ref)))
    # bf16 activations / weights with f32 accumulation through 5 layers.
    assert max_err < 0.15, f"mismatch vs reference: {max_err}"

    print("KERNEL_OK")
</pallas_src>

<mosaic_0001>
module attributes {stable_mosaic.version = 11 : i64} {
  func.func @_conv1x1_kernel(%arg0: i32, %arg1: memref<2x32xbf16, #tpu.memory_space<vmem>>, %arg2: memref<32x2048xbf16, #tpu.memory_space<vmem>>, %arg3: memref<2x2048xbf16, #tpu.memory_space<vmem>>, %arg4: memref<2x2048xf32, #tpu.memory_space<vmem>>) attributes {dimension_semantics = [#tpu.dimension_semantics<arbitrary>], iteration_bounds = array<i64: 1>, scalar_prefetch = 0 : i64, scratch_operands = 0 : i64, tpu.core_type = #tpu.core_type<tc>, window_params = [{pipeline_mode = #tpu.pipeline_mode<synchronous>, transform_indices = @transform_0, window_bounds = array<i64: 2, 32>}, {pipeline_mode = #tpu.pipeline_mode<synchronous>, transform_indices = @transform_1, window_bounds = array<i64: 32, 2048>}, {pipeline_mode = #tpu.pipeline_mode<synchronous>, transform_indices = @transform_2, window_bounds = array<i64: 2, 2048>}, {pipeline_mode = #tpu.pipeline_mode<synchronous>, transform_indices = @transform_3, window_bounds = array<i64: 2, 2048>}]} {
    %c0 = arith.constant 0 : index
    %c0_0 = arith.constant 0 : index
    %0 = vector.load %arg1[%c0, %c0_0] : memref<2x32xbf16, #tpu.memory_space<vmem>>, vector<2x32xbf16>
    %c0_1 = arith.constant 0 : index
    %c0_2 = arith.constant 0 : index
    %1 = vector.load %arg2[%c0_1, %c0_2] : memref<32x2048xbf16, #tpu.memory_space<vmem>>, vector<32x2048xbf16>
    %cst = arith.constant dense<0.000000e+00> : vector<2x2048xf32>
    %2 = tpu.matmul %0, %1, %cst {dimension_numbers = #tpu.dot_dimension_numbers<[1], [0], [0], [1], [0, 0, 1, 1], [], []>} : vector<2x32xbf16>, vector<32x2048xbf16>, vector<2x2048xf32> -> vector<2x2048xf32>
    %3 = arith.truncf %2 : vector<2x2048xf32> to vector<2x2048xbf16>
    %c0_3 = arith.constant 0 : index
    %c0_4 = arith.constant 0 : index
    %4 = vector.load %arg3[%c0_3, %c0_4] : memref<2x2048xbf16, #tpu.memory_space<vmem>>, vector<2x2048xbf16>
    tpu.vector_store %arg3[%c0_3, %c0_4], %3 {strides = array<i32>} : memref<2x2048xbf16, #tpu.memory_space<vmem>>, vector<2x2048xbf16>,
    %cst_5 = arith.constant dense<0.000000e+00> : vector<2048xf32>
    %5 = vector.multi_reduction <add>, %2, %cst_5 [0] : vector<2x2048xf32> to vector<2048xf32>
    %6 = vector.shape_cast %5 : vector<2048xf32> to vector<1x2048xf32>
    %c0_6 = arith.constant 0 : index
    %c0_7 = arith.constant 0 : index
    %7 = vector.load %arg4[%c0_6, %c0_7] : memref<2x2048xf32, #tpu.memory_space<vmem>>, vector<1x2048xf32>
    tpu.vector_store %arg4[%c0_6, %c0_7], %6 {strides = array<i32>} : memref<2x2048xf32, #tpu.memory_space<vmem>>, vector<1x2048xf32>,
    %8 = arith.mulf %2, %2 : vector<2x2048xf32>
    %cst_8 = arith.constant dense<0.000000e+00> : vector<2048xf32>
    %9 = vector.multi_reduction <add>, %8, %cst_8 [0] : vector<2x2048xf32> to vector<2048xf32>
    %10 = vector.shape_cast %9 : vector<2048xf32> to vector<1x2048xf32>
    %c1 = arith.constant 1 : index
    %c0_9 = arith.constant 0 : index
    %11 = vector.load %arg4[%c1, %c0_9] : memref<2x2048xf32, #tpu.memory_space<vmem>>, vector<1x2048xf32>
    tpu.vector_store %arg4[%c1, %c0_9], %10 {strides = array<i32>} : memref<2x2048xf32, #tpu.memory_space<vmem>>, vector<1x2048xf32>,
    return
  }
  func.func @transform_0(%arg0: i32) -> (i32, i32) {
    %c0_i32 = arith.constant 0 : i32
    %c0_i32_0 = arith.constant 0 : i32
    %c0_i32_1 = arith.constant 0 : i32
    return %c0_i32, %c0_i32_0 : i32, i32
  }
  func.func @transform_1(%arg0: i32) -> (i32, i32) {
    %c0_i32 = arith.constant 0 : i32
    %c0_i32_0 = arith.constant 0 : i32
    %c0_i32_1 = arith.constant 0 : i32
    return %c0_i32, %c0_i32_0 : i32, i32
  }
  func.func @transform_2(%arg0: i32) -> (i32, i32) {
    %c0_i32 = arith.constant 0 : i32
    %c0_i32_0 = arith.constant 0 : i32
    %c0_i32_1 = arith.constant 0 : i32
    return %c0_i32, %c0_i32_0 : i32, i32
  }
  func.func @transform_3(%arg0: i32) -> (i32, i32) {
    %c0_i32 = arith.constant 0 : i32
    %c0_i32_0 = arith.constant 0 : i32
    %c0_i32_1 = arith.constant 0 : i32
    return %c0_i32, %c0_i32_0 : i32, i32
  }
}

module attributes {stable_mosaic.version = 11 : i64} {
  func.func @_convt_s2_kernel(%arg0: i32, %arg1: memref<1x32x512xbf16, #tpu.memory_space<vmem>>, %arg2: memref<4x512x256xbf16, #tpu.memory_space<vmem>>, %arg3: memref<1x24x256xbf16, #tpu.memory_space<vmem>>, %arg4: memref<1x2x256xf32, #tpu.memory_space<vmem>>) attributes {dimension_semantics = [#tpu.dimension_semantics<parallel>], iteration_bounds = array<i64: 2>, scalar_prefetch = 0 : i64, scratch_operands = 0 : i64, tpu.core_type = #tpu.core_type<tc>, window_params = [{transform_indices = @transform_0, window_bounds = array<i64: 1, 32, 512>}, {pipeline_mode = #tpu.pipeline_mode<synchronous>, transform_indices = @transform_1, window_bounds = array<i64: 4, 512, 256>}, {transform_indices = @transform_2, window_bounds = array<i64: 1, 24, 256>}, {transform_indices = @transform_3, window_bounds = array<i64: 1, 2, 256>}]} {
    %c0 = arith.constant 0 : index
    %c0_0 = arith.constant 0 : index
    %c0_1 = arith.constant 0 : index
    %0 = vector.load %arg1[%c0, %c0_0, %c0_1] : memref<1x32x512xbf16, #tpu.memory_space<vmem>>, vector<1x24x512xbf16>
    %1 = vector.shape_cast %0 : vector<1x24x512xbf16> to vector<24x512xbf16>
    %c0_2 = arith.constant 0 : index
    %c0_3 = arith.constant 0 : index
    %c0_4 = arith.constant 0 : index
    %2 = vector.load %arg2[%c0_2, %c0_3, %c0_4] : memref<4x512x256xbf16, #tpu.memory_space<vmem>>, vector<1x512x256xbf16>
    %3 = vector.shape_cast %2 : vector<1x512x256xbf16> to vector<512x256xbf16>
    %cst = arith.constant dense<0.000000e+00> : vector<24x256xf32>
    %4 = tpu.matmul %1, %3, %cst {dimension_numbers = #tpu.dot_dimension_numbers<[1], [0], [0], [1], [0, 0, 1, 1], [], []>} : vector<24x512xbf16>, vector<512x256xbf16>, vector<24x256xf32> -> vector<24x256xf32>
    %c0_5 = arith.constant 0 : index
    %c1 = arith.constant 1 : index
    %c0_6 = arith.constant 0 : index
    %5 = vector.load %arg1[%c0_5, %c1, %c0_6] : memref<1x32x512xbf16, #tpu.memory_space<vmem>>, vector<1x24x512xbf16>
    %6 = vector.shape_cast %5 : vector<1x24x512xbf16> to vector<24x512xbf16>
    %c1_7 = arith.constant 1 : index
    %c0_8 = arith.constant 0 : index
    %c0_9 = arith.constant 0 : index
    %7 = vector.load %arg2[%c1_7, %c0_8, %c0_9] : memref<4x512x256xbf16, #tpu.memory_space<vmem>>, vector<1x512x256xbf16>
    %8 = vector.shape_cast %7 : vector<1x512x256xbf16> to vector<512x256xbf16>
    %cst_10 = arith.constant dense<0.000000e+00> : vector<24x256xf32>
    %9 = tpu.matmul %6, %8, %cst_10 {dimension_numbers = #tpu.dot_dimension_numbers<[1], [0], [0], [1], [0, 0, 1, 1], [], []>} : vector<24x512xbf16>, vector<512x256xbf16>, vector<24x256xf32> -> vector<24x256xf32>
    %10 = arith.addf %4, %9 : vector<24x256xf32>
    %c0_11 = arith.constant 0 : index
    %c6 = arith.constant 6 : index
    %c0_12 = arith.constant 0 : index
    %11 = vector.load %arg1[%c0_11, %c6, %c0_12] : memref<1x32x512xbf16, #tpu.memory_space<vmem>>, vector<1x24x512xbf16>
    %12 = vector.shape_cast %11 : vector<1x24x512xbf16> to vector<24x512xbf16>
    %c2 = arith.constant 2 : index
    %c0_13 = arith.constant 0 : index
    %c0_14 = arith.constant 0 : index
    %13 = vector.load %arg2[%c2, %c0_13, %c0_14] : memref<4x512x256xbf16, #tpu.memory_space<vmem>>, vector<1x512x256xbf16>
    %14 = vector.shape_cast %13 : vector<1x512x256xbf16> to vector<512x256xbf16>
    %cst_15 = arith.constant dense<0.000000e+00> : vector<24x256xf32>
    %15 = tpu.matmul %12, %14, %cst_15 {dimension_numbers = #tpu.dot_dimension_numbers<[1], [0], [0], [1], [0, 0, 1, 1], [], []>} : vector<24x512xbf16>, vector<512x256xbf16>, vector<24x256xf32> -> vector<24x256xf32>
    %16 = arith.addf %10, %15 : vector<24x256xf32>
    %c0_16 = arith.constant 0 : index
    %c7 = arith.constant 7 : index
    %c0_17 = arith.constant 0 : index
    %17 = vector.load %arg1[%c0_16, %c7, %c0_17] : memref<1x32x512xbf16, #tpu.memory_space<vmem>>, vector<1x24x512xbf16>
    %18 = vector.shape_cast %17 : vector<1x24x512xbf16> to vector<24x512xbf16>
    %c3 = arith.constant 3 : index
    %c0_18 = arith.constant 0 : index
    %c0_19 = arith.constant 0 : index
    %19 = vector.load %arg2[%c3, %c0_18, %c0_19] : memref<4x512x256xbf16, #tpu.memory_space<vmem>>, vector<1x512x256xbf16>
    %20 = vector.shape_cast %19 : vector<1x512x256xbf16> to vector<512x256xbf16>
    %cst_20 = arith.constant dense<0.000000e+00> : vector<24x256xf32>
    %21 = tpu.matmul %18, %20, %cst_20 {dimension_numbers = #tpu.dot_dimension_numbers<[1], [0], [0], [1], [0, 0, 1, 1], [], []>} : vector<24x512xbf16>, vector<512x256xbf16>, vector<24x256xf32> -> vector<24x256xf32>
    %22 = arith.addf %16, %21 : vector<24x256xf32>
    %23 = arith.truncf %22 : vector<24x256xf32> to vector<24x256xbf16>
    %c0_21 = arith.constant 0 : index
    %c0_22 = arith.constant 0 : index
    %c0_23 = arith.constant 0 : index
    %24 = vector.load %arg3[%c0_21, %c0_22, %c0_23] : memref<1x24x256xbf16, #tpu.memory_space<vmem>>, vector<1x24x256xbf16>
    %25 = vector.shape_cast %24 : vector<1x24x256xbf16> to vector<24x256xbf16>
    %26 = vector.shape_cast %23 : vector<24x256xbf16> to vector<1x24x256xbf16>
    tpu.vector_store %arg3[%c0_21, %c0_22, %c0_23], %26 {strides = array<i32>} : memref<1x24x256xbf16, #tpu.memory_space<vmem>>, vector<1x24x256xbf16>,
    %27 = tpu.iota {dimensions = array<i32: 0>} : vector<24x1xi32>
    %c6_i32 = arith.constant 6 : i32
    %c0_i32 = arith.constant 0 : i32
    %28 = arith.cmpi eq, %c6_i32, %c0_i32 : i32
    %c1_i32 = arith.constant 1 : i32
    %29 = arith.select %28, %c1_i32, %c6_i32 : i32
    %30 = vector.broadcast %29 : i32 to vector<24x1xi32>
    %31 = arith.remsi %27, %30 : vector<24x1xi32>
    %c0_i32_24 = arith.constant 0 : i32
    %32 = vector.broadcast %c0_i32_24 : i32 to vector<24x1xi32>
    %33 = arith.cmpi ne, %31, %32 : vector<24x1xi32>
    %c0_i32_25 = arith.constant 0 : i32
    %34 = vector.broadcast %c0_i32_25 : i32 to vector<24x1xi32>
    %35 = arith.cmpi slt, %31, %34 : vector<24x1xi32>
    %c0_i32_26 = arith.constant 0 : i32
    %36 = arith.cmpi slt, %29, %c0_i32_26 : i32
    %37 = vector.broadcast %36 : i1 to vector<24x1xi1>
    %38 = vector.broadcast %37 : vector<24x1xi1> to vector<24x1xi1>
    %39 = arith.xori %35, %38 : vector<24x1xi1>
    %40 = arith.andi %39, %33 : vector<24x1xi1>
    %41 = vector.broadcast %29 : i32 to vector<24x1xi32>
    %42 = arith.addi %31, %41 : vector<24x1xi32>
    %43 = arith.select %40, %42, %31 : vector<24x1xi1>, vector<24x1xi32>
    %c4_i32 = arith.constant 4 : i32
    %44 = vector.broadcast %c4_i32 : i32 to vector<24x1xi32>
    %45 = arith.cmpi slt, %43, %44 : vector<24x1xi32>
    %c24_i32 = arith.constant 24 : i32
    %46 = vector.broadcast %c24_i32 : i32 to vector<24x1xi32>
    %47 = arith.cmpi slt, %27, %46 : vector<24x1xi32>
    %48 = arith.andi %45, %47 : vector<24x1xi1>
    %49 = arith.extui %48 : vector<24x1xi1> to vector<24x1xi32>
    %50 = arith.sitofp %49 : vector<24x1xi32> to vector<24x1xf32>
    %51 = vector.broadcast %50 : vector<24x1xf32> to vector<24x256xf32>
    %52 = arith.mulf %22, %51 : vector<24x256xf32>
    %cst_27 = arith.constant dense<0.000000e+00> : vector<256xf32>
    %53 = vector.multi_reduction <add>, %52, %cst_27 [0] : vector<24x256xf32> to vector<256xf32>
    %54 = vector.shape_cast %53 : vector<256xf32> to vector<1x256xf32>
    %c0_28 = arith.constant 0 : index
    %c0_29 = arith.constant 0 : index
    %c0_30 = arith.constant 0 : index
    %55 = vector.load %arg4[%c0_28, %c0_29, %c0_30] : memref<1x2x256xf32, #tpu.memory_space<vmem>>, vector<1x1x256xf32>
    %56 = vector.shape_cast %55 : vector<1x1x256xf32> to vector<1x256xf32>
    %57 = vector.shape_cast %54 : vector<1x256xf32> to vector<1x1x256xf32>
    tpu.vector_store %arg4[%c0_28, %c0_29, %c0_30], %57 {strides = array<i32>} : memref<1x2x256xf32, #tpu.memory_space<vmem>>, vector<1x1x256xf32>,
    %58 = arith.mulf %52, %22 : vector<24x256xf32>
    %cst_31 = arith.constant dense<0.000000e+00> : vector<256xf32>
    %59 = vector.multi_reduction <add>, %58, %cst_31 [0] : vector<24x256xf32> to vector<256xf32>
    %60 = vector.shape_cast %59 : vector<256xf32> to vector<1x256xf32>
    %c0_32 = arith.constant 0 : index
    %c1_33 = arith.constant 1 : index
    %c0_34 = arith.constant 0 : index
    %61 = vector.load %arg4[%c0_32, %c1_33, %c0_34] : memref<1x2x256xf32, #tpu.memory_space<vmem>>, vector<1x1x256xf32>
    %62 = vector.shape_cast %61 : vector<1x1x256xf32> to vector<1x256xf32>
    %63 = vector.shape_cast %60 : vector<1x256xf32> to vector<1x1x256xf32>
    tpu.vector_store %arg4[%c0_32, %c1_33, %c0_34], %63 {strides = array<i32>} : memref<1x2x256xf32, #tpu.memory_space<vmem>>, vector<1x1x256xf32>,
    return
  }
  func.func @transform_0(%arg0: i32) -> (i32, i32, i32) {
    %c0_i32 = arith.constant 0 : i32
    %c0_i32_0 = arith.constant 0 : i32
    %c0_i32_1 = arith.constant 0 : i32
    return %arg0, %c0_i32, %c0_i32_0 : i32, i32, i32
  }
  func.func @transform_1(%arg0: i32) -> (i32, i32, i32) {
    %c0_i32 = arith.constant 0 : i32
    %c0_i32_0 = arith.constant 0 : i32
    %c0_i32_1 = arith.constant 0 : i32
    %c0_i32_2 = arith.constant 0 : i32
    return %c0_i32, %c0_i32_0, %c0_i32_1 : i32, i32, i32
  }
  func.func @transform_2(%arg0: i32) -> (i32, i32, i32) {
    %c0_i32 = arith.constant 0 : i32
    %c0_i32_0 = arith.constant 0 : i32
    %c0_i32_1 = arith.constant 0 : i32
    return %arg0, %c0_i32, %c0_i32_0 : i32, i32, i32
  }
  func.func @transform_3(%arg0: i32) -> (i32, i32, i32) {
    %c0_i32 = arith.constant 0 : i32
    %c0_i32_0 = arith.constant 0 : i32
    %c0_i32_1 = arith.constant 0 : i32
    return %arg0, %c0_i32, %c0_i32_0 : i32, i32, i32
  }
}

module attributes {stable_mosaic.version = 11 : i64} {
  func.func @_convt_s2_kernel(%arg0: i32, %arg1: memref<1x96x256xbf16, #tpu.memory_space<vmem>>, %arg2: memref<4x256x128xbf16, #tpu.memory_space<vmem>>, %arg3: memref<1x80x128xbf16, #tpu.memory_space<vmem>>, %arg4: memref<1x2x128xf32, #tpu.memory_space<vmem>>) attributes {dimension_semantics = [#tpu.dimension_semantics<parallel>], iteration_bounds = array<i64: 2>, scalar_prefetch = 0 : i64, scratch_operands = 0 : i64, tpu.core_type = #tpu.core_type<tc>, window_params = [{transform_indices = @transform_0, window_bounds = array<i64: 1, 96, 256>}, {pipeline_mode = #tpu.pipeline_mode<synchronous>, transform_indices = @transform_1, window_bounds = array<i64: 4, 256, 128>}, {transform_indices = @transform_2, window_bounds = array<i64: 1, 80, 128>}, {transform_indices = @transform_3, window_bounds = array<i64: 1, 2, 128>}]} {
    %c0 = arith.constant 0 : index
    %c0_0 = arith.constant 0 : index
    %c0_1 = arith.constant 0 : index
    %0 = vector.load %arg1[%c0, %c0_0, %c0_1] : memref<1x96x256xbf16, #tpu.memory_space<vmem>>, vector<1x80x256xbf16>
    %1 = vector.shape_cast %0 : vector<1x80x256xbf16> to vector<80x256xbf16>
    %c0_2 = arith.constant 0 : index
    %c0_3 = arith.constant 0 : index
    %c0_4 = arith.constant 0 : index
    %2 = vector.load %arg2[%c0_2, %c0_3, %c0_4] : memref<4x256x128xbf16, #tpu.memory_space<vmem>>, vector<1x256x128xbf16>
    %3 = vector.shape_cast %2 : vector<1x256x128xbf16> to vector<256x128xbf16>
    %cst = arith.constant dense<0.000000e+00> : vector<80x128xf32>
    %4 = tpu.matmul %1, %3, %cst {dimension_numbers = #tpu.dot_dimension_numbers<[1], [0], [0], [1], [0, 0, 1, 1], [], []>} : vector<80x256xbf16>, vector<256x128xbf16>, vector<80x128xf32> -> vector<80x128xf32>
    %c0_5 = arith.constant 0 : index
    %c1 = arith.constant 1 : index
    %c0_6 = arith.constant 0 : index
    %5 = vector.load %arg1[%c0_5, %c1, %c0_6] : memref<1x96x256xbf16, #tpu.memory_space<vmem>>, vector<1x80x256xbf16>
    %6 = vector.shape_cast %5 : vector<1x80x256xbf16> to vector<80x256xbf16>
    %c1_7 = arith.constant 1 : index
    %c0_8 = arith.constant 0 : index
    %c0_9 = arith.constant 0 : index
    %7 = vector.load %arg2[%c1_7, %c0_8, %c0_9] : memref<4x256x128xbf16, #tpu.memory_space<vmem>>, vector<1x256x128xbf16>
    %8 = vector.shape_cast %7 : vector<1x256x128xbf16> to vector<256x128xbf16>
    %cst_10 = arith.constant dense<0.000000e+00> : vector<80x128xf32>
    %9 = tpu.matmul %6, %8, %cst_10 {dimension_numbers = #tpu.dot_dimension_numbers<[1], [0], [0], [1], [0, 0, 1, 1], [], []>} : vector<80x256xbf16>, vector<256x128xbf16>, vector<80x128xf32> -> vector<80x128xf32>
    %10 = arith.addf %4, %9 : vector<80x128xf32>
    %c0_11 = arith.constant 0 : index
    %c10 = arith.constant 10 : index
    %c0_12 = arith.constant 0 : index
    %11 = vector.load %arg1[%c0_11, %c10, %c0_12] : memref<1x96x256xbf16, #tpu.memory_space<vmem>>, vector<1x80x256xbf16>
    %12 = vector.shape_cast %11 : vector<1x80x256xbf16> to vector<80x256xbf16>
    %c2 = arith.constant 2 : index
    %c0_13 = arith.constant 0 : index
    %c0_14 = arith.constant 0 : index
    %13 = vector.load %arg2[%c2, %c0_13, %c0_14] : memref<4x256x128xbf16, #tpu.memory_space<vmem>>, vector<1x256x128xbf16>
    %14 = vector.shape_cast %13 : vector<1x256x128xbf16> to vector<256x128xbf16>
    %cst_15 = arith.constant dense<0.000000e+00> : vector<80x128xf32>
    %15 = tpu.matmul %12, %14, %cst_15 {dimension_numbers = #tpu.dot_dimension_numbers<[1], [0], [0], [1], [0, 0, 1, 1], [], []>} : vector<80x256xbf16>, vector<256x128xbf16>, vector<80x128xf32> -> vector<80x128xf32>
    %16 = arith.addf %10, %15 : vector<80x128xf32>
    %c0_16 = arith.constant 0 : index
    %c11 = arith.constant 11 : index
    %c0_17 = arith.constant 0 : index
    %17 = vector.load %arg1[%c0_16, %c11, %c0_17] : memref<1x96x256xbf16, #tpu.memory_space<vmem>>, vector<1x80x256xbf16>
    %18 = vector.shape_cast %17 : vector<1x80x256xbf16> to vector<80x256xbf16>
    %c3 = arith.constant 3 : index
    %c0_18 = arith.constant 0 : index
    %c0_19 = arith.constant 0 : index
    %19 = vector.load %arg2[%c3, %c0_18, %c0_19] : memref<4x256x128xbf16, #tpu.memory_space<vmem>>, vector<1x256x128xbf16>
    %20 = vector.shape_cast %19 : vector<1x256x128xbf16> to vector<256x128xbf16>
    %cst_20 = arith.constant dense<0.000000e+00> : vector<80x128xf32>
    %21 = tpu.matmul %18, %20, %cst_20 {dimension_numbers = #tpu.dot_dimension_numbers<[1], [0], [0], [1], [0, 0, 1, 1], [], []>} : vector<80x256xbf16>, vector<256x128xbf16>, vector<80x128xf32> -> vector<80x128xf32>
    %22 = arith.addf %16, %21 : vector<80x128xf32>
    %23 = arith.truncf %22 : vector<80x128xf32> to vector<80x128xbf16>
    %c0_21 = arith.constant 0 : index
    %c0_22 = arith.constant 0 : index
    %c0_23 = arith.constant 0 : index
    %24 = vector.load %arg3[%c0_21, %c0_22, %c0_23] : memref<1x80x128xbf16, #tpu.memory_space<vmem>>, vector<1x80x128xbf16>
    %25 = vector.shape_cast %24 : vector<1x80x128xbf16> to vector<80x128xbf16>
    %26 = vector.shape_cast %23 : vector<80x128xbf16> to vector<1x80x128xbf16>
    tpu.vector_store %arg3[%c0_21, %c0_22, %c0_23], %26 {strides = array<i32>} : memref<1x80x128xbf16, #tpu.memory_space<vmem>>, vector<1x80x128xbf16>,
    %27 = tpu.iota {dimensions = array<i32: 0>} : vector<80x1xi32>
    %c10_i32 = arith.constant 10 : i32
    %c0_i32 = arith.constant 0 : i32
    %28 = arith.cmpi eq, %c10_i32, %c0_i32 : i32
    %c1_i32 = arith.constant 1 : i32
    %29 = arith.select %28, %c1_i32, %c10_i32 : i32
    %30 = vector.broadcast %29 : i32 to vector<80x1xi32>
    %31 = arith.remsi %27, %30 : vector<80x1xi32>
    %c0_i32_24 = arith.constant 0 : i32
    %32 = vector.broadcast %c0_i32_24 : i32 to vector<80x1xi32>
    %33 = arith.cmpi ne, %31, %32 : vector<80x1xi32>
    %c0_i32_25 = arith.constant 0 : i32
    %34 = vector.broadcast %c0_i32_25 : i32 to vector<80x1xi32>
    %35 = arith.cmpi slt, %31, %34 : vector<80x1xi32>
    %c0_i32_26 = arith.constant 0 : i32
    %36 = arith.cmpi slt, %29, %c0_i32_26 : i32
    %37 = vector.broadcast %36 : i1 to vector<80x1xi1>
    %38 = vector.broadcast %37 : vector<80x1xi1> to vector<80x1xi1>
    %39 = arith.xori %35, %38 : vector<80x1xi1>
    %40 = arith.andi %39, %33 : vector<80x1xi1>
    %41 = vector.broadcast %29 : i32 to vector<80x1xi32>
    %42 = arith.addi %31, %41 : vector<80x1xi32>
    %43 = arith.select %40, %42, %31 : vector<80x1xi1>, vector<80x1xi32>
    %c8_i32 = arith.constant 8 : i32
    %44 = vector.broadcast %c8_i32 : i32 to vector<80x1xi32>
    %45 = arith.cmpi slt, %43, %44 : vector<80x1xi32>
    %c80_i32 = arith.constant 80 : i32
    %46 = vector.broadcast %c80_i32 : i32 to vector<80x1xi32>
    %47 = arith.cmpi slt, %27, %46 : vector<80x1xi32>
    %48 = arith.andi %45, %47 : vector<80x1xi1>
    %49 = arith.extui %48 : vector<80x1xi1> to vector<80x1xi32>
    %50 = arith.sitofp %49 : vector<80x1xi32> to vector<80x1xf32>
    %51 = vector.broadcast %50 : vector<80x1xf32> to vector<80x128xf32>
    %52 = arith.mulf %22, %51 : vector<80x128xf32>
    %cst_27 = arith.constant dense<0.000000e+00> : vector<128xf32>
    %53 = vector.multi_reduction <add>, %52, %cst_27 [0] : vector<80x128xf32> to vector<128xf32>
    %54 = vector.shape_cast %53 : vector<128xf32> to vector<1x128xf32>
    %c0_28 = arith.constant 0 : index
    %c0_29 = arith.constant 0 : index
    %c0_30 = arith.constant 0 : index
    %55 = vector.load %arg4[%c0_28, %c0_29, %c0_30] : memref<1x2x128xf32, #tpu.memory_space<vmem>>, vector<1x1x128xf32>
    %56 = vector.shape_cast %55 : vector<1x1x128xf32> to vector<1x128xf32>
    %57 = vector.shape_cast %54 : vector<1x128xf32> to vector<1x1x128xf32>
    tpu.vector_store %arg4[%c0_28, %c0_29, %c0_30], %57 {strides = array<i32>} : memref<1x2x128xf32, #tpu.memory_space<vmem>>, vector<1x1x128xf32>,
    %58 = arith.mulf %52, %22 : vector<80x128xf32>
    %cst_31 = arith.constant dense<0.000000e+00> : vector<128xf32>
    %59 = vector.multi_reduction <add>, %58, %cst_31 [0] : vector<80x128xf32> to vector<128xf32>
    %60 = vector.shape_cast %59 : vector<128xf32> to vector<1x128xf32>
    %c0_32 = arith.constant 0 : index
    %c1_33 = arith.constant 1 : index
    %c0_34 = arith.constant 0 : index
    %61 = vector.load %arg4[%c0_32, %c1_33, %c0_34] : memref<1x2x128xf32, #tpu.memory_space<vmem>>, vector<1x1x128xf32>
    %62 = vector.shape_cast %61 : vector<1x1x128xf32> to vector<1x128xf32>
    %63 = vector.shape_cast %60 : vector<1x128xf32> to vector<1x1x128xf32>
    tpu.vector_store %arg4[%c0_32, %c1_33, %c0_34], %63 {strides = array<i32>} : memref<1x2x128xf32, #tpu.memory_space<vmem>>, vector<1x1x128xf32>,
    return
  }
  func.func @transform_0(%arg0: i32) -> (i32, i32, i32) {
    %c0_i32 = arith.constant 0 : i32
    %c0_i32_0 = arith.constant 0 : i32
    %c0_i32_1 = arith.constant 0 : i32
    return %arg0, %c0_i32, %c0_i32_0 : i32, i32, i32
  }
  func.func @transform_1(%arg0: i32) -> (i32, i32, i32) {
    %c0_i32 = arith.constant 0 : i32
    %c0_i32_0 = arith.constant 0 : i32
    %c0_i32_1 = arith.constant 0 : i32
    %c0_i32_2 = arith.constant 0 : i32
    return %c0_i32, %c0_i32_0, %c0_i32_1 : i32, i32, i32
  }
  func.func @transform_2(%arg0: i32) -> (i32, i32, i32) {
    %c0_i32 = arith.constant 0 : i32
    %c0_i32_0 = arith.constant 0 : i32
    %c0_i32_1 = arith.constant 0 : i32
    return %arg0, %c0_i32, %c0_i32_0 : i32, i32, i32
  }
  func.func @transform_3(%arg0: i32) -> (i32, i32, i32) {
    %c0_i32 = arith.constant 0 : i32
    %c0_i32_0 = arith.constant 0 : i32
    %c0_i32_1 = arith.constant 0 : i32
    return %arg0, %c0_i32, %c0_i32_0 : i32, i32, i32
  }
}

module attributes {stable_mosaic.version = 11 : i64} {
  func.func @_convt_s2_kernel(%arg0: i32, %arg1: memref<1x312x128xbf16, #tpu.memory_space<vmem>>, %arg2: memref<4x128x128xbf16, #tpu.memory_space<vmem>>, %arg3: memref<1x288x128xbf16, #tpu.memory_space<vmem>>, %arg4: memref<1x2x128xf32, #tpu.memory_space<vmem>>) attributes {dimension_semantics = [#tpu.dimension_semantics<parallel>], iteration_bounds = array<i64: 2>, scalar_prefetch = 0 : i64, scratch_operands = 0 : i64, tpu.core_type = #tpu.core_type<tc>, window_params = [{transform_indices = @transform_0, window_bounds = array<i64: 1, 312, 128>}, {pipeline_mode = #tpu.pipeline_mode<synchronous>, transform_indices = @transform_1, window_bounds = array<i64: 4, 128, 128>}, {transform_indices = @transform_2, window_bounds = array<i64: 1, 288, 128>}, {transform_indices = @transform_3, window_bounds = array<i64: 1, 2, 128>}]} {
    %c0 = arith.constant 0 : index
    %c0_0 = arith.constant 0 : index
    %c0_1 = arith.constant 0 : index
    %0 = vector.load %arg1[%c0, %c0_0, %c0_1] : memref<1x312x128xbf16, #tpu.memory_space<vmem>>, vector<1x288x128xbf16>
    %1 = vector.shape_cast %0 : vector<1x288x128xbf16> to vector<288x128xbf16>
    %c0_2 = arith.constant 0 : index
    %c0_3 = arith.constant 0 : index
    %c0_4 = arith.constant 0 : index
    %2 = vector.load %arg2[%c0_2, %c0_3, %c0_4] : memref<4x128x128xbf16, #tpu.memory_space<vmem>>, vector<1x128x128xbf16>
    %3 = vector.shape_cast %2 : vector<1x128x128xbf16> to vector<128x128xbf16>
    %cst = arith.constant dense<0.000000e+00> : vector<288x128xf32>
    %4 = tpu.matmul %1, %3, %cst {dimension_numbers = #tpu.dot_dimension_numbers<[1], [0], [0], [1], [0, 0, 1, 1], [], []>} : vector<288x128xbf16>, vector<128x128xbf16>, vector<288x128xf32> -> vector<288x128xf32>
    %c0_5 = arith.constant 0 : index
    %c1 = arith.constant 1 : index
    %c0_6 = arith.constant 0 : index
    %5 = vector.load %arg1[%c0_5, %c1, %c0_6] : memref<1x312x128xbf16, #tpu.memory_space<vmem>>, vector<1x288x128xbf16>
    %6 = vector.shape_cast %5 : vector<1x288x128xbf16> to vector<288x128xbf16>
    %c1_7 = arith.constant 1 : index
    %c0_8 = arith.constant 0 : index
    %c0_9 = arith.constant 0 : index
    %7 = vector.load %arg2[%c1_7, %c0_8, %c0_9] : memref<4x128x128xbf16, #tpu.memory_space<vmem>>, vector<1x128x128xbf16>
    %8 = vector.shape_cast %7 : vector<1x128x128xbf16> to vector<128x128xbf16>
    %cst_10 = arith.constant dense<0.000000e+00> : vector<288x128xf32>
    %9 = tpu.matmul %6, %8, %cst_10 {dimension_numbers = #tpu.dot_dimension_numbers<[1], [0], [0], [1], [0, 0, 1, 1], [], []>} : vector<288x128xbf16>, vector<128x128xbf16>, vector<288x128xf32> -> vector<288x128xf32>
    %10 = arith.addf %4, %9 : vector<288x128xf32>
    %c0_11 = arith.constant 0 : index
    %c18 = arith.constant 18 : index
    %c0_12 = arith.constant 0 : index
    %11 = vector.load %arg1[%c0_11, %c18, %c0_12] : memref<1x312x128xbf16, #tpu.memory_space<vmem>>, vector<1x288x128xbf16>
    %12 = vector.shape_cast %11 : vector<1x288x128xbf16> to vector<288x128xbf16>
    %c2 = arith.constant 2 : index
    %c0_13 = arith.constant 0 : index
    %c0_14 = arith.constant 0 : index
    %13 = vector.load %arg2[%c2, %c0_13, %c0_14] : memref<4x128x128xbf16, #tpu.memory_space<vmem>>, vector<1x128x128xbf16>
    %14 = vector.shape_cast %13 : vector<1x128x128xbf16> to vector<128x128xbf16>
    %cst_15 = arith.constant dense<0.000000e+00> : vector<288x128xf32>
    %15 = tpu.matmul %12, %14, %cst_15 {dimension_numbers = #tpu.dot_dimension_numbers<[1], [0], [0], [1], [0, 0, 1, 1], [], []>} : vector<288x128xbf16>, vector<128x128xbf16>, vector<288x128xf32> -> vector<288x128xf32>
    %16 = arith.addf %10, %15 : vector<288x128xf32>
    %c0_16 = arith.constant 0 : index
    %c19 = arith.constant 19 : index
    %c0_17 = arith.constant 0 : index
    %17 = vector.load %arg1[%c0_16, %c19, %c0_17] : memref<1x312x128xbf16, #tpu.memory_space<vmem>>, vector<1x288x128xbf16>
    %18 = vector.shape_cast %17 : vector<1x288x128xbf16> to vector<288x128xbf16>
    %c3 = arith.constant 3 : index
    %c0_18 = arith.constant 0 : index
    %c0_19 = arith.constant 0 : index
    %19 = vector.load %arg2[%c3, %c0_18, %c0_19] : memref<4x128x128xbf16, #tpu.memory_space<vmem>>, vector<1x128x128xbf16>
    %20 = vector.shape_cast %19 : vector<1x128x128xbf16> to vector<128x128xbf16>
    %cst_20 = arith.constant dense<0.000000e+00> : vector<288x128xf32>
    %21 = tpu.matmul %18, %20, %cst_20 {dimension_numbers = #tpu.dot_dimension_numbers<[1], [0], [0], [1], [0, 0, 1, 1], [], []>} : vector<288x128xbf16>, vector<128x128xbf16>, vector<288x128xf32> -> vector<288x128xf32>
    %22 = arith.addf %16, %21 : vector<288x128xf32>
    %23 = arith.truncf %22 : vector<288x128xf32> to vector<288x128xbf16>
    %c0_21 = arith.constant 0 : index
    %c0_22 = arith.constant 0 : index
    %c0_23 = arith.constant 0 : index
    %24 = vector.load %arg3[%c0_21, %c0_22, %c0_23] : memref<1x288x128xbf16, #tpu.memory_space<vmem>>, vector<1x288x128xbf16>
    %25 = vector.shape_cast %24 : vector<1x288x128xbf16> to vector<288x128xbf16>
    %26 = vector.shape_cast %23 : vector<288x128xbf16> to vector<1x288x128xbf16>
    tpu.vector_store %arg3[%c0_21, %c0_22, %c0_23], %26 {strides = array<i32>} : memref<1x288x128xbf16, #tpu.memory_space<vmem>>, vector<1x288x128xbf16>,
    %27 = tpu.iota {dimensions = array<i32: 0>} : vector<288x1xi32>
    %c18_i32 = arith.constant 18 : i32
    %c0_i32 = arith.constant 0 : i32
    %28 = arith.cmpi eq, %c18_i32, %c0_i32 : i32
    %c1_i32 = arith.constant 1 : i32
    %29 = arith.select %28, %c1_i32, %c18_i32 : i32
    %30 = vector.broadcast %29 : i32 to vector<288x1xi32>
    %31 = arith.remsi %27, %30 : vector<288x1xi32>
    %c0_i32_24 = arith.constant 0 : i32
    %32 = vector.broadcast %c0_i32_24 : i32 to vector<288x1xi32>
    %33 = arith.cmpi ne, %31, %32 : vector<288x1xi32>
    %c0_i32_25 = arith.constant 0 : i32
    %34 = vector.broadcast %c0_i32_25 : i32 to vector<288x1xi32>
    %35 = arith.cmpi slt, %31, %34 : vector<288x1xi32>
    %c0_i32_26 = arith.constant 0 : i32
    %36 = arith.cmpi slt, %29, %c0_i32_26 : i32
    %37 = vector.broadcast %36 : i1 to vector<288x1xi1>
    %38 = vector.broadcast %37 : vector<288x1xi1> to vector<288x1xi1>
    %39 = arith.xori %35, %38 : vector<288x1xi1>
    %40 = arith.andi %39, %33 : vector<288x1xi1>
    %41 = vector.broadcast %29 : i32 to vector<288x1xi32>
    %42 = arith.addi %31, %41 : vector<288x1xi32>
    %43 = arith.select %40, %42, %31 : vector<288x1xi1>, vector<288x1xi32>
    %c16_i32 = arith.constant 16 : i32
    %44 = vector.broadcast %c16_i32 : i32 to vector<288x1xi32>
    %45 = arith.cmpi slt, %43, %44 : vector<288x1xi32>
    %c288_i32 = arith.constant 288 : i32
    %46 = vector.broadcast %c288_i32 : i32 to vector<288x1xi32>
    %47 = arith.cmpi slt, %27, %46 : vector<288x1xi32>
    %48 = arith.andi %45, %47 : vector<288x1xi1>
    %49 = arith.extui %48 : vector<288x1xi1> to vector<288x1xi32>
    %50 = arith.sitofp %49 : vector<288x1xi32> to vector<288x1xf32>
    %51 = vector.broadcast %50 : vector<288x1xf32> to vector<288x128xf32>
    %52 = arith.mulf %22, %51 : vector<288x128xf32>
    %cst_27 = arith.constant dense<0.000000e+00> : vector<128xf32>
    %53 = vector.multi_reduction <add>, %52, %cst_27 [0] : vector<288x128xf32> to vector<128xf32>
    %54 = vector.shape_cast %53 : vector<128xf32> to vector<1x128xf32>
    %c0_28 = arith.constant 0 : index
    %c0_29 = arith.constant 0 : index
    %c0_30 = arith.constant 0 : index
    %55 = vector.load %arg4[%c0_28, %c0_29, %c0_30] : memref<1x2x128xf32, #tpu.memory_space<vmem>>, vector<1x1x128xf32>
    %56 = vector.shape_cast %55 : vector<1x1x128xf32> to vector<1x128xf32>
    %57 = vector.shape_cast %54 : vector<1x128xf32> to vector<1x1x128xf32>
    tpu.vector_store %arg4[%c0_28, %c0_29, %c0_30], %57 {strides = array<i32>} : memref<1x2x128xf32, #tpu.memory_space<vmem>>, vector<1x1x128xf32>,
    %58 = arith.mulf %52, %22 : vector<288x128xf32>
    %cst_31 = arith.constant dense<0.000000e+00> : vector<128xf32>
    %59 = vector.multi_reduction <add>, %58, %cst_31 [0] : vector<288x128xf32> to vector<128xf32>
    %60 = vector.shape_cast %59 : vector<128xf32> to vector<1x128xf32>
    %c0_32 = arith.constant 0 : index
    %c1_33 = arith.constant 1 : index
    %c0_34 = arith.constant 0 : index
    %61 = vector.load %arg4[%c0_32, %c1_33, %c0_34] : memref<1x2x128xf32, #tpu.memory_space<vmem>>, vector<1x1x128xf32>
    %62 = vector.shape_cast %61 : vector<1x1x128xf32> to vector<1x128xf32>
    %63 = vector.shape_cast %60 : vector<1x128xf32> to vector<1x1x128xf32>
    tpu.vector_store %arg4[%c0_32, %c1_33, %c0_34], %63 {strides = array<i32>} : memref<1x2x128xf32, #tpu.memory_space<vmem>>, vector<1x1x128xf32>,
    return
  }
  func.func @transform_0(%arg0: i32) -> (i32, i32, i32) {
    %c0_i32 = arith.constant 0 : i32
    %c0_i32_0 = arith.constant 0 : i32
    %c0_i32_1 = arith.constant 0 : i32
    return %arg0, %c0_i32, %c0_i32_0 : i32, i32, i32
  }
  func.func @transform_1(%arg0: i32) -> (i32, i32, i32) {
    %c0_i32 = arith.constant 0 : i32
    %c0_i32_0 = arith.constant 0 : i32
    %c0_i32_1 = arith.constant 0 : i32
    %c0_i32_2 = arith.constant 0 : i32
    return %c0_i32, %c0_i32_0, %c0_i32_1 : i32, i32, i32
  }
  func.func @transform_2(%arg0: i32) -> (i32, i32, i32) {
    %c0_i32 = arith.constant 0 : i32
    %c0_i32_0 = arith.constant 0 : i32
    %c0_i32_1 = arith.constant 0 : i32
    return %arg0, %c0_i32, %c0_i32_0 : i32, i32, i32
  }
  func.func @transform_3(%arg0: i32) -> (i32, i32, i32) {
    %c0_i32 = arith.constant 0 : i32
    %c0_i32_0 = arith.constant 0 : i32
    %c0_i32_1 = arith.constant 0 : i32
    return %arg0, %c0_i32, %c0_i32_0 : i32, i32, i32
  }
}

module attributes {stable_mosaic.version = 11 : i64} {
  func.func @_convt_s2_kernel(%arg0: i32, %arg1: memref<1x1128x64xbf16, #tpu.memory_space<vmem>>, %arg2: memref<4x64x128xbf16, #tpu.memory_space<vmem>>, %arg3: memref<1x1088x128xbf16, #tpu.memory_space<vmem>>) attributes {dimension_semantics = [#tpu.dimension_semantics<parallel>], iteration_bounds = array<i64: 2>, scalar_prefetch = 0 : i64, scratch_operands = 0 : i64, tpu.core_type = #tpu.core_type<tc>, window_params = [{transform_indices = @transform_0, window_bounds = array<i64: 1, 1128, 64>}, {pipeline_mode = #tpu.pipeline_mode<synchronous>, transform_indices = @transform_1, window_bounds = array<i64: 4, 64, 128>}, {transform_indices = @transform_2, window_bounds = array<i64: 1, 1088, 128>}]} {
    %c0 = arith.constant 0 : index
    %c0_0 = arith.constant 0 : index
    %c0_1 = arith.constant 0 : index
    %0 = vector.load %arg1[%c0, %c0_0, %c0_1] : memref<1x1128x64xbf16, #tpu.memory_space<vmem>>, vector<1x1088x64xbf16>
    %1 = vector.shape_cast %0 : vector<1x1088x64xbf16> to vector<1088x64xbf16>
    %c0_2 = arith.constant 0 : index
    %c0_3 = arith.constant 0 : index
    %c0_4 = arith.constant 0 : index
    %2 = vector.load %arg2[%c0_2, %c0_3, %c0_4] : memref<4x64x128xbf16, #tpu.memory_space<vmem>>, vector<1x64x128xbf16>
    %3 = vector.shape_cast %2 : vector<1x64x128xbf16> to vector<64x128xbf16>
    %cst = arith.constant dense<0.000000e+00> : vector<1088x128xf32>
    %4 = tpu.matmul %1, %3, %cst {dimension_numbers = #tpu.dot_dimension_numbers<[1], [0], [0], [1], [0, 0, 1, 1], [], []>} : vector<1088x64xbf16>, vector<64x128xbf16>, vector<1088x128xf32> -> vector<1088x128xf32>
    %c0_5 = arith.constant 0 : index
    %c1 = arith.constant 1 : index
    %c0_6 = arith.constant 0 : index
    %5 = vector.load %arg1[%c0_5, %c1, %c0_6] : memref<1x1128x64xbf16, #tpu.memory_space<vmem>>, vector<1x1088x64xbf16>
    %6 = vector.shape_cast %5 : vector<1x1088x64xbf16> to vector<1088x64xbf16>
    %c1_7 = arith.constant 1 : index
    %c0_8 = arith.constant 0 : index
    %c0_9 = arith.constant 0 : index
    %7 = vector.load %arg2[%c1_7, %c0_8, %c0_9] : memref<4x64x128xbf16, #tpu.memory_space<vmem>>, vector<1x64x128xbf16>
    %8 = vector.shape_cast %7 : vector<1x64x128xbf16> to vector<64x128xbf16>
    %cst_10 = arith.constant dense<0.000000e+00> : vector<1088x128xf32>
    %9 = tpu.matmul %6, %8, %cst_10 {dimension_numbers = #tpu.dot_dimension_numbers<[1], [0], [0], [1], [0, 0, 1, 1], [], []>} : vector<1088x64xbf16>, vector<64x128xbf16>, vector<1088x128xf32> -> vector<1088x128xf32>
    %10 = arith.addf %4, %9 : vector<1088x128xf32>
    %c0_11 = arith.constant 0 : index
    %c34 = arith.constant 34 : index
    %c0_12 = arith.constant 0 : index
    %11 = vector.load %arg1[%c0_11, %c34, %c0_12] : memref<1x1128x64xbf16, #tpu.memory_space<vmem>>, vector<1x1088x64xbf16>
    %12 = vector.shape_cast %11 : vector<1x1088x64xbf16> to vector<1088x64xbf16>
    %c2 = arith.constant 2 : index
    %c0_13 = arith.constant 0 : index
    %c0_14 = arith.constant 0 : index
    %13 = vector.load %arg2[%c2, %c0_13, %c0_14] : memref<4x64x128xbf16, #tpu.memory_space<vmem>>, vector<1x64x128xbf16>
    %14 = vector.shape_cast %13 : vector<1x64x128xbf16> to vector<64x128xbf16>
    %cst_15 = arith.constant dense<0.000000e+00> : vector<1088x128xf32>
    %15 = tpu.matmul %12, %14, %cst_15 {dimension_numbers = #tpu.dot_dimension_numbers<[1], [0], [0], [1], [0, 0, 1, 1], [], []>} : vector<1088x64xbf16>, vector<64x128xbf16>, vector<1088x128xf32> -> vector<1088x128xf32>
    %16 = arith.addf %10, %15 : vector<1088x128xf32>
    %c0_16 = arith.constant 0 : index
    %c35 = arith.constant 35 : index
    %c0_17 = arith.constant 0 : index
    %17 = vector.load %arg1[%c0_16, %c35, %c0_17] : memref<1x1128x64xbf16, #tpu.memory_space<vmem>>, vector<1x1088x64xbf16>
    %18 = vector.shape_cast %17 : vector<1x1088x64xbf16> to vector<1088x64xbf16>
    %c3 = arith.constant 3 : index
    %c0_18 = arith.constant 0 : index
    %c0_19 = arith.constant 0 : index
    %19 = vector.load %arg2[%c3, %c0_18, %c0_19] : memref<4x64x128xbf16, #tpu.memory_space<vmem>>, vector<1x64x128xbf16>
    %20 = vector.shape_cast %19 : vector<1x64x128xbf16> to vector<64x128xbf16>
    %cst_20 = arith.constant dense<0.000000e+00> : vector<1088x128xf32>
    %21 = tpu.matmul %18, %20, %cst_20 {dimension_numbers = #tpu.dot_dimension_numbers<[1], [0], [0], [1], [0, 0, 1, 1], [], []>} : vector<1088x64xbf16>, vector<64x128xbf16>, vector<1088x128xf32> -> vector<1088x128xf32>
    %22 = arith.addf %16, %21 : vector<1088x128xf32>
    %23 = math.tanh %22 : vector<1088x128xf32>
    %24 = arith.truncf %23 : vector<1088x128xf32> to vector<1088x128xbf16>
    %c0_21 = arith.constant 0 : index
    %c0_22 = arith.constant 0 : index
    %c0_23 = arith.constant 0 : index
    %25 = vector.load %arg3[%c0_21, %c0_22, %c0_23] : memref<1x1088x128xbf16, #tpu.memory_space<vmem>>, vector<1x1088x128xbf16>
    %26 = vector.shape_cast %25 : vector<1x1088x128xbf16> to vector<1088x128xbf16>
    %27 = vector.shape_cast %24 : vector<1088x128xbf16> to vector<1x1088x128xbf16>
    tpu.vector_store %arg3[%c0_21, %c0_22, %c0_23], %27 {strides = array<i32>} : memref<1x1088x128xbf16, #tpu.memory_space<vmem>>, vector<1x1088x128xbf16>,
    return
  }
  func.func @transform_0(%arg0: i32) -> (i32, i32, i32) {
    %c0_i32 = arith.constant 0 : i32
    %c0_i32_0 = arith.constant 0 : i32
    %c0_i32_1 = arith.constant 0 : i32
    return %arg0, %c0_i32, %c0_i32_0 : i32, i32, i32
  }
  func.func @transform_1(%arg0: i32) -> (i32, i32, i32) {
    %c0_i32 = arith.constant 0 : i32
    %c0_i32_0 = arith.constant 0 : i32
    %c0_i32_1 = arith.constant 0 : i32
    %c0_i32_2 = arith.constant 0 : i32
    return %c0_i32, %c0_i32_0, %c0_i32_1 : i32, i32, i32
  }
  func.func @transform_2(%arg0: i32) -> (i32, i32, i32) {
    %c0_i32 = arith.constant 0 : i32
    %c0_i32_0 = arith.constant 0 : i32
    %c0_i32_1 = arith.constant 0 : i32
    return %arg0, %c0_i32, %c0_i32_0 : i32, i32, i32
  }
}

</mosaic_0001>

<bundles_post_ra>
// kernel: generator_forward.5
= control target key start
LH: loop header
LB: loop body
LE: loop exit
PB: predicated region body
PF: predicated region fallthrough
CT: control target
= control target key end

     0   :  { %v1214_v3 = vmov 0   ;;  %vm207_vm0 = vcmask 261120   ;;  %vm673_vm1 = vcmask 1041408   ;;  %s1548_s1 = inlined_call_operand.vmem [shape: bf16[32,2048], index: 1, kind: input, shape index: {}]   ;;  %s1549_s0 = inlined_call_operand.vmem [shape: bf16[2,32], index: 0, kind: input, shape index: {}]   ;;  %s1550_s2 = inlined_call_operand.vmem [shape: bf16[2,2048], index: 2, kind: output, shape index: {0}]   ;;  %s1551_s3 = inlined_call_operand.vmem [shape: f32[2,2048], index: 3, kind: output, shape index: {1}]  }
   0x1   :  { %v15_v0 = vld [vmem:[%s1548_s1] sm:$0xff]  ;;  %v16_v2 = vld [vmem:[%s1548_s1 + $0x8] sm:$0xff]  ;;  %243 = vmatprep.mubr.bf16.mxu0 %v1214_v3  ;;  %284 = vmatprep.mubr.bf16.mxu1 %v1214_v3  ;;  %v17_v15 = vld [vmem:[%s1548_s1 + $0x10] sm:$0xff] }
   0x2   :  { %v23_v1 = vld [vmem:[%s1548_s1 + $0x40] sm:$0xff]  ;;  %v24_v5 = vld [vmem:[%s1548_s1 + $0x48] sm:$0xff]  ;;  %v25_v16 = vld [vmem:[%s1548_s1 + $0x50] sm:$0xff] }
   0x3   :  { %v1162_v4 = vcombine.high %v15_v0, %v23_v1  ;;  %v1161_v6 = vcombine.low %v15_v0, %v23_v1  ;;  %v31_v7 = vld [vmem:[%s1548_s1 + $0x80] sm:$0xff]  ;;  %v1164_v9 = vcombine.high %v16_v2, %v24_v5  ;;  %v1163_v10 = vcombine.low %v16_v2, %v24_v5  ;;  %v32_v12 = vld [vmem:[%s1548_s1 + $0x88] sm:$0xff]  ;;  %v18_v17 = vld [vmem:[%s1548_s1 + $0x18] sm:$0xff] }
   0x4   :  { %v39_v8 = vld [vmem:[%s1548_s1 + $0xc0] sm:$0xff]  ;;  %v40_v13 = vld [vmem:[%s1548_s1 + $0xc8] sm:$0xff]  ;;  %v26_v19 = vld [vmem:[%s1548_s1 + $0x58] sm:$0xff]  ;;  %v1166_v21 = vcombine.high %v17_v15, %v25_v16  ;;  %v1165_v28 = vcombine.low %v17_v15, %v25_v16  ;;  %v1215_v2 = vmov 1966171168   ;;  %v578_v5 = vlaneseq }
   0x5   :  { %v1178_v11 = vcombine.high %v31_v7, %v39_v8  ;;  %211 = vmatprep.subr.bf16.mxu0 %v1162_v4  ;;  %v1180_v14 = vcombine.high %v32_v12, %v40_v13  ;;  %252 = vmatprep.subr.bf16.mxu1 %v1164_v9  ;;  %v1177_v18 = vcombine.low %v31_v7, %v39_v8  ;;  %v33_v23 = vld [vmem:[%s1548_s1 + $0x90] sm:$0xff]  ;;  %v34_v25 = vld [vmem:[%s1548_s1 + $0x98] sm:$0xff]  ;;  %v1289_v27 = vld [vmem:[%s1549_s0] sm:$0x1]  ;;  %v576_v4 = vunpack.c.l.s4 %v1215_v2 }
   0x6   :  { %212 = vmatpush1.bf16.msra.mxu0 %v1161_v6  ;;  %253 = vmatpush1.bf16.msra.mxu1 %v1163_v10  ;;  %v1179_v20 = vcombine.low %v32_v12, %v40_v13  ;;  %v1168_v22 = vcombine.high %v18_v17, %v26_v19  ;;  %v41_v24 = vld [vmem:[%s1548_s1 + $0xd0] sm:$0xff]  ;;  %v42_v26 = vld [vmem:[%s1548_s1 + $0xd8] sm:$0xff]  ;;  %v1167_v29 = vcombine.low %v18_v17, %v26_v19  ;;  %v19_v32 = vld [vmem:[%s1548_s1 + $0x20] sm:$0xff]  ;;  %v579_v7 = vshrl.u32 %v578_v5, 7 }
   0x7   :  { %213 = vmatprep.subr.bf16.mxu0 %v1178_v11  ;;  %254 = vmatprep.subr.bf16.mxu1 %v1180_v14  ;;  %v1182_v30 = vcombine.high %v33_v23, %v41_v24  ;;  %v1184_v31 = vcombine.high %v34_v25, %v42_v26  ;;  %v27_v33 = vld [vmem:[%s1548_s1 + $0x60] sm:$0xff]  ;;  %v20_v34 = vld [vmem:[%s1548_s1 + $0x28] sm:$0xff]  ;;  %v1181_v36 = vcombine.low %v33_v23, %v41_v24  ;;  %v21_v48 = vld [vmem:[%s1548_s1 + $0x30] sm:$0xff]  ;;  %v577_v6 = vunpack.c.0.s8 %v576_v4 }
   0x8   :  { %v28_v35 = vld [vmem:[%s1548_s1 + $0x68] sm:$0xff]  ;;  %v1183_v37 = vcombine.low %v34_v25, %v42_v26  ;;  %v1170_v38 = vcombine.high %v19_v32, %v27_v33  ;;  %v35_v40 = vld [vmem:[%s1548_s1 + $0xa0] sm:$0xff]  ;;  %v1169_v44 = vcombine.low %v19_v32, %v27_v33  ;;  %v29_v49 = vld [vmem:[%s1548_s1 + $0x70] sm:$0xff] }
   0x9   :  { %v1172_v39 = vcombine.high %v20_v34, %v28_v35  ;;  %v43_v41 = vld [vmem:[%s1548_s1 + $0xe0] sm:$0xff]  ;;  %v36_v42 = vld [vmem:[%s1548_s1 + $0xa8] sm:$0xff]  ;;  %v1171_v45 = vcombine.low %v20_v34, %v28_v35  ;;  %v22_v50 = vld [vmem:[%s1548_s1 + $0x38] sm:$0xff]  ;;  %v1174_v54 = vcombine.high %v21_v48, %v29_v49  ;;  %v1173_v60 = vcombine.low %v21_v48, %v29_v49 }
   0xa   :  { %214 = vmatpush1.bf16.msra.mxu0 %v1177_v18  ;;  %255 = vmatpush1.bf16.msra.mxu1 %v1179_v20  ;;  %v44_v43 = vld [vmem:[%s1548_s1 + $0xe8] sm:$0xff]  ;;  %v1186_v46 = vcombine.high %v35_v40, %v43_v41  ;;  %v30_v51 = vld [vmem:[%s1548_s1 + $0x78] sm:$0xff]  ;;  %v1185_v52 = vcombine.low %v35_v40, %v43_v41  ;;  %v37_v56 = vld [vmem:[%s1548_s1 + $0xb0] sm:$0xff]  ;;  %v1361_v9 = vsub.s32 %v577_v6, %v579_v7 }
   0xb   :  { %293 = vmatprep.subr.bf16.mxu0 %v1166_v21  ;;  %334 = vmatprep.subr.bf16.mxu1 %v1168_v22  ;;  %v1188_v47 = vcombine.high %v36_v42, %v44_v43  ;;  %v1187_v53 = vcombine.low %v36_v42, %v44_v43  ;;  %v1176_v55 = vcombine.high %v22_v50, %v30_v51  ;;  %v45_v57 = vld [vmem:[%s1548_s1 + $0xf0] sm:$0xff]  ;;  %v38_v58 = vld [vmem:[%s1548_s1 + $0xb8] sm:$0xff] }
   0xc   :  { %v46_v59 = vld [vmem:[%s1548_s1 + $0xf8] sm:$0xff]  ;;  %v1175_v61 = vcombine.low %v22_v50, %v30_v51  ;;  %v1190_v62 = vcombine.high %v37_v56, %v45_v57  ;;  %v1189_v0 = vcombine.low %v37_v56, %v45_v57 }
   0xd   :  { %1193 = vmatmul.mubr.msk.bf16.vlgmr.msra.gmra.mrb[0].mxu0 %vm207_vm0, %v1289_v27  ;;  %1194 = vmatmul.mubr.msk.bf16.vlgmr.msra.gmra.mrb[0].mxu1 %vm207_vm0, %v1289_v27  ;;  %v1192_v63 = vcombine.high %v38_v58, %v46_v59  ;;  %v1191_v1 = vcombine.low %v38_v58, %v46_v59 }
   0xe   :  { %294 = vmatpush1.bf16.msra.mxu0 %v1165_v28  ;;  %335 = vmatpush1.bf16.msra.mxu1 %v1167_v29 }
   0xf   :  { %295 = vmatprep.subr.bf16.mxu0 %v1182_v30  ;;  %336 = vmatprep.subr.bf16.mxu1 %v1184_v31 }
  0x10   :  { %325 = vmatprep.mubr.bf16.mxu0 %v1214_v3  ;;  %366 = vmatprep.mubr.bf16.mxu1 %v1214_v3 }
  0x12   :  { %296 = vmatpush1.bf16.msra.mxu0 %v1181_v36  ;;  %337 = vmatpush1.bf16.msra.mxu1 %v1183_v37 }
  0x13   :  { %375 = vmatprep.subr.bf16.mxu0 %v1170_v38  ;;  %416 = vmatprep.subr.bf16.mxu1 %v1172_v39 }
  0x15   :  { %1195 = vmatmul.mubr.msk.bf16.vlgmr.msra.gmra.mrb[4].mxu0 %vm207_vm0, %v1289_v27  ;;  %1196 = vmatmul.mubr.msk.bf16.vlgmr.msra.gmra.mrb[4].mxu1 %vm207_vm0, %v1289_v27 }
  0x16   :  { %376 = vmatpush1.bf16.msra.mxu0 %v1169_v44  ;;  %417 = vmatpush1.bf16.msra.mxu1 %v1171_v45 }
  0x17   :  { %377 = vmatprep.subr.bf16.mxu0 %v1186_v46  ;;  %418 = vmatprep.subr.bf16.mxu1 %v1188_v47 }
  0x18   :  { %407 = vmatprep.mubr.bf16.mxu0 %v1214_v3  ;;  %448 = vmatprep.mubr.bf16.mxu1 %v1214_v3 }
  0x1a   :  { %378 = vmatpush1.bf16.msra.mxu0 %v1185_v52  ;;  %419 = vmatpush1.bf16.msra.mxu1 %v1187_v53 }
  0x1b   :  { %457 = vmatprep.subr.bf16.mxu0 %v1174_v54  ;;  %498 = vmatprep.subr.bf16.mxu1 %v1176_v55 }
  0x1d   :  { %1197 = vmatmul.mubr.msk.bf16.vlgmr.msra.gmra.mrb[8].mxu0 %vm207_vm0, %v1289_v27  ;;  %1198 = vmatmul.mubr.msk.bf16.vlgmr.msra.gmra.mrb[8].mxu1 %vm207_vm0, %v1289_v27 }
  0x1e   :  { %458 = vmatpush1.bf16.msra.mxu0 %v1173_v60  ;;  %499 = vmatpush1.bf16.msra.mxu1 %v1175_v61 }
  0x1f   :  { %459 = vmatprep.subr.bf16.mxu0 %v1190_v62  ;;  %500 = vmatprep.subr.bf16.mxu1 %v1192_v63 }
  0x20   :  { %489 = vmatprep.mubr.bf16.mxu0 %v1214_v3  ;;  %530 = vmatprep.mubr.bf16.mxu1 %v1214_v3 }
  0x22   :  { %460 = vmatpush1.bf16.msra.mxu0 %v1189_v0  ;;  %501 = vmatpush1.bf16.msra.mxu1 %v1191_v1 }
  0x25   :  { %1199 = vmatmul.mubr.msk.bf16.vlgmr.msra.gmra.mrb[12].mxu0 %vm207_vm0, %v1289_v27  ;;  %1200 = vmatmul.mubr.msk.bf16.vlgmr.msra.gmra.mrb[12].mxu1 %vm207_vm0, %v1289_v27 }
  0xe0   :  { %v245_v8 = vpop.f32.mrb[0].mxu0  ;;  %v286_v11 = vpop.f32.mrb[0].mxu1 }
  0xe1   :  { %v674_v10 = vsel %vm673_vm1, %v245_v8, 0.0  ;;  %v905_v3 = vmul.f32 %v245_v8, %v245_v8  ;;  %v247_v12 = vpop.f32.mrb[1].mxu0  ;;  %v688_v14 = vsel %vm673_vm1, %v286_v11, 0.0  ;;  %v907_v15 = vmul.f32 %v286_v11, %v286_v11  ;;  %v288_v17 = vpop.f32.mrb[1].mxu1 }
  0xe2   :  { %v675_v13 = vrot.slane %v674_v10, 4  ;;  %v1201_v16 = vpack.c.bf16 %v247_v12, %v245_v8  ;;  %v249_v18 = vpop.f32.mrb[2].mxu0  ;;  %v689_v20 = vrot.slane %v688_v14, 4  ;;  %v681_v21 = vsel %vm673_vm1, %v247_v12, 0.0  ;;  %v290_v23 = vpop.f32.mrb[2].mxu1 }
  0xe3   :  { %v921_v19 = vsel %vm673_vm1, %v905_v3, 0.0  ;;  %v906_v22 = vmul.f32 %v247_v12, %v247_v12  ;;  %v250_v24 = vpop.f32.mrb[3].mxu0  ;;  %v935_v27 = vsel %vm673_vm1, %v907_v15, 0.0  ;;  %v291_v29 = vpop.f32.mrb[3].mxu1  ;;  %v682_v32 = vrot.slane %v681_v21, 4 }
  0xe4   :  { %v676_v25 = vadd.f32 %v675_v13, %v674_v10  ;;  %v922_v26 = vrot.slane %v921_v19, 4  ;;  %v581_v28 = vrot.slane %v1201_v16, %v1361_v9  ;;  %v690_v30 = vadd.f32 %v689_v20, %v688_v14 }
  0xe5   :  { %v936_v31 = vrot.slane %v935_v27, 4  ;;  %v928_v33 = vsel %vm673_vm1, %v906_v22, 0.0  ;;  %v1202_v37 = vpack.c.bf16 %v288_v17, %v286_v11  ;;  %v683_v40 = vadd.f32 %v682_v32, %v681_v21 }
  0xe6   :  { %v677_v34 = vrot.slane %v676_v25, 2  ;;  %v923_v35 = vadd.f32 %v922_v26, %v921_v19  ;;  %v929_v36 = vrot.slane %v928_v33, 4  ;;  %v691_v38 = vrot.slane %v690_v30, 2 }
  0xe7   :  { %v937_v39 = vadd.f32 %v936_v31, %v935_v27  ;;  %v695_v41 = vsel %vm673_vm1, %v288_v17, 0.0  ;;  %v588_v45 = vrot.slane %v1202_v37, %v1361_v9  ;;  %v684_v49 = vrot.slane %v683_v40, 2 }
  0xe8   :  { %v678_v42 = vadd.f32 %v677_v34, %v676_v25  ;;  %v924_v43 = vrot.slane %v923_v35, 2  ;;  %v930_v44 = vadd.f32 %v929_v36, %v928_v33  ;;  %v1372_v46 = vpop.f32.mrb[4].mxu0  ;;  %v692_v47 = vadd.f32 %v691_v38, %v690_v30  ;;  %v1374_v51 = vpop.f32.mrb[4].mxu1 }
  0xe9   :  { %v938_v48 = vrot.slane %v937_v39, 2  ;;  %v696_v50 = vrot.slane %v695_v41, 4  ;;  %v1376_v52 = vpop.f32.mrb[5].mxu0  ;;  %v603_v56 = vcombine.low %v581_v28, %v588_v45  ;;  %v1378_v57 = vpop.f32.mrb[5].mxu1  ;;  %v685_v60 = vadd.f32 %v684_v49, %v683_v40 }
  0xea   :  { %v679_v53 = vrot.slane %v678_v42, 1  ;;  %v925_v54 = vadd.f32 %v924_v43, %v923_v35  ;;  %v931_v55 = vrot.slane %v930_v44, 2  ;;  %v331_v58 = vpop.f32.mrb[6].mxu0  ;;  %v693_v59 = vrot.slane %v692_v47, 1  ;;  %v372_v62 = vpop.f32.mrb[6].mxu1 }
  0xeb   :  { %v697_v61 = vadd.f32 %v696_v50, %v695_v41  ;;  %v332_v63 = vpop.f32.mrb[7].mxu0  ;;  %v939_v1 = vadd.f32 %v938_v48, %v937_v39  ;;  %v373_v4 = vpop.f32.mrb[7].mxu1  ;;  %v686_v6 = vrot.slane %v685_v60, 1  ;;  %v1381_v7 = vrot.slane %v603_v56, %v1361_v9 }
  0xec   :  { %v926_v0 = vrot.slane %v925_v54, 1  ;;  %v932_v2 = vadd.f32 %v931_v55, %v930_v44  ;;  %v680_v5 = vadd.f32 %v679_v53, %v678_v42  ;;  %v908_v11 = vmul.f32 %v288_v17, %v288_v17 }
  0xed   :  { %v698_v8 = vrot.slane %v697_v61, 2  ;;  %v702_v12 = vsel %vm673_vm1, %v1372_v46, 0.0  ;;  %v694_v13 = vadd.f32 %v693_v59, %v692_v47  ;;  %v687_v14 = vadd.f32 %v686_v6, %v685_v60 }
  0xee   :  { %v927_v10 = vadd.f32 %v926_v0, %v925_v54  ;;  %v933_v3 = vrot.slane %v932_v2, 1  ;;  %v703_v16 = vrot.slane %v702_v12, 4  ;;  %v942_v19 = vsel %vm673_vm1, %v908_v11, 0.0 }
  0xef   :  { %v699_v15 = vadd.f32 %v698_v8, %v697_v61  ;;  %v909_v20 = vmul.f32 %v1372_v46, %v1372_v46  ;;  %v716_v21 = vsel %vm673_vm1, %v1374_v51, 0.0  ;;  %v802_v23 = vcombine.low %v680_v5, %v687_v14 }
  0xf0   :  { %v934_v18 = vadd.f32 %v933_v3, %v932_v2  ;;  %v1390_v22 = vpop.f32.mrb[8].mxu0  ;;  %v943_v24 = vrot.slane %v942_v19, 4  ;;  %v704_v25 = vadd.f32 %v703_v16, %v702_v12  ;;  %v1392_v26 = vpop.f32.mrb[8].mxu1  ;;  %v717_v30 = vrot.slane %v716_v21, 4 }
  0xf1   :  { %v700_v17 = vrot.slane %v699_v15, 1  ;;  %v1394_v27 = vpop.f32.mrb[9].mxu0  ;;  %v949_v29 = vsel %vm673_vm1, %v909_v20, 0.0  ;;  %v911_v31 = vmul.f32 %v1374_v51, %v1374_v51  ;;  %v1399_v32 = vpop.f32.mrb[9].mxu1  ;;  %v940_v34 = vrot.slane %v939_v1, 1 }
  0xf2   :  { %v1049_v28 = vcombine.low %v927_v10, %v934_v18  ;;  %v413_v33 = vpop.f32.mrb[10].mxu0  ;;  %v944_v36 = vadd.f32 %v943_v24, %v942_v19  ;;  %v705_v37 = vrot.slane %v704_v25, 2  ;;  %v454_v38 = vpop.f32.mrb[10].mxu1  ;;  %v812_v40 = vrot.slane %v802_v23, %v1361_v9 }
  0xf3   :  { %v701_v35 = vadd.f32 %v700_v17, %v699_v15  ;;  %v414_v39 = vpop.f32.mrb[11].mxu0  ;;  %v950_v41 = vrot.slane %v949_v29, 4  ;;  %v718_v42 = vadd.f32 %v717_v30, %v716_v21  ;;  %v963_v43 = vsel %vm673_vm1, %v911_v31, 0.0  ;;  %v455_v44 = vpop.f32.mrb[11].mxu1 }
  0xf4   :  { %v945_v47 = vrot.slane %v944_v36, 2  ;;  %v706_v48 = vadd.f32 %v705_v37, %v704_v25  ;;  %v964_v49 = vrot.slane %v963_v43, 4  ;;  %v1203_v54 = vpack.c.bf16 %v1376_v52, %v1372_v46 }
  0xf5   :  { %v803_v45 = vcombine.low %v694_v13, %v701_v35  ;;  %v951_v50 = vadd.f32 %v950_v41, %v949_v29  ;;  %v719_v53 = vrot.slane %v718_v42, 2  ;;  %v709_v55 = vsel %vm673_vm1, %v1376_v52, 0.0 }
  0xf6   :  { %v941_v56 = vadd.f32 %v940_v34, %v939_v1  ;;  %v946_v59 = vadd.f32 %v945_v47, %v944_v36  ;;  %v965_v60 = vadd.f32 %v964_v49, %v963_v43  ;;  %v707_v61 = vrot.slane %v706_v48, 1 }
  0xf7   :  { %v819_v58 = vrot.slane %v803_v45, %v1361_v9  ;;  %v952_v62 = vrot.slane %v951_v50, 2  ;;  %v720_v63 = vadd.f32 %v719_v53, %v718_v42  ;;  %v710_v0 = vrot.slane %v709_v55, 4 }
  0xf8   :  { %v1408_v2 = vpop.f32.mrb[12].mxu0  ;;  %v1411_v4 = vrot.slane %v1049_v28, %v1361_v9  ;;  %v947_v6 = vrot.slane %v946_v59, 1  ;;  %v966_v46 = vrot.slane %v965_v60, 2  ;;  %v1413_v8 = vpop.f32.mrb[12].mxu1  ;;  %v910_v12 = vmul.f32 %v1376_v52, %v1376_v52 }
  0xf9   :  { %v834_v5 = vcombine.low %v812_v40, %v819_v58  ;;  %v1415_v10 = vpop.f32.mrb[13].mxu0  ;;  %v953_v1 = vadd.f32 %v952_v62, %v951_v50  ;;  %v721_v3 = vrot.slane %v720_v63, 1  ;;  %v711_v11 = vadd.f32 %v710_v0, %v709_v55  ;;  %v1419_v13 = vpop.f32.mrb[13].mxu1 }
  0xfa   :  { %v495_v14 = vpop.f32.mrb[14].mxu0  ;;  %v948_v15 = vadd.f32 %v947_v6, %v946_v59  ;;  %v967_v16 = vadd.f32 %v966_v46, %v965_v60  ;;  %v595_v18 = vrot.slane %v1203_v54, %v1361_v9  ;;  %v1204_v19 = vpack.c.bf16 %v1378_v57, %v1374_v51  ;;  %v536_v20 = vpop.f32.mrb[14].mxu1 }
  0xfb   :  { %v496_v21 = vpop.f32.mrb[15].mxu0  ;;  %v1425_v23 = vrot.slane %v834_v5, %v1361_v9  ;;  %v1427_v17 = vadd.f32 %v707_v61, %v706_v48  ;;  %v712_v24 = vrot.slane %v711_v11, 2  ;;  %v956_v52 = vsel %vm673_vm1, %v910_v12, 0.0  ;;  %v537_v25 = vpop.f32.mrb[15].mxu1 }
  0xfc   :  { %v1050_v28 = vcombine.low %v941_v56, %v948_v15  ;;  %v954_v29 = vrot.slane %v953_v1, 1  ;;  %v957_v30 = vrot.slane %v956_v52, 4  ;;  %v602_v31 = vrot.slane %v1204_v19, %v1361_v9 }
  0xfd   :  { %v1431_v33 = vadd.f32 %v721_v3, %v720_v63  ;;  %v713_v34 = vadd.f32 %v712_v24, %v711_v11  ;;  %v723_v51 = vsel %vm673_vm1, %v1378_v57, 0.0  ;;  %v912_v35 = vmul.f32 %v1378_v57, %v1378_v57 }
  0xfe   :  { %v1066_v36 = vrot.slane %v1050_v28, %v1361_v9  ;;  %v968_v37 = vrot.slane %v967_v16, 1  ;;  %v958_v38 = vadd.f32 %v957_v30, %v956_v52  ;;  %v604_v39 = vcombine.low %v595_v18, %v602_v31 }
  0xff   :  { %v714_v40 = vrot.slane %v713_v34, 1  ;;  %v724_v41 = vrot.slane %v723_v51, 4  ;;  %v970_v42 = vsel %vm673_vm1, %v912_v35, 0.0  ;;  %v730_v43 = vsel %vm673_vm1, %v1390_v22, 0.0 }
 0x100   :  { %v1081_v44 = vcombine.low %v1411_v4, %v1066_v36  ;;  %v959_v45 = vrot.slane %v958_v38, 2  ;;  %v618_v47 = vrot.slane %v604_v39, %v1361_v9  ;;  %v971_v48 = vrot.slane %v970_v42, 4 }
 0x101   :  { %v715_v49 = vadd.f32 %v714_v40, %v713_v34  ;;  %v725_v57 = vadd.f32 %v724_v41, %v723_v51  ;;  %v731_v50 = vrot.slane %v730_v43, 4  ;;  %v913_v53 = vmul.f32 %v1390_v22, %v1390_v22 }
 0x102   :  { %v955_v54 = vadd.f32 %v954_v29, %v953_v1  ;;  %v960_v55 = vadd.f32 %v959_v45, %v958_v38  ;;  %v619_v56 = vcombine.low %v1381_v7, %v618_v47  ;;  %v972_v58 = vadd.f32 %v971_v48, %v970_v42 }
 0x103   :  { %v804_v59 = vcombine.low %v1427_v17, %v715_v49  ;;  %v726_v60 = vrot.slane %v725_v57, 2  ;;  %v732_v61 = vadd.f32 %v731_v50, %v730_v43  ;;  %v977_v62 = vsel %vm673_vm1, %v913_v53, 0.0 }
 0x104   :  { %v961_v63 = vrot.slane %v960_v55, 1  ;;  %671 = vst [vmem:[%s1550_s2] sm:$0xff] %v619_v56  ;;  %v973_v0 = vrot.slane %v972_v58, 2  ;;  %v978_v4 = vrot.slane %v977_v62, 4  ;;  %v744_v5 = vsel %vm673_vm1, %v1392_v26, 0.0 }
 0x105   :  { %v969_v6 = vadd.f32 %v968_v37, %v967_v16  ;;  %v727_v46 = vadd.f32 %v726_v60, %v725_v57  ;;  %v733_v7 = vrot.slane %v732_v61, 2  ;;  %v745_v1 = vrot.slane %v744_v5, 4 }
 0x106   :  { %v962_v3 = vadd.f32 %v961_v63, %v960_v55  ;;  %v974_v11 = vadd.f32 %v973_v0, %v972_v58  ;;  %v979_v12 = vadd.f32 %v978_v4, %v977_v62  ;;  %v915_v14 = vmul.f32 %v1392_v26, %v1392_v26 }
 0x107   :  { %v728_v15 = vrot.slane %v727_v46, 1  ;;  %v734_v18 = vadd.f32 %v733_v7, %v732_v61  ;;  %v746_v19 = vadd.f32 %v745_v1, %v744_v5  ;;  %v1205_v20 = vpack.c.bf16 %v1394_v27, %v1390_v22 }
 0x108   :  { %v1051_v21 = vcombine.low %v955_v54, %v962_v3  ;;  %v975_v17 = vrot.slane %v974_v11, 1  ;;  %v980_v24 = vrot.slane %v979_v12, 2  ;;  %v991_v16 = vsel %vm673_vm1, %v915_v14, 0.0 }
 0x109   :  { %v1089_v52 = vrot.slane %v1081_v44, %v1361_v9  ;;  %v729_v25 = vadd.f32 %v728_v15, %v727_v46  ;;  %v747_v28 = vrot.slane %v746_v19, 2  ;;  %v992_v29 = vrot.slane %v991_v16, 4 }
 0x10a   :  { %v826_v30 = vrot.slane %v804_v59, %v1361_v9  ;;  %v976_v31 = vadd.f32 %v975_v17, %v974_v11  ;;  %v735_v34 = vrot.slane %v734_v18, 1  ;;  %v981_v51 = vadd.f32 %v980_v24, %v979_v12 }
 0x10b   :  { %v1073_v35 = vrot.slane %v1051_v21, %v1361_v9  ;;  %v805_v36 = vcombine.low %v1431_v33, %v729_v25  ;;  %v748_v22 = vadd.f32 %v747_v28, %v746_v19  ;;  %v993_v37 = vadd.f32 %v992_v29, %v991_v16 }
 0x10c   :  { %v1052_v38 = vcombine.low %v969_v6, %v976_v31  ;;  %v1463_v39 = vrot.slane %v1205_v20, %v1361_v9  ;;  %v737_v40 = vsel %vm673_vm1, %v1394_v27, 0.0  ;;  %v914_v41 = vmul.f32 %v1394_v27, %v1394_v27 }
 0x10d   :  { %v833_v42 = vrot.slane %v805_v36, %v1361_v9  ;;  %v982_v43 = vrot.slane %v981_v51, 1  ;;  %v994_v44 = vrot.slane %v993_v37, 2  ;;  %v738_v45 = vrot.slane %v737_v40, 4 }
 0x10e   :  { %v1080_v47 = vrot.slane %v1052_v38, %v1361_v9  ;;  %v736_v33 = vadd.f32 %v735_v34, %v734_v18  ;;  %v984_v48 = vsel %vm673_vm1, %v914_v41, 0.0  ;;  %v1206_v49 = vpack.c.bf16 %v1399_v32, %v1392_v26 }
 0x10f   :  { %v835_v57 = vcombine.low %v826_v30, %v833_v42  ;;  %v749_v50 = vrot.slane %v748_v22, 1  ;;  %v995_v53 = vadd.f32 %v994_v44, %v993_v37  ;;  %v739_v54 = vadd.f32 %v738_v45, %v737_v40 }
 0x110   :  { %v1082_v55 = vcombine.low %v1073_v35, %v1080_v47  ;;  %v985_v56 = vrot.slane %v984_v48, 4  ;;  %v1475_v27 = vrot.slane %v1206_v49, %v1361_v9  ;;  %v751_v58 = vsel %vm673_vm1, %v1399_v32, 0.0 }
 0x111   :  { %v849_v59 = vrot.slane %v835_v57, %v1361_v9  ;;  %v983_v60 = vadd.f32 %v982_v43, %v981_v51  ;;  %v740_v61 = vrot.slane %v739_v54, 2  ;;  %v752_v62 = vrot.slane %v751_v58, 4 }
 0x112   :  { %v1096_v63 = vrot.slane %v1082_v55, %v1361_v9  ;;  %v986_v26 = vadd.f32 %v985_v56, %v984_v48  ;;  %v652_v0 = vcombine.low %v1463_v39, %v1475_v27  ;;  %v916_v4 = vmul.f32 %v1399_v32, %v1399_v32 }
 0x113   :  { %v850_v5 = vcombine.low %v1425_v23, %v849_v59  ;;  %v750_v6 = vadd.f32 %v749_v50, %v748_v22  ;;  %v741_v46 = vadd.f32 %v740_v61, %v739_v54  ;;  %v753_v7 = vadd.f32 %v752_v62, %v751_v58 }
 0x114   :  { %v1097_v1 = vcombine.low %v1089_v52, %v1096_v63  ;;  %v996_v3 = vrot.slane %v995_v53, 1  ;;  %v987_v11 = vrot.slane %v986_v26, 2  ;;  %v998_v12 = vsel %vm673_vm1, %v916_v4, 0.0 }
 0x115   :  { %902 = vst [vmem:[%s1551_s3] ss:$2 sm:$0xff] %v850_v5  ;;  %v742_v14 = vrot.slane %v741_v46, 1  ;;  %v754_v15 = vrot.slane %v753_v7, 2  ;;  %v999_v18 = vrot.slane %v998_v12, 4  ;;  %v758_v32 = vsel %vm673_vm1, %v1408_v2, 0.0 }
 0x116   :  { %1210 = vst [vmem:[%s1551_s3 + $0x1] ss:$2 sm:$0xff] %v1097_v1  ;;  %v988_v23 = vadd.f32 %v987_v11, %v986_v26  ;;  %v759_v19 = vrot.slane %v758_v32, 4  ;;  %v917_v20 = vmul.f32 %v1408_v2, %v1408_v2  ;;  %v772_v21 = vsel %vm673_vm1, %v1413_v8, 0.0 }
 0x117   :  { %v743_v17 = vadd.f32 %v742_v14, %v741_v46  ;;  %v755_v24 = vadd.f32 %v754_v15, %v753_v7  ;;  %v1000_v16 = vadd.f32 %v999_v18, %v998_v12  ;;  %v773_v52 = vrot.slane %v772_v21, 4 }
 0x118   :  { %v989_v25 = vrot.slane %v988_v23, 1  ;;  %v760_v28 = vadd.f32 %v759_v19, %v758_v32  ;;  %v1005_v29 = vsel %vm673_vm1, %v917_v20, 0.0  ;;  %v919_v30 = vmul.f32 %v1413_v8, %v1413_v8 }
 0x119   :  { %v851_v31 = vcombine.low %v736_v33, %v743_v17  ;;  %v756_v34 = vrot.slane %v755_v24, 1  ;;  %v1001_v51 = vrot.slane %v1000_v16, 2  ;;  %v1006_v35 = vrot.slane %v1005_v29, 4 }
 0x11a   :  { %v990_v36 = vadd.f32 %v989_v25, %v988_v23  ;;  %v761_v22 = vrot.slane %v760_v28, 2  ;;  %v774_v37 = vadd.f32 %v773_v52, %v772_v21  ;;  %v1019_v38 = vsel %vm673_vm1, %v919_v30, 0.0 }
 0x11b   :  { %v757_v39 = vadd.f32 %v756_v34, %v755_v24  ;;  %v1002_v40 = vadd.f32 %v1001_v51, %v1000_v16  ;;  %v1007_v41 = vadd.f32 %v1006_v35, %v1005_v29  ;;  %v997_v42 = vadd.f32 %v996_v3, %v995_v53 }
 0x11c   :  { %v1504_v43 = vrot.slane %v851_v31, %v1361_v9  ;;  %v1098_v44 = vcombine.low %v983_v60, %v990_v36  ;;  %v1020_v45 = vrot.slane %v1019_v38, 4  ;;  %v762_v33 = vadd.f32 %v761_v22, %v760_v28 }
 0x11d   :  { %v852_v47 = vcombine.low %v750_v6, %v757_v39  ;;  %v1003_v48 = vrot.slane %v1002_v40, 1  ;;  %v1207_v49 = vpack.c.bf16 %v1415_v10, %v1408_v2  ;;  %v775_v57 = vrot.slane %v774_v37, 2 }
 0x11e   :  { %v1008_v55 = vrot.slane %v1007_v41, 2  ;;  %v1108_v56 = vrot.slane %v1098_v44, %v1361_v9  ;;  %v1021_v53 = vadd.f32 %v1020_v45, %v1019_v38  ;;  %v765_v27 = vsel %vm673_vm1, %v1415_v10, 0.0 }
 0x11f   :  { %v1509_v50 = vrot.slane %v852_v47, %v1361_v9  ;;  %v1004_v54 = vadd.f32 %v1003_v48, %v1002_v40  ;;  %v763_v60 = vrot.slane %v762_v33, 1  ;;  %v766_v61 = vrot.slane %v765_v27, 4 }
 0x120   :  { %v776_v62 = vadd.f32 %v775_v57, %v774_v37  ;;  %v644_v2 = vrot.slane %v1207_v49, %v1361_v9  ;;  %v918_v63 = vmul.f32 %v1415_v10, %v1415_v10  ;;  %v1208_v26 = vpack.c.bf16 %v1419_v13, %v1413_v8 }
 0x121   :  { %v883_v58 = vcombine.low %v1504_v43, %v1509_v50  ;;  %v1099_v59 = vcombine.low %v997_v42, %v1004_v54  ;;  %v660_v4 = vrot.slane %v652_v0, %v1361_v9  ;;  %v1009_v6 = vadd.f32 %v1008_v55, %v1007_v41 }
 0x122   :  { %v767_v46 = vadd.f32 %v766_v61, %v765_v27  ;;  %v1022_v7 = vrot.slane %v1021_v53, 2  ;;  %v1012_v1 = vsel %vm673_vm1, %v918_v63, 0.0  ;;  %v651_v3 = vrot.slane %v1208_v26, %v1361_v9 }
 0x123   :  { %v1115_v5 = vrot.slane %v1099_v59, %v1361_v9  ;;  %v779_v11 = vsel %vm673_vm1, %v1419_v13, 0.0  ;;  %v1013_v10 = vrot.slane %v1012_v1, 4  ;;  %v764_v18 = vadd.f32 %v763_v60, %v762_v33 }
 0x124   :  { %v768_v14 = vrot.slane %v767_v46, 2  ;;  %v780_v15 = vrot.slane %v779_v11, 4  ;;  %v777_v8 = vrot.slane %v776_v62, 1  ;;  %v653_v32 = vcombine.low %v644_v2, %v651_v3 }
 0x125   :  { %v1130_v12 = vcombine.low %v1108_v56, %v1115_v5  ;;  %v920_v0 = vmul.f32 %v1419_v13, %v1419_v13  ;;  %v1014_v20 = vadd.f32 %v1013_v10, %v1012_v1  ;;  %v1010_v17 = vrot.slane %v1009_v6, 1 }
 0x126   :  { %v769_v19 = vadd.f32 %v768_v14, %v767_v46  ;;  %v781_v21 = vadd.f32 %v780_v15, %v779_v11  ;;  %v1023_v24 = vadd.f32 %v1022_v7, %v1021_v53  ;;  %v667_v16 = vrot.slane %v653_v32, %v1361_v9 }
 0x127   :  { %v1138_v23 = vrot.slane %v1130_v12, %v1361_v9  ;;  %v1026_v52 = vsel %vm673_vm1, %v920_v0, 0.0  ;;  %v1015_v28 = vrot.slane %v1014_v20, 2  ;;  %v1011_v36 = vadd.f32 %v1010_v17, %v1009_v6 }
 0x128   :  { %v770_v25 = vrot.slane %v769_v19, 1  ;;  %v782_v29 = vrot.slane %v781_v21, 2  ;;  %v1027_v30 = vrot.slane %v1026_v52, 4  ;;  %v668_v31 = vcombine.low %v660_v4, %v667_v16 }
 0x129   :  { %v1016_v51 = vadd.f32 %v1015_v28, %v1014_v20  ;;  %v778_v22 = vadd.f32 %v777_v8, %v776_v62  ;;  %v1024_v37 = vrot.slane %v1023_v24, 1  ;;  %v891_v53 = vrot.slane %v883_v58, %v1361_v9 }
 0x12a   :  { %v771_v34 = vadd.f32 %v770_v25, %v769_v19  ;;  %v783_v35 = vadd.f32 %v782_v29, %v781_v21  ;;  %v1028_v13 = vadd.f32 %v1027_v30, %v1026_v52  ;;  %672 = vst [vmem:[%s1550_s2 + $0x8] sm:$0xff] %v668_v31 }
 0x12b   :  { %v1017_v39 = vrot.slane %v1016_v51, 1  ;;  %v1025_v45 = vadd.f32 %v1024_v37, %v1023_v24 }
 0x12c   :  { %v853_v38 = vcombine.low %v764_v18, %v771_v34  ;;  %v784_v40 = vrot.slane %v783_v35, 1  ;;  %v1029_v41 = vrot.slane %v1028_v13, 2 }
 0x12d   :  { %v1018_v42 = vadd.f32 %v1017_v39, %v1016_v51 }
 0x12e   :  { %v785_v43 = vadd.f32 %v784_v40, %v783_v35  ;;  %v1030_v44 = vadd.f32 %v1029_v41, %v1028_v13  ;;  %v875_v47 = vrot.slane %v853_v38, %v1361_v9 }
 0x12f   :  { %v1100_v48 = vcombine.low %v1011_v36, %v1018_v42 }
 0x130   :  { %v854_v33 = vcombine.low %v778_v22, %v785_v43  ;;  %v1031_v49 = vrot.slane %v1030_v44, 1 }
 0x131   :  { %v1122_v54 = vrot.slane %v1100_v48, %v1361_v9 }
 0x132   :  { %v882_v57 = vrot.slane %v854_v33, %v1361_v9  ;;  %v1032_v50 = vadd.f32 %v1031_v49, %v1030_v44 }
 0x134   :  { %v884_v55 = vcombine.low %v875_v47, %v882_v57  ;;  %v1101_v56 = vcombine.low %v1025_v45, %v1032_v50 }
 0x136   :  { %v898_v27 = vrot.slane %v884_v55, %v1361_v9  ;;  %v1129_v59 = vrot.slane %v1101_v56, %v1361_v9 }
 0x138   :  { %v899_v60 = vcombine.low %v891_v53, %v898_v27  ;;  %v1131_v61 = vcombine.low %v1122_v54, %v1129_v59 }
 0x13a   :  { %1209 = vst [vmem:[%s1551_s3 + $0x10] ss:$2 sm:$0xff] %v899_v60  ;;  %v1145_v62 = vrot.slane %v1131_v61, %v1361_v9 }
 0x13c   :  { %v1146_v2 = vcombine.low %v1138_v23, %v1145_v62 }
 0x13e   :  { %1211 = vst [vmem:[%s1551_s3 + $0x11] ss:$2 sm:$0xff] %v1146_v2 }

// kernel: generator_forward.6
= control target key start
LH: loop header
LB: loop body
LE: loop exit
PB: predicated region body
PF: predicated region fallthrough
CT: control target
= control target key end

     0   :  { %s3702_s12 = smov 0   ;;  %s4678_s0 = inlined_call_operand.vmem [shape: bf16[2,32,512], index: 0, kind: input, shape index: {}]   ;;  %s4679_s1 = inlined_call_operand.vmem [shape: bf16[4,512,256], index: 1, kind: input, shape index: {}]   ;;  %s4680_s2 = inlined_call_operand.vmem [shape: bf16[2,24,256], index: 2, kind: output, shape index: {0}]   ;;  %s4681_s3 = inlined_call_operand.vmem [shape: f32[2,2,256], index: 3, kind: output, shape index: {1}]  }
   0x1 LB: > { %s2691_s13 = sadd.s32 4294967295, %s3678_s12   ;;  %p2695_p0 = scmp.ge.s32.totalorder %s3678_s12, 1  ;;  %s3678_s12 = sphi %s3702_s12, %s14_s12  }
   0x2   : > { %p140_p1 = scmp.lt.s32.totalorder %s3678_s12, 3 }
   0x4   : > { %p141_p2 = pnand %p2695_p0, %p140_p1 }
   0x5   : > { %v3262_v0 = vld [vmem:[%s4679_s1 + $0x204] ss:$8 sps:$4 sm:$0xff] (!%p141_p2)   ;;  %v3266_v2 = vld [vmem:[%s4679_s1 + $0x200] ss:$8 sps:$4 sm:$0xff] (!%p141_p2)   ;;  %v3268_v4 = vld [vmem:[%s4679_s1 + $0x214] ss:$8 sps:$4 sm:$0xff] (!%p141_p2)  }
   0x6   : > { %144 = sbr.rel (%p141_p2) target bundleno = 511 (0x1ff), region = 28  ;;  %v3264_v1 = vld [vmem:[%s4679_s1 + $0x404] ss:$8 sps:$4 sm:$0xff] (!%p141_p2)   ;;  %748 = vmatprep.subr.bf16.mxu1 (!%p141_p2), %v3262_v0  ;;  %v3267_v3 = vld [vmem:[%s4679_s1 + $0x400] ss:$8 sps:$4 sm:$0xff] (!%p141_p2)   ;;  %p169_p3 = scmp.lt.s32.totalorder (!%p141_p2), %s2691_s13, 1 }
   0x7   : > { %1736 = vmatprep.subr.bf16.mxu0 (!%p141_p2), %v3264_v1  ;;  %749 = vmatpush1.bf16.msra.mxu1 (!%p141_p2), %v3266_v2  ;;  %v3270_v5 = vld [vmem:[%s4679_s1 + $0x414] ss:$8 sps:$4 sm:$0xff] (!%p141_p2)   ;;  %v3272_v6 = vld [vmem:[%s4679_s1 + $0x210] ss:$8 sps:$4 sm:$0xff] (!%p141_p2)   ;;  %v3274_v8 = vld [vmem:[%s4679_s1 + $0x224] ss:$8 sps:$4 sm:$0xff] (!%p141_p2)  }
   0x8   : > { %1737 = vmatpush1.bf16.msra.mxu0 (!%p141_p2), %v3267_v3  ;;  %750 = vmatprep.subr.bf16.mxu1 (!%p141_p2), %v3268_v4  ;;  %v3273_v7 = vld [vmem:[%s4679_s1 + $0x410] ss:$8 sps:$4 sm:$0xff] (!%p141_p2)   ;;  %v3276_v9 = vld [vmem:[%s4679_s1 + $0x424] ss:$8 sps:$4 sm:$0xff] (!%p141_p2)   ;;  %v3278_v10 = vld [vmem:[%s4679_s1 + $0x220] ss:$8 sps:$4 sm:$0xff] (!%p141_p2)  }
   0x9   : > { %1738 = vmatprep.subr.bf16.mxu0 (!%p141_p2), %v3270_v5  ;;  %v3279_v11 = vld [vmem:[%s4679_s1 + $0x420] ss:$8 sps:$4 sm:$0xff] (!%p141_p2)   ;;  %v3280_v12 = vld [vmem:[%s4679_s1 + $0x234] ss:$8 sps:$4 sm:$0xff] (!%p141_p2)   ;;  %v3284_v14 = vld [vmem:[%s4679_s1 + $0x230] ss:$8 sps:$4 sm:$0xff] (!%p141_p2)  }
   0xa   : > { %v3282_v13 = vld [vmem:[%s4679_s1 + $0x434] ss:$8 sps:$4 sm:$0xff] (!%p141_p2)   ;;  %v3285_v15 = vld [vmem:[%s4679_s1 + $0x430] ss:$8 sps:$4 sm:$0xff] (!%p141_p2)   ;;  %v3286_v16 = vld [vmem:[%s4679_s1 + $0x244] ss:$8 sps:$4 sm:$0xff] (!%p141_p2)  }
   0xb   : > { %751 = vmatpush1.bf16.msra.mxu1 (!%p141_p2), %v3272_v6  ;;  %v3288_v17 = vld [vmem:[%s4679_s1 + $0x444] ss:$8 sps:$4 sm:$0xff] (!%p141_p2)   ;;  %v3290_v18 = vld [vmem:[%s4679_s1 + $0x240] ss:$8 sps:$4 sm:$0xff] (!%p141_p2)   ;;  %v3292_v20 = vld [vmem:[%s4679_s1 + $0x254] ss:$8 sps:$4 sm:$0xff] (!%p141_p2)  }
   0xc   : > { %1739 = vmatpush1.bf16.msra.mxu0 (!%p141_p2), %v3273_v7  ;;  %752 = vmatprep.subr.bf16.mxu1 (!%p141_p2), %v3274_v8  ;;  %v3291_v19 = vld [vmem:[%s4679_s1 + $0x440] ss:$8 sps:$4 sm:$0xff] (!%p141_p2)   ;;  %v3294_v21 = vld [vmem:[%s4679_s1 + $0x454] ss:$8 sps:$4 sm:$0xff] (!%p141_p2)   ;;  %v3296_v22 = vld [vmem:[%s4679_s1 + $0x250] ss:$8 sps:$4 sm:$0xff] (!%p141_p2)  }
   0xd   : > { %1740 = vmatprep.subr.bf16.mxu0 %v3276_v9  ;;  %v3297_v23 = vld [vmem:[%s4679_s1 + $0x450] ss:$8 sps:$4 sm:$0xff]   ;;  %v3298_v24 = vld [vmem:[%s4679_s1 + $0x264] ss:$8 sps:$4 sm:$0xff]   ;;  %v3302_v26 = vld [vmem:[%s4679_s1 + $0x260] ss:$8 sps:$4 sm:$0xff]  }
   0xe   : > { %v3300_v25 = vld [vmem:[%s4679_s1 + $0x464] ss:$8 sps:$4 sm:$0xff]   ;;  %v3303_v27 = vld [vmem:[%s4679_s1 + $0x460] ss:$8 sps:$4 sm:$0xff]   ;;  %v3304_v28 = vld [vmem:[%s4679_s1 + $0x274] ss:$8 sps:$4 sm:$0xff]  }
   0xf   : > { %753 = vmatpush1.bf16.msra.mxu1 %v3278_v10  ;;  %v3306_v29 = vld [vmem:[%s4679_s1 + $0x474] ss:$8 sps:$4 sm:$0xff]   ;;  %v3308_v30 = vld [vmem:[%s4679_s1 + $0x270] ss:$8 sps:$4 sm:$0xff]   ;;  %v3310_v32 = vld [vmem:[%s4679_s1 + $0x284] ss:$8 sps:$4 sm:$0xff]  }
  0x10   : > { %1741 = vmatpush1.bf16.msra.mxu0 %v3279_v11  ;;  %754 = vmatprep.subr.bf16.mxu1 %v3280_v12  ;;  %v3309_v31 = vld [vmem:[%s4679_s1 + $0x470] ss:$8 sps:$4 sm:$0xff]   ;;  %v3312_v33 = vld [vmem:[%s4679_s1 + $0x484] ss:$8 sps:$4 sm:$0xff]   ;;  %v3314_v34 = vld [vmem:[%s4679_s1 + $0x280] ss:$8 sps:$4 sm:$0xff]  }
  0x11   : > { %1742 = vmatprep.subr.bf16.mxu0 %v3282_v13  ;;  %v3315_v35 = vld [vmem:[%s4679_s1 + $0x480] ss:$8 sps:$4 sm:$0xff]   ;;  %v3316_v36 = vld [vmem:[%s4679_s1 + $0x294] ss:$8 sps:$4 sm:$0xff]   ;;  %s4685_s13 = smov (!%p169_p3, %s2691_s13), 1  ;;  %vm1395_vm0 = vcmask 1044480  }
  0x12   : > { %v3318_v37 = vld [vmem:[%s4679_s1 + $0x494] ss:$8 sps:$4 sm:$0xff]   ;;  %v3320_v38 = vld [vmem:[%s4679_s1 + $0x290] ss:$8 sps:$4 sm:$0xff]   ;;  %v3322_v40 = vld [vmem:[%s4679_s1 + $0x2a4] ss:$8 sps:$4 sm:$0xff]  }
  0x13   : > { %755 = vmatpush1.bf16.msra.mxu1 %v3284_v14  ;;  %v3321_v39 = vld [vmem:[%s4679_s1 + $0x490] ss:$8 sps:$4 sm:$0xff]   ;;  %s3186_s21 = sshll.u32 %s4685_s13, 6  ;;  %v3324_v41 = vld [vmem:[%s4679_s1 + $0x4a4] ss:$8 sps:$4 sm:$0xff]   ;;  %s3187_s25 = sshll.u32 %s4685_s13, 2 }
  0x14   : > { %1743 = vmatpush1.bf16.msra.mxu0 %v3285_v15  ;;  %756 = vmatprep.subr.bf16.mxu1 %v3286_v16  ;;  %v3326_v42 = vld [vmem:[%s4679_s1 + $0x2a0] ss:$8 sps:$4 sm:$0xff]   ;;  %s3852_s30 = scalar_lea.vmem %s4678_s0, %s3186_s21  ;;  %v3328_v44 = vld [vmem:[%s4679_s1 + $0x2b4] ss:$8 sps:$4 sm:$0xff]   ;;  %v3332_v46 = vld [vmem:[%s4679_s1 + $0x2b0] ss:$8 sps:$4 sm:$0xff]   ;;  %s183_s28 = scalar_lea.vmem %s4681_s3, %s3187_s25 }
  0x15   : > { %1744 = vmatprep.subr.bf16.mxu0 %v3288_v17  ;;  %v3327_v43 = vld [vmem:[%s4679_s1 + $0x4a0] ss:$8 sps:$4 sm:$0xff]   ;;  %v3330_v45 = vld [vmem:[%s4679_s1 + $0x4b4] ss:$8 sps:$4 sm:$0xff]   ;;  %v3333_v47 = vld [vmem:[%s4679_s1 + $0x4b0] ss:$8 sps:$4 sm:$0xff]  }
  0x16   : > { %v254_v48 = vld [vmem:[%s3852_s30] sm:$0xff]  ;;  %v256_v49 = vld [vmem:[%s3852_s30 + $0x10] sm:$0xff]  ;;  %vm359_vm1 = vsmask.f32 7424  ;;  %vm1921_vm2 = vsmask.f32 4352 }
  0x17   : > { %757 = vmatpush1.bf16.msra.mxu1 %v3290_v18  ;;  %v3869_v50 = vld [vmem:[%s3852_s30 + $0x20] sm:$0xff]  ;;  %v260_v51 = vld [vmem:[%s3852_s30 + $0x30] sm:$0x11]  ;;  %v3875_v53 = vcombine.high %v254_v48, %v256_v49  ;;  %v3898_v4 = vcombine.low %v254_v48, %v256_v49 }
  0x18   : > { %1745 = vmatpush1.bf16.msra.mxu0 %v3291_v19  ;;  %758 = vmatprep.subr.bf16.mxu1 %v3292_v20  ;;  %v3334_v52 = vld [vmem:[%s4679_s1 + $0x2c4] ss:$8 sps:$4 sm:$0xff]   ;;  %v3878_v54 = vcombine.high %v3869_v50, %v260_v51  ;;  %v1308_v57 = vld [vmem:[%s3852_s30 + $0x30] sm:$0x77]  ;;  %v3338_v62 = vld [vmem:[%s4679_s1 + $0x2c0] ss:$8 sps:$4 sm:$0xff]   ;;  %v2769_v13 = vcombine.low %v3869_v50, %v260_v51 }
  0x19   : > { %1746 = vmatprep.subr.bf16.mxu0 %v3294_v21  ;;  %v3336_v55 = vld [vmem:[%s4679_s1 + $0x4c4] ss:$8 sps:$4 sm:$0xff]   ;;  %v373_v58 = vshrl.u32 %v3875_v53, 16  ;;  %v375_v59 = vshll.u32 %v3875_v53, 16  ;;  %v3339_v63 = vld [vmem:[%s4679_s1 + $0x4c0] ss:$8 sps:$4 sm:$0xff]   ;;  %v2978_v0 = vcombine.high %v3869_v50, %v1308_v57 }
  0x1a   : > { %v1306_v56 = vld [vmem:[%s3852_s30] sm:$0x88]  ;;  %v380_v60 = vshll.u32 %v3878_v54, 16  ;;  %v3340_v5 = vld [vmem:[%s4679_s1 + $0x2d4] ss:$8 sps:$4 sm:$0xff]   ;;  %v363_v14 = vshll.u32 %v3898_v4, 16 }
  0x1b   : > { %759 = vmatpush1.bf16.msra.mxu1 %v3296_v22  ;;  %v3888_v61 = vcombine.high %v1306_v56, %v256_v49  ;;  %v377_v1 = vrot.slane %v375_v59, 1  ;;  %v3342_v6 = vld [vmem:[%s4679_s1 + $0x4d4] ss:$8 sps:$4 sm:$0xff]   ;;  %v3906_v7 = vrot.slane %v2978_v0, 3  ;;  %v3344_v9 = vld [vmem:[%s4679_s1 + $0x2d0] ss:$8 sps:$4 sm:$0xff]   ;;  %v3932_v22 = vcombine.low %v1306_v56, %v256_v49 }
  0x1c   : > { %1747 = vmatpush1.bf16.msra.mxu0 %v3297_v23  ;;  %760 = vmatprep.subr.bf16.mxu1 %v3298_v24  ;;  %v382_v2 = vrot.slane %v380_v60, 1  ;;  %v3345_v11 = vld [vmem:[%s4679_s1 + $0x4d0] ss:$8 sps:$4 sm:$0xff]   ;;  %v3346_v15 = vld [vmem:[%s4679_s1 + $0x2e4] ss:$8 sps:$4 sm:$0xff]   ;;  %v361_v18 = vshrl.u32 %v3898_v4, 16  ;;  %v2977_v23 = vcombine.low %v3869_v50, %v1308_v57 }
  0x1d   : > { %1748 = vmatprep.subr.bf16.mxu0 %v3300_v25  ;;  %v1399_v3 = vrot.slane %v3888_v61, 3  ;;  %v378_v8 = vor.u32 %v377_v1, %v373_v58  ;;  %v3348_v16 = vld [vmem:[%s4679_s1 + $0x4e4] ss:$8 sps:$4 sm:$0xff]   ;;  %v3350_v17 = vld [vmem:[%s4679_s1 + $0x2e0] ss:$8 sps:$4 sm:$0xff]   ;;  %v365_v20 = vrot.slane %v363_v14, 1 }
  0x1e   : > { %v3351_v19 = vld [vmem:[%s4679_s1 + $0x4e0] ss:$8 sps:$4 sm:$0xff]   ;;  %v368_v21 = vshll.u32 %v2769_v13, 16  ;;  %v3352_v24 = vld [vmem:[%s4679_s1 + $0x2f4] ss:$8 sps:$4 sm:$0xff]  }
  0x1f   : > { %761 = vmatpush1.bf16.msra.mxu1 %v3302_v26  ;;  %v1401_v10 = vsel %vm1395_vm0, %v1399_v3, %v3906_v7  ;;  %v383_v12 = vsel %vm359_vm1, %v378_v8, %v382_v2  ;;  %v3354_v25 = vld [vmem:[%s4679_s1 + $0x4f4] ss:$8 sps:$4 sm:$0xff]   ;;  %v3356_v26 = vld [vmem:[%s4679_s1 + $0x2f0] ss:$8 sps:$4 sm:$0xff]   ;;  %v3381_v49 = vld [vmem:[%s4679_s1 + $0x520] ss:$8 sps:$4 sm:$0xff]  }
  0x20   : > { %1749 = vmatpush1.bf16.msra.mxu0 %v3303_v27  ;;  %762 = vmatprep.subr.bf16.mxu1 %v3304_v28  ;;  %v3357_v27 = vld [vmem:[%s4679_s1 + $0x4f0] ss:$8 sps:$4 sm:$0xff]   ;;  %v366_v28 = vor.u32 %v365_v20, %v361_v18  ;;  %v3386_v51 = vld [vmem:[%s4679_s1 + $0x334] ss:$8 sps:$4 sm:$0xff]   ;;  %v3392_v56 = vld [vmem:[%s4679_s1 + $0x344] ss:$8 sps:$4 sm:$0xff]  }
  0x21   : > { %1750 = vmatprep.subr.bf16.mxu0 %v3306_v29  ;;  %780 = vmatprep.mubr.bf16.mxu1 %v383_v12  ;;  %v370_v29 = vrot.slane %v368_v21, 1  ;;  %v3395_v57 = vld [vmem:[%s4679_s1 + $0x544] ss:$8 sps:$4 sm:$0xff]   ;;  %v3390_v58 = vld [vmem:[%s4679_s1 + $0x340] ss:$8 sps:$4 sm:$0xff]  }
  0x22   : > { %1768 = vmatprep.mubr.bf16.mxu0 %v1401_v10  ;;  %v3393_v59 = vld [vmem:[%s4679_s1 + $0x540] ss:$8 sps:$4 sm:$0xff]   ;;  %v3398_v60 = vld [vmem:[%s4679_s1 + $0x354] ss:$8 sps:$4 sm:$0xff]   ;;  %v3399_v0 = vld [vmem:[%s4679_s1 + $0x550] ss:$8 sps:$4 sm:$0xff]  }
  0x23   : > { %763 = vmatpush1.bf16.msra.mxu1 %v3308_v30  ;;  %v1396_v30 = vrot.slane %v3932_v22, 3  ;;  %v3404_v1 = vld [vmem:[%s4679_s1 + $0x364] ss:$8 sps:$4 sm:$0xff]   ;;  %v3402_v3 = vld [vmem:[%s4679_s1 + $0x360] ss:$8 sps:$4 sm:$0xff]  }
  0x24   : > { %1751 = vmatpush1.bf16.msra.mxu0 %v3309_v31  ;;  %764 = vmatprep.subr.bf16.mxu1 %v3310_v32  ;;  %v1397_v31 = vrot.slane %v2977_v23, 3  ;;  %v3362_v32 = vld [vmem:[%s4679_s1 + $0x304] ss:$8 sps:$4 sm:$0xff]   ;;  %v4071_v18 = vld [vmem:[%s3852_s30 + $0x38] sm:$0x77] }
  0x25   : > { %1752 = vmatprep.subr.bf16.mxu0 %v3312_v33  ;;  %v3367_v33 = vld [vmem:[%s4679_s1 + $0x504] ss:$8 sps:$4 sm:$0xff]  }
  0x26   : > { %v4043_v8 = vld [vmem:[%s3852_s30 + $0x8] sm:$0xff] }
  0x27   : > { %765 = vmatpush1.bf16.msra.mxu1 %v3314_v34  ;;  %v411_v34 = vshrl.u32 %v3878_v54, 16  ;;  %v3384_v54 = vld [vmem:[%s4679_s1 + $0x330] ss:$8 sps:$4 sm:$0xff]   ;;  %v4049_v10 = vld [vmem:[%s3852_s30 + $0x28] sm:$0xff] }
  0x28   : > { %1753 = vmatpush1.bf16.msra.mxu0 %v3315_v35  ;;  %766 = vmatprep.subr.bf16.mxu1 %v3316_v36  ;;  %v3360_v35 = vld [vmem:[%s4679_s1 + $0x300] ss:$8 sps:$4 sm:$0xff]   ;;  %v3416_v23 = vld [vmem:[%s4679_s1 + $0x384] ss:$8 sps:$4 sm:$0xff]  }
  0x29   : > { %1754 = vmatprep.subr.bf16.mxu0 %v3318_v37  ;;  %v3365_v36 = vld [vmem:[%s4679_s1 + $0x500] ss:$8 sps:$4 sm:$0xff]   ;;  %v371_v37 = vsel %vm359_vm1, %v366_v28, %v370_v29 }
  0x2b   : > { %767 = vmatpush1.bf16.msra.mxu1 %v3320_v38  ;;  %v1398_v38 = vsel %vm1395_vm0, %v1396_v30, %v1397_v31 }
  0x2c   : > { %1755 = vmatpush1.bf16.msra.mxu0 %v3321_v39  ;;  %768 = vmatprep.subr.bf16.mxu1 %v3322_v40  ;;  %v3374_v39 = vld [vmem:[%s4679_s1 + $0x314] ss:$8 sps:$4 sm:$0xff]  }
  0x2d   : > { %1756 = vmatprep.subr.bf16.mxu0 %v3324_v41  ;;  %v3377_v40 = vld [vmem:[%s4679_s1 + $0x514] ss:$8 sps:$4 sm:$0xff]   ;;  %v413_v41 = vor.u32 %v411_v34, %v382_v2  ;;  %v3407_v2 = vld [vmem:[%s4679_s1 + $0x564] ss:$8 sps:$4 sm:$0xff]  }
  0x2e   : > { %v3425_v34 = vld [vmem:[%s4679_s1 + $0x594] ss:$8 sps:$4 sm:$0xff]  }
  0x2f   : > { %769 = vmatpush1.bf16.msra.mxu1 %v3326_v42  ;;  %v3372_v42 = vld [vmem:[%s4679_s1 + $0x310] ss:$8 sps:$4 sm:$0xff]  }
  0x30   : > { %1757 = vmatpush1.bf16.msra.mxu0 %v3327_v43  ;;  %770 = vmatprep.subr.bf16.mxu1 %v3328_v44  ;;  %v408_v43 = vshrl.u32 %v2769_v13, 16  ;;  %v3375_v44 = vld [vmem:[%s4679_s1 + $0x510] ss:$8 sps:$4 sm:$0xff]  }
  0x31   : > { %1758 = vmatprep.subr.bf16.mxu0 %v3330_v45  ;;  %v3380_v45 = vld [vmem:[%s4679_s1 + $0x324] ss:$8 sps:$4 sm:$0xff]   ;;  %v3408_v13 = vld [vmem:[%s4679_s1 + $0x370] ss:$8 sps:$4 sm:$0xff]  }
  0x32   : > { %v410_v48 = vor.u32 %v408_v43, %v370_v29  ;;  %v3434_v43 = vld [vmem:[%s4679_s1 + $0x3b4] ss:$8 sps:$4 sm:$0xff]  }
  0x33   : > { %771 = vmatpush1.bf16.msra.mxu1 %v3332_v46  ;;  %v3383_v46 = vld [vmem:[%s4679_s1 + $0x524] ss:$8 sps:$4 sm:$0xff]  }
  0x34   : > { %1759 = vmatpush1.bf16.msra.mxu0 %v3333_v47  ;;  %772 = vmatprep.subr.bf16.mxu1 %v3334_v52  ;;  %v3378_v47 = vld [vmem:[%s4679_s1 + $0x320] ss:$8 sps:$4 sm:$0xff]   ;;  %v3389_v52 = vld [vmem:[%s4679_s1 + $0x534] ss:$8 sps:$4 sm:$0xff]  }
  0x35   : > { %1760 = vmatprep.subr.bf16.mxu0 %v3336_v55  ;;  %v3387_v55 = vld [vmem:[%s4679_s1 + $0x530] ss:$8 sps:$4 sm:$0xff]  }
  0x37   : > { %773 = vmatpush1.bf16.msra.mxu1 %v3338_v62  ;;  %v3401_v62 = vld [vmem:[%s4679_s1 + $0x554] ss:$8 sps:$4 sm:$0xff]  }
  0x38   : > { %1761 = vmatpush1.bf16.msra.mxu0 %v3339_v63  ;;  %774 = vmatprep.subr.bf16.mxu1 %v3340_v5  ;;  %v3396_v63 = vld [vmem:[%s4679_s1 + $0x350] ss:$8 sps:$4 sm:$0xff]   ;;  %v3405_v5 = vld [vmem:[%s4679_s1 + $0x560] ss:$8 sps:$4 sm:$0xff]  }
  0x39   : > { %1762 = vmatprep.subr.bf16.mxu0 %v3342_v6  ;;  %v3410_v6 = vld [vmem:[%s4679_s1 + $0x374] ss:$8 sps:$4 sm:$0xff]  }
  0x3b   : > { %775 = vmatpush1.bf16.msra.mxu1 %v3344_v9  ;;  %v4046_v9 = vld [vmem:[%s3852_s30 + $0x18] sm:$0xff] }
  0x3c   : > { %1763 = vmatpush1.bf16.msra.mxu0 %v3345_v11  ;;  %776 = vmatprep.subr.bf16.mxu1 %v3346_v15  ;;  %v4052_v11 = vld [vmem:[%s3852_s30 + $0x38] sm:$0x11]  ;;  %v4056_v12 = vcombine.high %v4043_v8, %v4046_v9 }
  0x3d   : > { %1764 = vmatprep.subr.bf16.mxu0 %v3348_v16  ;;  %v4063_v14 = vcombine.high %v4049_v10, %v4052_v11 }
  0x3e   : > { %v397_v15 = vshrl.u32 %v4056_v12, 16  ;;  %v399_v16 = vshll.u32 %v4056_v12, 16 }
  0x3f   : > { %777 = vmatpush1.bf16.msra.mxu1 %v3350_v17  ;;  %v4068_v17 = vld [vmem:[%s3852_s30 + $0x8] sm:$0x88]  ;;  %v404_v20 = vshll.u32 %v4063_v14, 16 }
  0x40   : > { %1765 = vmatpush1.bf16.msra.mxu0 %v3351_v19  ;;  %778 = vmatprep.subr.bf16.mxu1 %v3352_v24  ;;  %v3411_v19 = vld [vmem:[%s4679_s1 + $0x570] ss:$8 sps:$4 sm:$0xff]   ;;  %v4079_v21 = vcombine.high %v4068_v17, %v4046_v9  ;;  %v3419_v24 = vld [vmem:[%s4679_s1 + $0x584] ss:$8 sps:$4 sm:$0xff]  }
  0x41   : > { %1766 = vmatprep.subr.bf16.mxu0 %v3354_v25  ;;  %v401_v25 = vrot.slane %v399_v16, 1 }
  0x42   : > { %v1405_v28 = vrot.slane %v4079_v21, 3 }
  0x43   : > { %779 = vmatpush1.bf16.msra.mxu1 %v3356_v26  ;;  %v2980_v26 = vcombine.high %v4049_v10, %v4071_v18  ;;  %v402_v29 = vor.u32 %v401_v25, %v397_v15 }
  0x44   : > { %1767 = vmatpush1.bf16.msra.mxu0 %v3357_v27  ;;  %799 = vmatprep.subr.bf16.mxu1 %v3362_v32  ;;  %v4089_v27 = vrot.slane %v404_v20, 1  ;;  %v3417_v32 = vld [vmem:[%s4679_s1 + $0x580] ss:$8 sps:$4 sm:$0xff]   ;;  %v417_v20 = vshrl.u32 %v4063_v14, 16  ;;  %v3481_v14 = vld [vmem:[%s4679_s1 + $0x614] ss:$8 sps:$4 sm:$0xff]  }
  0x45   : > { %1787 = vmatprep.subr.bf16.mxu0 %v3367_v33  ;;  %v4092_v30 = vrot.slane %v2980_v26, 3  ;;  %v3422_v33 = vld [vmem:[%s4679_s1 + $0x394] ss:$8 sps:$4 sm:$0xff]  }
  0x46   : > { %781 = vmatmul.mubr.bf16.vlgmr.msra.gmra.mrb[0].mxu1 %v371_v37  ;;  %v3420_v37 = vld [vmem:[%s4679_s1 + $0x390] ss:$8 sps:$4 sm:$0xff]  }
  0x47   : > { %1769 = vmatmul.mubr.bf16.vlgmr.msra.gmra.mrb[0].mxu0 %v1398_v38  ;;  %800 = vmatpush1.bf16.msra.mxu1 %v3360_v35  ;;  %v407_v35 = vsel %vm359_vm1, %v402_v29, %v4089_v27  ;;  %v3423_v38 = vld [vmem:[%s4679_s1 + $0x590] ss:$8 sps:$4 sm:$0xff]   ;;  %v419_v29 = vor.u32 %v417_v20, %v4089_v27  ;;  %v3484_v27 = vld [vmem:[%s4679_s1 + $0x24] ss:$8 sps:$4 sm:$0xff]  }
  0x48   : > { %1788 = vmatpush1.bf16.msra.mxu0 %v3365_v36  ;;  %801 = vmatprep.subr.bf16.mxu1 %v3374_v39  ;;  %v1407_v36 = vsel %vm1395_vm0, %v1405_v28, %v4092_v30  ;;  %v3428_v39 = vld [vmem:[%s4679_s1 + $0x3a4] ss:$8 sps:$4 sm:$0xff]   ;;  %v3478_v28 = vld [vmem:[%s4679_s1 + $0x14] ss:$8 sps:$4 sm:$0xff]  }
  0x49   : > { %1789 = vmatprep.subr.bf16.mxu0 %v3377_v40  ;;  %790 = vmatprep.mubr.bf16.mxu1 %v413_v41  ;;  %v3431_v40 = vld [vmem:[%s4679_s1 + $0x5a4] ss:$8 sps:$4 sm:$0xff]   ;;  %v3426_v41 = vld [vmem:[%s4679_s1 + $0x3a0] ss:$8 sps:$4 sm:$0xff]  }
  0x4a   : > { %1778 = vmatprep.mubr.bf16.mxu0 %v3906_v7  ;;  %v3413_v7 = vld [vmem:[%s4679_s1 + $0x574] ss:$8 sps:$4 sm:$0xff]   ;;  %v3532_v20 = vld [vmem:[%s4679_s1 + $0xa4] ss:$8 sps:$4 sm:$0xff]  }
  0x4b   : > { %802 = vmatpush1.bf16.msra.mxu1 %v3372_v42  ;;  %v3429_v42 = vld [vmem:[%s4679_s1 + $0x5a0] ss:$8 sps:$4 sm:$0xff]  }
  0x4c   : > { %1790 = vmatpush1.bf16.msra.mxu0 %v3375_v44  ;;  %803 = vmatprep.subr.bf16.mxu1 %v3380_v45  ;;  %v3437_v44 = vld [vmem:[%s4679_s1 + $0x5b4] ss:$8 sps:$4 sm:$0xff]   ;;  %v3432_v45 = vld [vmem:[%s4679_s1 + $0x3b0] ss:$8 sps:$4 sm:$0xff]  }
  0x4d   : > { %1791 = vmatprep.subr.bf16.mxu0 %v3383_v46  ;;  %v3435_v46 = vld [vmem:[%s4679_s1 + $0x5b0] ss:$8 sps:$4 sm:$0xff]  }
  0x4e   : > { %791 = vmatmul.mubr.bf16.gmra.mrb[4].mxu1 %v410_v48  ;;  %v3443_v48 = vld [vmem:[%s4679_s1 + $0x5c4] ss:$8 sps:$4 sm:$0xff]  }
  0x4f   : > { %1779 = vmatmul.mubr.bf16.gmra.mrb[4].mxu0 %v1397_v31  ;;  %804 = vmatpush1.bf16.msra.mxu1 %v3378_v47  ;;  %v3414_v31 = vld [vmem:[%s4679_s1 + $0x380] ss:$8 sps:$4 sm:$0xff]   ;;  %v3440_v47 = vld [vmem:[%s4679_s1 + $0x3c4] ss:$8 sps:$4 sm:$0xff]  }
  0x50   : > { %1792 = vmatpush1.bf16.msra.mxu0 %v3381_v49  ;;  %805 = vmatprep.subr.bf16.mxu1 %v3386_v51  ;;  %v3438_v49 = vld [vmem:[%s4679_s1 + $0x3c0] ss:$8 sps:$4 sm:$0xff]  }
  0x51   : > { %1793 = vmatprep.subr.bf16.mxu0 %v3389_v52  ;;  %831 = vmatprep.mubr.bf16.mxu1 %v407_v35  ;;  %v3441_v51 = vld [vmem:[%s4679_s1 + $0x5c0] ss:$8 sps:$4 sm:$0xff]   ;;  %v3446_v52 = vld [vmem:[%s4679_s1 + $0x3d4] ss:$8 sps:$4 sm:$0xff]   ;;  %v1943_v35 = vshll.u32 %v3888_v61, 16 }
  0x52   : > { %1819 = vmatprep.mubr.bf16.mxu0 %v1407_v36  ;;  %v3487_v36 = vld [vmem:[%s4679_s1 + $0x624] ss:$8 sps:$4 sm:$0xff]  }
  0x53   : > { %806 = vmatpush1.bf16.msra.mxu1 %v3384_v54  ;;  %v4157_v54 = vcombine.low %v4043_v8, %v4046_v9  ;;  %v3461_v8 = vld [vmem:[%s4679_s1 + $0x5f4] ss:$8 sps:$4 sm:$0xff]  }
  0x54   : > { %1794 = vmatpush1.bf16.msra.mxu0 %v3387_v55  ;;  %807 = vmatprep.subr.bf16.mxu1 %v3392_v56  ;;  %v3449_v55 = vld [vmem:[%s4679_s1 + $0x5d4] ss:$8 sps:$4 sm:$0xff]   ;;  %v3444_v56 = vld [vmem:[%s4679_s1 + $0x3d0] ss:$8 sps:$4 sm:$0xff]  }
  0x55   : > { %1795 = vmatprep.subr.bf16.mxu0 %v3395_v57  ;;  %v3447_v57 = vld [vmem:[%s4679_s1 + $0x5d0] ss:$8 sps:$4 sm:$0xff]  }
  0x57   : > { %808 = vmatpush1.bf16.msra.mxu1 %v3390_v58  ;;  %v3452_v58 = vld [vmem:[%s4679_s1 + $0x3e4] ss:$8 sps:$4 sm:$0xff]  }
  0x58   : > { %1796 = vmatpush1.bf16.msra.mxu0 %v3393_v59  ;;  %809 = vmatprep.subr.bf16.mxu1 %v3398_v60  ;;  %v2771_v59 = vcombine.low %v4049_v10, %v4052_v11  ;;  %v387_v60 = vshll.u32 %v4157_v54, 16  ;;  %v3459_v11 = vld [vmem:[%s4679_s1 + $0x5f0] ss:$8 sps:$4 sm:$0xff]  }
  0x59   : > { %1797 = vmatprep.subr.bf16.mxu0 %v3401_v62  ;;  %v3455_v62 = vld [vmem:[%s4679_s1 + $0x5e4] ss:$8 sps:$4 sm:$0xff]  }
  0x5b   : > { %810 = vmatpush1.bf16.msra.mxu1 %v3396_v63  ;;  %v3450_v63 = vld [vmem:[%s4679_s1 + $0x3e0] ss:$8 sps:$4 sm:$0xff]  }
  0x5c   : > { %1798 = vmatpush1.bf16.msra.mxu0 %v3399_v0  ;;  %811 = vmatprep.subr.bf16.mxu1 %v3404_v1  ;;  %v3453_v0 = vld [vmem:[%s4679_s1 + $0x5e0] ss:$8 sps:$4 sm:$0xff]   ;;  %v4185_v1 = vcombine.low %v4068_v17, %v4046_v9  ;;  %v3456_v9 = vld [vmem:[%s4679_s1 + $0x3f0] ss:$8 sps:$4 sm:$0xff]  }
  0x5d   : > { %1799 = vmatprep.subr.bf16.mxu0 %v3407_v2  ;;  %v3458_v2 = vld [vmem:[%s4679_s1 + $0x3f4] ss:$8 sps:$4 sm:$0xff]  }
  0x5f   : > { %812 = vmatpush1.bf16.msra.mxu1 %v3402_v3  ;;  %v2979_v3 = vcombine.low %v4049_v10, %v4071_v18  ;;  %v1402_v18 = vrot.slane %v4185_v1, 3 }
  0x60   : > { %1800 = vmatpush1.bf16.msra.mxu0 %v3405_v5  ;;  %813 = vmatprep.subr.bf16.mxu1 %v3410_v6  ;;  %v385_v5 = vshrl.u32 %v4157_v54, 16  ;;  %v389_v6 = vrot.slane %v387_v60, 1  ;;  %v3500_v60 = vld [vmem:[%s4679_s1 + $0x50] ss:$8 sps:$4 sm:$0xff]  }
  0x61   : > { %1801 = vmatprep.subr.bf16.mxu0 %v3413_v7  ;;  %v392_v7 = vshll.u32 %v2771_v59, 16  ;;  %v1403_v15 = vrot.slane %v2979_v3, 3  ;;  %v3509_v3 = vld [vmem:[%s4679_s1 + $0x660] ss:$8 sps:$4 sm:$0xff]  }
  0x62   : > { %v390_v16 = vor.u32 %v389_v6, %v385_v5  ;;  %v3514_v5 = vld [vmem:[%s4679_s1 + $0x74] ss:$8 sps:$4 sm:$0xff]  }
  0x63   : > { %814 = vmatpush1.bf16.msra.mxu1 %v3408_v13  ;;  %v3468_v13 = vld [vmem:[%s4679_s1 + $0x4] ss:$8 sps:$4 sm:$0xff]   ;;  %v394_v17 = vrot.slane %v392_v7, 1  ;;  %v1404_v26 = vsel %vm1395_vm0, %v1402_v18, %v1403_v15  ;;  %v3517_v6 = vld [vmem:[%s4679_s1 + $0x674] ss:$8 sps:$4 sm:$0xff]  }
  0x64   : > { %1802 = vmatpush1.bf16.msra.mxu0 %v3411_v19  ;;  %815 = vmatprep.subr.bf16.mxu1 %v3416_v23  ;;  %v3475_v19 = vld [vmem:[%s4679_s1 + $0x604] ss:$8 sps:$4 sm:$0xff]   ;;  %v3466_v23 = vld [vmem:[%s4679_s1] ss:$8 sps:$4 sm:$0xff]   ;;  %v3512_v7 = vld [vmem:[%s4679_s1 + $0x70] ss:$8 sps:$4 sm:$0xff]  }
  0x65   : > { %1803 = vmatprep.subr.bf16.mxu0 %v3419_v24  ;;  %v3473_v24 = vld [vmem:[%s4679_s1 + $0x600] ss:$8 sps:$4 sm:$0xff]   ;;  %v395_v25 = vsel %vm359_vm1, %v390_v16, %v394_v17  ;;  %v3526_v16 = vld [vmem:[%s4679_s1 + $0x94] ss:$8 sps:$4 sm:$0xff]   ;;  %v3524_v18 = vld [vmem:[%s4679_s1 + $0x90] ss:$8 sps:$4 sm:$0xff]  }
  0x67   : > { %816 = vmatpush1.bf16.msra.mxu1 %v3414_v31  ;;  %v3476_v31 = vld [vmem:[%s4679_s1 + $0x10] ss:$8 sps:$4 sm:$0xff]  }
  0x68   : > { %1804 = vmatpush1.bf16.msra.mxu0 %v3417_v32  ;;  %817 = vmatprep.subr.bf16.mxu1 %v3422_v33  ;;  %v414_v32 = vshrl.u32 %v2771_v59, 16  ;;  %v1940_v33 = vshrl.u32 %v3888_v61, 16  ;;  %v3490_v61 = vld [vmem:[%s4679_s1 + $0x34] ss:$8 sps:$4 sm:$0xff]  }
  0x69   : > { %1805 = vmatprep.subr.bf16.mxu0 %v3425_v34  ;;  %v3479_v34 = vld [vmem:[%s4679_s1 + $0x610] ss:$8 sps:$4 sm:$0xff]  }
  0x6b   : > { %818 = vmatpush1.bf16.msra.mxu1 %v3420_v37  ;;  %v3482_v37 = vld [vmem:[%s4679_s1 + $0x20] ss:$8 sps:$4 sm:$0xff]  }
  0x6c   : > { %1806 = vmatpush1.bf16.msra.mxu0 %v3423_v38  ;;  %819 = vmatprep.subr.bf16.mxu1 %v3428_v39  ;;  %v3485_v38 = vld [vmem:[%s4679_s1 + $0x620] ss:$8 sps:$4 sm:$0xff]   ;;  %v416_v39 = vor.u32 %v414_v32, %v394_v17  ;;  %v3529_v17 = vld [vmem:[%s4679_s1 + $0x694] ss:$8 sps:$4 sm:$0xff]   ;;  %v3547_v32 = vld [vmem:[%s4679_s1 + $0x6c4] ss:$8 sps:$4 sm:$0xff]  }
  0x6d   : > { %1807 = vmatprep.subr.bf16.mxu0 %v3431_v40  ;;  %v4247_v40 = vld [vmem:[%s3852_s30 + $0x30] sm:$0xff] }
  0x6f   : > { %820 = vmatpush1.bf16.msra.mxu1 %v3426_v41  ;;  %v1942_v41 = vrot.slane %v1940_v33, 3  ;;  %v3542_v33 = vld [vmem:[%s4679_s1 + $0xc0] ss:$8 sps:$4 sm:$0xff]  }
  0x70   : > { %1808 = vmatpush1.bf16.msra.mxu0 %v3429_v42  ;;  %821 = vmatprep.subr.bf16.mxu1 %v3434_v43  ;;  %v1945_v42 = vrot.slane %v1943_v35, 4  ;;  %v3493_v43 = vld [vmem:[%s4679_s1 + $0x634] ss:$8 sps:$4 sm:$0xff]   ;;  %v3545_v35 = vld [vmem:[%s4679_s1 + $0x6c0] ss:$8 sps:$4 sm:$0xff]  }
  0x71   : > { %1809 = vmatprep.subr.bf16.mxu0 %v3437_v44 }
  0x73   : > { %822 = vmatpush1.bf16.msra.mxu1 %v3432_v45 }
  0x74   : > { %1810 = vmatpush1.bf16.msra.mxu0 %v3435_v46  ;;  %823 = vmatprep.subr.bf16.mxu1 %v3440_v47  ;;  %v3488_v46 = vld [vmem:[%s4679_s1 + $0x30] ss:$8 sps:$4 sm:$0xff]   ;;  %v3496_v47 = vld [vmem:[%s4679_s1 + $0x44] ss:$8 sps:$4 sm:$0xff]  }
  0x75   : > { %1811 = vmatprep.subr.bf16.mxu0 %v3443_v48  ;;  %v1946_v48 = vor.u32 %v1945_v42, %v1942_v41 }
  0x77   : > { %824 = vmatpush1.bf16.msra.mxu1 %v3438_v49 }
  0x78   : > { %1812 = vmatpush1.bf16.msra.mxu0 %v3441_v51  ;;  %825 = vmatprep.subr.bf16.mxu1 %v3446_v52  ;;  %v3499_v52 = vld [vmem:[%s4679_s1 + $0x644] ss:$8 sps:$4 sm:$0xff]  }
  0x79   : > { %1813 = vmatprep.subr.bf16.mxu0 %v3449_v55 }
  0x7b   : > { %826 = vmatpush1.bf16.msra.mxu1 %v3444_v56  ;;  %v3494_v56 = vld [vmem:[%s4679_s1 + $0x40] ss:$8 sps:$4 sm:$0xff]  }
  0x7c   : > { %1814 = vmatpush1.bf16.msra.mxu0 %v3447_v57  ;;  %827 = vmatprep.subr.bf16.mxu1 %v3452_v58  ;;  %v3497_v57 = vld [vmem:[%s4679_s1 + $0x640] ss:$8 sps:$4 sm:$0xff]   ;;  %v3502_v58 = vld [vmem:[%s4679_s1 + $0x54] ss:$8 sps:$4 sm:$0xff]  }
  0x7d   : > { %1815 = vmatprep.subr.bf16.mxu0 %v3455_v62  ;;  %v3503_v62 = vld [vmem:[%s4679_s1 + $0x650] ss:$8 sps:$4 sm:$0xff]  }
  0x7f   : > { %828 = vmatpush1.bf16.msra.mxu1 %v3450_v63  ;;  %v3508_v63 = vld [vmem:[%s4679_s1 + $0x64] ss:$8 sps:$4 sm:$0xff]  }
  0x80   : > { %1816 = vmatpush1.bf16.msra.mxu0 %v3453_v0  ;;  %829 = vmatprep.subr.bf16.mxu1 %v3458_v2  ;;  %v3511_v0 = vld [vmem:[%s4679_s1 + $0x664] ss:$8 sps:$4 sm:$0xff]   ;;  %v3506_v2 = vld [vmem:[%s4679_s1 + $0x60] ss:$8 sps:$4 sm:$0xff]  }
  0x81   : > { %1817 = vmatprep.subr.bf16.mxu0 %v3461_v8  ;;  %v3515_v8 = vld [vmem:[%s4679_s1 + $0x670] ss:$8 sps:$4 sm:$0xff]  }
  0x83   : > { %830 = vmatpush1.bf16.msra.mxu1 %v3456_v9  ;;  %v3520_v9 = vld [vmem:[%s4679_s1 + $0x84] ss:$8 sps:$4 sm:$0xff]  }
  0x84   : > { %1818 = vmatpush1.bf16.msra.mxu0 %v3459_v11  ;;  %1204 = vmatprep.subr.bf16.mxu1 %v3468_v13  ;;  %v3523_v11 = vld [vmem:[%s4679_s1 + $0x684] ss:$8 sps:$4 sm:$0xff]   ;;  %v3518_v13 = vld [vmem:[%s4679_s1 + $0x80] ss:$8 sps:$4 sm:$0xff]  }
  0x85   : > { %2318 = vmatprep.subr.bf16.mxu0 %v3475_v19  ;;  %v3527_v19 = vld [vmem:[%s4679_s1 + $0x690] ss:$8 sps:$4 sm:$0xff]  }
  0x86   : > { %832 = vmatmul.mubr.bf16.vlgmr.msra.gmra.mrb[0].mxu1 %v395_v25  ;;  %v3533_v25 = vld [vmem:[%s4679_s1 + $0x6a0] ss:$8 sps:$4 sm:$0xff]  }
  0x87   : > { %1820 = vmatmul.mubr.bf16.vlgmr.msra.gmra.mrb[0].mxu0 %v1404_v26  ;;  %1205 = vmatpush1.bf16.msra.mxu1 %v3466_v23  ;;  %v3535_v23 = vld [vmem:[%s4679_s1 + $0x6a4] ss:$8 sps:$4 sm:$0xff]   ;;  %v3538_v26 = vld [vmem:[%s4679_s1 + $0xb4] ss:$8 sps:$4 sm:$0xff]  }
  0x88   : > { %2319 = vmatpush1.bf16.msra.mxu0 %v3473_v24  ;;  %1206 = vmatprep.subr.bf16.mxu1 %v3478_v28  ;;  %v3530_v24 = vld [vmem:[%s4679_s1 + $0xa0] ss:$8 sps:$4 sm:$0xff]   ;;  %v3541_v28 = vld [vmem:[%s4679_s1 + $0x6b4] ss:$8 sps:$4 sm:$0xff]  }
  0x89   : > { %2320 = vmatprep.subr.bf16.mxu0 %v3481_v14  ;;  %841 = vmatprep.mubr.bf16.mxu1 %v419_v29  ;;  %v3536_v14 = vld [vmem:[%s4679_s1 + $0xb0] ss:$8 sps:$4 sm:$0xff]  }
  0x8a   : > { %1829 = vmatprep.mubr.bf16.mxu0 %v4092_v30  ;;  %v3110_v30 = vcombine.high %v3869_v50, %v4247_v40  ;;  %v3491_v50 = vld [vmem:[%s4679_s1 + $0x630] ss:$8 sps:$4 sm:$0xff]  }
  0x8b   : > { %1207 = vmatpush1.bf16.msra.mxu1 %v3476_v31  ;;  %v3539_v29 = vld [vmem:[%s4679_s1 + $0x6b0] ss:$8 sps:$4 sm:$0xff]   ;;  %v3544_v31 = vld [vmem:[%s4679_s1 + $0xc4] ss:$8 sps:$4 sm:$0xff]  }
  0x8c   : > { %2321 = vmatpush1.bf16.msra.mxu0 %v3479_v34  ;;  %1208 = vmatprep.subr.bf16.mxu1 %v3484_v27  ;;  %v1948_v44 = vshrl.u32 %v3110_v30, 16  ;;  %v1951_v45 = vshll.u32 %v3110_v30, 16  ;;  %v1957_v34 = vshrl.u32 %v4185_v1, 16  ;;  %v1960_v27 = vshll.u32 %v4185_v1, 16  ;;  %v1845_v30 = vld [vmem:[%s3852_s30 + $0x38] sm:$0xff] }
  0x8d   : > { %2322 = vmatprep.subr.bf16.mxu0 %v3487_v36  ;;  %v3670_v36 = vld [vmem:[%s3852_s30 + $0x20] sm:$0xff]  ;;  %v1923_v1 = vshrl.u32 %v3932_v22, 16 }
  0x8e   : > { %842 = vmatmul.mubr.bf16.gmra.mrb[4].mxu1 %v416_v39  ;;  %v1950_v49 = vrot.slane %v1948_v44, 3  ;;  %v1953_v51 = vrot.slane %v1951_v45, 4  ;;  %v3553_v39 = vld [vmem:[%s4679_s1 + $0x6d4] ss:$8 sps:$4 sm:$0xff]   ;;  %v1959_v41 = vrot.slane %v1957_v34, 3  ;;  %v1962_v42 = vrot.slane %v1960_v27, 4 }
  0x8f   : > { %1830 = vmatmul.mubr.bf16.gmra.mrb[4].mxu0 %v1403_v15  ;;  %1209 = vmatpush1.bf16.msra.mxu1 %v3482_v37  ;;  %v3521_v15 = vld [vmem:[%s4679_s1 + $0x680] ss:$8 sps:$4 sm:$0xff]   ;;  %v3109_v37 = vcombine.low %v3670_v36, %v4247_v40  ;;  %v3548_v40 = vld [vmem:[%s4679_s1 + $0xd0] ss:$8 sps:$4 sm:$0xff]  }
  0x90   : > { %2323 = vmatpush1.bf16.msra.mxu0 %v3485_v38  ;;  %1210 = vmatprep.subr.bf16.mxu1 %v3490_v61  ;;  %v4270_v55 = vor.u32 %v1953_v51, %v1950_v49  ;;  %v3550_v38 = vld [vmem:[%s4679_s1 + $0xd4] ss:$8 sps:$4 sm:$0xff]   ;;  %v1926_v61 = vshll.u32 %v3932_v22, 16  ;;  %v3556_v22 = vld [vmem:[%s4679_s1 + $0xe4] ss:$8 sps:$4 sm:$0xff]   ;;  %v1925_v51 = vrot.slane %v1923_v1, 3 }
  0x91   : > { %2324 = vmatprep.subr.bf16.mxu0 %v3493_v43  ;;  %1236 = vmatprep.mubr.bf16.mxu1 %v3875_v53  ;;  %v3505_v53 = vld [vmem:[%s4679_s1 + $0x654] ss:$8 sps:$4 sm:$0xff]   ;;  %v3551_v43 = vld [vmem:[%s4679_s1 + $0x6d0] ss:$8 sps:$4 sm:$0xff]   ;;  %v1931_v44 = vshrl.u32 %v3109_v37, 16  ;;  %v1934_v45 = vshll.u32 %v3109_v37, 16 }
  0x92   : > { %v1955_v59 = vsel %vm1921_vm2, %v1946_v48, %v4270_v55  ;;  %v3554_v49 = vld [vmem:[%s4679_s1 + $0xe0] ss:$8 sps:$4 sm:$0xff]   ;;  %v3591_v37 = vld [vmem:[%s4679_s1 + $0x734] ss:$8 sps:$4 sm:$0xff]   ;;  %v3589_v1 = vld [vmem:[%s4679_s1 + $0x730] ss:$8 sps:$4 sm:$0xff]  }
  0x93   : > { %1211 = vmatpush1.bf16.msra.mxu1 %v3488_v46  ;;  %2350 = vmatprep.mubr.bf16.mxu0 %v1955_v59  ;;  %v3111_v46 = vcombine.low %v4049_v10, %v1845_v30  ;;  %v1936_v59 = vrot.slane %v1934_v45, 4  ;;  %v3583_v36 = vld [vmem:[%s4679_s1 + $0x720] ss:$8 sps:$4 sm:$0xff]   ;;  %v3606_v45 = vld [vmem:[%s4679_s1 + $0x164] ss:$8 sps:$4 sm:$0xff]  }
  0x94   : > { %2325 = vmatpush1.bf16.msra.mxu0 %v3491_v50  ;;  %1212 = vmatprep.subr.bf16.mxu1 %v3496_v47  ;;  %v3559_v50 = vld [vmem:[%s4679_s1 + $0x6e4] ss:$8 sps:$4 sm:$0xff]  }
  0x95   : > { %2326 = vmatprep.subr.bf16.mxu0 %v3499_v52  ;;  %v1965_v47 = vshrl.u32 %v3111_v46, 16  ;;  %v1968_v48 = vshll.u32 %v3111_v46, 16  ;;  %v1928_v52 = vrot.slane %v1926_v61, 4  ;;  %v3594_v61 = vld [vmem:[%s4679_s1 + $0x144] ss:$8 sps:$4 sm:$0xff]  }
  0x96   : > { %v3609_v46 = vld [vmem:[%s4679_s1 + $0x764] ss:$8 sps:$4 sm:$0xff]  }
  0x97   : > { %1213 = vmatpush1.bf16.msra.mxu1 %v3494_v56  ;;  %v1963_v56 = vor.u32 %v1962_v42, %v1959_v41  ;;  %v3592_v41 = vld [vmem:[%s4679_s1 + $0x140] ss:$8 sps:$4 sm:$0xff]  }
  0x98   : > { %2327 = vmatpush1.bf16.msra.mxu0 %v3497_v57  ;;  %1214 = vmatprep.subr.bf16.mxu1 %v3502_v58  ;;  %v3557_v57 = vld [vmem:[%s4679_s1 + $0x6e0] ss:$8 sps:$4 sm:$0xff]   ;;  %v1933_v58 = vrot.slane %v1931_v44, 3  ;;  %v3601_v44 = vld [vmem:[%s4679_s1 + $0x750] ss:$8 sps:$4 sm:$0xff]  }
  0x99   : > { %2328 = vmatprep.subr.bf16.mxu0 %v3505_v53  ;;  %v1967_v53 = vrot.slane %v1965_v47, 3  ;;  %v3595_v42 = vld [vmem:[%s4679_s1 + $0x740] ss:$8 sps:$4 sm:$0xff]   ;;  %v3612_v47 = vld [vmem:[%s4679_s1 + $0x174] ss:$8 sps:$4 sm:$0xff]  }
  0x9b   : > { %1215 = vmatpush1.bf16.msra.mxu1 %v3500_v60  ;;  %v1970_v60 = vrot.slane %v1968_v48, 4  ;;  %v3615_v48 = vld [vmem:[%s4679_s1 + $0x774] ss:$8 sps:$4 sm:$0xff]  }
  0x9c   : > { %2329 = vmatpush1.bf16.msra.mxu0 %v3503_v62  ;;  %1216 = vmatprep.subr.bf16.mxu1 %v3508_v63  ;;  %v3562_v62 = vld [vmem:[%s4679_s1 + $0xf4] ss:$8 sps:$4 sm:$0xff]  }
  0x9d   : > { %2330 = vmatprep.subr.bf16.mxu0 %v3511_v0  ;;  %v3565_v63 = vld [vmem:[%s4679_s1 + $0x6f4] ss:$8 sps:$4 sm:$0xff]   ;;  %v4414_v0 = vor.u32 %v1970_v60, %v1967_v53  ;;  %v3622_v60 = vld [vmem:[%s4679_s1 + $0x190] ss:$8 sps:$4 sm:$0xff]  }
  0x9e   : > { %v3627_v53 = vld [vmem:[%s4679_s1 + $0x794] ss:$8 sps:$4 sm:$0xff]  }
  0x9f   : > { %1217 = vmatpush1.bf16.msra.mxu1 %v3506_v2  ;;  %v3112_v2 = vcombine.high %v4049_v10, %v1845_v30  ;;  %v3568_v10 = vld [vmem:[%s4679_s1 + $0x104] ss:$8 sps:$4 sm:$0xff]  }
  0xa0   : > { %2331 = vmatpush1.bf16.msra.mxu0 %v3509_v3  ;;  %1218 = vmatprep.subr.bf16.mxu1 %v3514_v5  ;;  %v3560_v3 = vld [vmem:[%s4679_s1 + $0xf0] ss:$8 sps:$4 sm:$0xff]   ;;  %v3597_v30 = vld [vmem:[%s4679_s1 + $0x744] ss:$8 sps:$4 sm:$0xff]  }
  0xa1   : > { %2332 = vmatprep.subr.bf16.mxu0 %v3517_v6  ;;  %v3563_v5 = vld [vmem:[%s4679_s1 + $0x6f0] ss:$8 sps:$4 sm:$0xff]   ;;  %v1929_v6 = vor.u32 %v1928_v52, %v1925_v51  ;;  %v3618_v52 = vld [vmem:[%s4679_s1 + $0x184] ss:$8 sps:$4 sm:$0xff]  }
  0xa2   : > { %v3613_v51 = vld [vmem:[%s4679_s1 + $0x770] ss:$8 sps:$4 sm:$0xff]  }
  0xa3   : > { %1219 = vmatpush1.bf16.msra.mxu1 %v3512_v7  ;;  %v1937_v7 = vor.u32 %v1936_v59, %v1933_v58  ;;  %v3619_v58 = vld [vmem:[%s4679_s1 + $0x780] ss:$8 sps:$4 sm:$0xff]   ;;  %v3624_v59 = vld [vmem:[%s4679_s1 + $0x194] ss:$8 sps:$4 sm:$0xff]  }
  0xa4   : > { %2333 = vmatpush1.bf16.msra.mxu0 %v3515_v8  ;;  %1220 = vmatprep.subr.bf16.mxu1 %v3520_v9  ;;  %v4425_v8 = vsel %vm1921_vm2, %v1963_v56, %v4414_v0  ;;  %v3573_v9 = vld [vmem:[%s4679_s1 + $0x704] ss:$8 sps:$4 sm:$0xff]  }
  0xa5   : > { %2334 = vmatprep.subr.bf16.mxu0 %v3523_v11  ;;  %v188_v11 = vld [vmem:[%s3852_s30 + $0x20] sm:$0xff] }
  0xa6   : > { %v3621_v56 = vld [vmem:[%s4679_s1 + $0x784] ss:$8 sps:$4 sm:$0xff]  }
  0xa7   : > { %1221 = vmatpush1.bf16.msra.mxu1 %v3518_v13  ;;  %v1974_v13 = vshrl.u32 %v4079_v21, 16 }
  0xa8   : > { %2335 = vmatpush1.bf16.msra.mxu0 %v3521_v15  ;;  %1222 = vmatprep.subr.bf16.mxu1 %v3526_v16  ;;  %v1977_v15 = vshll.u32 %v4079_v21, 16  ;;  %v1982_v16 = vshrl.u32 %v3112_v2, 16  ;;  %v3576_v21 = vld [vmem:[%s4679_s1 + $0x114] ss:$8 sps:$4 sm:$0xff]  }
  0xa9   : > { %2336 = vmatprep.subr.bf16.mxu0 %v3529_v17  ;;  %v1985_v17 = vshll.u32 %v3112_v2, 16  ;;  %v3633_v2 = vld [vmem:[%s4679_s1 + $0x7a4] ss:$8 sps:$4 sm:$0xff]  }
  0xab   : > { %1223 = vmatpush1.bf16.msra.mxu1 %v3524_v18  ;;  %v3566_v18 = vld [vmem:[%s4679_s1 + $0x100] ss:$8 sps:$4 sm:$0xff]  }
  0xac   : > { %2337 = vmatpush1.bf16.msra.mxu0 %v3527_v19  ;;  %1224 = vmatprep.subr.bf16.mxu1 %v3532_v20  ;;  %v3571_v19 = vld [vmem:[%s4679_s1 + $0x700] ss:$8 sps:$4 sm:$0xff]   ;;  %v1938_v20 = vsel %vm1921_vm2, %v1929_v6, %v1937_v7  ;;  %v3636_v6 = vld [vmem:[%s4679_s1 + $0x1b4] ss:$8 sps:$4 sm:$0xff]  }
  0xad   : > { %2338 = vmatprep.subr.bf16.mxu0 %v3535_v23  ;;  %v3579_v23 = vld [vmem:[%s4679_s1 + $0x714] ss:$8 sps:$4 sm:$0xff]  }
  0xaf   : > { %1225 = vmatpush1.bf16.msra.mxu1 %v3530_v24  ;;  %v2842_v24 = vcombine.high %v188_v11, %v188_v11 }
  0xb0   : > { %2339 = vmatpush1.bf16.msra.mxu0 %v3533_v25  ;;  %1226 = vmatprep.subr.bf16.mxu1 %v3538_v26  ;;  %v1976_v25 = vrot.slane %v1974_v13, 3  ;;  %v1979_v26 = vrot.slane %v1977_v15, 4  ;;  %v3645_v13 = vld [vmem:[%s4679_s1 + $0x7c4] ss:$8 sps:$4 sm:$0xff]   ;;  %v3640_v15 = vld [vmem:[%s4679_s1 + $0x1c0] ss:$8 sps:$4 sm:$0xff]  }
  0xb1   : > { %2340 = vmatprep.subr.bf16.mxu0 %v3541_v28  ;;  %v1984_v28 = vrot.slane %v1982_v16, 3  ;;  %v3643_v16 = vld [vmem:[%s4679_s1 + $0x7c0] ss:$8 sps:$4 sm:$0xff]  }
  0xb2   : > { %v1980_v34 = vor.u32 %v1979_v26, %v1976_v25  ;;  %v3657_v25 = vld [vmem:[%s4679_s1 + $0x7e0] ss:$8 sps:$4 sm:$0xff]   ;;  %v3662_v26 = vld [vmem:[%s4679_s1 + $0x1f4] ss:$8 sps:$4 sm:$0xff]  }
  0xb3   : > { %1227 = vmatpush1.bf16.msra.mxu1 %v3536_v14  ;;  %v1987_v14 = vrot.slane %v1985_v17, 4  ;;  %v3648_v17 = vld [vmem:[%s4679_s1 + $0x1d4] ss:$8 sps:$4 sm:$0xff]  }
  0xb4   : > { %2341 = vmatpush1.bf16.msra.mxu0 %v3539_v29  ;;  %1228 = vmatprep.subr.bf16.mxu1 %v3544_v31  ;;  %v3574_v29 = vld [vmem:[%s4679_s1 + $0x110] ss:$8 sps:$4 sm:$0xff]  }
  0xb5   : > { %2342 = vmatprep.subr.bf16.mxu0 %v3547_v32  ;;  %v3577_v31 = vld [vmem:[%s4679_s1 + $0x710] ss:$8 sps:$4 sm:$0xff]   ;;  %v3585_v32 = vld [vmem:[%s4679_s1 + $0x724] ss:$8 sps:$4 sm:$0xff]   ;;  %v4463_v27 = vor.u32 %v1987_v14, %v1984_v28  ;;  %v3665_v28 = vld [vmem:[%s4679_s1 + $0x7f4] ss:$8 sps:$4 sm:$0xff]  }
  0xb6   : > { %v3660_v14 = vld [vmem:[%s4679_s1 + $0x1f0] ss:$8 sps:$4 sm:$0xff]  }
  0xb7   : > { %1229 = vmatpush1.bf16.msra.mxu1 %v3542_v33  ;;  %v2841_v33 = vcombine.low %v188_v11, %v188_v11  ;;  %v3642_v11 = vld [vmem:[%s4679_s1 + $0x1c4] ss:$8 sps:$4 sm:$0xff]  }
  0xb8   : > { %2343 = vmatpush1.bf16.msra.mxu0 %v3545_v35  ;;  %1230 = vmatprep.subr.bf16.mxu1 %v3550_v38  ;;  %v3580_v35 = vld [vmem:[%s4679_s1 + $0x120] ss:$8 sps:$4 sm:$0xff]   ;;  %v1989_v38 = vsel %vm1921_vm2, %v1980_v34, %v4463_v27 }
  0xb9   : > { %2344 = vmatprep.subr.bf16.mxu0 %v3553_v39  ;;  %v3586_v39 = vld [vmem:[%s4679_s1 + $0x130] ss:$8 sps:$4 sm:$0xff]  }
  0xbb   : > { %1231 = vmatpush1.bf16.msra.mxu1 %v3548_v40  ;;  %v3600_v40 = vld [vmem:[%s4679_s1 + $0x154] ss:$8 sps:$4 sm:$0xff]  }
  0xbc   : > { %2345 = vmatpush1.bf16.msra.mxu0 %v3551_v43  ;;  %1232 = vmatprep.subr.bf16.mxu1 %v3556_v22  ;;  %v3598_v43 = vld [vmem:[%s4679_s1 + $0x150] ss:$8 sps:$4 sm:$0xff]   ;;  %v3604_v22 = vld [vmem:[%s4679_s1 + $0x160] ss:$8 sps:$4 sm:$0xff]  }
  0xbd   : > { %2346 = vmatprep.subr.bf16.mxu0 %v3559_v50  ;;  %v3607_v50 = vld [vmem:[%s4679_s1 + $0x760] ss:$8 sps:$4 sm:$0xff]  }
  0xbf   : > { %1233 = vmatpush1.bf16.msra.mxu1 %v3554_v49  ;;  %v3610_v49 = vld [vmem:[%s4679_s1 + $0x170] ss:$8 sps:$4 sm:$0xff]  }
  0xc0   : > { %2347 = vmatpush1.bf16.msra.mxu0 %v3557_v57  ;;  %1234 = vmatprep.subr.bf16.mxu1 %v3562_v62  ;;  %v3616_v57 = vld [vmem:[%s4679_s1 + $0x180] ss:$8 sps:$4 sm:$0xff]   ;;  %v3625_v62 = vld [vmem:[%s4679_s1 + $0x790] ss:$8 sps:$4 sm:$0xff]  }
  0xc1   : > { %2348 = vmatprep.subr.bf16.mxu0 %v3565_v63  ;;  %v3630_v63 = vld [vmem:[%s4679_s1 + $0x1a4] ss:$8 sps:$4 sm:$0xff]  }
  0xc3   : > { %1235 = vmatpush1.bf16.msra.mxu1 %v3560_v3  ;;  %v3628_v3 = vld [vmem:[%s4679_s1 + $0x1a0] ss:$8 sps:$4 sm:$0xff]  }
  0xc4   : > { %2349 = vmatpush1.bf16.msra.mxu0 %v3563_v5  ;;  %1255 = vmatprep.subr.bf16.mxu1 %v3568_v10  ;;  %v3631_v5 = vld [vmem:[%s4679_s1 + $0x7a0] ss:$8 sps:$4 sm:$0xff]   ;;  %v3634_v10 = vld [vmem:[%s4679_s1 + $0x1b0] ss:$8 sps:$4 sm:$0xff]  }
  0xc5   : > { %2369 = vmatprep.subr.bf16.mxu0 %v3573_v9  ;;  %v3637_v9 = vld [vmem:[%s4679_s1 + $0x7b0] ss:$8 sps:$4 sm:$0xff]  }
  0xc6   : > { %1237 = vmatmul.mubr.bf16.vlgmr.msra.gmra.mrb[0].mxu1 %v3898_v4  ;;  %v3582_v4 = vld [vmem:[%s4679_s1 + $0x124] ss:$8 sps:$4 sm:$0xff]  }
  0xc7   : > { %2351 = vmatmul.mubr.bf16.vlgmr.msra.gmra.mrb[0].mxu0 %v1938_v20  ;;  %1256 = vmatpush1.bf16.msra.mxu1 %v3566_v18  ;;  %v3651_v18 = vld [vmem:[%s4679_s1 + $0x7d4] ss:$8 sps:$4 sm:$0xff]   ;;  %v3649_v20 = vld [vmem:[%s4679_s1 + $0x7d0] ss:$8 sps:$4 sm:$0xff]  }
  0xc8   : > { %2370 = vmatpush1.bf16.msra.mxu0 %v3571_v19  ;;  %1257 = vmatprep.subr.bf16.mxu1 %v3576_v21  ;;  %v3646_v19 = vld [vmem:[%s4679_s1 + $0x1d0] ss:$8 sps:$4 sm:$0xff]   ;;  %v3656_v21 = vld [vmem:[%s4679_s1 + $0x1e4] ss:$8 sps:$4 sm:$0xff]  }
  0xc9   : > { %2371 = vmatprep.subr.bf16.mxu0 %v3579_v23  ;;  %1246 = vmatprep.mubr.bf16.mxu1 %v2842_v24  ;;  %v3659_v23 = vld [vmem:[%s4679_s1 + $0x7e4] ss:$8 sps:$4 sm:$0xff]   ;;  %v3654_v24 = vld [vmem:[%s4679_s1 + $0x1e0] ss:$8 sps:$4 sm:$0xff]  }
  0xca   : > { %2360 = vmatprep.mubr.bf16.mxu0 %v4270_v55  ;;  %v3588_v55 = vld [vmem:[%s4679_s1 + $0x134] ss:$8 sps:$4 sm:$0xff]  }
  0xcb   : > { %1258 = vmatpush1.bf16.msra.mxu1 %v3574_v29  ;;  %v3663_v29 = vld [vmem:[%s4679_s1 + $0x7f0] ss:$8 sps:$4 sm:$0xff]  }
  0xcc   : > { %2372 = vmatpush1.bf16.msra.mxu0 %v3577_v31  ;;  %1259 = vmatprep.subr.bf16.mxu1 %v3582_v4  ;;  %v3671_v31 = vld [vmem:[%s3852_s30 + $0x28] sm:$0xff]  ;;  %s3245_s30 = smul.u32 24, %s4685_s13 }
  0xcd   : > { %2373 = vmatprep.subr.bf16.mxu0 %v3585_v32  ;;  %v2844_v4 = vcombine.high %v3671_v31, %v3671_v31  ;;  %v2843_v32 = vcombine.low %v3671_v31, %v3671_v31 }
  0xce   : > { %1247 = vmatmul.mubr.bf16.gmra.mrb[4].mxu1 %v2841_v33  ;;  %v2449_v33 = vlaneseq  ;;  %s4664_s24 = scalar_lea.vmem %s4680_s2, %s3245_s30 }
  0xcf   : > { %2361 = vmatmul.mubr.bf16.gmra.mrb[4].mxu0 %v1937_v7  ;;  %1260 = vmatpush1.bf16.msra.mxu1 %v3580_v35  ;;  %v3639_v7 = vld [vmem:[%s4679_s1 + $0x7b4] ss:$8 sps:$4 sm:$0xff]  }
  0xd0   : > { %2374 = vmatpush1.bf16.msra.mxu0 %v3583_v36  ;;  %1261 = vmatprep.subr.bf16.mxu1 %v3588_v55  ;;  %v4636_v34 = vshrl.u32 %v2449_v33, 7  ;;  %vm2558_vm15 = vcmp.lt.s32.totalorder %v2449_v33, 256 }
  0xd1   : > { %2375 = vmatprep.subr.bf16.mxu0 %v3591_v37  ;;  %1287 = vmatprep.mubr.bf16.mxu1 %v4056_v12  ;;  %v3603_v12 = vld [vmem:[%s4679_s1 + $0x754] ss:$8 sps:$4 sm:$0xff]  }
  0xd2   : > { %2401 = vmatprep.mubr.bf16.mxu0 %v1989_v38  ;;  %v2451_v35 = vadd.s32 8, %v4636_v34  ;;  %v4640_v36 = vmul.u32.u64.low 2863311531, %v4636_v34  ;;  %v4641_v55 = vmul.u32.u64.high 2863311531, %v4636_v34, %v4640_v36 }
  0xd3   : > { %1262 = vmatpush1.bf16.msra.mxu1 %v3586_v39 }
  0xd4   : > { %2376 = vmatpush1.bf16.msra.mxu0 %v3589_v1  ;;  %1263 = vmatprep.subr.bf16.mxu1 %v3594_v61 }
  0xd5   : > { %2377 = vmatprep.subr.bf16.mxu0 %v3597_v30 }
  0xd7   : > { %1264 = vmatpush1.bf16.msra.mxu1 %v3592_v41 }
  0xd8   : > { %2378 = vmatpush1.bf16.msra.mxu0 %v3595_v42  ;;  %1265 = vmatprep.subr.bf16.mxu1 %v3600_v40 }
  0xd9   : > { %2379 = vmatprep.subr.bf16.mxu0 %v3603_v12 }
  0xdb   : > { %1266 = vmatpush1.bf16.msra.mxu1 %v3598_v43 }
  0xdc   : > { %2380 = vmatpush1.bf16.msra.mxu0 %v3601_v44  ;;  %1267 = vmatprep.subr.bf16.mxu1 %v3606_v45 }
  0xdd   : > { %2381 = vmatprep.subr.bf16.mxu0 %v3609_v46 }
  0xdf   : > { %1268 = vmatpush1.bf16.msra.mxu1 %v3604_v22 }
  0xe0   : > { %2382 = vmatpush1.bf16.msra.mxu0 %v3607_v50  ;;  %1269 = vmatprep.subr.bf16.mxu1 %v3612_v47 }
  0xe1   : > { %2383 = vmatprep.subr.bf16.mxu0 %v3615_v48 }
  0xe3   : > { %1270 = vmatpush1.bf16.msra.mxu1 %v3610_v49  ;;  %v3680_v49 = vmov 0.0  }
  0xe4   : > { %2384 = vmatpush1.bf16.msra.mxu0 %v3613_v51  ;;  %1271 = vmatprep.subr.bf16.mxu1 %v3618_v52 }
  0xe5   : > { %2385 = vmatprep.subr.bf16.mxu0 %v3621_v56 }
  0xe7   : > { %1272 = vmatpush1.bf16.msra.mxu1 %v3616_v57 }
  0xe8   : > { %2386 = vmatpush1.bf16.msra.mxu0 %v3619_v58  ;;  %1273 = vmatprep.subr.bf16.mxu1 %v3624_v59 }
  0xe9   : > { %2387 = vmatprep.subr.bf16.mxu0 %v3627_v53 }
  0xeb   : > { %1274 = vmatpush1.bf16.msra.mxu1 %v3622_v60 }
  0xec   : > { %2388 = vmatpush1.bf16.msra.mxu0 %v3625_v62  ;;  %1275 = vmatprep.subr.bf16.mxu1 %v3630_v63 }
  0xed   : > { %2389 = vmatprep.subr.bf16.mxu0 %v3633_v2 }
  0xef   : > { %1276 = vmatpush1.bf16.msra.mxu1 %v3628_v3 }
  0xf0   : > { %2390 = vmatpush1.bf16.msra.mxu0 %v3631_v5  ;;  %1277 = vmatprep.subr.bf16.mxu1 %v3636_v6 }
  0xf1   : > { %2391 = vmatprep.subr.bf16.mxu0 %v3639_v7 }
  0xf3   : > { %1278 = vmatpush1.bf16.msra.mxu1 %v3634_v10 }
  0xf4   : > { %2392 = vmatpush1.bf16.msra.mxu0 %v3637_v9  ;;  %1279 = vmatprep.subr.bf16.mxu1 %v3642_v11 }
  0xf5   : > { %2393 = vmatprep.subr.bf16.mxu0 %v3645_v13 }
  0xf7   : > { %1280 = vmatpush1.bf16.msra.mxu1 %v3640_v15 }
  0xf8   : > { %2394 = vmatpush1.bf16.msra.mxu0 %v3643_v16  ;;  %1281 = vmatprep.subr.bf16.mxu1 %v3648_v17 }
  0xf9   : > { %2395 = vmatprep.subr.bf16.mxu0 %v3651_v18 }
  0xfb   : > { %1282 = vmatpush1.bf16.msra.mxu1 %v3646_v19 }
  0xfc   : > { %2396 = vmatpush1.bf16.msra.mxu0 %v3649_v20  ;;  %1283 = vmatprep.subr.bf16.mxu1 %v3656_v21 }
  0xfd   : > { %2397 = vmatprep.subr.bf16.mxu0 %v3659_v23 }
  0xff   : > { %1284 = vmatpush1.bf16.msra.mxu1 %v3654_v24 }
 0x100   : > { %2398 = vmatpush1.bf16.msra.mxu0 %v3657_v25  ;;  %1285 = vmatprep.subr.bf16.mxu1 %v3662_v26 }
 0x101   : > { %2399 = vmatprep.subr.bf16.mxu0 %v3665_v28 }
 0x103   : > { %1286 = vmatpush1.bf16.msra.mxu1 %v3660_v14 }
 0x104   : > { %2400 = vmatpush1.bf16.msra.mxu0 %v3663_v29 }
 0x106   : > { %1288 = vmatmul.mubr.bf16.vlgmr.msra.gmra.mrb[0].mxu1 %v4157_v54  ;;  %v4643_v54 = vmul.u32.u64.low 2863311531, %v2451_v35  ;;  %v4644_v37 = vmul.u32.u64.high 2863311531, %v2451_v35, %v4643_v54 }
 0x107   : > { %2402 = vmatmul.mubr.bf16.vlgmr.msra.gmra.mrb[0].mxu0 %v4425_v8  ;;  %1297 = vmatprep.mubr.bf16.mxu1 %v2844_v4  ;;  %v2452_v8 = vadd.s32 16, %v4636_v34 }
 0x108   : > { %2411 = vmatprep.mubr.bf16.mxu0 %v4463_v27  ;;  %v2459_v27 = vshrl.u32 %v4641_v55, 2 }
 0x109   : > { %v4648_v38 = vmul.u32.u64.low 2863311531, %v2452_v8  ;;  %v4649_v39 = vmul.u32.u64.high 2863311531, %v2452_v8, %v4648_v38 }
 0x10a   : > { %v2460_v1 = vmul.u32 6, %v2459_v27 }
 0x10b   : > { %v2481_v41 = vshrl.u32 %v4649_v39, 2 }
 0x10c   : > { %v2461_v30 = vsub.s32 %v4636_v34, %v2460_v1 }
 0x10d   : > { %v2482_v40 = vmul.u32 6, %v2481_v41 }
 0x10e   : > { %1298 = vmatmul.mubr.bf16.gmra.mrb[4].mxu1 %v2843_v32  ;;  %vm2486_vm3 = vcmp.ne.s32.totalorder %v2461_v30, 0  ;;  %vm2489_vm4 = vcmp.lt.s32.totalorder %v2461_v30, 0  ;;  %v2495_v12 = vadd.s32 6, %v2461_v30 }
 0x10f   : > { %2412 = vmatmul.mubr.bf16.gmra.mrb[4].mxu0 %v4414_v0  ;;  %v2470_v0 = vshrl.u32 %v4644_v37, 2  ;;  %vm2492_vm7 = vmand %vm2489_vm4, %vm2486_vm3  ;;  %v2483_v44 = vsub.s32 %v2452_v8, %v2482_v40 }
 0x110   : > { %v2498_v45 = vsel %vm2492_vm7, %v2495_v12, %v2461_v30  ;;  %v3681_v12 = vmov 1966171168  }
 0x111   : > { %v2471_v61 = vmul.u32 6, %v2470_v0  ;;  %vm2488_vm9 = vcmp.ne.s32.totalorder %v2483_v44, 0  ;;  %vm2491_vm10 = vcmp.lt.s32.totalorder %v2483_v44, 0  ;;  %vm2501_vm11 = vcmp.lt.s32.totalorder %v2498_v45, 4 }
 0x112   : > { %v2497_v22 = vadd.s32 6, %v2483_v44  ;;  %vm4655_vm13 = vmand %vm2491_vm10, %vm2488_vm9  ;;  %v3180_v51 = vsel %vm2501_vm11, 1.0, %v3680_v49 }
 0x113   : > { %v2472_v42 = vsub.s32 %v2451_v35, %v2471_v61 }
 0x114   : > { %v2500_v62 = vsel %vm4655_vm13, %v2497_v22, %v2483_v44 }
 0x115   : > { %vm2487_vm5 = vcmp.ne.s32.totalorder %v2472_v42, 0  ;;  %vm2490_vm6 = vcmp.lt.s32.totalorder %v2472_v42, 0  ;;  %v2496_v43 = vadd.s32 6, %v2472_v42  ;;  %vm2503_vm14 = vcmp.lt.s32.totalorder %v2500_v62, 4 }
 0x116   : > { %vm2493_vm8 = vmand %vm2490_vm6, %vm2487_vm5  ;;  %v3182_v24 = vsel %vm2503_vm14, 1.0, %v3680_v49 }
 0x117   : > { %v2499_v46 = vsel %vm2493_vm8, %v2496_v43, %v2472_v42  ;;  %v2542_v43 = vunpack.c.l.s4 %v3681_v12 }
 0x118   : > { %vm2502_vm12 = vcmp.lt.s32.totalorder %v2499_v46, 4 }
 0x119   : > { %v3181_v60 = vsel %vm2502_vm12, 1.0, %v3680_v49 }
 0x1d9   : > { %v1289_v47 = vpop.f32.mrb[0].mxu1 }
 0x1da   : > { %v2403_v48 = vpop.f32.mrb[0].mxu0  ;;  %v1291_v56 = vpop.f32.mrb[1].mxu1 }
 0x1db   : > { %v3191_v52 = vadd.f32 %v2403_v48, %v1289_v47  ;;  %v2405_v57 = vpop.f32.mrb[1].mxu0  ;;  %v1293_v59 = vpop.f32.mrb[2].mxu1 }
 0x1dc   : > { %v3192_v58 = vadd.f32 %v2405_v57, %v1291_v56  ;;  %v2407_v53 = vpop.f32.mrb[2].mxu0  ;;  %v1295_v3 = vpop.f32.mrb[3].mxu1 }
 0x1dd   : > { %v2516_v63 = vmul.f32 %v3191_v52, %v3180_v51  ;;  %v3193_v2 = vadd.f32 %v2407_v53, %v1293_v59  ;;  %v2409_v5 = vpop.f32.mrb[3].mxu0 }
 0x1de   : > { %v3188_v6 = vpack.c.bf16 %v3192_v58, %v3191_v52  ;;  %v2517_v7 = vmul.f32 %v3192_v58, %v3180_v51  ;;  %v3194_v10 = vadd.f32 %v2409_v5, %v1295_v3  ;;  %v2543_v51 = vunpack.c.0.s8 %v2542_v43 }
 0x1df   : > { %v2518_v9 = vmul.f32 %v3193_v2, %v3181_v60  ;;  %v2561_v15 = vmul.f32 %v3191_v52, %v2516_v63 }
 0x1e0   : > { %2446 = vst [vmem:[%s4664_s24] sm:$0xff] %v3188_v6  ;;  %v3189_v11 = vpack.c.bf16 %v3194_v10, %v3193_v2  ;;  %v2519_v13 = vmul.f32 %v3194_v10, %v3181_v60  ;;  %v2562_v18 = vmul.f32 %v3192_v58, %v2517_v7 }
 0x1e1   : > { %v2522_v16 = vadd.f32 %v2518_v9, %v2516_v63  ;;  %v2563_v17 = vmul.f32 %v3193_v2, %v2518_v9  ;;  %v1299_v21 = vpop.f32.mrb[4].mxu1  ;;  %v2546_v63 = vsub.s32 %v2543_v51, %v4636_v34 }
 0x1e2   : > { %2447 = vst [vmem:[%s4664_s24 + $0x8] sm:$0xff] %v3189_v11  ;;  %v2530_v19 = vadd.f32 %v2519_v13, %v2517_v7  ;;  %v2564_v20 = vmul.f32 %v3194_v10, %v2519_v13  ;;  %v2413_v23 = vpop.f32.mrb[4].mxu0  ;;  %v1301_v28 = vpop.f32.mrb[5].mxu1 }
 0x1e3   : > { %v2567_v25 = vadd.f32 %v2563_v17, %v2561_v15  ;;  %v3195_v26 = vadd.f32 %v2413_v23, %v1299_v21  ;;  %v2415_v14 = vpop.f32.mrb[5].mxu0  ;;  %v1303_v4 = vpop.f32.mrb[6].mxu1 }
 0x1e4   : > { %v2575_v29 = vadd.f32 %v2564_v20, %v2562_v18  ;;  %v3196_v31 = vadd.f32 %v2415_v14, %v1301_v28  ;;  %v2417_v32 = vpop.f32.mrb[6].mxu0  ;;  %v1304_v36 = vpop.f32.mrb[7].mxu1 }
 0x1e5   : > { %v2520_v35 = vmul.f32 %v3195_v26, %v3182_v24  ;;  %v2418_v55 = vpop.f32.mrb[7].mxu0 }
 0x1e6   : > { %v3190_v54 = vpack.c.bf16 %v3196_v31, %v3195_v26  ;;  %v2521_v37 = vmul.f32 %v3196_v31, %v3182_v24 }
 0x1e7   : > { %v2523_v8 = vadd.f32 %v2522_v16, %v2520_v35  ;;  %v2565_v27 = vmul.f32 %v3195_v26, %v2520_v35 }
 0x1e8   : > { %2448 = vst [vmem:[%s4664_s24 + $0x10] sm:$0xff] %v3190_v54  ;;  %v2531_v38 = vadd.f32 %v2530_v19, %v2521_v37  ;;  %v2566_v39 = vmul.f32 %v3196_v31, %v2521_v37 }
 0x1e9   : > { %v2524_v0 = vrot.slane %v2523_v8, 4  ;;  %v2568_v1 = vadd.f32 %v2567_v25, %v2565_v27 }
 0x1ea   : > { %v2532_v61 = vrot.slane %v2531_v38, 4  ;;  %v2576_v30 = vadd.f32 %v2575_v29, %v2566_v39 }
 0x1eb   : > { %v2525_v41 = vadd.f32 %v2524_v0, %v2523_v8  ;;  %v2569_v42 = vrot.slane %v2568_v1, 4 }
 0x1ec   : > { %v2533_v40 = vadd.f32 %v2532_v61, %v2531_v38  ;;  %v2577_v44 = vrot.slane %v2576_v30, 4 }
 0x1ed   : > { %v2526_v45 = vrot.slane %v2525_v41, 2  ;;  %v2570_v46 = vadd.f32 %v2569_v42, %v2568_v1 }
 0x1ee   : > { %v2534_v22 = vrot.slane %v2533_v40, 2  ;;  %v2578_v50 = vadd.f32 %v2577_v44, %v2576_v30 }
 0x1ef   : > { %v2527_v47 = vadd.f32 %v2526_v45, %v2525_v41  ;;  %v2571_v48 = vrot.slane %v2570_v46, 2 }
 0x1f0   : > { %v2535_v49 = vadd.f32 %v2534_v22, %v2533_v40  ;;  %v2579_v52 = vrot.slane %v2578_v50, 2 }
 0x1f1   : > { %v2528_v56 = vrot.slane %v2527_v47, 1  ;;  %v2572_v57 = vadd.f32 %v2571_v48, %v2570_v46 }
 0x1f2   : > { %v2536_v58 = vrot.slane %v2535_v49, 1  ;;  %v2580_v59 = vadd.f32 %v2579_v52, %v2578_v50 }
 0x1f3   : > { %v2529_v53 = vadd.f32 %v2528_v56, %v2527_v47  ;;  %v2573_v60 = vrot.slane %v2572_v57, 1 }
 0x1f4   : > { %v2537_v62 = vadd.f32 %v2536_v58, %v2535_v49  ;;  %v2581_v2 = vrot.slane %v2580_v59, 1 }
 0x1f5   : > { %v2574_v3 = vadd.f32 %v2573_v60, %v2572_v57 }
 0x1f6   : > { %v2540_v5 = vcombine.low %v2529_v53, %v2537_v62  ;;  %v2582_v6 = vadd.f32 %v2581_v2, %v2580_v59 }
 0x1f8   : > { %v2547_v7 = vrot.slane %v2540_v5, %v2546_v63  ;;  %v2585_v10 = vcombine.low %v2574_v3, %v2582_v6 }
 0x1fa   : > { %v2554_v9 = vrot.slane %v2547_v7, %v2546_v63  ;;  %v2592_v11 = vrot.slane %v2585_v10, %v2546_v63 }
 0x1fc   : > { %2560 = vst.msk [vmem:[%s183_s28] ss:$2 sm:$0x3] %vm2558_vm15, %v2554_v9  ;;  %v2599_v13 = vrot.slane %v2592_v11, %v2546_v63 }
 0x1fe   : > { %3183 = vst.msk [vmem:[%s183_s28 + $0x1] ss:$2 sm:$0x3] %vm2558_vm15, %v2599_v13 }
 0x1ff PF: > { %s14_s12 = sadd.s32 1, %s3678_s12  }
 0x200   : > { %p11_p4 = scmp.ge.s32.totalorder %s14_s12, 4  }
 0x202   :  { %13 = sbr.rel (!%p11_p4) target bundleno = 1 (0x1), region = 74 }

// kernel: generator_forward.7
= control target key start
LH: loop header
LB: loop body
LE: loop exit
PB: predicated region body
PF: predicated region fallthrough
CT: control target
= control target key end

     0   :  { %s2386_s12 = smov 0   ;;  %s3050_s0 = inlined_call_operand.vmem [shape: bf16[2,96,256], index: 0, kind: input, shape index: {}]   ;;  %s3051_s1 = inlined_call_operand.vmem [shape: bf16[4,256,128], index: 1, kind: input, shape index: {}]   ;;  %s3052_s2 = inlined_call_operand.vmem [shape: bf16[2,80,128], index: 2, kind: output, shape index: {0}]   ;;  %s3053_s3 = inlined_call_operand.vmem [shape: f32[2,2,128], index: 3, kind: output, shape index: {1}]  }
   0x1 LB: > { %s1796_s13 = sadd.s32 4294967295, %s2363_s12   ;;  %p1800_p0 = scmp.ge.s32.totalorder %s2363_s12, 1  ;;  %s2363_s12 = sphi %s2386_s12, %s14_s12  }
   0x2   : > { %p140_p1 = scmp.lt.s32.totalorder %s2363_s12, 3 }
   0x4   : > { %p141_p2 = pnand %p1800_p0, %p140_p1 }
   0x5   : > { %v2266_v0 = vld [vmem:[%s3051_s1 + $0xc0] sm:$0xff] (!%p141_p2)   ;;  %v2270_v4 = vld [vmem:[%s3051_s1 + $0xc8] sm:$0xff] (!%p141_p2)   ;;  %v2274_v8 = vld [vmem:[%s3051_s1 + $0xd0] sm:$0xff] (!%p141_p2)   ;;  %p168_p3 = scmp.lt.s32.totalorder (!%p141_p2), %s1796_s13, 1  ;;  %vm304_vm0 = vsmask.f32 (!%p141_p2), 7424 }
   0x6   : > { %144 = sbr.rel (%p141_p2) target bundleno = 352 (0x160), region = 28  ;;  %v2267_v1 = vld [vmem:[%s3051_s1 + $0x40] sm:$0xff] (!%p141_p2)   ;;  %2051 = vmatprep.subr.bf16.mxu0 (!%p141_p2), %v2266_v0  ;;  %v2271_v5 = vld [vmem:[%s3051_s1 + $0x48] sm:$0xff] (!%p141_p2)   ;;  %v2275_v9 = vld [vmem:[%s3051_s1 + $0x50] sm:$0xff] (!%p141_p2)   ;;  %vm840_vm1 = vcmask (!%p141_p2), 1046528  }
   0x7   : > { %v2268_v2 = vld [vmem:[%s3051_s1 + $0x80] sm:$0xff] (!%p141_p2)   ;;  %2097 = vmatprep.subr.bf16.mxu1 (!%p141_p2), %v2267_v1  ;;  %v2272_v6 = vld [vmem:[%s3051_s1 + $0x88] sm:$0xff] (!%p141_p2)   ;;  %v2276_v10 = vld [vmem:[%s3051_s1 + $0x90] sm:$0xff] (!%p141_p2)   ;;  %vm1091_vm2 = vsmask.f32 (!%p141_p2), 6400 }
   0x8   : > { %v2269_v3 = vld [vmem:[%s3051_s1] sm:$0xff] (!%p141_p2)   ;;  %2052 = vmatpush3.bf16.msra.mxu0 (!%p141_p2), %v2268_v2  ;;  %v2273_v7 = vld [vmem:[%s3051_s1 + $0x8] sm:$0xff] (!%p141_p2)   ;;  %v2277_v11 = vld [vmem:[%s3051_s1 + $0x10] sm:$0xff] (!%p141_p2)  }
   0x9   : > { %2098 = vmatpush3.bf16.msra.mxu1 (!%p141_p2), %v2269_v3  ;;  %2053 = vmatprep.subr.bf16.mxu0 (!%p141_p2), %v2270_v4  ;;  %v2278_v12 = vld [vmem:[%s3051_s1 + $0xd8] sm:$0xff] (!%p141_p2)   ;;  %v2282_v16 = vld [vmem:[%s3051_s1 + $0xe0] sm:$0xff] (!%p141_p2)   ;;  %v2286_v20 = vld [vmem:[%s3051_s1 + $0xe8] sm:$0xff] (!%p141_p2)  }
   0xa   : > { %2099 = vmatprep.subr.bf16.mxu1 (!%p141_p2), %v2271_v5  ;;  %v2279_v13 = vld [vmem:[%s3051_s1 + $0x58] sm:$0xff] (!%p141_p2)   ;;  %v2283_v17 = vld [vmem:[%s3051_s1 + $0x60] sm:$0xff] (!%p141_p2)   ;;  %v2287_v21 = vld [vmem:[%s3051_s1 + $0x68] sm:$0xff] (!%p141_p2)  }
   0xb   : > { %v2280_v14 = vld [vmem:[%s3051_s1 + $0x98] sm:$0xff] (!%p141_p2)   ;;  %v2284_v18 = vld [vmem:[%s3051_s1 + $0xa0] sm:$0xff] (!%p141_p2)   ;;  %v2288_v22 = vld [vmem:[%s3051_s1 + $0xa8] sm:$0xff] (!%p141_p2)  }
   0xc   : > { %2054 = vmatpush3.bf16.msra.mxu0 (!%p141_p2), %v2272_v6  ;;  %v2281_v15 = vld [vmem:[%s3051_s1 + $0x18] sm:$0xff] (!%p141_p2)   ;;  %v2285_v19 = vld [vmem:[%s3051_s1 + $0x20] sm:$0xff] (!%p141_p2)   ;;  %v2289_v23 = vld [vmem:[%s3051_s1 + $0x28] sm:$0xff] (!%p141_p2)  }
   0xd   : > { %2100 = vmatpush3.bf16.msra.mxu1 %v2273_v7  ;;  %2055 = vmatprep.subr.bf16.mxu0 %v2274_v8  ;;  %s3089_s13 = smov (!%p168_p3, %s1796_s13), 1  ;;  %v2290_v24 = vld [vmem:[%s3051_s1 + $0xf0] sm:$0xff]   ;;  %v2294_v28 = vld [vmem:[%s3051_s1 + $0xf8] sm:$0xff]   ;;  %v2303_v38 = vld [vmem:[%s3051_s1 + $0x140] sm:$0xff]  }
   0xe   : > { %2101 = vmatprep.subr.bf16.mxu1 %v2275_v9  ;;  %v2291_v25 = vld [vmem:[%s3051_s1 + $0x70] sm:$0xff]   ;;  %s2235_s16 = smul.u32 96, %s3089_s13  ;;  %v2295_v29 = vld [vmem:[%s3051_s1 + $0x78] sm:$0xff]   ;;  %v2305_v45 = vld [vmem:[%s3051_s1 + $0x1c0] sm:$0xff]   ;;  %s1803_s26 = sshll.u32 %s3089_s13, 1 }
   0xf   : > { %v2292_v26 = vld [vmem:[%s3051_s1 + $0xb0] sm:$0xff]   ;;  %v2296_v30 = vld [vmem:[%s3051_s1 + $0xb8] sm:$0xff]   ;;  %v2304_v50 = vld [vmem:[%s3051_s1 + $0x100] sm:$0xff]   ;;  %s181_s30 = scalar_lea.vmem %s3053_s3, %s1803_s26 }
  0x10   : > { %2056 = vmatpush3.bf16.msra.mxu0 %v2276_v10  ;;  %v2293_v27 = vld [vmem:[%s3051_s1 + $0x30] sm:$0xff]   ;;  %s2494_s27 = scalar_lea.vmem %s3050_s0, %s2235_s16  ;;  %v2297_v31 = vld [vmem:[%s3051_s1 + $0x38] sm:$0xff]   ;;  %v2306_v53 = vld [vmem:[%s3051_s1 + $0x180] sm:$0xff]  }
  0x11   : > { %2102 = vmatpush3.bf16.msra.mxu1 %v2277_v11  ;;  %2057 = vmatprep.subr.bf16.mxu0 %v2278_v12  ;;  %v2503_v32 = vld [vmem:[%s2494_s27 + $0x10] sm:$0xff]  ;;  %v2506_v33 = vld [vmem:[%s2494_s27 + $0x18] sm:$0xff]  ;;  %v2298_v34 = vld [vmem:[%s2494_s27 + $0x4] ss:$8 sps:$4 sm:$0xff]  }
  0x12   : > { %2103 = vmatprep.subr.bf16.mxu1 %v2279_v13  ;;  %v2301_v35 = vld [vmem:[%s2494_s27] ss:$8 sps:$4 sm:$0xff]   ;;  %v1839_v36 = vcombine.high %v2503_v32, %v2506_v33  ;;  %v1838_v37 = vcombine.low %v2503_v32, %v2506_v33  ;;  %v318_v39 = vshrl.u32 %v2298_v34, 16  ;;  %v320_v40 = vshll.u32 %v2298_v34, 16  ;;  %710 = vmatprep.mubr.bf16.mxu1 %v2298_v34  ;;  %v2313_v6 = vld [vmem:[%s3051_s1 + $0x150] sm:$0xff]  }
  0x13   : > { %v306_v41 = vshrl.u32 %v2301_v35, 16  ;;  %v308_v42 = vshll.u32 %v2301_v35, 16  ;;  %v2307_v58 = vld [vmem:[%s3051_s1 + $0x148] sm:$0xff]   ;;  %v187_v59 = vld [vmem:[%s2494_s27 + $0x20] sm:$0xff]  ;;  %v2314_v10 = vld [vmem:[%s3051_s1 + $0x110] sm:$0xff]  }
  0x14   : > { %2058 = vmatpush3.bf16.msra.mxu0 %v2280_v14  ;;  %v325_v43 = vshll.u32 %v1839_v36, 16  ;;  %v313_v44 = vshll.u32 %v1838_v37, 16  ;;  %v322_v46 = vrot.slane %v320_v40, 1  ;;  %v337_v54 = vshrl.u32 %v1839_v36, 16  ;;  %v2533_v60 = vld [vmem:[%s2494_s27 + $0x28] sm:$0xff]  ;;  %v2315_v11 = vld [vmem:[%s3051_s1 + $0x1d0] sm:$0xff]  }
  0x15   : > { %2104 = vmatpush3.bf16.msra.mxu1 %v2281_v15  ;;  %2059 = vmatprep.subr.bf16.mxu0 %v2282_v16  ;;  %v310_v47 = vrot.slane %v308_v42, 1  ;;  %v329_v55 = vshrl.u32 %v1838_v37, 16  ;;  %v2308_v61 = vld [vmem:[%s3051_s1 + $0x108] sm:$0xff]   ;;  %v1841_v62 = vcombine.high %v187_v59, %v2533_v60  ;;  %v1840_v0 = vcombine.low %v187_v59, %v2533_v60  ;;  %v2316_v14 = vld [vmem:[%s3051_s1 + $0x190] sm:$0xff]   ;;  %v2564_v16 = vld [vmem:[%s2494_s27 + $0x38] sm:$0xff] }
  0x16   : > { %2105 = vmatprep.subr.bf16.mxu1 %v2283_v17  ;;  %v327_v48 = vrot.slane %v325_v43, 1  ;;  %v315_v49 = vrot.slane %v313_v44, 1  ;;  %v323_v51 = vor.u32 %v322_v46, %v318_v39  ;;  %v2310_v63 = vld [vmem:[%s3051_s1 + $0x1c8] sm:$0xff]   ;;  %v2561_v15 = vld [vmem:[%s2494_s27 + $0x30] sm:$0xff]  ;;  %v2323_v34 = vld [vmem:[%s3051_s1 + $0x160] sm:$0xff]  }
  0x17   : > { %v311_v52 = vor.u32 %v310_v47, %v306_v41  ;;  %v2312_v1 = vld [vmem:[%s3051_s1 + $0x188] sm:$0xff]   ;;  %v341_v3 = vshll.u32 %v1841_v62, 16  ;;  %v333_v5 = vshll.u32 %v1840_v0, 16  ;;  %v353_v7 = vshrl.u32 %v1841_v62, 16  ;;  %v2325_v40 = vld [vmem:[%s3051_s1 + $0x1e0] sm:$0xff]  }
  0x18   : > { %2060 = vmatpush3.bf16.msra.mxu0 %v2284_v18  ;;  %v328_v56 = vsel %vm304_vm0, %v323_v51, %v327_v48  ;;  %v339_v2 = vor.u32 %v337_v54, %v327_v48  ;;  %v331_v4 = vor.u32 %v329_v55, %v315_v49  ;;  %v345_v17 = vshrl.u32 %v1840_v0, 16  ;;  %v2601_v41 = vld [vmem:[%s2494_s27 + $0x40] sm:$0xff]  ;;  %v2604_v42 = vld [vmem:[%s2494_s27 + $0x48] sm:$0xff] }
  0x19   : > { %2106 = vmatpush3.bf16.msra.mxu1 %v2285_v19  ;;  %2061 = vmatprep.subr.bf16.mxu0 %v2286_v20  ;;  %v316_v57 = vsel %vm304_vm0, %v311_v52, %v315_v49  ;;  %v343_v8 = vrot.slane %v341_v3, 1  ;;  %v335_v9 = vrot.slane %v333_v5, 1  ;;  %v2567_v18 = vcombine.high %v2506_v33, %v187_v59  ;;  %v2318_v20 = vld [vmem:[%s3051_s1 + $0x158] sm:$0xff]   ;;  %v2327_v46 = vld [vmem:[%s3051_s1 + $0x1a0] sm:$0xff]   ;;  %v2329_v49 = vld [vmem:[%s3051_s1 + $0x168] sm:$0xff]  }
  0x1a   : > { %2107 = vmatprep.subr.bf16.mxu1 %v2287_v21  ;;  %531 = vmatprep.mubr.bf16.mxu0 %v328_v56  ;;  %v1843_v19 = vcombine.high %v2561_v15, %v2564_v16  ;;  %v1842_v21 = vcombine.low %v2561_v15, %v2564_v16  ;;  %v1844_v47 = vcombine.low %v2601_v41, %v2604_v42  ;;  %v2330_v55 = vld [vmem:[%s3051_s1 + $0x128] sm:$0xff]  }
  0x1b   : > { %v344_v12 = vsel %vm304_vm0, %v339_v2, %v343_v8  ;;  %v336_v13 = vsel %vm304_vm0, %v331_v4, %v335_v9  ;;  %v845_v44 = vrot.slane %v2567_v18, 1  ;;  %v1121_v48 = vshll.u32 %v2567_v18, 16  ;;  %v2335_v4 = vld [vmem:[%s3051_s1 + $0x130] sm:$0xff]  }
  0x1c   : > { %2062 = vmatpush3.bf16.msra.mxu0 %v2288_v22  ;;  %v2320_v22 = vld [vmem:[%s3051_s1 + $0x118] sm:$0xff]   ;;  %v361_v43 = vshrl.u32 %v1842_v21, 16 }
  0x1d   : > { %2108 = vmatpush3.bf16.msra.mxu1 %v2289_v23  ;;  %2063 = vmatprep.subr.bf16.mxu0 %v2290_v24  ;;  %v355_v23 = vor.u32 %v353_v7, %v343_v8  ;;  %v357_v24 = vshll.u32 %v1843_v19, 16  ;;  %v2337_v7 = vld [vmem:[%s3051_s1 + $0x1f0] sm:$0xff]  }
  0x1e   : > { %2109 = vmatprep.subr.bf16.mxu1 %v2291_v25  ;;  %v349_v25 = vshll.u32 %v1842_v21, 16 }
  0x20   : > { %2064 = vmatpush3.bf16.msra.mxu0 %v2292_v26  ;;  %v347_v26 = vor.u32 %v345_v17, %v335_v9 }
  0x21   : > { %2110 = vmatpush3.bf16.msra.mxu1 %v2293_v27  ;;  %2065 = vmatprep.subr.bf16.mxu0 %v2294_v28  ;;  %v2321_v27 = vld [vmem:[%s3051_s1 + $0x1d8] sm:$0xff]   ;;  %v1118_v28 = vshrl.u32 %v2567_v18, 16 }
  0x22   : > { %2111 = vmatprep.subr.bf16.mxu1 %v2295_v29  ;;  %v359_v29 = vrot.slane %v357_v24, 1 }
  0x24   : > { %2066 = vmatpush3.bf16.msra.mxu0 %v2296_v30  ;;  %v351_v30 = vrot.slane %v349_v25, 1  ;;  %v2342_v25 = vld [vmem:[%s3051_s1 + $0x1b8] sm:$0xff]  }
  0x25   : > { %2112 = vmatpush3.bf16.msra.mxu1 %v2297_v31  ;;  %2143 = vmatprep.subr.bf16.mxu0 %v2303_v38  ;;  %v2322_v31 = vld [vmem:[%s3051_s1 + $0x198] sm:$0xff]   ;;  %v2594_v38 = vcombine.low %v2506_v33, %v187_v59  ;;  %v1845_v33 = vcombine.high %v2601_v41, %v2604_v42  ;;  %v2331_v59 = vld [vmem:[%s3051_s1 + $0x1e8] sm:$0xff]  }
  0x26   : > { %2189 = vmatprep.subr.bf16.mxu1 %v2305_v45  ;;  %v352_v39 = vsel %vm304_vm0, %v347_v26, %v351_v30  ;;  %v2607_v45 = vrot.slane %v1118_v28, 1  ;;  %v363_v54 = vor.u32 %v361_v43, %v351_v30  ;;  %v751_v26 = vld [vmem:[%s2494_s27 + $0x8] sm:$0xee]  ;;  %v2671_v28 = vcombine.high %v2564_v16, %v2601_v41 }
  0x27   : > { %532 = vmatmul.mubr.bf16.vlgmr.msra.gmra.mrb[0].mxu0 %v316_v57  ;;  %v373_v52 = vshll.u32 %v1845_v33, 16  ;;  %v385_v56 = vshrl.u32 %v1845_v33, 16  ;;  %v1104_v8 = vshll.u32 %v2594_v38, 16  ;;  %v2678_v30 = vcombine.low %v2564_v16, %v2601_v41 }
  0x28   : > { %711 = vmatmul.mubr.bf16.vlgmr.msra.gmra.mrb[0].mxu1 %v2301_v35  ;;  %2144 = vmatpush3.bf16.msra.mxu0 %v2304_v50  ;;  %v360_v35 = vsel %vm304_vm0, %v355_v23, %v359_v29  ;;  %v842_v50 = vrot.slane %v2594_v38, 1  ;;  %v2662_v23 = vcombine.low %v2533_v60, %v2561_v15  ;;  %v853_v18 = vrot.slane %v2671_v28, 1 }
  0x29   : > { %718 = vmatprep.mubr.bf16.mxu1 %v1839_v36  ;;  %2190 = vmatpush3.bf16.msra.mxu1 %v2306_v53  ;;  %v2324_v36 = vld [vmem:[%s3051_s1 + $0x120] sm:$0xff]   ;;  %v365_v53 = vshll.u32 %v1844_v47, 16  ;;  %v375_v57 = vrot.slane %v373_v52, 1 }
  0x2a   : > { %2191 = vmatprep.subr.bf16.mxu1 %v2310_v63  ;;  %2145 = vmatprep.subr.bf16.mxu0 %v2307_v58  ;;  %v2333_v63 = vld [vmem:[%s3051_s1 + $0x170] sm:$0xff]   ;;  %v1127_v43 = vshrl.u32 %v2662_v23, 16 }
  0x2b   : > { %539 = vmatprep.mubr.bf16.mxu0 %v344_v12  ;;  %v367_v58 = vrot.slane %v365_v53, 1  ;;  %v387_v9 = vor.u32 %v385_v56, %v375_v57  ;;  %v2338_v12 = vld [vmem:[%s3051_s1 + $0x1b0] sm:$0xff]  }
  0x2c   : > { %2146 = vmatpush3.bf16.msra.mxu0 %v2308_v61  ;;  %v2332_v61 = vld [vmem:[%s3051_s1 + $0x1a8] sm:$0xff]   ;;  %v1129_v56 = vrot.slane %v1127_v43, 1 }
  0x2d   : > { %2192 = vmatpush3.bf16.msra.mxu1 %v2312_v1  ;;  %2147 = vmatprep.subr.bf16.mxu0 %v2313_v6  ;;  %v1101_v1 = vshrl.u32 %v2594_v38, 16  ;;  %v368_v2 = vsel %vm304_vm0, %v363_v54, %v367_v58  ;;  %v377_v6 = vshrl.u32 %v1844_v47, 16 }
  0x2e   : > { %2193 = vmatprep.subr.bf16.mxu1 %v2315_v11 }
  0x2f   : > { %540 = vmatmul.mubr.bf16.gmra.mrb[4].mxu0 %v336_v13  ;;  %v2339_v13 = vld [vmem:[%s3051_s1 + $0x178] sm:$0xff]  }
  0x30   : > { %719 = vmatmul.mubr.bf16.gmra.mrb[4].mxu1 %v1838_v37  ;;  %2148 = vmatpush3.bf16.msra.mxu0 %v2314_v10  ;;  %v369_v37 = vshrl.u32 %v1843_v19, 16 }
  0x31   : > { %726 = vmatprep.mubr.bf16.mxu1 %v1841_v62  ;;  %2194 = vmatpush3.bf16.msra.mxu1 %v2316_v14  ;;  %v2652_v14 = vcombine.high %v2533_v60, %v2561_v15  ;;  %v1913_v60 = vcombine.high %v751_v26, %v2503_v32 }
  0x32   : > { %2149 = vmatprep.subr.bf16.mxu0 %v2318_v20  ;;  %2195 = vmatprep.subr.bf16.mxu1 %v2321_v27  ;;  %v371_v51 = vor.u32 %v369_v37, %v359_v29  ;;  %v1123_v27 = vrot.slane %v1121_v48, 2  ;;  %v1912_v29 = vcombine.low %v751_v26, %v2503_v32 }
  0x33   : > { %547 = vmatprep.mubr.bf16.mxu0 %v360_v35  ;;  %v1136_v15 = vshrl.u32 %v2652_v14, 16  ;;  %v1106_v35 = vrot.slane %v1104_v8, 2  ;;  %v844_v37 = vrot.slane %v1913_v60, 1 }
  0x34   : > { %2150 = vmatpush3.bf16.msra.mxu0 %v2320_v22  ;;  %v376_v62 = vsel %vm304_vm0, %v371_v51, %v375_v57  ;;  %v2341_v22 = vld [vmem:[%s3051_s1 + $0x1f8] sm:$0xff]   ;;  %v1124_v32 = vor.u32 %v1123_v27, %v2607_v45  ;;  %v849_v45 = vrot.slane %v2652_v14, 1  ;;  %v1130_v57 = vshll.u32 %v2662_v23, 16 }
  0x35   : > { %2196 = vmatpush3.bf16.msra.mxu1 %v2322_v31  ;;  %2151 = vmatprep.subr.bf16.mxu0 %v2323_v34  ;;  %v1103_v34 = vrot.slane %v1101_v1, 1  ;;  %v846_v16 = vsel %vm840_vm1, %v844_v37, %v845_v44 }
  0x36   : > { %2197 = vmatprep.subr.bf16.mxu1 %v2325_v40  ;;  %v1113_v40 = vshll.u32 %v1913_v60, 16  ;;  %v1132_v1 = vrot.slane %v1130_v57, 2 }
  0x37   : > { %548 = vmatmul.mubr.bf16.gmra.mrb[8].mxu0 %v352_v39  ;;  %v1110_v39 = vshrl.u32 %v1913_v60, 16  ;;  %v1107_v53 = vor.u32 %v1106_v35, %v1103_v34  ;;  %v851_v35 = vrot.slane %v2678_v30, 1 }
  0x38   : > { %727 = vmatmul.mubr.bf16.gmra.mrb[8].mxu1 %v1840_v0  ;;  %2152 = vmatpush3.bf16.msra.mxu0 %v2324_v36  ;;  %v225_v0 = vld [vmem:[%s2494_s27 + $0x50] sm:$0x11]  ;;  %v1139_v36 = vshll.u32 %v2652_v14, 16  ;;  %v1115_v48 = vrot.slane %v1113_v40, 2  ;;  %v1133_v8 = vor.u32 %v1132_v1, %v1129_v56 }
  0x39   : > { %734 = vmatprep.mubr.bf16.mxu1 %v1843_v19  ;;  %2198 = vmatpush3.bf16.msra.mxu1 %v2327_v46  ;;  %v1847_v3 = vcombine.high %v225_v0, %v225_v0  ;;  %v1846_v5 = vcombine.low %v225_v0, %v225_v0  ;;  %v379_v19 = vor.u32 %v377_v6, %v367_v58  ;;  %v1096_v46 = vshll.u32 %v1912_v29, 16 }
  0x3a   : > { %2153 = vmatprep.subr.bf16.mxu0 %v2329_v49  ;;  %2199 = vmatprep.subr.bf16.mxu1 %v2331_v59  ;;  %v1112_v41 = vrot.slane %v1110_v39, 1  ;;  %v841_v49 = vrot.slane %v1912_v29, 1  ;;  %v1141_v54 = vrot.slane %v1139_v36, 2  ;;  %v761_v39 = vld [vmem:[%s2494_s27 + $0x58] sm:$0x11] }
  0x3b   : > { %555 = vmatprep.mubr.bf16.mxu0 %v376_v62  ;;  %v389_v10 = vshll.u32 %v1847_v3, 16  ;;  %v381_v11 = vshll.u32 %v1846_v5, 16  ;;  %v1098_v52 = vrot.slane %v1096_v46, 2  ;;  %v1157_v62 = vshll.u32 %v2671_v28, 16 }
  0x3c   : > { %2154 = vmatpush3.bf16.msra.mxu0 %v2330_v55  ;;  %v1116_v55 = vor.u32 %v1115_v48, %v1112_v41  ;;  %v843_v0 = vsel %vm840_vm1, %v841_v49, %v842_v50  ;;  %v1922_v57 = vcombine.low %v761_v39, %v761_v39 }
  0x3d   : > { %2200 = vmatpush3.bf16.msra.mxu1 %v2332_v61  ;;  %2155 = vmatprep.subr.bf16.mxu0 %v2333_v63  ;;  %v391_v17 = vrot.slane %v389_v10, 1  ;;  %v383_v20 = vrot.slane %v381_v11, 1  ;;  %v1154_v61 = vshrl.u32 %v2671_v28, 16  ;;  %v1159_v6 = vrot.slane %v1157_v62, 2 }
  0x3e   : > { %2201 = vmatprep.subr.bf16.mxu1 %v2337_v7  ;;  %v1125_v63 = vsel %vm1091_vm2, %v1116_v55, %v1124_v32  ;;  %v850_v7 = vsel %vm840_vm1, %v845_v44, %v849_v45  ;;  %v1148_v10 = vshll.u32 %v2678_v30, 16  ;;  %v1134_v44 = vsel %vm1091_vm2, %v1107_v53, %v1133_v8 }
  0x3f   : > { %556 = vmatmul.mubr.bf16.gmra.mrb[12].mxu0 %v368_v2  ;;  %v392_v24 = vsel %vm304_vm0, %v387_v9, %v391_v17  ;;  %v384_v31 = vsel %vm304_vm0, %v379_v19, %v383_v20  ;;  %v760_v2 = vld [vmem:[%s2494_s27 + $0x50] sm:$0xff]  ;;  %v1156_v5 = vrot.slane %v1154_v61, 1  ;;  %v1145_v9 = vshrl.u32 %v2678_v30, 16  ;;  %v1052_v19 = vld [vmem:[%s2494_s27 + $0x58] sm:$0x33]  ;;  %s2236_s27 = smul.u32 40, %s3089_s13 }
  0x40   : > { %735 = vmatmul.mubr.bf16.gmra.mrb[12].mxu1 %v1842_v21  ;;  %2156 = vmatpush3.bf16.msra.mxu0 %v2335_v4  ;;  %v2340_v21 = vld [vmem:[%s3051_s1 + $0x138] sm:$0xff]   ;;  %v1921_v11 = vcombine.high %v2604_v42, %v760_v2  ;;  %v1973_v27 = vcombine.high %v1052_v19, %v1052_v19  ;;  %v1972_v40 = vcombine.low %v1052_v19, %v1052_v19  ;;  %v859_v61 = vrot.slane %v1922_v57, 1 }
  0x41   : > { %742 = vmatprep.mubr.bf16.mxu1 %v1845_v33  ;;  %2157 = vmatprep.subr.bf16.mxu0 %v2339_v13  ;;  %v1093_v33 = vshrl.u32 %v1912_v29, 16  ;;  %v847_v13 = vrot.slane %v2662_v23, 1  ;;  %v1147_v20 = vrot.slane %v1145_v9, 1  ;;  %v854_v29 = vsel %vm840_vm1, %v849_v45, %v853_v18  ;;  %s2909_s25 = scalar_lea.vmem %s3052_s2, %s2236_s27 }
  0x42   : > { %2202 = vmatpush3.bf16.msra.mxu1 %v2338_v12  ;;  %563 = vmatprep.mubr.bf16.mxu0 %v392_v24  ;;  %v1160_v12 = vor.u32 %v1159_v6, %v1156_v5  ;;  %v1172_v14 = vshrl.u32 %v1921_v11, 16  ;;  %v1175_v17 = vshll.u32 %v1921_v11, 16  ;;  %v1193_v34 = vshll.u32 %v1973_v27, 16 }
  0x43   : > { %2203 = vmatprep.subr.bf16.mxu1 %v2341_v22  ;;  %v1095_v51 = vrot.slane %v1093_v33, 1  ;;  %v1920_v22 = vcombine.low %v2604_v42, %v760_v2  ;;  %v848_v23 = vsel %vm840_vm1, %v842_v50, %v847_v13  ;;  %v1190_v42 = vshrl.u32 %v1973_v27, 16 }
  0x44   : > { %2158 = vmatpush3.bf16.msra.mxu0 %v2340_v21  ;;  %v1150_v21 = vrot.slane %v1148_v10, 2  ;;  %v1177_v26 = vrot.slane %v1175_v17, 2  ;;  %v857_v36 = vrot.slane %v1921_v11, 1  ;;  %v1195_v33 = vrot.slane %v1193_v34, 2 }
  0x45   : > { %v1099_v58 = vor.u32 %v1098_v52, %v1095_v51  ;;  %v1163_v60 = vshrl.u32 %v1920_v22, 16  ;;  %v852_v46 = vsel %vm840_vm1, %v847_v13, %v851_v35  ;;  %v1181_v30 = vshrl.u32 %v1972_v40, 16 }
  0x46   : > { %2204 = vmatpush3.bf16.msra.mxu1 %v2342_v25  ;;  %v1174_v25 = vrot.slane %v1172_v14, 1  ;;  %v1151_v28 = vor.u32 %v1150_v21, %v1147_v20  ;;  %v1184_v48 = vshll.u32 %v1972_v40, 16  ;;  %v855_v51 = vrot.slane %v1920_v22, 1 }
  0x47   : > { %564 = vmatmul.mubr.bf16.gmra.mrb[16].mxu0 %v384_v31  ;;  %v1108_v3 = vsel %vm1091_vm2, %v1099_v58, %v1107_v53  ;;  %v1165_v37 = vrot.slane %v1163_v60, 1  ;;  %v1437_v6 = vlaneseq }
  0x48   : > { %743 = vmatmul.mubr.bf16.gmra.mrb[16].mxu1 %v1844_v47  ;;  %v1138_v47 = vrot.slane %v1136_v15, 1  ;;  %1001 = vmatprep.mubr.bf16.mxu0 %v846_v16  ;;  %v1166_v15 = vshll.u32 %v1920_v22, 16  ;;  %v1178_v31 = vor.u32 %v1177_v26, %v1174_v25  ;;  %v1152_v38 = vsel %vm1091_vm2, %v1133_v8, %v1151_v28 }
  0x49   : > { %1336 = vmatprep.mubr.bf16.mxu1 %v1125_v63  ;;  %v1923_v16 = vcombine.high %v761_v39, %v761_v39  ;;  %v1186_v55 = vrot.slane %v1184_v48, 2  ;;  %v856_v56 = vsel %vm840_vm1, %v851_v35, %v855_v51  ;;  %v860_v63 = vsel %vm840_vm1, %v855_v51, %v859_v61 }
  0x4a   : > { %v1142_v59 = vor.u32 %v1141_v54, %v1138_v47  ;;  %v1168_v50 = vrot.slane %v1166_v15, 2  ;;  %v1179_v43 = vsel %vm1091_vm2, %v1160_v12, %v1178_v31  ;;  %v858_v47 = vsel %vm840_vm1, %v853_v18, %v857_v36 }
  0x4b   : > { %v861_v52 = vrot.slane %v1923_v16, 1  ;;  %v1183_v54 = vrot.slane %v1181_v30, 1 }
  0x4c   : > { %v1143_v4 = vsel %vm1091_vm2, %v1124_v32, %v1142_v59  ;;  %v1161_v24 = vsel %vm1091_vm2, %v1142_v59, %v1160_v12  ;;  %v1192_v32 = vrot.slane %v1190_v42, 1  ;;  %v1169_v41 = vor.u32 %v1168_v50, %v1165_v37 }
  0x4d   : > { %v862_v58 = vsel %vm840_vm1, %v857_v36, %v861_v52  ;;  %v1187_v59 = vor.u32 %v1186_v55, %v1183_v54  ;;  %v2726_v12 = vshrl.u32 %v1437_v6, 7 }
  0x4e   : > { %v1196_v49 = vor.u32 %v1195_v33, %v1192_v32  ;;  %v1170_v53 = vsel %vm1091_vm2, %v1151_v28, %v1169_v41 }
  0x4f   : > { %1002 = vmatmul.mubr.bf16.vlgmr.msra.gmra.mrb[20].mxu0 %v843_v0  ;;  %v1188_v62 = vsel %vm1091_vm2, %v1169_v41, %v1187_v59  ;;  %v2740_v42 = vadd.s32 16, %v2726_v12  ;;  %v2759_v30 = vadd.s32 32, %v2726_v12 }
  0x50   : > { %1337 = vmatmul.mubr.bf16.vlgmr.msra.gmra.mrb[20].mxu1 %v1108_v3  ;;  %1009 = vmatprep.mubr.bf16.mxu0 %v850_v7  ;;  %v1197_v45 = vsel %vm1091_vm2, %v1178_v31, %v1196_v49 }
  0x51   : > { %1344 = vmatprep.mubr.bf16.mxu1 %v1143_v4 }
  0x57   : > { %1010 = vmatmul.mubr.bf16.gmra.mrb[24].mxu0 %v848_v23  ;;  %v2737_v23 = vadd.s32 8, %v2726_v12 }
  0x58   : > { %1345 = vmatmul.mubr.bf16.gmra.mrb[24].mxu1 %v1134_v44  ;;  %1017 = vmatprep.mubr.bf16.mxu0 %v854_v29 }
  0x59   : > { %1352 = vmatprep.mubr.bf16.mxu1 %v1161_v24  ;;  %v2733_v24 = vmul.u32.u64.low 3435973837, %v2726_v12  ;;  %v2734_v25 = vmul.u32.u64.high 3435973837, %v2726_v12, %v2733_v24  ;;  %v2745_v50 = vmul.u32.u64.low 3435973837, %v2737_v23  ;;  %v2746_v39 = vmul.u32.u64.high 3435973837, %v2737_v23, %v2745_v50 }
  0x5b   : > { %v1454_v32 = vshrl.u32 %v2734_v25, 3 }
  0x5d   : > { %v1455_v52 = vmul.u32 10, %v1454_v32 }
  0x5f   : > { %1018 = vmatmul.mubr.bf16.gmra.mrb[28].mxu0 %v852_v46  ;;  %v2752_v33 = vmul.u32.u64.low 3435973837, %v2740_v42  ;;  %v2753_v46 = vmul.u32.u64.high 3435973837, %v2740_v42, %v2752_v33 }
  0x60   : > { %1353 = vmatmul.mubr.bf16.gmra.mrb[28].mxu1 %v1152_v38  ;;  %1025 = vmatprep.mubr.bf16.mxu0 %v858_v47  ;;  %v2756_v47 = vadd.s32 24, %v2726_v12  ;;  %v2808_v33 = vadd.s32 56, %v2726_v12 }
  0x61   : > { %1360 = vmatprep.mubr.bf16.mxu1 %v1179_v43 }
  0x67   : > { %1026 = vmatmul.mubr.bf16.gmra.mrb[32].mxu0 %v856_v56 }
  0x68   : > { %1361 = vmatmul.mubr.bf16.gmra.mrb[32].mxu1 %v1170_v53  ;;  %1033 = vmatprep.mubr.bf16.mxu0 %v862_v58 }
  0x69   : > { %1368 = vmatprep.mubr.bf16.mxu1 %v1197_v45  ;;  %v2762_v55 = vmul.u32.u64.low 3435973837, %v2756_v47  ;;  %v2763_v45 = vmul.u32.u64.high 3435973837, %v2756_v47, %v2762_v55 }
  0x6f   : > { %1034 = vmatmul.mubr.bf16.gmra.mrb[36].mxu0 %v860_v63 }
  0x70   : > { %1369 = vmatmul.mubr.bf16.gmra.mrb[36].mxu1 %v1188_v62  ;;  %v1465_v62 = vshrl.u32 %v2746_v39, 3 }
  0xfa   : > { %v2067_v7 = vpop.f32.mrb[0].mxu0 }
  0xfb   : > { %v2113_v0 = vpop.f32.mrb[0].mxu1  ;;  %v2068_v8 = vpop.f32.mrb[1].mxu0 }
  0xfc   : > { %v2114_v1 = vpop.f32.mrb[1].mxu1  ;;  %v2069_v9 = vadd.f32 %v2068_v8, %v2067_v7  ;;  %v2070_v10 = vpop.f32.mrb[2].mxu0  ;;  %v1466_v8 = vmul.u32 10, %v1465_v62 }
  0xfd   : > { %v2115_v2 = vadd.f32 %v2114_v1, %v2113_v0  ;;  %v2116_v3 = vpop.f32.mrb[2].mxu1  ;;  %v2071_v13 = vpop.f32.mrb[3].mxu0  ;;  %v2769_v63 = vmul.u32.u64.low 3435973837, %v2759_v30  ;;  %v2770_v0 = vmul.u32.u64.high 3435973837, %v2759_v30, %v2769_v63 }
  0xfe   : > { %v2117_v4 = vpop.f32.mrb[3].mxu1  ;;  %v2072_v19 = vadd.f32 %v2071_v13, %v2070_v10  ;;  %v2780_v13 = vadd.s32 48, %v2726_v12 }
  0xff   : > { %v2118_v5 = vadd.f32 %v2117_v4, %v2116_v3  ;;  %v2728_v17 = vadd.f32 %v2115_v2, %v2069_v9  ;;  %v1456_v3 = vsub.s32 %v2726_v12, %v1455_v52  ;;  %v1476_v4 = vshrl.u32 %v2753_v46, 3 }
 0x101   : > { %v2730_v21 = vadd.f32 %v2118_v5, %v2072_v19  ;;  %v2777_v5 = vadd.s32 40, %v2726_v12  ;;  %vm1558_vm3 = vcmp.ne.s32.totalorder %v1456_v3, 0  ;;  %vm1568_vm4 = vcmp.lt.s32.totalorder %v1456_v3, 0 }
 0x102   : > { %v2073_v26 = vpop.f32.mrb[4].mxu0  ;;  %vm2796_vm5 = vmand %vm1568_vm4, %vm1558_vm3 }
 0x103   : > { %v2119_v11 = vpop.f32.mrb[4].mxu1  ;;  %v2074_v27 = vpop.f32.mrb[5].mxu0 }
 0x104   : > { %v2120_v14 = vpop.f32.mrb[5].mxu1  ;;  %v2075_v29 = vadd.f32 %v2074_v27, %v2073_v26  ;;  %v2076_v28 = vpop.f32.mrb[6].mxu0  ;;  %v1487_v27 = vshrl.u32 %v2763_v45, 3 }
 0x105   : > { %v2121_v18 = vadd.f32 %v2120_v14, %v2119_v11  ;;  %v2122_v44 = vpop.f32.mrb[6].mxu1  ;;  %v2077_v15 = vpop.f32.mrb[7].mxu0 }
 0x106   : > { %v2123_v20 = vpop.f32.mrb[7].mxu1  ;;  %v2078_v35 = vadd.f32 %v2077_v15, %v2076_v28  ;;  %v1588_v28 = vadd.s32 10, %v1456_v3  ;;  %v1498_v15 = vshrl.u32 %v2770_v0, 3 }
 0x107   : > { %v2124_v22 = vadd.f32 %v2123_v20, %v2122_v44  ;;  %v2742_v34 = vadd.f32 %v2121_v18, %v2075_v29  ;;  %v1477_v18 = vmul.u32 10, %v1476_v4 }
 0x108   : > { %v2783_v44 = vmul.u32.u64.low 3435973837, %v2777_v5  ;;  %v2784_v20 = vmul.u32.u64.high 3435973837, %v2777_v5, %v2783_v44  ;;  %v1598_v32 = vsel %vm2796_vm5, %v1588_v28, %v1456_v3  ;;  %v2842_v3 = vadd.s32 64, %v2726_v12 }
 0x109   : > { %v2748_v40 = vadd.f32 %v2124_v22, %v2078_v35  ;;  %v1478_v50 = vsub.s32 %v2740_v42, %v1477_v18  ;;  %vm2816_vm10 = vcmp.lt.s32.totalorder %v1598_v32, 8  ;;  %v2856_v18 = vadd.s32 72, %v2726_v12 }
 0x10a   : > { %v2079_v16 = vpop.f32.mrb[8].mxu0  ;;  %v1509_v42 = vshrl.u32 %v2784_v20, 3  ;;  %v2870_v12 = vmul.u32.u64.low 3435973837, %v2842_v3  ;;  %v2871_v28 = vmul.u32.u64.high 3435973837, %v2842_v3, %v2870_v12 }
 0x10b   : > { %v2125_v60 = vpop.f32.mrb[8].mxu1  ;;  %v2080_v41 = vpop.f32.mrb[9].mxu0  ;;  %vm1560_vm8 = vcmp.ne.s32.totalorder %v1478_v50, 0  ;;  %vm1570_vm9 = vcmp.lt.s32.totalorder %v1478_v50, 0  ;;  %v1590_v45 = vadd.s32 10, %v1478_v50 }
 0x10c   : > { %v2126_v31 = vpop.f32.mrb[9].mxu1  ;;  %v2081_v48 = vadd.f32 %v2080_v41, %v2079_v16  ;;  %v2082_v49 = vpop.f32.mrb[10].mxu0  ;;  %v1499_v41 = vmul.u32 10, %v1498_v15  ;;  %vm2833_vm12 = vmand %vm1570_vm9, %vm1560_vm8 }
 0x10d   : > { %v2127_v36 = vadd.f32 %v2126_v31, %v2125_v60  ;;  %v2128_v38 = vpop.f32.mrb[10].mxu1  ;;  %v2083_v53 = vpop.f32.mrb[11].mxu0  ;;  %v2790_v60 = vsub.s32 %v2737_v23, %v1466_v8 }
 0x10e   : > { %v2129_v37 = vpop.f32.mrb[11].mxu1  ;;  %v2084_v57 = vadd.f32 %v2083_v53, %v2082_v49  ;;  %v2838_v63 = vsub.s32 %v2759_v30, %v1499_v41 }
 0x10f   : > { %v2130_v43 = vadd.f32 %v2129_v37, %v2128_v38  ;;  %v2765_v56 = vadd.f32 %v2127_v36, %v2081_v48  ;;  %v2801_v38 = vmul.u32.u64.low 3435973837, %v2780_v13  ;;  %v2802_v37 = vmul.u32.u64.high 3435973837, %v2780_v13, %v2801_v38 }
 0x110   : > { %vm1559_vm6 = vcmp.ne.s32.totalorder %v2790_v60, 0  ;;  %vm1569_vm7 = vcmp.lt.s32.totalorder %v2790_v60, 0  ;;  %v1589_v49 = vadd.s32 10, %v2790_v60  ;;  %vm1562_vm15 = vcmp.ne.s32.totalorder %v2838_v63, 0 }
 0x111   : > { %v2772_v1 = vadd.f32 %v2130_v43, %v2084_v57  ;;  %v1488_v43 = vmul.u32 10, %v1487_v27  ;;  %vm2823_vm11 = vmand %vm1569_vm7, %vm1559_vm6  ;;  %vm1572_vm1 = vcmp.lt.s32.totalorder %v2838_v63, 0  ;;  %v1592_v36 = vadd.s32 10, %v2838_v63 }
 0x112   : > { %v2085_v6 = vpop.f32.mrb[12].mxu0  ;;  %vm2893_vm4 = vmand %vm1572_vm1, %vm1562_vm15 }
 0x113   : > { %v2131_v51 = vpop.f32.mrb[12].mxu1  ;;  %v2086_v7 = vpop.f32.mrb[13].mxu0  ;;  %v1602_v55 = vsel %vm2893_vm4, %v1592_v36, %v2838_v63 }
 0x114   : > { %v2132_v54 = vpop.f32.mrb[13].mxu1  ;;  %v2087_v9 = vadd.f32 %v2086_v7, %v2085_v6  ;;  %v2088_v10 = vpop.f32.mrb[14].mxu0  ;;  %v2365_v7 = vmov 0.0  }
 0x115   : > { %v2133_v58 = vadd.f32 %v2132_v54, %v2131_v51  ;;  %v2134_v59 = vpop.f32.mrb[14].mxu1  ;;  %v2089_v14 = vpop.f32.mrb[15].mxu0  ;;  %v2821_v54 = vsub.s32 %v2756_v47, %v1488_v43  ;;  %v1520_v47 = vshrl.u32 %v2802_v37, 3  ;;  %v2000_v8 = vsel %vm2816_vm10, 1.0, %v2365_v7 }
 0x116   : > { %v2135_v61 = vpop.f32.mrb[15].mxu1  ;;  %v2090_v24 = vadd.f32 %v2089_v14, %v2088_v10  ;;  %v1600_v14 = vsel %vm2833_vm12, %v1590_v45, %v1478_v50  ;;  %vm2952_vm12 = vcmp.lt.s32.totalorder %v1602_v55, 8 }
 0x117   : > { %v2136_v2 = vadd.f32 %v2135_v61, %v2134_v59  ;;  %v2786_v22 = vadd.f32 %v2133_v58, %v2087_v9  ;;  %v2828_v57 = vmul.u32.u64.low 3435973837, %v2808_v33  ;;  %v2829_v58 = vmul.u32.u64.high 3435973837, %v2808_v33, %v2828_v57 }
 0x118   : > { %vm1561_vm13 = vcmp.ne.s32.totalorder %v2821_v54, 0  ;;  %vm1571_vm14 = vcmp.lt.s32.totalorder %v2821_v54, 0  ;;  %vm2874_vm3 = vcmp.lt.s32.totalorder %v1600_v14, 8 }
 0x119   : > { %v2793_v31 = vadd.f32 %v2136_v2, %v2090_v24  ;;  %v1510_v2 = vmul.u32 10, %v1509_v42  ;;  %vm2861_vm0 = vmand %vm1571_vm14, %vm1561_vm13  ;;  %v1531_v38 = vshrl.u32 %v2829_v58, 3  ;;  %v2002_v42 = vsel %vm2874_vm3, 1.0, %v2365_v7 }
 0x11a   : > { %v2091_v39 = vpop.f32.mrb[16].mxu0 }
 0x11b   : > { %v2137_v11 = vpop.f32.mrb[16].mxu1  ;;  %v2092_v23 = vpop.f32.mrb[17].mxu0  ;;  %v1532_v57 = vmul.u32 10, %v1531_v38 }
 0x11c   : > { %v2138_v19 = vpop.f32.mrb[17].mxu1  ;;  %v2093_v46 = vadd.f32 %v2092_v23, %v2091_v39  ;;  %v2094_v16 = vpop.f32.mrb[18].mxu0 }
 0x11d   : > { %v2139_v25 = vadd.f32 %v2138_v19, %v2137_v11  ;;  %v2140_v26 = vpop.f32.mrb[18].mxu1  ;;  %v2095_v48 = vpop.f32.mrb[19].mxu0  ;;  %v1599_v11 = vsel %vm2823_vm11, %v1589_v49, %v2790_v60  ;;  %v1591_v19 = vadd.s32 10, %v2821_v54 }
 0x11e   : > { %v2141_v29 = vpop.f32.mrb[19].mxu1  ;;  %v2096_v52 = vadd.f32 %v2095_v48, %v2094_v16  ;;  %vm1609_vm2 = vcmp.lt.s32.totalorder %v1599_v11, 8 }
 0x11f   : > { %v2142_v35 = vadd.f32 %v2141_v29, %v2140_v26  ;;  %v2814_v51 = vadd.f32 %v2139_v25, %v2093_v46  ;;  %v1521_v25 = vmul.u32 10, %v1520_v47  ;;  %v2867_v29 = vsub.s32 %v2777_v5, %v1510_v2 }
 0x120   : > { %v2882_v5 = vmul.u32.u64.low 3435973837, %v2856_v18  ;;  %v2883_v37 = vmul.u32.u64.high 3435973837, %v2856_v18, %v2882_v5  ;;  %v2001_v46 = vsel %vm1609_vm2, 1.0, %v2365_v7 }
 0x121   : > { %v2831_v59 = vadd.f32 %v2142_v35, %v2096_v52  ;;  %v2898_v32 = vsub.s32 %v2780_v13, %v1521_v25  ;;  %vm1563_vm5 = vcmp.ne.s32.totalorder %v2867_v29, 0  ;;  %vm1573_vm6 = vcmp.lt.s32.totalorder %v2867_v29, 0 }
 0x122   : > { %v2159_v4 = vpop.f32.mrb[20].mxu0  ;;  %v1593_v45 = vadd.s32 10, %v2867_v29  ;;  %vm2923_vm8 = vmand %vm1573_vm6, %vm1563_vm5 }
 0x123   : > { %v2205_v61 = vpop.f32.mrb[20].mxu1  ;;  %v2160_v30 = vpop.f32.mrb[21].mxu0  ;;  %vm1564_vm9 = vcmp.ne.s32.totalorder %v2898_v32, 0  ;;  %vm1574_vm10 = vcmp.lt.s32.totalorder %v2898_v32, 0  ;;  %v1594_v14 = vadd.s32 10, %v2898_v32 }
 0x124   : > { %v2206_v0 = vpop.f32.mrb[21].mxu1  ;;  %v2161_v44 = vadd.f32 %v2160_v30, %v2159_v4  ;;  %v2162_v20 = vpop.f32.mrb[22].mxu0  ;;  %v1603_v11 = vsel %vm2923_vm8, %v1593_v45, %v2867_v29  ;;  %vm2945_vm11 = vmand %vm1574_vm10, %vm1564_vm9  ;;  %v2004_v45 = vsel %vm2952_vm12, 1.0, %v2365_v7 }
 0x125   : > { %v2207_v6 = vadd.f32 %v2206_v0, %v2205_v61  ;;  %v2208_v9 = vpop.f32.mrb[22].mxu1  ;;  %v2163_v26 = vpop.f32.mrb[23].mxu0  ;;  %vm2956_vm13 = vcmp.lt.s32.totalorder %v1603_v11, 8 }
 0x126   : > { %v2209_v10 = vpop.f32.mrb[23].mxu1  ;;  %v1042_v60 = vadd.f32 %v2161_v44, %v2728_v17  ;;  %v2164_v15 = vadd.f32 %v2163_v26, %v2162_v20  ;;  %v1601_v17 = vsel %vm2861_vm0, %v1591_v19, %v2821_v54  ;;  %v2937_v19 = vsub.s32 %v2808_v33, %v1532_v57 }
 0x127   : > { %v2210_v24 = vadd.f32 %v2209_v10, %v2208_v9  ;;  %vm2911_vm7 = vcmp.lt.s32.totalorder %v1601_v17, 8  ;;  %v1553_v44 = vshrl.u32 %v2883_v37, 3  ;;  %v1604_v37 = vsel %vm2945_vm11, %v1594_v14, %v2898_v32 }
 0x128   : > { %v1377_v50 = vadd.f32 %v2207_v6, %v1042_v60  ;;  %v1043_v39 = vadd.f32 %v2164_v15, %v2730_v21  ;;  %v1542_v6 = vshrl.u32 %v2871_v28, 3  ;;  %v2003_v33 = vsel %vm2911_vm7, 1.0, %v2365_v7 }
 0x129   : > { %vm1565_vm14 = vcmp.ne.s32.totalorder %v2937_v19, 0  ;;  %vm1575_vm15 = vcmp.lt.s32.totalorder %v2937_v19, 0  ;;  %vm2989_vm1 = vcmp.lt.s32.totalorder %v1604_v37, 8 }
 0x12a   : > { %v1658_v21 = vmul.f32 %v2000_v8, %v1377_v50  ;;  %v1378_v41 = vadd.f32 %v2210_v24, %v1043_v39  ;;  %v2165_v48 = vpop.f32.mrb[24].mxu0  ;;  %v1543_v12 = vmul.u32 10, %v1542_v6  ;;  %vm2975_vm0 = vmand %vm1575_vm15, %vm1565_vm14 }
 0x12b   : > { %v2211_v43 = vpop.f32.mrb[24].mxu1  ;;  %v2166_v13 = vpop.f32.mrb[25].mxu0 }
 0x12c   : > { %v2212_v16 = vpop.f32.mrb[25].mxu1  ;;  %v2025_v58 = vpack.c.bf16 %v1378_v41, %v1377_v50  ;;  %v1659_v61 = vmul.f32 %v2001_v46, %v1378_v41  ;;  %v2167_v62 = vadd.f32 %v2166_v13, %v2165_v48  ;;  %v2168_v47 = vpop.f32.mrb[26].mxu0  ;;  %v1684_v2 = vmul.f32 %v1658_v21, %v1377_v50 }
 0x12d   : > { %v2213_v49 = vadd.f32 %v2212_v16, %v2211_v43  ;;  %v2214_v52 = vpop.f32.mrb[26].mxu1  ;;  %v2169_v4 = vpop.f32.mrb[27].mxu0  ;;  %v1554_v50 = vmul.u32 10, %v1553_v44  ;;  %v1595_v48 = vadd.s32 10, %v2937_v19 }
 0x12e   : > { %v2215_v53 = vpop.f32.mrb[27].mxu1  ;;  %2026 = vst [vmem:[%s2909_s25] sm:$0xff] %v2025_v58   ;;  %v1668_v8 = vadd.f32 %v1659_v61, %v1658_v21  ;;  %v1685_v9 = vmul.f32 %v1659_v61, %v1378_v41  ;;  %v1044_v30 = vadd.f32 %v2167_v62, %v2742_v34  ;;  %v2170_v10 = vadd.f32 %v2169_v4, %v2168_v47 }
 0x12f   : > { %v2216_v63 = vadd.f32 %v2215_v53, %v2214_v52  ;;  %v2980_v55 = vsub.s32 %v2856_v18, %v1554_v50  ;;  %v2005_v61 = vsel %vm2956_vm13, 1.0, %v2365_v7 }
 0x130   : > { %v1694_v20 = vadd.f32 %v1685_v9, %v1684_v2  ;;  %v1379_v24 = vadd.f32 %v2213_v49, %v1044_v30  ;;  %v1045_v25 = vadd.f32 %v2170_v10, %v2748_v40  ;;  %v2967_v49 = vsub.s32 %v2842_v3, %v1543_v12 }
 0x131   : > { %vm1567_vm4 = vcmp.ne.s32.totalorder %v2980_v55, 0  ;;  %vm1577_vm5 = vcmp.lt.s32.totalorder %v2980_v55, 0  ;;  %v1597_v29 = vadd.s32 10, %v2980_v55 }
 0x132   : > { %v1660_v40 = vmul.f32 %v2002_v42, %v1379_v24  ;;  %v1380_v28 = vadd.f32 %v2216_v63, %v1045_v25  ;;  %v2171_v60 = vpop.f32.mrb[28].mxu0  ;;  %v1605_v63 = vsel %vm2975_vm0, %v1595_v48, %v2937_v19  ;;  %vm1566_vm2 = vcmp.ne.s32.totalorder %v2967_v49, 0  ;;  %vm3023_vm8 = vmand %vm1577_vm5, %vm1567_vm4 }
 0x133   : > { %v2217_v26 = vpop.f32.mrb[28].mxu1  ;;  %v2172_v38 = vpop.f32.mrb[29].mxu0  ;;  %vm1576_vm3 = vcmp.lt.s32.totalorder %v2967_v49, 0  ;;  %vm3000_vm6 = vcmp.lt.s32.totalorder %v1605_v63, 8  ;;  %v1596_v25 = vadd.s32 10, %v2967_v49 }
 0x134   : > { %v2218_v27 = vpop.f32.mrb[29].mxu1  ;;  %v1669_v39 = vadd.f32 %v1668_v8, %v1660_v40  ;;  %v1686_v43 = vmul.f32 %v1660_v40, %v1379_v24  ;;  %v2030_v17 = vpack.c.bf16 %v1380_v28, %v1379_v24  ;;  %v1661_v23 = vmul.f32 %v2003_v33, %v1380_v28  ;;  %v2174_v46 = vpop.f32.mrb[30].mxu0  ;;  %vm3011_vm7 = vmand %vm1576_vm3, %vm1566_vm2 }
 0x135   : > { %v2219_v15 = vadd.f32 %v2218_v27, %v2217_v26  ;;  %v2220_v35 = vpop.f32.mrb[30].mxu1  ;;  %v2173_v16 = vadd.f32 %v2172_v38, %v2171_v60  ;;  %v2175_v21 = vpop.f32.mrb[31].mxu0  ;;  %v2007_v38 = vsel %vm3000_vm6, 1.0, %v2365_v7  ;;  %v1606_v37 = vsel %vm3011_vm7, %v1596_v25, %v2967_v49 }
 0x136   : > { %v2221_v5 = vpop.f32.mrb[31].mxu1  ;;  %v1695_v42 = vadd.f32 %v1694_v20, %v1686_v43  ;;  %2047 = vst [vmem:[%s2909_s25 + $0x8] sm:$0xff] %v2030_v17   ;;  %v1670_v32 = vadd.f32 %v1669_v39, %v1661_v23  ;;  %v1687_v52 = vmul.f32 %v1661_v23, %v1380_v28  ;;  %v2176_v13 = vadd.f32 %v2175_v21, %v2174_v46 }
 0x137   : > { %v2222_v41 = vadd.f32 %v2221_v5, %v2220_v35  ;;  %v1046_v53 = vadd.f32 %v2173_v16, %v2765_v56  ;;  %v2006_v28 = vsel %vm2989_vm1, 1.0, %v2365_v7  ;;  %vm1616_vm9 = vcmp.lt.s32.totalorder %v1606_v37, 8 }
 0x138   : > { %v1696_v3 = vadd.f32 %v1695_v42, %v1687_v52  ;;  %v1047_v57 = vadd.f32 %v2176_v13, %v2772_v1 }
 0x139   : > { %v1381_v56 = vadd.f32 %v2219_v15, %v1046_v53 }
 0x13a   : > { %v1382_v18 = vadd.f32 %v2222_v41, %v1047_v57  ;;  %v2177_v0 = vpop.f32.mrb[32].mxu0 }
 0x13b   : > { %v2223_v58 = vpop.f32.mrb[32].mxu1  ;;  %v1662_v1 = vmul.f32 %v2004_v45, %v1381_v56  ;;  %v2178_v6 = vpop.f32.mrb[33].mxu0 }
 0x13c   : > { %v2224_v62 = vpop.f32.mrb[33].mxu1  ;;  %v2035_v9 = vpack.c.bf16 %v1382_v18, %v1381_v56  ;;  %v1663_v30 = vmul.f32 %v2005_v61, %v1382_v18  ;;  %v2179_v10 = vadd.f32 %v2178_v6, %v2177_v0  ;;  %v2180_v11 = vpop.f32.mrb[34].mxu0 }
 0x13d   : > { %v2225_v2 = vadd.f32 %v2224_v62, %v2223_v58  ;;  %v2226_v4 = vpop.f32.mrb[34].mxu1  ;;  %v1671_v44 = vadd.f32 %v1670_v32, %v1662_v1  ;;  %v1688_v20 = vmul.f32 %v1662_v1, %v1381_v56  ;;  %v2181_v19 = vpop.f32.mrb[35].mxu0  ;;  %v2008_v58 = vsel %vm1616_vm9, 1.0, %v2365_v7 }
 0x13e   : > { %v2227_v8 = vpop.f32.mrb[35].mxu1  ;;  %2048 = vst [vmem:[%s2909_s25 + $0x10] sm:$0xff] %v2035_v9   ;;  %v1689_v26 = vmul.f32 %v1663_v30, %v1382_v18  ;;  %v1048_v34 = vadd.f32 %v2179_v10, %v2786_v22  ;;  %v2182_v33 = vadd.f32 %v2181_v19, %v2180_v11 }
 0x13f   : > { %v2228_v14 = vadd.f32 %v2227_v8, %v2226_v4  ;;  %v1697_v12 = vadd.f32 %v1696_v3, %v1688_v20  ;;  %v1672_v40 = vadd.f32 %v1671_v44, %v1663_v30 }
 0x140   : > { %v1383_v60 = vadd.f32 %v2225_v2, %v1048_v34  ;;  %v1049_v15 = vadd.f32 %v2182_v33, %v2793_v31  ;;  %v1607_v31 = vsel %vm3023_vm8, %v1597_v29, %v2980_v55 }
 0x141   : > { %v1698_v36 = vadd.f32 %v1697_v12, %v1689_v26  ;;  %vm1617_vm10 = vcmp.lt.s32.totalorder %v1607_v31, 8 }
 0x142   : > { %v1664_v50 = vmul.f32 %v2006_v28, %v1383_v60  ;;  %v1384_v39 = vadd.f32 %v2228_v14, %v1049_v15  ;;  %v2183_v43 = vpop.f32.mrb[36].mxu0  ;;  %v2009_v62 = vsel %vm1617_vm10, 1.0, %v2365_v7 }
 0x143   : > { %v2229_v35 = vpop.f32.mrb[36].mxu1  ;;  %v2184_v46 = vpop.f32.mrb[37].mxu0 }
 0x144   : > { %v2230_v5 = vpop.f32.mrb[37].mxu1  ;;  %v1673_v21 = vadd.f32 %v1672_v40, %v1664_v50  ;;  %v1690_v41 = vmul.f32 %v1664_v50, %v1383_v60  ;;  %v2040_v48 = vpack.c.bf16 %v1384_v39, %v1383_v60  ;;  %v1665_v42 = vmul.f32 %v2007_v38, %v1384_v39  ;;  %v2186_v32 = vpop.f32.mrb[38].mxu0 }
 0x145   : > { %v2231_v17 = vadd.f32 %v2230_v5, %v2229_v35  ;;  %v2232_v23 = vpop.f32.mrb[38].mxu1  ;;  %v2185_v52 = vadd.f32 %v2184_v46, %v2183_v43  ;;  %v2187_v49 = vpop.f32.mrb[39].mxu0 }
 0x146   : > { %v2233_v16 = vpop.f32.mrb[39].mxu1  ;;  %v1699_v53 = vadd.f32 %v1698_v36, %v1690_v41  ;;  %2049 = vst [vmem:[%s2909_s25 + $0x18] sm:$0xff] %v2040_v48   ;;  %v1674_v54 = vadd.f32 %v1673_v21, %v1665_v42  ;;  %v1691_v3 = vmul.f32 %v1665_v42, %v1384_v39  ;;  %v2188_v45 = vadd.f32 %v2187_v49, %v2186_v32 }
 0x147   : > { %v2234_v13 = vadd.f32 %v2233_v16, %v2232_v23  ;;  %v1050_v55 = vadd.f32 %v2185_v52, %v2814_v51 }
 0x148   : > { %v1700_v57 = vadd.f32 %v1699_v53, %v1691_v3  ;;  %v1051_v56 = vadd.f32 %v2188_v45, %v2831_v59 }
 0x149   : > { %v1385_v61 = vadd.f32 %v2231_v17, %v1050_v55 }
 0x14a   : > { %v1386_v47 = vadd.f32 %v2234_v13, %v1051_v56 }
 0x14b   : > { %v1666_v18 = vmul.f32 %v2008_v58, %v1385_v61 }
 0x14c   : > { %v2045_v0 = vpack.c.bf16 %v1386_v47, %v1385_v61  ;;  %v1667_v2 = vmul.f32 %v2009_v62, %v1386_v47 }
 0x14d   : > { %v1675_v4 = vadd.f32 %v1674_v54, %v1666_v18  ;;  %v1692_v63 = vmul.f32 %v1666_v18, %v1385_v61 }
 0x14e   : > { %2050 = vst [vmem:[%s2909_s25 + $0x20] sm:$0xff] %v2045_v0   ;;  %v1693_v1 = vmul.f32 %v1667_v2, %v1386_v47 }
 0x14f   : > { %v1701_v6 = vadd.f32 %v1700_v57, %v1692_v63  ;;  %v1676_v8 = vadd.f32 %v1675_v4, %v1667_v2 }
 0x151   : > { %v1677_v51 = vrot.slane %v1676_v8, 4  ;;  %v1702_v9 = vadd.f32 %v1701_v6, %v1693_v1 }
 0x153   : > { %v1678_v30 = vadd.f32 %v1677_v51, %v1676_v8  ;;  %v1703_v10 = vrot.slane %v1702_v9, 4 }
 0x155   : > { %v1679_v11 = vrot.slane %v1678_v30, 2  ;;  %v1704_v59 = vadd.f32 %v1703_v10, %v1702_v9 }
 0x157   : > { %v1680_v14 = vadd.f32 %v1679_v11, %v1678_v30  ;;  %v1705_v7 = vrot.slane %v1704_v59, 2 }
 0x159   : > { %v1681_v44 = vrot.slane %v1680_v14, 1  ;;  %v1706_v20 = vadd.f32 %v1705_v7, %v1704_v59 }
 0x15b   : > { %v1682_v19 = vadd.f32 %v1681_v44, %v1680_v14  ;;  %v1707_v24 = vrot.slane %v1706_v20, 1 }
 0x15d   : > { %1683 = vst [vmem:[%s181_s30] sm:$0x1] %v1682_v19  ;;  %v1708_v25 = vadd.f32 %v1707_v24, %v1706_v20 }
 0x15f   : > { %1709 = vst [vmem:[%s181_s30 + $0x1] sm:$0x1] %v1708_v25 }
 0x160 PF: > { %s14_s12 = sadd.s32 1, %s2363_s12  }
 0x161   : > { %p11_p4 = scmp.ge.s32.totalorder %s14_s12, 4  }
 0x163   :  { %13 = sbr.rel (!%p11_p4) target bundleno = 1 (0x1), region = 73 }

// kernel: generator_forward.8
= control target key start
LH: loop header
LB: loop body
LE: loop exit
PB: predicated region body
PF: predicated region fallthrough
CT: control target
= control target key end

     0   :  { %s4078_s12 = smov 0   ;;  %s5584_s0 = inlined_call_operand.vmem [shape: bf16[2,312,128], index: 0, kind: input, shape index: {}]   ;;  %s5585_s1 = inlined_call_operand.vmem [shape: bf16[4,128,128], index: 1, kind: input, shape index: {}]   ;;  %s5586_s2 = inlined_call_operand.vmem [shape: bf16[2,288,128], index: 2, kind: output, shape index: {0}]   ;;  %s5587_s3 = inlined_call_operand.vmem [shape: f32[2,2,128], index: 3, kind: output, shape index: {1}]  }
   0x1 LB: > { %s3131_s13 = sadd.s32 4294967295, %s4055_s12   ;;  %p3135_p0 = scmp.ge.s32.totalorder %s4055_s12, 1  ;;  %s4055_s12 = sphi %s4078_s12, %s14_s12  }
   0x2   : > { %p140_p1 = scmp.lt.s32.totalorder %s4055_s12, 3 }
   0x4   : > { %p141_p2 = pnand %p3135_p0, %p140_p1 }
   0x5   : > { %v3978_v0 = vld [vmem:[%s5585_s1 + $0x40] sm:$0xff] (!%p141_p2)   ;;  %v3980_v2 = vld [vmem:[%s5585_s1 + $0x48] sm:$0xff] (!%p141_p2)   ;;  %p168_p3 = scmp.lt.s32.totalorder (!%p141_p2), %s3131_s13, 1  ;;  %v3982_v4 = vld [vmem:[%s5585_s1 + $0x50] sm:$0xff] (!%p141_p2)   ;;  %vm1128_vm0 = vcmask (!%p141_p2), 1046528  }
   0x6   : > { %144 = sbr.rel (%p141_p2) target bundleno = 416 (0x1a0), region = 28  ;;  %v3979_v1 = vld [vmem:[%s5585_s1 + $0x80] sm:$0xff] (!%p141_p2)   ;;  %3579 = vmatprep.subr.bf16.mxu1 (!%p141_p2), %v3978_v0  ;;  %v3981_v3 = vld [vmem:[%s5585_s1 + $0x88] sm:$0xff] (!%p141_p2)   ;;  %v3983_v5 = vld [vmem:[%s5585_s1 + $0x90] sm:$0xff] (!%p141_p2)   ;;  %vm346_vm1 = vsmask.f32 (!%p141_p2), 7424 }
   0x7   : > { %3683 = vmatprep.subr.bf16.mxu0 (!%p141_p2), %v3979_v1  ;;  %3580 = vmatpush3.bf16.msra.mxu1 (!%p141_p2), %v3978_v0  ;;  %v3984_v6 = vld [vmem:[%s5585_s1 + $0x58] sm:$0xff] (!%p141_p2)   ;;  %v3986_v8 = vld [vmem:[%s5585_s1 + $0x60] sm:$0xff] (!%p141_p2)   ;;  %v3988_v10 = vld [vmem:[%s5585_s1 + $0x68] sm:$0xff] (!%p141_p2)   ;;  %vm1466_vm2 = vsmask.f32 (!%p141_p2), 6400 }
   0x8   : > { %3684 = vmatpush3.bf16.msra.mxu0 (!%p141_p2), %v3979_v1  ;;  %3581 = vmatprep.subr.bf16.mxu1 (!%p141_p2), %v3980_v2  ;;  %v3985_v7 = vld [vmem:[%s5585_s1 + $0x98] sm:$0xff] (!%p141_p2)   ;;  %v3987_v9 = vld [vmem:[%s5585_s1 + $0xa0] sm:$0xff] (!%p141_p2)   ;;  %v3989_v11 = vld [vmem:[%s5585_s1 + $0xa8] sm:$0xff] (!%p141_p2)  }
   0x9   : > { %3685 = vmatprep.subr.bf16.mxu0 (!%p141_p2), %v3981_v3  ;;  %v3990_v14 = vld [vmem:[%s5585_s1 + $0x70] sm:$0xff] (!%p141_p2)   ;;  %v3992_v25 = vld [vmem:[%s5585_s1 + $0x78] sm:$0xff] (!%p141_p2)   ;;  %v3999_v36 = vld [vmem:[%s5585_s1] sm:$0xff] (!%p141_p2)  }
   0xa   : > { %v3991_v15 = vld [vmem:[%s5585_s1 + $0xb0] sm:$0xff] (!%p141_p2)   ;;  %v3993_v33 = vld [vmem:[%s5585_s1 + $0xb8] sm:$0xff] (!%p141_p2)   ;;  %v4001_v41 = vld [vmem:[%s5585_s1 + $0xc0] sm:$0xff] (!%p141_p2)  }
   0xb   : > { %3582 = vmatpush3.bf16.msra.mxu1 (!%p141_p2), %v3980_v2  ;;  %v4006_v53 = vld [vmem:[%s5585_s1 + $0x8] sm:$0xff] (!%p141_p2)  }
   0xc   : > { %3686 = vmatpush3.bf16.msra.mxu0 (!%p141_p2), %v3981_v3  ;;  %3583 = vmatprep.subr.bf16.mxu1 (!%p141_p2), %v3982_v4  ;;  %v4007_v57 = vld [vmem:[%s5585_s1 + $0xc8] sm:$0xff] (!%p141_p2)  }
   0xd   : > { %s5721_s13 = smov (!%p168_p3, %s3131_s13), 1  ;;  %3687 = vmatprep.subr.bf16.mxu0 %v3983_v5 }
   0xe   : > { %s3895_s30 = smul.u32 156, %s5721_s13  ;;  %s3138_s9 = sshll.u32 %s5721_s13, 1 }
   0xf   : > { %3584 = vmatpush3.bf16.msra.mxu1 %v3982_v4  ;;  %v4012_v4 = vld [vmem:[%s5585_s1 + $0x10] sm:$0xff]   ;;  %s181_s15 = scalar_lea.vmem %s5587_s3, %s3138_s9 }
  0x10   : > { %3688 = vmatpush3.bf16.msra.mxu0 %v3983_v5  ;;  %3585 = vmatprep.subr.bf16.mxu1 %v3984_v6  ;;  %s4125_s14 = scalar_lea.vmem %s5584_s0, %s3895_s30 }
  0x11   : > { %3689 = vmatprep.subr.bf16.mxu0 %v3985_v7  ;;  %v4131_v12 = vld [vmem:[%s4125_s14] sm:$0xff]   ;;  %v4134_v13 = vld [vmem:[%s4125_s14 + $0x8] sm:$0xff]   ;;  %v4146_v19 = vld [vmem:[%s4125_s14 + $0x10] sm:$0xff]  }
  0x12   : > { %v348_v16 = vshrl.u32 %v4131_v12, 16  ;;  %v350_v17 = vshll.u32 %v4131_v12, 16  ;;  %v355_v18 = vshll.u32 %v4134_v13, 16  ;;  %v4149_v20 = vld [vmem:[%s4125_s14 + $0x8] sm:$0xfe]   ;;  %v1130_v23 = vrot.slane %v4146_v19, 1 }
  0x13   : > { %3586 = vmatpush3.bf16.msra.mxu1 %v3984_v6  ;;  %v4153_v24 = vld [vmem:[%s4125_s14 + $0x10] sm:$0xff]   ;;  %v1129_v26 = vrot.slane %v4149_v20, 1  ;;  %v359_v27 = vshrl.u32 %v4134_v13, 16  ;;  %v4162_v30 = vld [vmem:[%s4125_s14 + $0x18] sm:$0xff]   ;;  %v4178_v38 = vld [vmem:[%s4125_s14 + $0x20] sm:$0xff]  }
  0x14   : > { %3690 = vmatpush3.bf16.msra.mxu0 %v3985_v7  ;;  %3587 = vmatprep.subr.bf16.mxu1 %v3986_v8  ;;  %v352_v21 = vrot.slane %v350_v17, 1  ;;  %v357_v22 = vrot.slane %v355_v18, 1  ;;  %v363_v29 = vshll.u32 %v4153_v24, 16  ;;  %v4166_v32 = vld [vmem:[%s4125_s14 + $0x18] sm:$0xff]   ;;  %v367_v35 = vshrl.u32 %v4153_v24, 16  ;;  %v4184_v42 = vld [vmem:[%s4125_s14 + $0x20] sm:$0xff]  }
  0x15   : > { %3691 = vmatprep.subr.bf16.mxu0 %v3987_v9  ;;  %v1131_v31 = vsel %vm1128_vm0, %v1129_v26, %v1130_v23  ;;  %v371_v37 = vshll.u32 %v4166_v32, 16  ;;  %v1132_v43 = vrot.slane %v4162_v30, 1  ;;  %v379_v46 = vshll.u32 %v4184_v42, 16  ;;  %v4189_v47 = vld [vmem:[%s4125_s14 + $0x28] sm:$0xff]   ;;  %v4209_v60 = vld [vmem:[%s4125_s14 + $0x30] sm:$0xff]   ;;  %v4218_v3 = vld [vmem:[%s4125_s14 + $0x38] sm:$0xff]  }
  0x16   : > { %v353_v28 = vor.u32 %v352_v21, %v348_v16  ;;  %3699 = vmatprep.mubr.bf16.mxu0 %v1131_v31  ;;  %v361_v39 = vor.u32 %v359_v27, %v357_v22  ;;  %v365_v40 = vrot.slane %v363_v29, 1  ;;  %v1134_v48 = vrot.slane %v4178_v38, 1  ;;  %v4199_v54 = vld [vmem:[%s4125_s14 + $0x28] sm:$0xff]   ;;  %v4213_v62 = vld [vmem:[%s4125_s14 + $0x30] sm:$0xff]   ;;  %v4235_v16 = vld [vmem:[%s4125_s14 + $0x40] sm:$0xff]  }
  0x17   : > { %3588 = vmatpush3.bf16.msra.mxu1 %v3986_v8  ;;  %v373_v44 = vrot.slane %v371_v37, 1  ;;  %v375_v49 = vshrl.u32 %v4166_v32, 16  ;;  %v381_v51 = vrot.slane %v379_v46, 1  ;;  %v1136_v52 = vrot.slane %v4189_v47, 1  ;;  %v4013_v7 = vld [vmem:[%s5585_s1 + $0xd0] sm:$0xff]   ;;  %v4240_v21 = vld [vmem:[%s4125_s14 + $0x40] sm:$0xff]  }
  0x18   : > { %3692 = vmatpush3.bf16.msra.mxu0 %v3987_v9  ;;  %3589 = vmatprep.subr.bf16.mxu1 %v3988_v10  ;;  %v358_v34 = vsel %vm346_vm1, %v353_v28, %v357_v22  ;;  %v369_v45 = vor.u32 %v367_v35, %v365_v40  ;;  %v366_v50 = vsel %vm346_vm1, %v361_v39, %v365_v40  ;;  %v383_v55 = vshrl.u32 %v4184_v42, 16  ;;  %v4229_v9 = vld [vmem:[%s4125_s14 + $0x38] sm:$0xff]   ;;  %v4246_v27 = vld [vmem:[%s4125_s14 + $0x48] sm:$0xff]  }
  0x19   : > { %3693 = vmatprep.subr.bf16.mxu0 %v3989_v11  ;;  %3595 = vmatprep.mubr.bf16.mxu1 %v358_v34  ;;  %v1133_v56 = vsel %vm1128_vm0, %v1130_v23, %v1132_v43  ;;  %v387_v59 = vshll.u32 %v4199_v54, 16  ;;  %v1135_v61 = vsel %vm1128_vm0, %v1132_v43, %v1134_v48  ;;  %v391_v63 = vshrl.u32 %v4199_v54, 16  ;;  %v4018_v28 = vld [vmem:[%s5585_s1 + $0x18] sm:$0xff]   ;;  %v4257_v35 = vld [vmem:[%s4125_s14 + $0x48] sm:$0xff]   ;;  %v4265_v43 = vld [vmem:[%s4125_s14 + $0x50] sm:$0xff]  }
  0x1a   : > { %v374_v58 = vsel %vm346_vm1, %v369_v45, %v373_v44  ;;  %v377_v0 = vor.u32 %v375_v49, %v373_v44  ;;  %v1138_v2 = vrot.slane %v4209_v60, 1  ;;  %v385_v5 = vor.u32 %v383_v55, %v381_v51  ;;  %v4019_v31 = vld [vmem:[%s5585_s1 + $0xd8] sm:$0xff]   ;;  %v4024_v55 = vld [vmem:[%s5585_s1 + $0x20] sm:$0xff]  }
  0x1b   : > { %3590 = vmatpush3.bf16.msra.mxu1 %v3988_v10  ;;  %v389_v1 = vrot.slane %v387_v59, 1  ;;  %v395_v6 = vshll.u32 %v4213_v62, 16  ;;  %v1140_v8 = vrot.slane %v4218_v3, 1  ;;  %v1137_v17 = vsel %vm1128_vm0, %v1134_v48, %v1136_v52  ;;  %v4025_v59 = vld [vmem:[%s5585_s1 + $0xe0] sm:$0xff]  }
  0x1c   : > { %3694 = vmatpush3.bf16.msra.mxu0 %v3989_v11  ;;  %3591 = vmatprep.subr.bf16.mxu1 %v3990_v14  ;;  %v399_v11 = vshrl.u32 %v4213_v62, 16  ;;  %v407_v22 = vshrl.u32 %v4229_v9, 16  ;;  %v1139_v23 = vsel %vm1128_vm0, %v1136_v52, %v1138_v2  ;;  %v1142_v26 = vrot.slane %v4235_v16, 1  ;;  %v4274_v52 = vld [vmem:[%s4125_s14 + $0x58] sm:$0xff]  }
  0x1d   : > { %3695 = vmatprep.subr.bf16.mxu0 %v3991_v15  ;;  %v397_v10 = vrot.slane %v395_v6, 1  ;;  %v390_v18 = vsel %vm346_vm1, %v385_v5, %v389_v1  ;;  %v411_v29 = vshll.u32 %v4240_v21, 16  ;;  %v1144_v34 = vrot.slane %v4246_v27, 1 }
  0x1e   : > { %v415_v39 = vshrl.u32 %v4240_v21, 16  ;;  %v419_v40 = vshll.u32 %v4257_v35, 16  ;;  %v423_v44 = vshrl.u32 %v4257_v35, 16  ;;  %v1141_v49 = vsel %vm1128_vm0, %v1138_v2, %v1140_v8  ;;  %v4290_v2 = vld [vmem:[%s4125_s14 + $0x60] sm:$0xff]  }
  0x1f   : > { %3592 = vmatpush3.bf16.msra.mxu1 %v3990_v14  ;;  %v382_v14 = vsel %vm346_vm1, %v377_v0, %v381_v51  ;;  %v413_v37 = vrot.slane %v411_v29, 1  ;;  %v427_v51 = vshll.u32 %v4265_v43, 16 }
  0x20   : > { %3696 = vmatpush3.bf16.msra.mxu0 %v3991_v15  ;;  %3593 = vmatprep.subr.bf16.mxu1 %v3992_v25  ;;  %v403_v15 = vshll.u32 %v4229_v9, 16  ;;  %v421_v46 = vrot.slane %v419_v40, 1 }
  0x21   : > { %3697 = vmatprep.subr.bf16.mxu0 %v3993_v33  ;;  %v417_v0 = vor.u32 %v415_v39, %v413_v37 }
  0x23   : > { %3594 = vmatpush3.bf16.msra.mxu1 %v3992_v25  ;;  %v405_v25 = vrot.slane %v403_v15, 1  ;;  %v4031_v15 = vld [vmem:[%s5585_s1 + $0xe8] sm:$0xff]  }
  0x24   : > { %3698 = vmatpush3.bf16.msra.mxu0 %v3993_v33  ;;  %3631 = vmatprep.subr.bf16.mxu1 %v3999_v36  ;;  %v393_v33 = vor.u32 %v391_v63, %v389_v1 }
  0x25   : > { %3735 = vmatprep.subr.bf16.mxu0 %v4001_v41  ;;  %v409_v63 = vor.u32 %v407_v22, %v405_v25 }
  0x26   : > { %3596 = vmatmul.mubr.bf16.vlgmr.msra.gmra.mrb[0].mxu1 %v366_v50  ;;  %v398_v45 = vsel %vm346_vm1, %v393_v33, %v397_v10  ;;  %v425_v33 = vor.u32 %v423_v44, %v421_v46  ;;  %v4037_v44 = vld [vmem:[%s5585_s1 + $0xf0] sm:$0xff]  }
  0x27   : > { %3700 = vmatmul.mubr.bf16.vlgmr.msra.gmra.mrb[0].mxu0 %v1133_v56  ;;  %3632 = vmatpush3.bf16.msra.mxu1 %v3999_v36  ;;  %v401_v36 = vor.u32 %v399_v11, %v397_v10  ;;  %v431_v56 = vshrl.u32 %v4265_v43, 16  ;;  %v4030_v10 = vld [vmem:[%s5585_s1 + $0x28] sm:$0xff]   ;;  %v414_v11 = vsel %vm346_vm1, %v409_v63, %v413_v37 }
  0x28   : > { %3736 = vmatpush3.bf16.msra.mxu0 %v4001_v41  ;;  %3599 = vmatprep.mubr.bf16.mxu1 %v374_v58  ;;  %v4262_v41 = vld [vmem:[%s4125_s14 + $0x50] sm:$0xff]   ;;  %v1148_v58 = vrot.slane %v4274_v52, 1 }
  0x29   : > { %3703 = vmatprep.mubr.bf16.mxu0 %v1135_v61  ;;  %3633 = vmatprep.subr.bf16.mxu1 %v4006_v53  ;;  %v1146_v48 = vrot.slane %v4262_v41, 1  ;;  %v406_v50 = vsel %vm346_vm1, %v401_v36, %v405_v25  ;;  %v4286_v61 = vld [vmem:[%s4125_s14 + $0x58] sm:$0xff]   ;;  %v4323_v36 = vld [vmem:[%s4125_s14 + $0x70] sm:$0xff]  }
  0x2a   : > { %3737 = vmatprep.subr.bf16.mxu0 %v4007_v57  ;;  %v435_v1 = vshll.u32 %v4286_v61, 16  ;;  %v439_v5 = vshrl.u32 %v4286_v61, 16 }
  0x2b   : > { %3634 = vmatpush3.bf16.msra.mxu1 %v4006_v53  ;;  %v1143_v53 = vsel %vm1128_vm0, %v1140_v8, %v1142_v26  ;;  %v4298_v8 = vld [vmem:[%s4125_s14 + $0x68] sm:$0xff]   ;;  %v1147_v25 = vsel %vm1128_vm0, %v1144_v34, %v1146_v48 }
  0x2c   : > { %3738 = vmatpush3.bf16.msra.mxu0 %v4007_v57  ;;  %3635 = vmatprep.subr.bf16.mxu1 %v4012_v4  ;;  %v429_v57 = vrot.slane %v427_v51, 1  ;;  %v437_v6 = vrot.slane %v435_v1, 1  ;;  %v1152_v22 = vrot.slane %v4298_v8, 1  ;;  %v4339_v51 = vld [vmem:[%s4125_s14 + $0x78] sm:$0xff]   ;;  %v4351_v1 = vld [vmem:[%s4125_s14 + $0x80] sm:$0xff]  }
  0x2d   : > { %3739 = vmatprep.subr.bf16.mxu0 %v4013_v7 }
  0x2e   : > { %3600 = vmatmul.mubr.bf16.gmra.mrb[4].mxu1 %v382_v14  ;;  %v433_v37 = vor.u32 %v431_v56, %v429_v57  ;;  %v463_v56 = vshrl.u32 %v4323_v36, 16 }
  0x2f   : > { %3704 = vmatmul.mubr.bf16.gmra.mrb[4].mxu0 %v1137_v17  ;;  %3603 = vmatprep.mubr.bf16.mxu1 %v390_v18  ;;  %v1145_v17 = vsel %vm1128_vm0, %v1142_v26, %v1144_v34  ;;  %v422_v18 = vsel %vm346_vm1, %v417_v0, %v421_v46  ;;  %v467_v0 = vshll.u32 %v4339_v51, 16 }
  0x30   : > { %3707 = vmatprep.mubr.bf16.mxu0 %v1139_v23  ;;  %3636 = vmatpush3.bf16.msra.mxu1 %v4012_v4  ;;  %v4293_v4 = vld [vmem:[%s4125_s14 + $0x60] sm:$0xff]   ;;  %v4312_v23 = vld [vmem:[%s4125_s14 + $0x68] sm:$0xff]   ;;  %v438_v63 = vsel %vm346_vm1, %v433_v37, %v437_v6 }
  0x31   : > { %3740 = vmatpush3.bf16.msra.mxu0 %v4013_v7  ;;  %3637 = vmatprep.subr.bf16.mxu1 %v4018_v28  ;;  %v1150_v7 = vrot.slane %v4290_v2, 1  ;;  %v443_v14 = vshll.u32 %v4293_v4, 16  ;;  %v447_v29 = vshrl.u32 %v4293_v4, 16  ;;  %v451_v26 = vshll.u32 %v4312_v23, 16 }
  0x32   : > { %3741 = vmatprep.subr.bf16.mxu0 %v4019_v31  ;;  %v455_v34 = vshrl.u32 %v4312_v23, 16 }
  0x33   : > { %v453_v39 = vrot.slane %v451_v26, 1  ;;  %v4363_v26 = vld [vmem:[%s4125_s14 + $0x88] sm:$0xff]  }
  0x34   : > { %3638 = vmatpush3.bf16.msra.mxu1 %v4018_v28  ;;  %v445_v28 = vrot.slane %v443_v14, 1  ;;  %v471_v14 = vshrl.u32 %v4339_v51, 16 }
  0x35   : > { %3742 = vmatpush3.bf16.msra.mxu0 %v4019_v31  ;;  %3639 = vmatprep.subr.bf16.mxu1 %v4024_v55  ;;  %v4320_v31 = vld [vmem:[%s4125_s14 + $0x70] sm:$0xff]  }
  0x36   : > { %3604 = vmatmul.mubr.bf16.gmra.mrb[8].mxu1 %v398_v45  ;;  %3743 = vmatprep.subr.bf16.mxu0 %v4025_v59  ;;  %v1154_v40 = vrot.slane %v4320_v31, 1  ;;  %v4328_v45 = vld [vmem:[%s4125_s14 + $0x78] sm:$0xff]  }
  0x37   : > { %3708 = vmatmul.mubr.bf16.gmra.mrb[8].mxu0 %v1141_v49  ;;  %3607 = vmatprep.mubr.bf16.mxu1 %v406_v50  ;;  %v4036_v49 = vld [vmem:[%s5585_s1 + $0x30] sm:$0xff]   ;;  %v459_v50 = vshll.u32 %v4323_v36, 16  ;;  %v1156_v46 = vrot.slane %v4328_v45, 1 }
  0x38   : > { %3711 = vmatprep.mubr.bf16.mxu0 %v1143_v53  ;;  %3640 = vmatpush3.bf16.msra.mxu1 %v4024_v55  ;;  %v430_v53 = vsel %vm346_vm1, %v425_v33, %v429_v57  ;;  %v1151_v57 = vsel %vm1128_vm0, %v1148_v58, %v1150_v7 }
  0x39   : > { %3744 = vmatpush3.bf16.msra.mxu0 %v4025_v59  ;;  %3641 = vmatprep.subr.bf16.mxu1 %v4030_v10  ;;  %v461_v55 = vrot.slane %v459_v50, 1  ;;  %v1149_v59 = vsel %vm1128_vm0, %v1146_v48, %v1148_v58  ;;  %v449_v48 = vor.u32 %v447_v29, %v445_v28  ;;  %v1153_v58 = vsel %vm1128_vm0, %v1150_v7, %v1152_v22  ;;  %v4043_v50 = vld [vmem:[%s5585_s1 + $0x38] sm:$0xff]  }
  0x3a   : > { %3745 = vmatprep.subr.bf16.mxu0 %v4031_v15 }
  0x3b   : > { %v454_v7 = vsel %vm346_vm1, %v449_v48, %v453_v39  ;;  %v1468_v48 = vshrl.u32 %v4149_v20, 16 }
  0x3c   : > { %3642 = vmatpush3.bf16.msra.mxu1 %v4030_v10  ;;  %v441_v10 = vor.u32 %v439_v5, %v437_v6  ;;  %v465_v5 = vor.u32 %v463_v56, %v461_v55  ;;  %v4369_v6 = vld [vmem:[%s4125_s14 + $0x88] sm:$0xff]   ;;  %v1157_v56 = vsel %vm1128_vm0, %v1154_v40, %v1156_v46 }
  0x3d   : > { %3746 = vmatpush3.bf16.msra.mxu0 %v4031_v15  ;;  %3643 = vmatprep.subr.bf16.mxu1 %v4036_v49  ;;  %v469_v15 = vrot.slane %v467_v0, 1 }
  0x3e   : > { %3608 = vmatmul.mubr.bf16.gmra.mrb[12].mxu1 %v414_v11  ;;  %3747 = vmatprep.subr.bf16.mxu0 %v4037_v44  ;;  %v4357_v11 = vld [vmem:[%s4125_s14 + $0x80] sm:$0xff]   ;;  %v446_v33 = vsel %vm346_vm1, %v441_v10, %v445_v28  ;;  %v483_v28 = vshll.u32 %v4369_v6, 16 }
  0x3f   : > { %3712 = vmatmul.mubr.bf16.gmra.mrb[12].mxu0 %v1145_v17  ;;  %3611 = vmatprep.mubr.bf16.mxu1 %v422_v18  ;;  %v1158_v17 = vrot.slane %v4351_v1, 1  ;;  %v457_v18 = vor.u32 %v455_v34, %v453_v39  ;;  %v479_v29 = vshrl.u32 %v4357_v11, 16  ;;  %v473_v37 = vor.u32 %v471_v14, %v469_v15 }
  0x40   : > { %3715 = vmatprep.mubr.bf16.mxu0 %v1147_v25  ;;  %3644 = vmatpush3.bf16.msra.mxu1 %v4036_v49  ;;  %v475_v25 = vshll.u32 %v4357_v11, 16  ;;  %v1160_v34 = vrot.slane %v4363_v26, 1  ;;  %v485_v10 = vrot.slane %v483_v28, 1  ;;  %v487_v14 = vshrl.u32 %v4369_v6, 16 }
  0x41   : > { %3748 = vmatpush3.bf16.msra.mxu0 %v4037_v44  ;;  %v4378_v44 = vld [vmem:[%s4125_s14 + $0x90] sm:$0xff]   ;;  %3645 = vmatprep.subr.bf16.mxu1 %v4043_v50 }
  0x42   : > { %v477_v49 = vrot.slane %v475_v25, 1  ;;  %v4391_v0 = vsel %vm1128_vm0, %v1158_v17, %v1160_v34  ;;  %v1162_v39 = vrot.slane %v4378_v44, 1  ;;  %v1159_v25 = vsel %vm1128_vm0, %v1156_v46, %v1158_v17 }
  0x43   : > { %v489_v28 = vor.u32 %v487_v14, %v485_v10  ;;  %v1470_v17 = vrot.slane %v1468_v48, 1 }
  0x44   : > { %3646 = vmatpush3.bf16.msra.mxu1 %v4043_v50 }
  0x46   : > { %3612 = vmatmul.mubr.bf16.gmra.mrb[16].mxu1 %v430_v53  ;;  %v1155_v53 = vsel %vm1128_vm0, %v1152_v22, %v1154_v40  ;;  %v470_v22 = vsel %vm346_vm1, %v465_v5, %v469_v15  ;;  %v4046_v40 = vld [vmem:[%s4125_s14 + $0x90] ss:$0 sps:$4 sm:$0x11]   ;;  %v1471_v15 = vshll.u32 %v4149_v20, 16  ;;  %v1485_v20 = vshrl.u32 %v4162_v30, 16 }
  0x47   : > { %3716 = vmatmul.mubr.bf16.gmra.mrb[16].mxu0 %v1149_v59  ;;  %3615 = vmatprep.mubr.bf16.mxu1 %v438_v63  ;;  %v4045_v59 = vld [vmem:[%s5585_s1 + $0xf8] sm:$0xff]   ;;  %v462_v63 = vsel %vm346_vm1, %v457_v18, %v461_v55  ;;  %v4400_v55 = vsel %vm346_vm1, %v473_v37, %v477_v49  ;;  %v4403_v18 = vsel %vm1128_vm0, %v1160_v34, %v1162_v39  ;;  %v491_v50 = vshll.u32 %v4046_v40, 16 }
  0x48   : > { %3719 = vmatprep.mubr.bf16.mxu0 %v1151_v57  ;;  %v481_v57 = vor.u32 %v479_v29, %v477_v49  ;;  %3749 = vmatprep.subr.bf16.mxu0 %v4045_v59  ;;  %v4047_v29 = vld [vmem:[%s4125_s14 + $0x98] ss:$0 sps:$4 sm:$0x11]   ;;  %v1473_v37 = vrot.slane %v1471_v15, 2  ;;  %v1476_v49 = vshrl.u32 %v4146_v19, 16  ;;  %v1487_v48 = vrot.slane %v1485_v20, 1 }
  0x49   : > { %3750 = vmatpush3.bf16.msra.mxu0 %v4045_v59  ;;  %v1164_v46 = vrot.slane %v4047_v29, 1  ;;  %v493_v34 = vrot.slane %v491_v50, 1  ;;  %v1479_v59 = vshll.u32 %v4146_v19, 16  ;;  %v1497_v19 = vshll.u32 %v4178_v38, 16 }
  0x4a   : > { %v4408_v5 = vsel %vm346_vm1, %v481_v57, %v485_v10  ;;  %v1474_v10 = vor.u32 %v1473_v37, %v1470_v17  ;;  %v1478_v40 = vrot.slane %v1476_v49, 1  ;;  %v1503_v15 = vshrl.u32 %v4189_v47, 16 }
  0x4b   : > { %v4415_v57 = vsel %vm1128_vm0, %v1162_v39, %v1164_v46  ;;  %v1481_v14 = vrot.slane %v1479_v59, 2  ;;  %v1512_v46 = vshrl.u32 %v4209_v60, 16  ;;  %v1515_v17 = vshll.u32 %v4209_v60, 16 }
  0x4c   : > { %v1499_v37 = vrot.slane %v1497_v19, 2  ;;  %v1505_v49 = vrot.slane %v1503_v15, 1  ;;  %v1524_v60 = vshll.u32 %v4218_v3, 16 }
  0x4d   : > { %v1482_v50 = vor.u32 %v1481_v14, %v1478_v40  ;;  %v1514_v20 = vrot.slane %v1512_v46, 1  ;;  %v1551_v46 = vshll.u32 %v4262_v41, 16 }
  0x4e   : > { %3616 = vmatmul.mubr.bf16.gmra.mrb[20].mxu1 %v446_v33  ;;  %v1488_v33 = vshll.u32 %v4162_v30, 16  ;;  %v1506_v30 = vshll.u32 %v4189_v47, 16  ;;  %v1517_v47 = vrot.slane %v1515_v17, 2  ;;  %v1557_v17 = vshrl.u32 %v4274_v52, 16 }
  0x4f   : > { %3720 = vmatmul.mubr.bf16.gmra.mrb[20].mxu0 %v1153_v58  ;;  %3619 = vmatprep.mubr.bf16.mxu1 %v454_v7  ;;  %v1494_v58 = vshrl.u32 %v4178_v38, 16  ;;  %v4419_v7 = vsel %vm346_vm1, %v489_v28, %v493_v34  ;;  %v1521_v34 = vshrl.u32 %v4218_v3, 16  ;;  %v4428_v59 = vsel %vm1466_vm2, %v1474_v10, %v1482_v50 }
  0x50   : > { %3723 = vmatprep.mubr.bf16.mxu0 %v1155_v53  ;;  %v1490_v53 = vrot.slane %v1488_v33, 2  ;;  %v1508_v28 = vrot.slane %v1506_v30, 2  ;;  %v1518_v14 = vor.u32 %v1517_v47, %v1514_v20  ;;  %v1539_v10 = vshrl.u32 %v4246_v27, 16 }
  0x51   : > { %v1496_v29 = vrot.slane %v1494_v58, 1  ;;  %v1523_v58 = vrot.slane %v1521_v34, 1  ;;  %v1553_v20 = vrot.slane %v1551_v46, 2  ;;  %v1605_v46 = vshll.u32 %v4351_v1, 16 }
  0x52   : > { %v1491_v39 = vor.u32 %v1490_v53, %v1487_v48  ;;  %v1509_v40 = vor.u32 %v1508_v28, %v1505_v49  ;;  %v1530_v48 = vshrl.u32 %v4235_v16, 16  ;;  %v1541_v15 = vrot.slane %v1539_v10, 1 }
  0x53   : > { %v1500_v33 = vor.u32 %v1499_v37, %v1496_v29  ;;  %v1560_v37 = vshll.u32 %v4274_v52, 16  ;;  %v1566_v49 = vshrl.u32 %v4290_v2, 16  ;;  %v1587_v10 = vshll.u32 %v4320_v31, 16 }
  0x54   : > { %v4431_v38 = vsel %vm1466_vm2, %v1482_v50, %v1491_v39  ;;  %v4445_v29 = vsel %vm1466_vm2, %v1509_v40, %v1518_v14  ;;  %v1532_v3 = vrot.slane %v1530_v48, 1  ;;  %v1578_v48 = vshll.u32 %v4298_v8, 16 }
  0x55   : > { %v4438_v53 = vsel %vm1466_vm2, %v1491_v39, %v1500_v33  ;;  %v4441_v19 = vsel %vm1466_vm2, %v1500_v33, %v1509_v40  ;;  %v1559_v33 = vrot.slane %v1557_v17, 1  ;;  %v1568_v40 = vrot.slane %v1566_v49, 1  ;;  %v4048_v17 = vld [vmem:[%s4125_s14 + $0x98] ss:$0 sps:$4 sm:$0x33]   ;;  %s3896_s14 = smul.u32 144, %s5721_s13 }
  0x56   : > { %3620 = vmatmul.mubr.bf16.gmra.mrb[24].mxu1 %v462_v63  ;;  %v1533_v63 = vshll.u32 %v4235_v16, 16  ;;  %v1548_v16 = vshrl.u32 %v4262_v41, 16  ;;  %v1562_v41 = vrot.slane %v1560_v37, 2 }
  0x57   : > { %3724 = vmatmul.mubr.bf16.gmra.mrb[24].mxu0 %v1157_v56  ;;  %3623 = vmatprep.mubr.bf16.mxu1 %v470_v22  ;;  %v1526_v56 = vrot.slane %v1524_v60, 2  ;;  %v1542_v22 = vshll.u32 %v4246_v27, 16  ;;  %v1569_v60 = vshll.u32 %v4290_v2, 16  ;;  %s5271_s8 = scalar_lea.vmem %s5586_s2, %s3896_s14 }
  0x58   : > { %3727 = vmatprep.mubr.bf16.mxu0 %v1159_v25  ;;  %v1535_v25 = vrot.slane %v1533_v63, 2  ;;  %v1550_v34 = vrot.slane %v1548_v16, 1  ;;  %v1584_v63 = vshrl.u32 %v4320_v31, 16 }
  0x59   : > { %v1527_v30 = vor.u32 %v1526_v56, %v1523_v58  ;;  %v1544_v50 = vrot.slane %v1542_v22, 2  ;;  %v1593_v22 = vshrl.u32 %v4328_v45, 16 }
  0x5a   : > { %v1536_v39 = vor.u32 %v1535_v25, %v1532_v3  ;;  %v1554_v58 = vor.u32 %v1553_v20, %v1550_v34  ;;  %v1580_v3 = vrot.slane %v1578_v48, 2  ;;  %v1586_v25 = vrot.slane %v1584_v63, 1 }
  0x5b   : > { %v4453_v27 = vsel %vm1466_vm2, %v1518_v14, %v1527_v30  ;;  %v1545_v28 = vor.u32 %v1544_v50, %v1541_v15  ;;  %v1575_v14 = vshrl.u32 %v4298_v8, 16  ;;  %v1589_v15 = vrot.slane %v1587_v10, 2 }
  0x5c   : > { %v4457_v47 = vsel %vm1466_vm2, %v1527_v30, %v1536_v39  ;;  %v1595_v30 = vrot.slane %v1593_v22, 1  ;;  %v1596_v8 = vshll.u32 %v4328_v45, 16  ;;  %v1602_v50 = vshrl.u32 %v4351_v1, 16 }
  0x5d   : > { %v4462_v52 = vsel %vm1466_vm2, %v1536_v39, %v1545_v28  ;;  %v1577_v56 = vrot.slane %v1575_v14, 1  ;;  %v1590_v31 = vor.u32 %v1589_v15, %v1586_v25  ;;  %v1611_v39 = vshrl.u32 %v4363_v26, 16 }
  0x5e   : > { %3624 = vmatmul.mubr.bf16.gmra.mrb[28].mxu1 %v4400_v55  ;;  %v1563_v55 = vor.u32 %v1562_v41, %v1559_v33  ;;  %v1598_v49 = vrot.slane %v1596_v8, 2  ;;  %v1614_v34 = vshll.u32 %v4363_v26, 16  ;;  %v1607_v33 = vrot.slane %v1605_v46, 2 }
  0x5f   : > { %3728 = vmatmul.mubr.bf16.gmra.mrb[28].mxu0 %v4391_v0  ;;  %3627 = vmatprep.mubr.bf16.mxu1 %v4408_v5  ;;  %v1555_v0 = vsel %vm1466_vm2, %v1545_v28, %v1554_v58  ;;  %v1571_v5 = vrot.slane %v1569_v60, 2  ;;  %v1581_v16 = vor.u32 %v1580_v3, %v1577_v56  ;;  %v1604_v28 = vrot.slane %v1602_v50, 1 }
  0x60   : > { %3731 = vmatprep.mubr.bf16.mxu0 %v4403_v18  ;;  %v1564_v2 = vsel %vm1466_vm2, %v1554_v58, %v1563_v55  ;;  %v1613_v41 = vrot.slane %v1611_v39, 1  ;;  %v1599_v1 = vor.u32 %v1598_v49, %v1595_v30  ;;  %v1620_v58 = vshrl.u32 %v4378_v44, 16 }
  0x61   : > { %v1572_v18 = vor.u32 %v1571_v5, %v1568_v40  ;;  %v1591_v45 = vsel %vm1466_vm2, %v1581_v16, %v1590_v31  ;;  %v1616_v40 = vrot.slane %v1614_v34, 2  ;;  %v1623_v60 = vshll.u32 %v4378_v44, 16 }
  0x62   : > { %v1608_v26 = vor.u32 %v1607_v33, %v1604_v28  ;;  %v1632_v14 = vshll.u32 %v4048_v17, 16  ;;  %v1622_v63 = vrot.slane %v1620_v58, 1 }
  0x63   : > { %v1573_v37 = vsel %vm1466_vm2, %v1563_v55, %v1572_v18  ;;  %v1582_v20 = vsel %vm1466_vm2, %v1572_v18, %v1581_v16  ;;  %v1600_v55 = vsel %vm1466_vm2, %v1590_v31, %v1599_v1  ;;  %v1617_v48 = vor.u32 %v1616_v40, %v1613_v41 }
  0x64   : > { %v1625_v10 = vrot.slane %v1623_v60, 2 }
  0x65   : > { %v1618_v56 = vsel %vm1466_vm2, %v1608_v26, %v1617_v48 }
  0x66   : > { %3628 = vmatmul.mubr.bf16.gmra.mrb[32].mxu1 %v4419_v7  ;;  %v1629_v7 = vshrl.u32 %v4048_v17, 16  ;;  %v1626_v22 = vor.u32 %v1625_v10, %v1622_v63 }
  0x67   : > { %3732 = vmatmul.mubr.bf16.gmra.mrb[32].mxu0 %v4415_v57  ;;  %3647 = vmatprep.mubr.bf16.mxu1 %v4131_v12  ;;  %v1609_v57 = vsel %vm1466_vm2, %v1599_v1, %v1608_v26  ;;  %v1634_v12 = vrot.slane %v1632_v14, 2 }
  0x68   : > { %3751 = vmatprep.mubr.bf16.mxu0 %v4428_v59  ;;  %v1631_v5 = vrot.slane %v1629_v7, 1  ;;  %v1627_v44 = vsel %vm1466_vm2, %v1617_v48, %v1626_v22 }
  0x6a   : > { %v1635_v3 = vor.u32 %v1634_v12, %v1631_v5 }
  0x6c   : > { %v1636_v59 = vsel %vm1466_vm2, %v1626_v22, %v1635_v3 }
  0x6e   : > { %3648 = vmatmul.mubr.bf16.vlgmr.msra.gmra.mrb[0].mxu1 %v4134_v13  ;;  %v2096_v13 = vlaneseq }
  0x6f   : > { %3752 = vmatmul.mubr.bf16.vlgmr.msra.gmra.mrb[0].mxu0 %v4431_v38  ;;  %3651 = vmatprep.mubr.bf16.mxu1 %v4153_v24 }
  0x70   : > { %3755 = vmatprep.mubr.bf16.mxu0 %v4438_v53  ;;  %v4517_v24 = vshrl.u32 %v2096_v13, 7 }
  0x72   : > { %v4550_v15 = vadd.s32 40, %v4517_v24  ;;  %v4554_v30 = vadd.s32 80, %v4517_v24  ;;  %v4572_v34 = vadd.s32 64, %v4517_v24  ;;  %v4585_v26 = vadd.s32 88, %v4517_v24 }
  0x73   : > { %v4595_v10 = vadd.s32 72, %v4517_v24 }
  0x74   : > { %v4581_v58 = vmul.u32.u64.low 3817748708, %v4572_v34  ;;  %v4582_v60 = vmul.u32.u64.high 3817748708, %v4572_v34, %v4581_v58 }
  0x76   : > { %3652 = vmatmul.mubr.bf16.gmra.mrb[4].mxu1 %v4166_v32  ;;  %v2099_v32 = vadd.s32 16, %v4517_v24 }
  0x77   : > { %3756 = vmatmul.mubr.bf16.gmra.mrb[4].mxu0 %v4441_v19  ;;  %3655 = vmatprep.mubr.bf16.mxu1 %v4184_v42 }
  0x78   : > { %3759 = vmatprep.mubr.bf16.mxu0 %v4445_v29 }
  0x7e   : > { %3656 = vmatmul.mubr.bf16.gmra.mrb[8].mxu1 %v4199_v54  ;;  %v4520_v42 = vmul.u32.u64.low 3817748708, %v2099_v32  ;;  %v4521_v54 = vmul.u32.u64.high 3817748708, %v2099_v32, %v4520_v42 }
  0x7f   : > { %3760 = vmatmul.mubr.bf16.gmra.mrb[8].mxu0 %v4453_v27  ;;  %3659 = vmatprep.mubr.bf16.mxu1 %v4213_v62  ;;  %v2100_v62 = vadd.s32 24, %v4517_v24 }
  0x80   : > { %3763 = vmatprep.mubr.bf16.mxu0 %v4457_v47 }
  0x86   : > { %3660 = vmatmul.mubr.bf16.gmra.mrb[12].mxu1 %v4229_v9 }
  0x87   : > { %3764 = vmatmul.mubr.bf16.gmra.mrb[12].mxu0 %v4462_v52  ;;  %3663 = vmatprep.mubr.bf16.mxu1 %v4240_v21  ;;  %v4525_v9 = vmul.u32.u64.low 3817748708, %v4517_v24  ;;  %v4526_v21 = vmul.u32.u64.high 3817748708, %v4517_v24, %v4525_v9 }
  0x88   : > { %3767 = vmatprep.mubr.bf16.mxu0 %v1555_v0 }
  0x89   : > { %v2139_v38 = vshrl.u32 %v4526_v21, 4 }
  0x8b   : > { %v2140_v0 = vmul.u32 18, %v2139_v38  ;;  %v4812_v38 = vadd.s32 152, %v4517_v24 }
  0x8d   : > { %v2141_v50 = vsub.s32 %v4517_v24, %v2140_v0 }
  0x8e   : > { %3664 = vmatmul.mubr.bf16.gmra.mrb[16].mxu1 %v4257_v35 }
  0x8f   : > { %3768 = vmatmul.mubr.bf16.gmra.mrb[16].mxu0 %v1564_v2  ;;  %3667 = vmatprep.mubr.bf16.mxu1 %v4265_v43  ;;  %v4528_v35 = vmul.u32.u64.low 3817748708, %v2100_v62  ;;  %v4529_v43 = vmul.u32.u64.high 3817748708, %v2100_v62, %v4528_v35  ;;  %v4547_v2 = vadd.s32 56, %v4517_v24  ;;  %vm2529_vm6 = vcmp.ne.s32.totalorder %v2141_v50, 0 }
  0x90   : > { %3771 = vmatprep.mubr.bf16.mxu0 %v1573_v37  ;;  %v4563_v17 = vmul.u32.u64.low 3817748708, %v4550_v15  ;;  %v4564_v37 = vmul.u32.u64.high 3817748708, %v4550_v15, %v4563_v17  ;;  %vm2565_vm7 = vcmp.lt.s32.totalorder %v2141_v50, 0  ;;  %v2637_v7 = vadd.s32 18, %v2141_v50 }
  0x91   : > { %v2172_v53 = vshrl.u32 %v4529_v43, 4  ;;  %v4558_v16 = vmul.u32.u64.low 3817748708, %v4547_v2  ;;  %v4559_v31 = vmul.u32.u64.high 3817748708, %v4547_v2, %v4558_v16  ;;  %vm4589_vm10 = vmand %vm2565_vm7, %vm2529_vm6  ;;  %v4631_v43 = vadd.s32 96, %v4517_v24 }
  0x92   : > { %v2194_v12 = vshrl.u32 %v4564_v37, 4 }
  0x93   : > { %v2173_v25 = vmul.u32 18, %v2172_v53  ;;  %v2216_v63 = vshrl.u32 %v4559_v31, 4  ;;  %v4690_v31 = vadd.s32 120, %v4517_v24 }
  0x94   : > { %v2195_v35 = vmul.u32 18, %v2194_v12 }
  0x95   : > { %v2174_v46 = vsub.s32 %v2100_v62, %v2173_v25  ;;  %v4625_v62 = vmul.u32.u64.low 3817748708, %v4595_v10  ;;  %v4626_v9 = vmul.u32.u64.high 3817748708, %v4595_v10, %v4625_v62 }
  0x96   : > { %3668 = vmatmul.mubr.bf16.gmra.mrb[20].mxu1 %v4286_v61  ;;  %v2161_v61 = vshrl.u32 %v4521_v54, 4  ;;  %v2217_v54 = vmul.u32 18, %v2216_v63 }
  0x97   : > { %3772 = vmatmul.mubr.bf16.gmra.mrb[20].mxu0 %v1582_v20  ;;  %3671 = vmatprep.mubr.bf16.mxu1 %v4293_v4  ;;  %v2098_v4 = vadd.s32 8, %v4517_v24  ;;  %vm2532_vm8 = vcmp.ne.s32.totalorder %v2174_v46, 0  ;;  %vm2568_vm9 = vcmp.lt.s32.totalorder %v2174_v46, 0  ;;  %v2640_v48 = vadd.s32 18, %v2174_v46 }
  0x98   : > { %3775 = vmatprep.mubr.bf16.mxu0 %v1591_v45  ;;  %v4575_v45 = vmul.u32.u64.low 3817748708, %v4554_v30  ;;  %v4576_v33 = vmul.u32.u64.high 3817748708, %v4554_v30, %v4575_v45  ;;  %vm4602_vm12 = vmand %vm2568_vm9, %vm2532_vm8  ;;  %v2238_v16 = vshrl.u32 %v4626_v9, 4  ;;  %v4779_v9 = vadd.s32 128, %v4517_v24 }
  0x99   : > { %v2676_v42 = vsel %vm4602_vm12, %v2640_v48, %v2174_v46  ;;  %v4708_v45 = vadd.s32 104, %v4517_v24 }
  0x9a   : > { %v2249_v13 = vshrl.u32 %v4576_v33, 4  ;;  %v2239_v33 = vmul.u32 18, %v2238_v16 }
  0x9e   : > { %3672 = vmatmul.mubr.bf16.gmra.mrb[24].mxu1 %v4312_v23  ;;  %v2103_v23 = vadd.s32 48, %v4517_v24 }
  0x9f   : > { %3776 = vmatmul.mubr.bf16.gmra.mrb[24].mxu0 %v1600_v55  ;;  %3675 = vmatprep.mubr.bf16.mxu1 %v4323_v36  ;;  %v2101_v36 = vadd.s32 32, %v4517_v24 }
  0xa0   : > { %3779 = vmatprep.mubr.bf16.mxu0 %v1609_v57  ;;  %v4540_v19 = vmul.u32.u64.low 3817748708, %v2103_v23  ;;  %v4541_v29 = vmul.u32.u64.high 3817748708, %v2103_v23, %v4540_v19 }
  0xa1   : > { %v4543_v27 = vmul.u32.u64.low 3817748708, %v2101_v36  ;;  %v4544_v47 = vmul.u32.u64.high 3817748708, %v2101_v36, %v4543_v27  ;;  %v2196_v19 = vsub.s32 %v4550_v15, %v2195_v35 }
  0xa2   : > { %v2205_v39 = vshrl.u32 %v4541_v29, 4  ;;  %v4659_v29 = vmul.u32.u64.low 3817748708, %v4631_v43  ;;  %v4660_v27 = vmul.u32.u64.high 3817748708, %v4631_v43, %v4659_v29 }
  0xa3   : > { %v2183_v28 = vshrl.u32 %v4544_v47, 4  ;;  %v4057_v47 = vmov 0.0  }
  0xa4   : > { %v2206_v1 = vmul.u32 18, %v2205_v39 }
  0xa5   : > { %v2184_v40 = vmul.u32 18, %v2183_v28 }
  0xa6   : > { %3676 = vmatmul.mubr.bf16.gmra.mrb[28].mxu1 %v4339_v51  ;;  %v2162_v51 = vmul.u32 18, %v2161_v61  ;;  %v2227_v61 = vshrl.u32 %v4582_v60, 4 }
  0xa7   : > { %3780 = vmatmul.mubr.bf16.gmra.mrb[28].mxu0 %v1618_v56  ;;  %3679 = vmatprep.mubr.bf16.mxu1 %v4357_v11  ;;  %v4607_v56 = vsub.s32 %v2103_v23, %v2206_v1  ;;  %v4609_v22 = vsub.s32 %v2101_v36, %v2184_v40 }
  0xa8   : > { %3783 = vmatprep.mubr.bf16.mxu0 %v1627_v44  ;;  %v2163_v52 = vsub.s32 %v2099_v32, %v2162_v51  ;;  %v4612_v3 = vmul.u32.u64.low 3817748708, %v4585_v26  ;;  %v4613_v44 = vmul.u32.u64.high 3817748708, %v4585_v26, %v4612_v3  ;;  %v4620_v32 = vadd.s32 112, %v4517_v24 }
  0xa9   : > { %vm2535_vm15 = vcmp.ne.s32.totalorder %v4607_v56, 0  ;;  %vm2571_vm0 = vcmp.lt.s32.totalorder %v4607_v56, 0  ;;  %vm2533_vm1 = vcmp.ne.s32.totalorder %v4609_v22, 0  ;;  %vm2569_vm2 = vcmp.lt.s32.totalorder %v4609_v22, 0 }
  0xaa   : > { %vm2531_vm3 = vcmp.ne.s32.totalorder %v2163_v52, 0  ;;  %vm2567_vm4 = vcmp.lt.s32.totalorder %v2163_v52, 0  ;;  %v2639_v8 = vadd.s32 18, %v2163_v52  ;;  %vm4652_vm6 = vmand %vm2571_vm0, %vm2535_vm15  ;;  %v2641_v53 = vadd.s32 18, %v4609_v22 }
  0xab   : > { %vm4566_vm5 = vmand %vm2567_vm4, %vm2531_vm3  ;;  %v4639_v23 = vmul.u32.u64.low 3817748708, %v4620_v32  ;;  %v4640_v36 = vmul.u32.u64.high 3817748708, %v4620_v32, %v4639_v23  ;;  %vm2712_vm4 = vcmp.lt.s32.totalorder %v2676_v42, 16  ;;  %v2260_v25 = vshrl.u32 %v4613_v44, 4 }
  0xac   : > { %v2675_v41 = vsel %vm4566_vm5, %v2639_v8, %v2163_v52  ;;  %vm4671_vm7 = vmand %vm2569_vm2, %vm2533_vm1  ;;  %v2240_v3 = vsub.s32 %v4595_v10, %v2239_v33 }
  0xad   : > { %vm4597_vm11 = vcmp.lt.s32.totalorder %v2675_v41, 16  ;;  %v2677_v39 = vsel %vm4671_vm7, %v2641_v53, %v4609_v22  ;;  %v2261_v49 = vmul.u32 18, %v2260_v25 }
  0xae   : > { %3680 = vmatmul.mubr.bf16.gmra.mrb[32].mxu1 %v4369_v6  ;;  %v4535_v11 = vmul.u32.u64.low 3817748708, %v2098_v4  ;;  %v4536_v6 = vmul.u32.u64.high 3817748708, %v2098_v4, %v4535_v11  ;;  %v4665_v52 = vsel %vm4597_vm11, 1.0, %v4057_v47  ;;  %vm2570_vm11 = vcmp.lt.s32.totalorder %v2196_v19, 0 }
  0xaf   : > { %3784 = vmatmul.mubr.bf16.gmra.mrb[32].mxu0 %v1636_v59  ;;  %v2673_v59 = vsel %vm4589_vm10, %v2637_v7, %v2141_v50  ;;  %v2643_v11 = vadd.s32 18, %v4607_v56  ;;  %vm2534_vm10 = vcmp.ne.s32.totalorder %v2196_v19, 0  ;;  %vm4725_vm1 = vcmp.lt.s32.totalorder %v2677_v39, 16 }
  0xb0   : > { %v2150_v18 = vshrl.u32 %v4536_v6, 4  ;;  %vm2709_vm3 = vcmp.lt.s32.totalorder %v2673_v59, 16  ;;  %v4650_v6 = vsub.s32 %v4547_v2, %v2217_v54  ;;  %v2228_v2 = vmul.u32 18, %v2227_v61  ;;  %vm4731_vm2 = vmand %vm2570_vm11, %vm2534_vm10 }
  0xb1   : > { %v4677_v15 = vsel %vm2709_vm3, 1.0, %v4057_v47  ;;  %v2679_v46 = vsel %vm4652_vm6, %v2643_v11, %v4607_v56  ;;  %v4711_v41 = vmul.u32.u64.low 3817748708, %v4690_v31  ;;  %v4712_v1 = vmul.u32.u64.high 3817748708, %v4690_v31, %v4711_v41 }
  0xb2   : > { %v2151_v20 = vmul.u32 18, %v2150_v18  ;;  %v4680_v18 = vsel %vm2712_vm4, 1.0, %v4057_v47  ;;  %vm2536_vm8 = vcmp.ne.s32.totalorder %v4650_v6, 0  ;;  %vm2572_vm9 = vcmp.lt.s32.totalorder %v4650_v6, 0 }
  0xb3   : > { %v2644_v17 = vadd.s32 18, %v4650_v6  ;;  %v4700_v37 = vsub.s32 %v4572_v34, %v2228_v2  ;;  %vm4702_vm12 = vmand %vm2572_vm9, %vm2536_vm8  ;;  %v4715_v34 = vadd.s32 144, %v4517_v24  ;;  %vm4721_vm0 = vcmp.lt.s32.totalorder %v2679_v46, 16 }
  0xb4   : > { %v4587_v14 = vsub.s32 %v2098_v4, %v2151_v20  ;;  %v2250_v4 = vmul.u32 18, %v2249_v13  ;;  %v2293_v20 = vshrl.u32 %v4640_v36, 4  ;;  %v2262_v63 = vsub.s32 %v4585_v26, %v2261_v49 }
  0xb5   : > { %v2680_v55 = vsel %vm4702_vm12, %v2644_v17, %v4650_v6  ;;  %vm2537_vm3 = vcmp.ne.s32.totalorder %v4700_v37, 0  ;;  %v4749_v12 = vmul.u32.u64.low 3817748708, %v4708_v45  ;;  %v4750_v56 = vmul.u32.u64.high 3817748708, %v4708_v45, %v4749_v12 }
  0xb6   : > { %vm2530_vm13 = vcmp.ne.s32.totalorder %v4587_v14, 0  ;;  %vm2566_vm14 = vcmp.lt.s32.totalorder %v4587_v14, 0  ;;  %v2638_v21 = vadd.s32 18, %v4587_v14  ;;  %v2251_v50 = vsub.s32 %v4554_v30, %v2250_v4 }
  0xb7   : > { %vm4644_vm5 = vmand %vm2566_vm14, %vm2530_vm13  ;;  %v2642_v30 = vadd.s32 18, %v2196_v19  ;;  %v2294_v5 = vmul.u32 18, %v2293_v20  ;;  %v4756_v26 = vmul.u32.u64.low 3817748708, %v4715_v34  ;;  %v4757_v44 = vmul.u32.u64.high 3817748708, %v4715_v34, %v4756_v26 }
  0xb8   : > { %v2674_v8 = vsel %vm4644_vm5, %v2638_v21, %v4587_v14  ;;  %vm2539_vm13 = vcmp.ne.s32.totalorder %v2251_v50, 0  ;;  %vm2575_vm14 = vcmp.lt.s32.totalorder %v2251_v50, 0  ;;  %v2271_v14 = vshrl.u32 %v4660_v27, 4 }
  0xb9   : > { %vm4717_vm15 = vcmp.lt.s32.totalorder %v2674_v8, 16  ;;  %v2647_v48 = vadd.s32 18, %v2251_v50  ;;  %vm4743_vm4 = vmand %vm2575_vm14, %vm2539_vm13  ;;  %vm2573_vm5 = vcmp.lt.s32.totalorder %v4700_v37, 0  ;;  %v2678_v22 = vsel %vm4731_vm2, %v2642_v30, %v2196_v19 }
  0xba   : > { %v4762_v59 = vsel %vm4717_vm15, 1.0, %v4057_v47  ;;  %v4767_v13 = vsel %vm4721_vm0, 1.0, %v4057_v47  ;;  %v2645_v42 = vadd.s32 18, %v4700_v37  ;;  %v2272_v54 = vmul.u32 18, %v2271_v14  ;;  %vm4774_vm6 = vmand %vm2573_vm5, %vm2537_vm3 }
  0xbb   : > { %v2683_v10 = vsel %vm4743_vm4, %v2647_v48, %v2251_v50  ;;  %vm2540_vm7 = vcmp.ne.s32.totalorder %v2262_v63, 0  ;;  %vm2576_vm8 = vcmp.lt.s32.totalorder %v2262_v63, 0  ;;  %v4784_v21 = vsel %vm4725_vm1, 1.0, %v4057_v47 }
  0xbc   : > { %vm4786_vm9 = vcmp.lt.s32.totalorder %v2680_v55, 16  ;;  %vm4790_vm10 = vcmp.lt.s32.totalorder %v2678_v22, 16  ;;  %v2295_v4 = vsub.s32 %v4620_v32, %v2294_v5  ;;  %v2648_v23 = vadd.s32 18, %v2262_v63  ;;  %vm4804_vm14 = vmand %vm2576_vm8, %vm2540_vm7 }
  0xbd   : > { %vm2538_vm11 = vcmp.ne.s32.totalorder %v2240_v3, 0  ;;  %vm2574_vm12 = vcmp.lt.s32.totalorder %v2240_v3, 0  ;;  %v2304_v36 = vshrl.u32 %v4712_v1, 4  ;;  %vm4796_vm13 = vcmp.lt.s32.totalorder %v2683_v10, 16 }
  0xbe   : > { %v2681_v11 = vsel %vm4774_vm6, %v2645_v42, %v4700_v37  ;;  %v4809_v32 = vsub.s32 %v4631_v43, %v2272_v54  ;;  %v2646_v53 = vadd.s32 18, %v2240_v3  ;;  %v4819_v27 = vadd.s32 136, %v4517_v24  ;;  %vm4821_vm15 = vmand %vm2574_vm12, %vm2538_vm11 }
  0xbf   : > { %v4815_v19 = vmul.u32.u64.low 3817748708, %v4779_v9  ;;  %v4816_v29 = vmul.u32.u64.high 3817748708, %v4779_v9, %v4815_v19  ;;  %vm2543_vm0 = vcmp.ne.s32.totalorder %v2295_v4, 0  ;;  %vm2579_vm1 = vcmp.lt.s32.totalorder %v2295_v4, 0 }
  0xc0   : > { %v4826_v43 = vadd.s32 176, %v4517_v24  ;;  %v4829_v2 = vadd.s32 160, %v4517_v24  ;;  %v2684_v25 = vsel %vm4804_vm14, %v2648_v23, %v2262_v63  ;;  %v2305_v8 = vmul.u32 18, %v2304_v36  ;;  %vm4842_vm3 = vmand %vm2579_vm1, %vm2543_vm0 }
  0xc1   : > { %v2282_v50 = vshrl.u32 %v4750_v56, 4  ;;  %v2337_v16 = vshrl.u32 %v4757_v44, 4  ;;  %v2651_v46 = vadd.s32 18, %v2295_v4  ;;  %vm2541_vm2 = vcmp.ne.s32.totalorder %v4809_v32, 0 }
  0xc2   : > { %v4837_v39 = vmul.u32.u64.low 3817748708, %v4812_v38  ;;  %v4838_v17 = vmul.u32.u64.high 3817748708, %v4812_v38, %v4837_v39  ;;  %v2682_v30 = vsel %vm4821_vm15, %v2646_v53, %v2240_v3  ;;  %vm2577_vm4 = vcmp.lt.s32.totalorder %v4809_v32, 0 }
  0xc3   : > { %v4848_v49 = vmul.u32.u64.low 3817748708, %v4819_v27  ;;  %v4849_v28 = vmul.u32.u64.high 3817748708, %v4819_v27, %v4848_v49  ;;  %v4852_v20 = vmul.u32.u64.low 3817748708, %v4826_v43  ;;  %v4853_v33 = vmul.u32.u64.high 3817748708, %v4826_v43, %v4852_v20  ;;  %vm4873_vm8 = vmand %vm2577_vm4, %vm2541_vm2 }
  0xc4   : > { %v4856_v41 = vmul.u32.u64.low 3817748708, %v4829_v2  ;;  %v4857_v1 = vmul.u32.u64.high 3817748708, %v4829_v2, %v4856_v41  ;;  %v4862_v40 = vsel %vm4786_vm9, 1.0, %v4057_v47  ;;  %vm2717_vm5 = vcmp.lt.s32.totalorder %v2681_v11, 16 }
  0xc5   : > { %vm2720_vm6 = vcmp.lt.s32.totalorder %v2684_v25, 16  ;;  %v2649_v58 = vadd.s32 18, %v4809_v32  ;;  %vm4865_vm7 = vcmp.lt.s32.totalorder %v2682_v30, 16  ;;  %v2687_v7 = vsel %vm4842_vm3, %v2651_v46, %v2295_v4 }
  0xc6   : > { %v2283_v55 = vmul.u32 18, %v2282_v50  ;;  %v4878_v48 = vadd.s32 184, %v4517_v24  ;;  %v4883_v63 = vsel %vm4790_vm10, 1.0, %v4057_v47  ;;  %v4888_v57 = vsel %vm4796_vm13, 1.0, %v4057_v47 }
  0xc7   : > { %v2338_v5 = vmul.u32 18, %v2337_v16  ;;  %v4891_v12 = vadd.s32 168, %v4517_v24  ;;  %v4894_v56 = vsel %vm2717_vm5, 1.0, %v4057_v47  ;;  %v4897_v22 = vsel %vm2720_vm6, 1.0, %v4057_v47 }
  0xc8   : > { %v4900_v3 = vsub.s32 %v4690_v31, %v2305_v8  ;;  %v2315_v26 = vshrl.u32 %v4816_v29, 4  ;;  %v4906_v44 = vsel %vm4865_vm7, 1.0, %v4057_v47  ;;  %vm4908_vm9 = vcmp.lt.s32.totalorder %v2687_v7, 16 }
  0xc9   : > { %v2685_v54 = vsel %vm4873_vm8, %v2649_v58, %v4809_v32  ;;  %v4916_v10 = vadd.s32 208, %v4517_v24  ;;  %v4919_v31 = vsub.s32 %v4708_v45, %v2283_v55  ;;  %v2348_v62 = vshrl.u32 %v4838_v17, 4 }
  0xca   : > { %v4923_v35 = vmul.u32.u64.low 3817748708, %v4878_v48  ;;  %v4924_v61 = vmul.u32.u64.high 3817748708, %v4878_v48, %v4923_v35  ;;  %v4927_v4 = vsub.s32 %v4715_v34, %v2338_v5  ;;  %v2326_v23 = vshrl.u32 %v4849_v28, 4 }
  0xcb   : > { %v4931_v36 = vmul.u32.u64.low 3817748708, %v4891_v12  ;;  %v4932_v51 = vmul.u32.u64.high 3817748708, %v4891_v12, %v4931_v36  ;;  %vm2544_vm10 = vcmp.ne.s32.totalorder %v4900_v3, 0  ;;  %v2316_v11 = vmul.u32 18, %v2315_v26 }
  0xcc   : > { %v2381_v45 = vshrl.u32 %v4853_v33, 4  ;;  %v2359_v6 = vshrl.u32 %v4857_v1, 4  ;;  %vm2580_vm11 = vcmp.lt.s32.totalorder %v4900_v3, 0  ;;  %v4943_v34 = vadd.s32 192, %v4517_v24 }
  0xcd   : > { %v4939_v32 = vmul.u32.u64.low 3817748708, %v4916_v10  ;;  %v4940_v53 = vmul.u32.u64.high 3817748708, %v4916_v10, %v4939_v32  ;;  %vm2542_vm12 = vcmp.ne.s32.totalorder %v4919_v31, 0  ;;  %vm2578_vm13 = vcmp.lt.s32.totalorder %v4919_v31, 0  ;;  %vm4960_vm0 = vmand %vm2580_vm11, %vm2544_vm10 }
  0xce   : > { %v2349_v19 = vmul.u32 18, %v2348_v62  ;;  %v4948_v29 = vadd.s32 216, %v4517_v24  ;;  %v2652_v0 = vadd.s32 18, %v4900_v3  ;;  %vm2547_vm14 = vcmp.ne.s32.totalorder %v4927_v4, 0  ;;  %vm4967_vm1 = vmand %vm2578_vm13, %vm2542_vm12 }
  0xcf   : > { %vm2583_vm15 = vcmp.lt.s32.totalorder %v4927_v4, 0  ;;  %v2327_v25 = vmul.u32 18, %v2326_v23  ;;  %v4956_v8 = vsel %vm4908_vm9, 1.0, %v4057_v47  ;;  %v2317_v16 = vsub.s32 %v4779_v9, %v2316_v11 }
  0xd0   : > { %v2382_v46 = vmul.u32 18, %v2381_v45  ;;  %v2360_v39 = vmul.u32 18, %v2359_v6  ;;  %v2650_v30 = vadd.s32 18, %v4919_v31  ;;  %v2655_v37 = vadd.s32 18, %v4927_v4  ;;  %vm4977_vm2 = vmand %vm2583_vm15, %vm2547_vm14 }
  0xd1   : > { %v4974_v49 = vmul.u32.u64.low 3817748708, %v4943_v34  ;;  %v4975_v28 = vmul.u32.u64.high 3817748708, %v4943_v34, %v4974_v49  ;;  %v4982_v9 = vsub.s32 %v4812_v38, %v2349_v19  ;;  %v2392_v33 = vshrl.u32 %v4924_v61, 4 }
  0xd2   : > { %v4986_v41 = vmul.u32.u64.low 3817748708, %v4948_v29  ;;  %v4987_v1 = vmul.u32.u64.high 3817748708, %v4948_v29, %v4986_v41  ;;  %vm4989_vm3 = vcmp.lt.s32.totalorder %v2685_v54, 16  ;;  %v2688_v60 = vsel %vm4960_vm0, %v2652_v0, %v4900_v3 }
  0xd3   : > { %v4997_v7 = vsub.s32 %v4819_v27, %v2327_v25  ;;  %v2370_v38 = vshrl.u32 %v4932_v51, 4  ;;  %vm2545_vm4 = vcmp.ne.s32.totalorder %v2317_v16, 0  ;;  %vm2581_vm5 = vcmp.lt.s32.totalorder %v2317_v16, 0 }
  0xd4   : > { %v5001_v14 = vsub.s32 %v4826_v43, %v2382_v46  ;;  %v5004_v55 = vsub.s32 %v4829_v2, %v2360_v39  ;;  %v2686_v5 = vsel %vm4967_vm1, %v2650_v30, %v4919_v31  ;;  %v2691_v3 = vsel %vm4977_vm2, %v2655_v37, %v4927_v4  ;;  %vm5018_vm8 = vmand %vm2581_vm5, %vm2545_vm4 }
  0xd5   : > { %v2425_v27 = vshrl.u32 %v4940_v53, 4  ;;  %v5014_v26 = vadd.s32 200, %v4517_v24  ;;  %v2653_v42 = vadd.s32 18, %v2317_v16  ;;  %vm2548_vm6 = vcmp.ne.s32.totalorder %v4982_v9, 0 }
  0xd6   : > { %vm2584_vm7 = vcmp.lt.s32.totalorder %v4982_v9, 0  ;;  %v2393_v43 = vmul.u32 18, %v2392_v33  ;;  %v2656_v54 = vadd.s32 18, %v4982_v9  ;;  %vm2546_vm9 = vcmp.ne.s32.totalorder %v4997_v7, 0 }
  0xd7   : > { %vm2582_vm10 = vcmp.lt.s32.totalorder %v4997_v7, 0  ;;  %v2371_v31 = vmul.u32 18, %v2370_v38  ;;  %vm2551_vm11 = vcmp.ne.s32.totalorder %v5001_v14, 0  ;;  %vm2587_vm12 = vcmp.lt.s32.totalorder %v5001_v14, 0  ;;  %vm5029_vm15 = vmand %vm2584_vm7, %vm2548_vm6 }
  0xd8   : > { %vm2549_vm13 = vcmp.ne.s32.totalorder %v5004_v55, 0  ;;  %vm2585_vm14 = vcmp.lt.s32.totalorder %v5004_v55, 0  ;;  %v2426_v35 = vmul.u32 18, %v2425_v27  ;;  %v2403_v61 = vshrl.u32 %v4975_v28, 4  ;;  %vm5040_vm0 = vmand %vm2582_vm10, %vm2546_vm9 }
  0xd9   : > { %v5035_v4 = vmul.u32.u64.low 3817748708, %v5014_v26  ;;  %v5036_v23 = vmul.u32.u64.high 3817748708, %v5014_v26, %v5035_v4  ;;  %v2689_v36 = vsel %vm5018_vm8, %v2653_v42, %v2317_v16  ;;  %v2654_v11 = vadd.s32 18, %v4997_v7  ;;  %vm5052_vm1 = vmand %vm2587_vm12, %vm2551_vm11 }
  0xda   : > { %v2394_v45 = vsub.s32 %v4878_v48, %v2393_v43  ;;  %v2436_v6 = vshrl.u32 %v4987_v1, 4  ;;  %v5050_v32 = vsel %vm4989_vm3, 1.0, %v4057_v47  ;;  %v2659_v19 = vadd.s32 18, %v5001_v14  ;;  %vm5075_vm5 = vmand %vm2585_vm14, %vm2549_vm13 }
  0xdb   : > { %v2657_v0 = vadd.s32 18, %v5004_v55  ;;  %v2372_v25 = vsub.s32 %v4891_v12, %v2371_v31  ;;  %vm5059_vm2 = vcmp.lt.s32.totalorder %v2688_v60, 16  ;;  %vm5063_vm4 = vcmp.lt.s32.totalorder %v2686_v5, 16 }
  0xdc   : > { %vm5067_vm3 = vcmp.lt.s32.totalorder %v2691_v3, 16  ;;  %v5080_v12 = vadd.s32 240, %v4517_v24  ;;  %vm5082_vm6 = vcmp.lt.s32.totalorder %v2689_v36, 16  ;;  %v2692_v17 = vsel %vm5029_vm15, %v2656_v54, %v4982_v9 }
  0xdd   : > { %v2427_v30 = vsub.s32 %v4916_v10, %v2426_v35  ;;  %v2404_v37 = vmul.u32 18, %v2403_v61  ;;  %v2690_v49 = vsel %vm5040_vm0, %v2654_v11, %v4997_v7  ;;  %vm2552_vm7 = vcmp.ne.s32.totalorder %v2394_v45, 0 }
  0xde   : > { %vm2588_vm8 = vcmp.lt.s32.totalorder %v2394_v45, 0  ;;  %v2437_v28 = vmul.u32 18, %v2436_v6  ;;  %v2695_v20 = vsel %vm5052_vm1, %v2659_v19, %v5001_v14  ;;  %v2693_v33 = vsel %vm5075_vm5, %v2657_v0, %v5004_v55 }
  0xdf   : > { %vm2550_vm9 = vcmp.ne.s32.totalorder %v2372_v25, 0  ;;  %vm2586_vm10 = vcmp.lt.s32.totalorder %v2372_v25, 0  ;;  %v2660_v9 = vadd.s32 18, %v2394_v45  ;;  %v2658_v10 = vadd.s32 18, %v2372_v25  ;;  %vm5103_vm11 = vmand %vm2588_vm8, %vm2552_vm7 }
  0xe0   : > { %v5100_v41 = vmul.u32.u64.low 3817748708, %v5080_v12  ;;  %v5101_v1 = vmul.u32.u64.high 3817748708, %v5080_v12, %v5100_v41  ;;  %vm2555_vm12 = vcmp.ne.s32.totalorder %v2427_v30, 0  ;;  %vm2591_vm13 = vcmp.lt.s32.totalorder %v2427_v30, 0  ;;  %vm5121_vm14 = vmand %vm2586_vm10, %vm2550_vm9 }
  0xe1   : > { %v5108_v60 = vsub.s32 %v4943_v34, %v2404_v37  ;;  %v2414_v7 = vshrl.u32 %v5036_v23, 4  ;;  %v5114_v38 = vsel %vm5059_vm2, 1.0, %v4057_v47  ;;  %v5119_v14 = vsel %vm5063_vm4, 1.0, %v4057_v47  ;;  %vm5161_vm4 = vmand %vm2591_vm13, %vm2555_vm12 }
  0xe2   : > { %v5126_v5 = vsub.s32 %v4948_v29, %v2437_v28  ;;  %v5129_v34 = vadd.s32 224, %v4517_v24  ;;  %v5134_v3 = vsel %vm5067_vm3, 1.0, %v4057_v47  ;;  %v5139_v27 = vsel %vm5082_vm6, 1.0, %v4057_v47 }
  0xe3   : > { %vm5141_vm15 = vcmp.lt.s32.totalorder %v2692_v17, 16  ;;  %v2663_v43 = vadd.s32 18, %v2427_v30  ;;  %vm5145_vm0 = vcmp.lt.s32.totalorder %v2690_v49, 16  ;;  %vm5149_vm1 = vcmp.lt.s32.totalorder %v2695_v20, 16 }
  0xe4   : > { %vm5153_vm2 = vcmp.lt.s32.totalorder %v2693_v33, 16  ;;  %v2696_v31 = vsel %vm5103_vm11, %v2660_v9, %v2394_v45  ;;  %v2694_v35 = vsel %vm5121_vm14, %v2658_v10, %v2372_v25  ;;  %vm2553_vm3 = vcmp.ne.s32.totalorder %v5108_v60, 0 }
  0xe5   : > { %vm2589_vm5 = vcmp.lt.s32.totalorder %v5108_v60, 0  ;;  %v2415_v61 = vmul.u32 18, %v2414_v7  ;;  %vm2556_vm6 = vcmp.ne.s32.totalorder %v5126_v5, 0  ;;  %vm2592_vm7 = vcmp.lt.s32.totalorder %v5126_v5, 0 }
  0xe6   : > { %v5172_v4 = vmul.u32.u64.low 3817748708, %v5129_v34  ;;  %v5173_v23 = vmul.u32.u64.high 3817748708, %v5129_v34, %v5172_v4  ;;  %vm2732_vm8 = vcmp.lt.s32.totalorder %v2696_v31, 16  ;;  %v2699_v36 = vsel %vm5161_vm4, %v2663_v43, %v2427_v30  ;;  %vm5190_vm10 = vmand %vm2589_vm5, %vm2553_vm3 }
  0xe7   : > { %v2661_v51 = vadd.s32 18, %v5108_v60  ;;  %v5179_v11 = vadd.s32 248, %v4517_v24  ;;  %v5184_v45 = vsel %vm5141_vm15, 1.0, %v4057_v47  ;;  %vm5186_vm9 = vcmp.lt.s32.totalorder %v2694_v35, 16  ;;  %vm5213_vm11 = vmand %vm2592_vm7, %vm2556_vm6 }
  0xe8   : > { %v2664_v19 = vadd.s32 18, %v5126_v5  ;;  %v2469_v0 = vshrl.u32 %v5101_v1, 4  ;;  %v5199_v25 = vsel %vm5145_vm0, 1.0, %v4057_v47  ;;  %v5204_v50 = vsel %vm5149_vm1, 1.0, %v4057_v47 }
  0xe9   : > { %v5209_v48 = vsel %vm5153_vm2, 1.0, %v4057_v47  ;;  %v5218_v46 = vsub.s32 %v5014_v26, %v2415_v61  ;;  %v5221_v17 = vsel %vm2732_vm8, 1.0, %v4057_v47  ;;  %vm5223_vm12 = vcmp.lt.s32.totalorder %v2699_v36, 16 }
  0xea   : > { %v5228_v37 = vadd.s32 232, %v4517_v24  ;;  %v5231_v49 = vadd.s32 272, %v4517_v24  ;;  %v5237_v26 = vsel %vm5186_vm9, 1.0, %v4057_v47  ;;  %v2697_v33 = vsel %vm5190_vm10, %v2661_v51, %v5108_v60 }
  0xeb   : > { %v5243_v9 = vmul.u32.u64.low 3817748708, %v5179_v11  ;;  %v5244_v10 = vmul.u32.u64.high 3817748708, %v5179_v11, %v5243_v9  ;;  %v2700_v7 = vsel %vm5213_vm11, %v2664_v19, %v5126_v5  ;;  %v2470_v55 = vmul.u32 18, %v2469_v0 }
  0xec   : > { %v5250_v42 = vadd.s32 256, %v4517_v24  ;;  %v5255_v60 = vsel %vm5223_vm12, 1.0, %v4057_v47  ;;  %vm2554_vm13 = vcmp.ne.s32.totalorder %v5218_v46, 0  ;;  %vm2590_vm14 = vcmp.lt.s32.totalorder %v5218_v46, 0 }
  0xed   : > { %vm5259_vm15 = vcmp.lt.s32.totalorder %v2697_v33, 16  ;;  %v2447_v62 = vshrl.u32 %v5173_v23, 4  ;;  %v5265_v35 = vadd.s32 280, %v4517_v24  ;;  %vm2736_vm0 = vcmp.lt.s32.totalorder %v2700_v7, 16  ;;  %vm5274_vm1 = vmand %vm2590_vm14, %vm2554_vm13 }
  0xee   : > { %v2662_v36 = vadd.s32 18, %v5218_v46  ;;  %v5279_v23 = vsub.s32 %v5080_v12, %v2470_v55  ;;  %v5295_v12 = vsel %vm2736_vm0, 1.0, %v4057_v47  ;;  %v5298_v33 = vadd.s32 264, %v4517_v24 }
  0xef   : > { %v2480_v24 = vshrl.u32 %v5244_v10, 4 }
  0xf0   : > { %v2698_v7 = vsel %vm5274_vm1, %v2662_v36, %v5218_v46  ;;  %vm2559_vm2 = vcmp.ne.s32.totalorder %v5279_v23, 0  ;;  %vm2595_vm4 = vcmp.lt.s32.totalorder %v5279_v23, 0  ;;  %v2667_v36 = vadd.s32 18, %v5279_v23 }
  0xf1   : > { %vm5307_vm3 = vcmp.lt.s32.totalorder %v2698_v7, 16  ;;  %vm5317_vm5 = vmand %vm2595_vm4, %vm2559_vm2 }
 0x141   : > { %v3649_v39 = vpop.f32.mrb[0].mxu1 }
 0x142   : > { %v3753_v28 = vpop.f32.mrb[0].mxu0  ;;  %v838_v20 = vpop.f32.mrb[1].mxu1 }
 0x143   : > { %v3787_v41 = vadd.f32 %v3753_v28, %v3649_v39  ;;  %v1737_v1 = vpop.f32.mrb[1].mxu0  ;;  %v3650_v58 = vpop.f32.mrb[2].mxu1  ;;  %v5290_v39 = vsel %vm5259_vm15, 1.0, %v4057_v47 }
 0x144   : > { %v3788_v43 = vadd.f32 %v1737_v1, %v838_v20  ;;  %v3754_v29 = vpop.f32.mrb[2].mxu0  ;;  %v841_v2 = vpop.f32.mrb[3].mxu1  ;;  %v2448_v20 = vmul.u32 18, %v2447_v62 }
 0x145   : > { %v3789_v54 = vadd.f32 %v3754_v29, %v3650_v58  ;;  %v1740_v31 = vpop.f32.mrb[3].mxu0  ;;  %v2891_v19 = vmul.f32 %v3787_v41, %v4665_v52 }
 0x146   : > { %v2889_v61 = vmul.f32 %v3788_v43, %v4677_v15  ;;  %v3790_v4 = vadd.f32 %v1740_v31, %v841_v2  ;;  %v5282_v15 = vmul.u32.u64.low 3817748708, %v5228_v37  ;;  %v5283_v53 = vmul.u32.u64.high 3817748708, %v5228_v37, %v5282_v15 }
 0x147   : > { %v3376_v51 = vpack.c.bf16 %v3789_v54, %v3787_v41  ;;  %v2892_v30 = vmul.f32 %v3789_v54, %v4680_v18  ;;  %v2969_v2 = vmul.f32 %v3787_v41, %v2891_v19 }
 0x148   : > { %v3371_v0 = vpack.c.bf16 %v3790_v4, %v3788_v43  ;;  %v2890_v16 = vmul.f32 %v3790_v4, %v4762_v59  ;;  %v2967_v52 = vmul.f32 %v3788_v43, %v2889_v61 }
 0x149   : > { %3458 = vst [vmem:[%s5271_s8 + $0x8] sm:$0xff] %v3376_v51   ;;  %v3653_v28 = vpop.f32.mrb[4].mxu1 }
 0x14a   : > { %3372 = vst [vmem:[%s5271_s8] sm:$0xff] %v3371_v0   ;;  %v2925_v9 = vadd.f32 %v2890_v16, %v2889_v61  ;;  %v2968_v59 = vmul.f32 %v3790_v4, %v2890_v16  ;;  %v3757_v1 = vpop.f32.mrb[4].mxu0  ;;  %v854_v58 = vpop.f32.mrb[5].mxu1  ;;  %v2970_v4 = vmul.f32 %v3789_v54, %v2892_v30  ;;  %v5322_v16 = vsub.s32 %v5129_v34, %v2448_v20 }
 0x14b   : > { %v3791_v55 = vadd.f32 %v3757_v1, %v3653_v28  ;;  %v1753_v18 = vpop.f32.mrb[5].mxu0  ;;  %v3654_v29 = vpop.f32.mrb[6].mxu1  ;;  %v2703_v34 = vsel %vm5317_vm5, %v2667_v36, %v5279_v23 }
 0x14c   : > { %v2926_v43 = vadd.f32 %v2925_v9, %v2891_v19  ;;  %v3003_v31 = vadd.f32 %v2968_v59, %v2967_v52  ;;  %v3792_v5 = vadd.f32 %v1753_v18, %v854_v58  ;;  %v3758_v62 = vpop.f32.mrb[6].mxu0  ;;  %v857_v61 = vpop.f32.mrb[7].mxu1  ;;  %v5334_v18 = vsel %vm5307_vm3, 1.0, %v4057_v47 }
 0x14d   : > { %v3793_v51 = vadd.f32 %v3758_v62, %v3654_v29  ;;  %v1756_v15 = vpop.f32.mrb[7].mxu0  ;;  %v5325_v28 = vmul.u32.u64.low 3817748708, %v5231_v49  ;;  %v5326_v52 = vmul.u32.u64.high 3817748708, %v5231_v49, %v5325_v28  ;;  %v2895_v1 = vmul.f32 %v3791_v55, %v4767_v13 }
 0x14e   : > { %v3004_v6 = vadd.f32 %v3003_v31, %v2969_v2  ;;  %v2893_v0 = vmul.f32 %v3792_v5, %v4784_v21  ;;  %v2927_v10 = vadd.f32 %v2926_v43, %v2892_v30  ;;  %v3794_v41 = vadd.f32 %v1756_v15, %v857_v61 }
 0x14f   : > { %v3386_v19 = vpack.c.bf16 %v3793_v51, %v3791_v55  ;;  %v2481_v43 = vmul.u32 18, %v2480_v24  ;;  %v5341_v13 = vmul.u32.u64.low 3817748708, %v5250_v42  ;;  %v5342_v31 = vmul.u32.u64.high 3817748708, %v5250_v42, %v5341_v13 }
 0x150   : > { %v2928_v21 = vadd.f32 %v2927_v10, %v2893_v0  ;;  %v2971_v30 = vmul.f32 %v3792_v5, %v2893_v0  ;;  %v3005_v9 = vadd.f32 %v3004_v6, %v2970_v4  ;;  %v3381_v59 = vpack.c.bf16 %v3794_v41, %v3792_v5 }
 0x151   : > { %3460 = vst [vmem:[%s5271_s8 + $0x18] sm:$0xff] %v3386_v19   ;;  %v2894_v58 = vmul.f32 %v3794_v41, %v4883_v63  ;;  %v3657_v7 = vpop.f32.mrb[8].mxu1  ;;  %v2896_v63 = vmul.f32 %v3793_v51, %v4862_v40  ;;  %vm5346_vm6 = vcmp.lt.s32.totalorder %v2703_v34, 16  ;;  %vm2557_vm7 = vcmp.ne.s32.totalorder %v5322_v16, 0 }
 0x152   : > { %v3006_v20 = vadd.f32 %v3005_v9, %v2971_v30  ;;  %3459 = vst [vmem:[%s5271_s8 + $0x10] sm:$0xff] %v3381_v59   ;;  %v3761_v29 = vpop.f32.mrb[8].mxu0  ;;  %v870_v2 = vpop.f32.mrb[9].mxu1  ;;  %v2458_v24 = vshrl.u32 %v5283_v53, 4  ;;  %v2973_v0 = vmul.f32 %v3791_v55, %v2895_v1  ;;  %vm2593_vm8 = vcmp.lt.s32.totalorder %v5322_v16, 0 }
 0x153   : > { %v2929_v5 = vadd.f32 %v2928_v21, %v2894_v58  ;;  %v2972_v62 = vmul.f32 %v3794_v41, %v2894_v58  ;;  %v3795_v61 = vadd.f32 %v3761_v29, %v3657_v7  ;;  %v1769_v4 = vpop.f32.mrb[9].mxu0  ;;  %v3658_v15 = vpop.f32.mrb[10].mxu1  ;;  %v5355_v21 = vsub.s32 %v5179_v11, %v2481_v43  ;;  %vm5370_vm9 = vmand %vm2593_vm8, %vm2557_vm7 }
 0x154   : > { %v3796_v46 = vadd.f32 %v1769_v4, %v870_v2  ;;  %v3762_v6 = vpop.f32.mrb[10].mxu0  ;;  %v873_v23 = vpop.f32.mrb[11].mxu1  ;;  %v2974_v30 = vmul.f32 %v3793_v51, %v2896_v63  ;;  %v2665_v7 = vadd.s32 18, %v5322_v16  ;;  %v5364_v11 = vsel %vm5346_vm6, 1.0, %v4057_v47 }
 0x155   : > { %v2930_v10 = vadd.f32 %v2929_v5, %v2895_v1  ;;  %v3007_v54 = vadd.f32 %v3006_v20, %v2972_v62  ;;  %v3797_v40 = vadd.f32 %v3762_v6, %v3658_v15  ;;  %v1772_v19 = vpop.f32.mrb[11].mxu0  ;;  %v2899_v34 = vmul.f32 %v3795_v61, %v4888_v57 }
 0x156   : > { %v2897_v41 = vmul.f32 %v3796_v46, %v4894_v56  ;;  %v3798_v28 = vadd.f32 %v1772_v19, %v873_v23  ;;  %vm2560_vm10 = vcmp.ne.s32.totalorder %v5355_v21, 0  ;;  %vm2596_vm11 = vcmp.lt.s32.totalorder %v5355_v21, 0 }
 0x157   : > { %v3008_v9 = vadd.f32 %v3007_v54, %v2973_v0  ;;  %v2931_v59 = vadd.f32 %v2930_v10, %v2896_v63  ;;  %v3396_v58 = vpack.c.bf16 %v3797_v40, %v3795_v61  ;;  %v2459_v43 = vmul.u32 18, %v2458_v24  ;;  %vm5388_vm12 = vmand %vm2596_vm11, %vm2560_vm10 }
 0x158   : > { %v2975_v53 = vmul.f32 %v3796_v46, %v2897_v41  ;;  %v3391_v55 = vpack.c.bf16 %v3798_v28, %v3796_v46  ;;  %v2898_v1 = vmul.f32 %v3798_v28, %v4906_v44  ;;  %v2900_v63 = vmul.f32 %v3797_v40, %v4897_v22 }
 0x159   : > { %v2932_v56 = vadd.f32 %v2931_v59, %v2897_v41  ;;  %v3009_v20 = vadd.f32 %v3008_v9, %v2974_v30  ;;  %3462 = vst [vmem:[%s5271_s8 + $0x28] sm:$0xff] %v3396_v58   ;;  %v3661_v29 = vpop.f32.mrb[12].mxu1  ;;  %v2701_v36 = vsel %vm5370_vm9, %v2665_v7, %v5322_v16  ;;  %v2668_v0 = vadd.s32 18, %v5355_v21 }
 0x15a   : > { %3461 = vst [vmem:[%s5271_s8 + $0x20] sm:$0xff] %v3391_v55   ;;  %v2976_v44 = vmul.f32 %v3798_v28, %v2898_v1  ;;  %v3765_v57 = vpop.f32.mrb[12].mxu0  ;;  %v886_v2 = vpop.f32.mrb[13].mxu1  ;;  %v2513_v10 = vshrl.u32 %v5326_v52, 4  ;;  %v2977_v54 = vmul.f32 %v3795_v61, %v2899_v34  ;;  %v2978_v61 = vmul.f32 %v3797_v40, %v2900_v63 }
 0x15b   : > { %v3010_v13 = vadd.f32 %v3009_v20, %v2975_v53  ;;  %v2933_v5 = vadd.f32 %v2932_v56, %v2898_v1  ;;  %v3799_v62 = vadd.f32 %v3765_v57, %v3661_v29  ;;  %v1785_v4 = vpop.f32.mrb[13].mxu0  ;;  %v3662_v15 = vpop.f32.mrb[14].mxu1  ;;  %vm5397_vm13 = vcmp.lt.s32.totalorder %v2701_v36, 16 }
 0x15c   : > { %v3800_v46 = vadd.f32 %v1785_v4, %v886_v2  ;;  %v3766_v6 = vpop.f32.mrb[14].mxu0  ;;  %v889_v23 = vpop.f32.mrb[15].mxu1  ;;  %v5393_v16 = vmul.u32.u64.low 3817748708, %v5265_v35  ;;  %v5394_v52 = vmul.u32.u64.high 3817748708, %v5265_v35, %v5393_v16  ;;  %v2704_v40 = vsel %vm5388_vm12, %v2668_v0, %v5355_v21 }
 0x15d   : > { %v2934_v24 = vadd.f32 %v2933_v5, %v2899_v34  ;;  %v3011_v19 = vadd.f32 %v3010_v13, %v2976_v44  ;;  %v3801_v41 = vadd.f32 %v3766_v6, %v3662_v15  ;;  %v1788_v22 = vpop.f32.mrb[15].mxu0  ;;  %v2903_v34 = vmul.f32 %v3799_v62, %v4956_v8 }
 0x15e   : > { %v2901_v28 = vmul.f32 %v3800_v46, %v5050_v32  ;;  %v3802_v30 = vadd.f32 %v1788_v22, %v889_v23  ;;  %v5411_v2 = vmul.u32.u64.low 3817748708, %v5298_v33  ;;  %v5412_v13 = vmul.u32.u64.high 3817748708, %v5298_v33, %v5411_v2 }
 0x15f   : > { %v3012_v59 = vadd.f32 %v3011_v19, %v2977_v54  ;;  %v2935_v58 = vadd.f32 %v2934_v24, %v2900_v63  ;;  %v3406_v53 = vpack.c.bf16 %v3801_v41, %v3799_v62  ;;  %v2904_v63 = vmul.f32 %v3801_v41, %v5114_v38 }
 0x160   : > { %v2979_v55 = vmul.f32 %v3800_v46, %v2901_v28  ;;  %v3401_v32 = vpack.c.bf16 %v3802_v30, %v3800_v46  ;;  %v2902_v1 = vmul.f32 %v3802_v30, %v5119_v14  ;;  %v5408_v14 = vsub.s32 %v5228_v37, %v2459_v43 }
 0x161   : > { %v2936_v56 = vadd.f32 %v2935_v58, %v2901_v28  ;;  %v3013_v20 = vadd.f32 %v3012_v59, %v2978_v61  ;;  %3464 = vst [vmem:[%s5271_s8 + $0x38] sm:$0xff] %v3406_v53   ;;  %v3665_v29 = vpop.f32.mrb[16].mxu1  ;;  %vm5415_vm14 = vcmp.lt.s32.totalorder %v2704_v40, 16  ;;  %v2514_v37 = vmul.u32 18, %v2513_v10 }
 0x162   : > { %3463 = vst [vmem:[%s5271_s8 + $0x30] sm:$0xff] %v3401_v32   ;;  %v2980_v51 = vmul.f32 %v3802_v30, %v2902_v1  ;;  %v3769_v44 = vpop.f32.mrb[16].mxu0  ;;  %v902_v57 = vpop.f32.mrb[17].mxu1  ;;  %v2491_v43 = vshrl.u32 %v5342_v31, 4  ;;  %v2981_v0 = vmul.f32 %v3799_v62, %v2903_v34  ;;  %vm2558_vm15 = vcmp.ne.s32.totalorder %v5408_v14, 0 }
 0x163   : > { %v3014_v8 = vadd.f32 %v3013_v20, %v2979_v55  ;;  %v2937_v5 = vadd.f32 %v2936_v56, %v2902_v1  ;;  %v3803_v4 = vadd.f32 %v3769_v44, %v3665_v29  ;;  %v1801_v15 = vpop.f32.mrb[17].mxu0  ;;  %v3666_v46 = vpop.f32.mrb[18].mxu1  ;;  %vm2594_vm0 = vcmp.lt.s32.totalorder %v5408_v14, 0 }
 0x164   : > { %v3804_v6 = vadd.f32 %v1801_v15, %v902_v57  ;;  %v3770_v21 = vpop.f32.mrb[18].mxu0  ;;  %v905_v23 = vpop.f32.mrb[19].mxu1  ;;  %v2982_v30 = vmul.f32 %v3801_v41, %v2904_v63  ;;  %v2666_v59 = vadd.s32 18, %v5408_v14  ;;  %v5430_v32 = vsel %vm5397_vm13, 1.0, %v4057_v47  ;;  %vm5436_vm1 = vmand %vm2594_vm0, %vm2558_vm15 }
 0x165   : > { %v2938_v54 = vadd.f32 %v2937_v5, %v2903_v34  ;;  %v3015_v24 = vadd.f32 %v3014_v8, %v2980_v51  ;;  %v3805_v19 = vadd.f32 %v3770_v21, %v3666_v46  ;;  %v1804_v22 = vpop.f32.mrb[19].mxu0  ;;  %v2907_v58 = vmul.f32 %v3803_v4, %v5134_v3 }
 0x166   : > { %v2905_v38 = vmul.f32 %v3804_v6, %v5139_v27  ;;  %v3806_v28 = vadd.f32 %v1804_v22, %v905_v23  ;;  %v5444_v34 = vsel %vm5415_vm14, 1.0, %v4057_v47  ;;  %v2492_v7 = vmul.u32 18, %v2491_v43 }
 0x167   : > { %v3016_v9 = vadd.f32 %v3015_v24, %v2981_v0  ;;  %v2939_v16 = vadd.f32 %v2938_v54, %v2904_v63  ;;  %v3416_v10 = vpack.c.bf16 %v3805_v19, %v3803_v4  ;;  %v2502_v56 = vshrl.u32 %v5412_v13, 4 }
 0x168   : > { %v2983_v61 = vmul.f32 %v3804_v6, %v2905_v38  ;;  %v3411_v31 = vpack.c.bf16 %v3806_v28, %v3804_v6  ;;  %v2906_v62 = vmul.f32 %v3806_v28, %v5199_v25  ;;  %v2908_v29 = vmul.f32 %v3805_v19, %v5184_v45 }
 0x169   : > { %v2940_v53 = vadd.f32 %v2939_v16, %v2905_v38  ;;  %v3017_v27 = vadd.f32 %v3016_v9, %v2982_v30  ;;  %3466 = vst [vmem:[%s5271_s8 + $0x48] sm:$0xff] %v3416_v10   ;;  %v3669_v55 = vpop.f32.mrb[20].mxu1  ;;  %v2702_v5 = vsel %vm5436_vm1, %v2666_v59, %v5408_v14  ;;  %v5452_v15 = vsub.s32 %v5231_v49, %v2514_v37 }
 0x16a   : > { %3465 = vst [vmem:[%s5271_s8 + $0x40] sm:$0xff] %v3411_v31   ;;  %v2984_v25 = vmul.f32 %v3806_v28, %v2906_v62  ;;  %v3773_v3 = vpop.f32.mrb[20].mxu0  ;;  %v918_v1 = vpop.f32.mrb[21].mxu1  ;;  %v2524_v46 = vshrl.u32 %v5394_v52, 4  ;;  %v2985_v13 = vmul.f32 %v3803_v4, %v2907_v58  ;;  %v5457_v0 = vsub.s32 %v5250_v42, %v2492_v7 }
 0x16b   : > { %v3018_v20 = vadd.f32 %v3017_v27, %v2983_v61  ;;  %v2941_v40 = vadd.f32 %v2940_v53, %v2906_v62  ;;  %v3807_v51 = vadd.f32 %v3773_v3, %v3669_v55  ;;  %v1817_v44 = vpop.f32.mrb[21].mxu0  ;;  %v3670_v57 = vpop.f32.mrb[22].mxu1  ;;  %v2503_v54 = vmul.u32 18, %v2502_v56 }
 0x16c   : > { %v3808_v2 = vadd.f32 %v1817_v44, %v918_v1  ;;  %v3774_v8 = vpop.f32.mrb[22].mxu0  ;;  %v921_v63 = vpop.f32.mrb[23].mxu1  ;;  %v2986_v14 = vmul.f32 %v3805_v19, %v2908_v29  ;;  %vm2563_vm2 = vcmp.ne.s32.totalorder %v5452_v15, 0  ;;  %vm5463_vm4 = vcmp.lt.s32.totalorder %v2702_v5, 16 }
 0x16d   : > { %v2942_v6 = vadd.f32 %v2941_v40, %v2907_v58  ;;  %v3019_v21 = vadd.f32 %v3018_v20, %v2984_v25  ;;  %v3809_v45 = vadd.f32 %v3774_v8, %v3670_v57  ;;  %v1820_v23 = vpop.f32.mrb[23].mxu0  ;;  %v2911_v38 = vmul.f32 %v3807_v51, %v5204_v50 }
 0x16e   : > { %v2909_v36 = vmul.f32 %v3808_v2, %v5209_v48  ;;  %v3810_v43 = vadd.f32 %v1820_v23, %v921_v63  ;;  %v2525_v19 = vmul.u32 18, %v2524_v46  ;;  %vm2561_vm3 = vcmp.ne.s32.totalorder %v5457_v0, 0 }
 0x16f   : > { %v3020_v24 = vadd.f32 %v3019_v21, %v2985_v13  ;;  %v2943_v49 = vadd.f32 %v2942_v6, %v2908_v29  ;;  %v3426_v37 = vpack.c.bf16 %v3809_v45, %v3807_v51  ;;  %vm2597_vm5 = vcmp.lt.s32.totalorder %v5457_v0, 0 }
 0x170   : > { %v2987_v22 = vmul.f32 %v3808_v2, %v2909_v36  ;;  %v3421_v52 = vpack.c.bf16 %v3810_v43, %v3808_v2  ;;  %v2910_v4 = vmul.f32 %v3810_v43, %v5237_v26  ;;  %v5471_v26 = vsub.s32 %v5298_v33, %v2503_v54  ;;  %vm5484_vm7 = vmand %vm2597_vm5, %vm2561_vm3 }
 0x171   : > { %v2944_v28 = vadd.f32 %v2943_v49, %v2909_v36  ;;  %v3021_v48 = vadd.f32 %v3020_v24, %v2986_v14  ;;  %3468 = vst [vmem:[%s5271_s8 + $0x58] sm:$0xff] %v3426_v37   ;;  %v3673_v30 = vpop.f32.mrb[24].mxu1  ;;  %v2912_v61 = vmul.f32 %v3809_v45, %v5221_v17  ;;  %vm2599_vm6 = vcmp.lt.s32.totalorder %v5452_v15, 0 }
 0x172   : > { %3467 = vst [vmem:[%s5271_s8 + $0x50] sm:$0xff] %v3421_v52   ;;  %v2988_v9 = vmul.f32 %v3810_v43, %v2910_v4  ;;  %v3777_v16 = vpop.f32.mrb[24].mxu0  ;;  %v934_v10 = vpop.f32.mrb[25].mxu1  ;;  %v5476_v41 = vadd.s32 18, %v5452_v15  ;;  %v2669_v25 = vadd.s32 18, %v5457_v0  ;;  %v2989_v3 = vmul.f32 %v3807_v51, %v2911_v38  ;;  %vm5500_vm10 = vmand %vm2599_vm6, %vm2563_vm2 }
 0x173   : > { %v3022_v50 = vadd.f32 %v3021_v48, %v2987_v22  ;;  %v2945_v31 = vadd.f32 %v2944_v28, %v2910_v4  ;;  %v3811_v62 = vadd.f32 %v3777_v16, %v3673_v30  ;;  %v1833_v59 = vpop.f32.mrb[25].mxu0  ;;  %v3674_v58 = vpop.f32.mrb[26].mxu1  ;;  %v5489_v40 = vsub.s32 %v5265_v35, %v2525_v19 }
 0x174   : > { %v3812_v53 = vadd.f32 %v1833_v59, %v934_v10  ;;  %v3778_v27 = vpop.f32.mrb[26].mxu0  ;;  %v937_v55 = vpop.f32.mrb[27].mxu1  ;;  %vm2562_vm8 = vcmp.ne.s32.totalorder %v5471_v26, 0  ;;  %v2990_v51 = vmul.f32 %v3809_v45, %v2912_v61  ;;  %vm2598_vm9 = vcmp.lt.s32.totalorder %v5471_v26, 0 }
 0x175   : > { %v2946_v33 = vadd.f32 %v2945_v31, %v2911_v38  ;;  %v3023_v1 = vadd.f32 %v3022_v50, %v2988_v9  ;;  %v3813_v7 = vadd.f32 %v3778_v27, %v3674_v58  ;;  %v1836_v56 = vpop.f32.mrb[27].mxu0  ;;  %v2915_v5 = vmul.f32 %v3811_v62, %v5255_v60  ;;  %vm5516_vm13 = vmand %vm2598_vm9, %vm2562_vm8 }
 0x176   : > { %v2913_v17 = vmul.f32 %v3812_v53, %v5290_v39  ;;  %v3814_v20 = vadd.f32 %v1836_v56, %v937_v55  ;;  %vm2564_vm11 = vcmp.ne.s32.totalorder %v5489_v40, 0  ;;  %vm2600_vm12 = vcmp.lt.s32.totalorder %v5489_v40, 0 }
 0x177   : > { %v3024_v44 = vadd.f32 %v3023_v1, %v2989_v3  ;;  %v2947_v57 = vadd.f32 %v2946_v33, %v2912_v61  ;;  %v3436_v39 = vpack.c.bf16 %v3813_v7, %v3811_v62  ;;  %v2670_v23 = vadd.s32 18, %v5471_v26  ;;  %vm5532_vm14 = vmand %vm2600_vm12, %vm2564_vm11 }
 0x178   : > { %v2991_v2 = vmul.f32 %v3812_v53, %v2913_v17  ;;  %v3431_v8 = vpack.c.bf16 %v3814_v20, %v3812_v53  ;;  %v2914_v63 = vmul.f32 %v3814_v20, %v5334_v18  ;;  %v2705_v18 = vsel %vm5484_vm7, %v2669_v25, %v5457_v0 }
 0x179   : > { %v2948_v46 = vadd.f32 %v2947_v57, %v2913_v17  ;;  %v3025_v13 = vadd.f32 %v3024_v44, %v2990_v51  ;;  %3470 = vst [vmem:[%s5271_s8 + $0x68] sm:$0xff] %v3436_v39   ;;  %v3677_v35 = vpop.f32.mrb[28].mxu1  ;;  %v2916_v43 = vmul.f32 %v3813_v7, %v5295_v12  ;;  %v3323_v4 = vsel %vm5463_vm4, 1.0, %v4057_v47 }
 0x17a   : > { %3469 = vst [vmem:[%s5271_s8 + $0x60] sm:$0xff] %v3431_v8   ;;  %v2992_v21 = vmul.f32 %v3814_v20, %v2914_v63  ;;  %v3781_v45 = vpop.f32.mrb[28].mxu0  ;;  %v950_v60 = vpop.f32.mrb[29].mxu1  ;;  %v2707_v12 = vsel %vm5500_vm10, %v5476_v41, %v5452_v15  ;;  %v2672_v38 = vadd.s32 18, %v5489_v40  ;;  %v2993_v28 = vmul.f32 %v3811_v62, %v2915_v5 }
 0x17b   : > { %v3026_v36 = vadd.f32 %v3025_v13, %v2991_v2  ;;  %v2949_v54 = vadd.f32 %v2948_v46, %v2914_v63  ;;  %v3815_v14 = vadd.f32 %v3781_v45, %v3677_v35  ;;  %v1849_v24 = vpop.f32.mrb[29].mxu0  ;;  %v3678_v49 = vpop.f32.mrb[30].mxu1  ;;  %vm5537_vm15 = vcmp.lt.s32.totalorder %v2705_v18, 16 }
 0x17c   : > { %v3816_v37 = vadd.f32 %v1849_v24, %v950_v60  ;;  %v3782_v22 = vpop.f32.mrb[30].mxu0  ;;  %v953_v52 = vpop.f32.mrb[31].mxu1  ;;  %v2706_v50 = vsel %vm5516_vm13, %v2670_v23, %v5471_v26  ;;  %v2994_v61 = vmul.f32 %v3813_v7, %v2916_v43  ;;  %vm5554_vm1 = vcmp.lt.s32.totalorder %v2707_v12, 16 }
 0x17d   : > { %v2950_v48 = vadd.f32 %v2949_v54, %v2915_v5  ;;  %v3027_v30 = vadd.f32 %v3026_v36, %v2992_v21  ;;  %v3817_v19 = vadd.f32 %v3782_v22, %v3678_v49  ;;  %v1852_v9 = vpop.f32.mrb[31].mxu0  ;;  %v2919_v55 = vmul.f32 %v3815_v14, %v5364_v11 }
 0x17e   : > { %v2917_v42 = vmul.f32 %v3816_v37, %v5430_v32  ;;  %v3818_v10 = vadd.f32 %v1852_v9, %v953_v52  ;;  %v2708_v32 = vsel %vm5532_vm14, %v2672_v38, %v5489_v40  ;;  %vm5549_vm0 = vcmp.lt.s32.totalorder %v2706_v50, 16 }
 0x17f   : > { %v3028_v31 = vadd.f32 %v3027_v30, %v2993_v28  ;;  %v2951_v62 = vadd.f32 %v2950_v48, %v2916_v43  ;;  %v3446_v59 = vpack.c.bf16 %v3817_v19, %v3815_v14  ;;  %v3326_v11 = vsel %vm5537_vm15, 1.0, %v4057_v47 }
 0x180   : > { %v2995_v58 = vmul.f32 %v3816_v37, %v2917_v42  ;;  %v3441_v53 = vpack.c.bf16 %v3818_v10, %v3816_v37  ;;  %v2918_v27 = vmul.f32 %v3818_v10, %v3323_v4  ;;  %v2920_v20 = vmul.f32 %v3817_v19, %v5444_v34 }
 0x181   : > { %v2952_v41 = vadd.f32 %v2951_v62, %v2917_v42  ;;  %v3029_v25 = vadd.f32 %v3028_v31, %v2994_v61  ;;  %3472 = vst [vmem:[%s5271_s8 + $0x78] sm:$0xff] %v3446_v59   ;;  %v3681_v3 = vpop.f32.mrb[32].mxu1  ;;  %vm5562_vm2 = vcmp.lt.s32.totalorder %v2708_v32, 16  ;;  %v3327_v63 = vsel %vm5549_vm0, 1.0, %v4057_v47 }
 0x182   : > { %3471 = vst [vmem:[%s5271_s8 + $0x70] sm:$0xff] %v3441_v53   ;;  %v2996_v26 = vmul.f32 %v3818_v10, %v2918_v27  ;;  %v3785_v1 = vpop.f32.mrb[32].mxu0  ;;  %v966_v56 = vpop.f32.mrb[33].mxu1  ;;  %v2997_v5 = vmul.f32 %v3815_v14, %v2919_v55  ;;  %v3328_v6 = vsel %vm5554_vm1, 1.0, %v4057_v47  ;;  %v2998_v45 = vmul.f32 %v3817_v19, %v2920_v20 }
 0x183   : > { %v3030_v17 = vadd.f32 %v3029_v25, %v2995_v58  ;;  %v2953_v29 = vadd.f32 %v2952_v41, %v2918_v27  ;;  %v3819_v40 = vadd.f32 %v3785_v1, %v3681_v3  ;;  %v1865_v51 = vpop.f32.mrb[33].mxu0  ;;  %v3682_v44 = vpop.f32.mrb[34].mxu1  ;;  %v3329_v54 = vsel %vm5562_vm2, 1.0, %v4057_v47 }
 0x184   : > { %v3820_v57 = vadd.f32 %v1865_v51, %v966_v56  ;;  %v3786_v39 = vpop.f32.mrb[34].mxu0  ;;  %v969_v8 = vpop.f32.mrb[35].mxu1 }
 0x185   : > { %v2954_v46 = vadd.f32 %v2953_v29, %v2919_v55  ;;  %v3031_v13 = vadd.f32 %v3030_v17, %v2996_v26  ;;  %v3821_v35 = vadd.f32 %v3786_v39, %v3682_v44  ;;  %v1868_v34 = vpop.f32.mrb[35].mxu0  ;;  %v2923_v49 = vmul.f32 %v3819_v40, %v3328_v6 }
 0x186   : > { %v2921_v18 = vmul.f32 %v3820_v57, %v3326_v11  ;;  %v3822_v21 = vadd.f32 %v1868_v34, %v969_v8 }
 0x187   : > { %v3032_v60 = vadd.f32 %v3031_v13, %v2997_v5  ;;  %v2955_v23 = vadd.f32 %v2954_v46, %v2920_v20  ;;  %v3456_v36 = vpack.c.bf16 %v3821_v35, %v3819_v40  ;;  %v2924_v4 = vmul.f32 %v3821_v35, %v3329_v54 }
 0x188   : > { %v2999_v43 = vmul.f32 %v3820_v57, %v2921_v18  ;;  %v3451_v14 = vpack.c.bf16 %v3822_v21, %v3820_v57  ;;  %v2922_v24 = vmul.f32 %v3822_v21, %v3327_v63  ;;  %v3001_v38 = vmul.f32 %v3819_v40, %v2923_v49 }
 0x189   : > { %v2956_v0 = vadd.f32 %v2955_v23, %v2921_v18  ;;  %v3033_v37 = vadd.f32 %v3032_v60, %v2998_v45  ;;  %3474 = vst [vmem:[%s5271_s8 + $0x88] sm:$0xff] %v3456_v36   ;;  %v3002_v30 = vmul.f32 %v3821_v35, %v2924_v4 }
 0x18a   : > { %3473 = vst [vmem:[%s5271_s8 + $0x80] sm:$0xff] %v3451_v14   ;;  %v3000_v22 = vmul.f32 %v3822_v21, %v2922_v24 }
 0x18b   : > { %v3034_v52 = vadd.f32 %v3033_v37, %v2999_v43  ;;  %v2957_v12 = vadd.f32 %v2956_v0, %v2922_v24 }
 0x18d   : > { %v2958_v28 = vadd.f32 %v2957_v12, %v2923_v49  ;;  %v3035_v48 = vadd.f32 %v3034_v52, %v3000_v22 }
 0x18f   : > { %v2959_v19 = vadd.f32 %v2958_v28, %v2924_v4  ;;  %v3036_v9 = vadd.f32 %v3035_v48, %v3001_v38 }
 0x191   : > { %v2960_v16 = vrot.slane %v2959_v19, 4  ;;  %v3037_v47 = vadd.f32 %v3036_v9, %v3002_v30 }
 0x193   : > { %v2961_v42 = vadd.f32 %v2960_v16, %v2959_v19  ;;  %v3038_v10 = vrot.slane %v3037_v47, 4 }
 0x195   : > { %v2962_v15 = vrot.slane %v2961_v42, 2  ;;  %v3039_v50 = vadd.f32 %v3038_v10, %v3037_v47 }
 0x197   : > { %v2963_v61 = vadd.f32 %v2962_v15, %v2961_v42  ;;  %v3040_v31 = vrot.slane %v3039_v50, 2 }
 0x199   : > { %v2964_v62 = vrot.slane %v2963_v61, 1  ;;  %v3041_v59 = vadd.f32 %v3040_v31, %v3039_v50 }
 0x19b   : > { %v2965_v58 = vadd.f32 %v2964_v62, %v2963_v61  ;;  %v3042_v53 = vrot.slane %v3041_v59, 1 }
 0x19d   : > { %2966 = vst [vmem:[%s181_s15] sm:$0x1] %v2965_v58  ;;  %v3043_v27 = vadd.f32 %v3042_v53, %v3041_v59 }
 0x19f   : > { %3044 = vst [vmem:[%s181_s15 + $0x1] sm:$0x1] %v3043_v27 }
 0x1a0 PF: > { %s14_s12 = sadd.s32 1, %s4055_s12  }
 0x1a1   : > { %p11_p4 = scmp.ge.s32.totalorder %s14_s12, 4  }
 0x1a3   :  { %13 = sbr.rel (!%p11_p4) target bundleno = 1 (0x1), region = 73 }

// kernel: generator_forward.9
= control target key start
LH: loop header
LB: loop body
LE: loop exit
PB: predicated region body
PF: predicated region fallthrough
CT: control target
= control target key end

     0   :  { %s9755_s9 = smov 0   ;;  %s10647_s0 = inlined_call_operand.vmem [shape: bf16[2,1128,64], index: 0, kind: input, shape index: {}]   ;;  %s10648_s1 = inlined_call_operand.vmem [shape: bf16[4,64,128], index: 1, kind: input, shape index: {}]   ;;  %s10649_s2 = inlined_call_operand.vmem [shape: bf16[2,1088,128], index: 2, kind: output, shape index: {}]  }
   0x1 LB: > { %s6748_s10 = sadd.s32 4294967295, %s9738_s9   ;;  %p6752_p0 = scmp.ge.s32.totalorder %s9738_s9, 1  ;;  %s9738_s9 = sphi %s9755_s9, %s12_s9  }
   0x2   : > { %p112_p1 = scmp.lt.s32.totalorder %s9738_s9, 3 }
   0x4   : > { %p113_p2 = pnand %p6752_p0, %p112_p1 }
   0x5   : > { %v9169_v0 = vld [vmem:[%s10648_s1 + $0x20] sm:$0xff] (!%p113_p2)   ;;  %p134_p3 = scmp.lt.s32.totalorder (!%p113_p2), %s6748_s10, 1  ;;  %v9171_v2 = vld [vmem:[%s10648_s1 + $0x28] sm:$0xff] (!%p113_p2)   ;;  %v9173_v4 = vld [vmem:[%s10648_s1 + $0x30] sm:$0xff] (!%p113_p2)   ;;  %vm1215_vm0 = vcmask (!%p113_p2), 523264   ;;  %vm3223_vm2 = vcmask (!%p113_p2), 1046528  }
   0x6   : > { %116 = sbr.rel (%p113_p2) target bundleno = 793 (0x319), region = 28  ;;  %v9170_v1 = vld [vmem:[%s10648_s1 + $0x40] sm:$0xff] (!%p113_p2)   ;;  %8175 = vmatprep.subr.bf16.mxu1 (!%p113_p2), %v9169_v0  ;;  %v9172_v3 = vld [vmem:[%s10648_s1 + $0x48] sm:$0xff] (!%p113_p2)   ;;  %v9174_v5 = vld [vmem:[%s10648_s1 + $0x50] sm:$0xff] (!%p113_p2)   ;;  %vm642_vm1 = vsmask.f32 (!%p113_p2), 7424 }
   0x7   : > { %8463 = vmatprep.subr.bf16.mxu0 (!%p113_p2), %v9170_v1  ;;  %8176 = vmatpush3.bf16.msra.mxu1 (!%p113_p2), %v9169_v0  ;;  %v9175_v6 = vld [vmem:[%s10648_s1 + $0x38] sm:$0xff] (!%p113_p2)   ;;  %v9182_v19 = vld [vmem:[%s10648_s1] sm:$0xff] (!%p113_p2)   ;;  %vm4315_vm3 = vsmask.f32 (!%p113_p2), 6400 }
   0x8   : > { %8464 = vmatpush3.bf16.msra.mxu0 (!%p113_p2), %v9170_v1  ;;  %8177 = vmatprep.subr.bf16.mxu1 (!%p113_p2), %v9171_v2  ;;  %v9176_v7 = vld [vmem:[%s10648_s1 + $0x58] sm:$0xff] (!%p113_p2)   ;;  %v9184_v27 = vld [vmem:[%s10648_s1 + $0x60] sm:$0xff] (!%p113_p2)  }
   0x9   : > { %8465 = vmatprep.subr.bf16.mxu0 (!%p113_p2), %v9172_v3 }
   0xb   : > { %8178 = vmatpush3.bf16.msra.mxu1 (!%p113_p2), %v9171_v2 }
   0xc   : > { %8466 = vmatpush3.bf16.msra.mxu0 (!%p113_p2), %v9172_v3  ;;  %8179 = vmatprep.subr.bf16.mxu1 (!%p113_p2), %v9173_v4 }
   0xd   : > { %s10651_s10 = smov (!%p134_p3, %s6748_s10), 1  ;;  %8467 = vmatprep.subr.bf16.mxu0 %v9174_v5 }
   0xe   : > { %s9159_s21 = smul.u32 564, %s10651_s10 }
   0xf   : > { %8180 = vmatpush3.bf16.msra.mxu1 %v9173_v4 }
  0x10   : > { %s9790_s28 = scalar_lea.vmem %s10647_s0, %s9159_s21  ;;  %8468 = vmatpush3.bf16.msra.mxu0 %v9174_v5  ;;  %8181 = vmatprep.subr.bf16.mxu1 %v9175_v6  ;;  %s9160_s21 = smul.u32 544, %s10651_s10 }
  0x11   : > { %v9177_v8 = vld [vmem:[%s9790_s28] sm:$0xff]   ;;  %v9178_v9 = vld [vmem:[%s9790_s28 + $0x8] sm:$0xff]   ;;  %v9179_v14 = vld [vmem:[%s9790_s28 + $0x10] sm:$0xfe]   ;;  %8469 = vmatprep.subr.bf16.mxu0 %v9176_v7 }
  0x12   : > { %v644_v10 = vshrl.u32 %v9177_v8, 16  ;;  %v646_v11 = vshll.u32 %v9177_v8, 16  ;;  %v651_v12 = vshll.u32 %v9178_v9, 16  ;;  %v655_v13 = vshrl.u32 %v9178_v9, 16  ;;  %v9180_v15 = vld [vmem:[%s9790_s28 + $0x18] sm:$0xff]   ;;  %v9181_v18 = vld [vmem:[%s9790_s28 + $0x10] sm:$0xff]   ;;  %s10532_s23 = scalar_lea.vmem %s10649_s2, %s9160_s21 }
  0x13   : > { %v3224_v20 = vrot.slane %v9179_v14, 1  ;;  %v3225_v21 = vrot.slane %v9180_v15, 1  ;;  %8182 = vmatpush3.bf16.msra.mxu1 %v9175_v6  ;;  %v659_v24 = vshll.u32 %v9181_v18, 16  ;;  %v9183_v25 = vld [vmem:[%s9790_s28 + $0x20] sm:$0xff]   ;;  %v663_v28 = vshrl.u32 %v9181_v18, 16  ;;  %v9185_v32 = vld [vmem:[%s9790_s28 + $0x18] sm:$0xff]  }
  0x14   : > { %v648_v16 = vrot.slane %v646_v11, 1  ;;  %v653_v17 = vrot.slane %v651_v12, 1  ;;  %8470 = vmatpush3.bf16.msra.mxu0 %v9176_v7  ;;  %8319 = vmatprep.subr.bf16.mxu1 %v9182_v19  ;;  %v3227_v31 = vrot.slane %v9183_v25, 1  ;;  %v9186_v35 = vld [vmem:[%s9790_s28 + $0x28] sm:$0xff]   ;;  %v667_v37 = vshll.u32 %v9185_v32, 16  ;;  %v9187_v38 = vld [vmem:[%s9790_s28 + $0x20] sm:$0xff]  }
  0x15   : > { %v3226_v26 = vsel %vm3223_vm2, %v3224_v20, %v3225_v21  ;;  %v661_v30 = vrot.slane %v659_v24, 1  ;;  %8607 = vmatprep.subr.bf16.mxu0 %v9184_v27  ;;  %v671_v39 = vshrl.u32 %v9185_v32, 16  ;;  %v9188_v40 = vld [vmem:[%s9790_s28 + $0x30] sm:$0xff]   ;;  %v3229_v41 = vrot.slane %v9186_v35, 1  ;;  %v9189_v42 = vld [vmem:[%s9790_s28 + $0x28] sm:$0xff]   ;;  %v9190_v49 = vld [vmem:[%s9790_s28 + $0x38] sm:$0xff]  }
  0x16   : > { %v649_v22 = vor.u32 %v648_v16, %v644_v10  ;;  %v657_v23 = vor.u32 %v655_v13, %v653_v17  ;;  %8471 = vmatprep.mubr.msk.bf16.mxu0 %vm1215_vm0, %v3226_v26  ;;  %v3228_v34 = vsel %vm3223_vm2, %v3225_v21, %v3227_v31  ;;  %v669_v43 = vrot.slane %v667_v37, 1  ;;  %v9191_v53 = vld [vmem:[%s9790_s28 + $0x30] sm:$0xff]   ;;  %v9192_v58 = vld [vmem:[%s9790_s28 + $0x40] sm:$0xff]   ;;  %v9193_v62 = vld [vmem:[%s9790_s28 + $0x38] sm:$0xff]  }
  0x17   : > { %8472 = vmatmul.mubr.msk.bf16.vlgmr.msra.gmra.mrb[0].mxu0 %vm1215_vm0, %v3228_v34  ;;  %v665_v36 = vor.u32 %v663_v28, %v661_v30  ;;  %v675_v44 = vshll.u32 %v9187_v38, 16  ;;  %v3231_v45 = vrot.slane %v9188_v40, 1  ;;  %v679_v46 = vshrl.u32 %v9187_v38, 16  ;;  %v9194_v4 = vld [vmem:[%s9790_s28 + $0x48] sm:$0xff]   ;;  %v9195_v5 = vld [vmem:[%s9790_s28 + $0x40] sm:$0xff]   ;;  %v9196_v11 = vld [vmem:[%s9790_s28 + $0x50] sm:$0xff]  }
  0x18   : > { %v654_v29 = vsel %vm642_vm1, %v649_v22, %v653_v17  ;;  %v662_v33 = vsel %vm642_vm1, %v657_v23, %v661_v30  ;;  %8608 = vmatpush3.bf16.msra.mxu0 %v9184_v27  ;;  %v3230_v47 = vsel %vm3223_vm2, %v3227_v31, %v3229_v41  ;;  %v683_v48 = vshll.u32 %v9189_v42, 16  ;;  %v9197_v13 = vld [vmem:[%s9790_s28 + $0x48] sm:$0xff]   ;;  %v9198_v17 = vld [vmem:[%s9790_s28 + $0x58] sm:$0xff]   ;;  %v9199_v23 = vld [vmem:[%s9790_s28 + $0x50] sm:$0xff]  }
  0x19   : > { %8183 = vmatprep.mubr.msk.bf16.mxu1 %vm1215_vm0, %v654_v29  ;;  %v670_v50 = vsel %vm642_vm1, %v665_v36, %v669_v43  ;;  %8475 = vmatprep.mubr.msk.bf16.mxu0 %vm1215_vm0, %v3230_v47  ;;  %v673_v51 = vor.u32 %v671_v39, %v669_v43  ;;  %v677_v52 = vrot.slane %v675_v44, 1  ;;  %v3232_v54 = vsel %vm3223_vm2, %v3229_v41, %v3231_v45  ;;  %v9201_v29 = vld [vmem:[%s9790_s28 + $0x58] sm:$0xff]   ;;  %v9200_v34 = vld [vmem:[%s9790_s28 + $0x60] sm:$0xff]   ;;  %v9202_v39 = vld [vmem:[%s9790_s28 + $0x68] sm:$0xff]  }
  0x1a   : > { %8184 = vmatmul.mubr.msk.bf16.vlgmr.msra.gmra.mrb[0].mxu1 %vm1215_vm0, %v662_v33  ;;  %v685_v55 = vrot.slane %v683_v48, 1  ;;  %v3233_v56 = vrot.slane %v9190_v49, 1  ;;  %v687_v57 = vshrl.u32 %v9189_v42, 16  ;;  %v691_v61 = vshll.u32 %v9191_v53, 16  ;;  %v9203_v41 = vld [vmem:[%s9790_s28 + $0x60] sm:$0xff]   ;;  %v9205_v44 = vld [vmem:[%s9790_s28 + $0x68] sm:$0xff]  }
  0x1b   : > { %8320 = vmatpush3.bf16.msra.mxu1 %v9182_v19  ;;  %8187 = vmatprep.mubr.msk.bf16.mxu1 %vm1215_vm0, %v670_v50  ;;  %v678_v59 = vsel %vm642_vm1, %v673_v51, %v677_v52  ;;  %v681_v60 = vor.u32 %v679_v46, %v677_v52  ;;  %v695_v0 = vshrl.u32 %v9191_v53, 16  ;;  %v699_v3 = vshll.u32 %v9193_v62, 16  ;;  %v9204_v52 = vld [vmem:[%s9790_s28 + $0x70] sm:$0xff]  }
  0x1c   : > { %v3234_v63 = vsel %vm3223_vm2, %v3231_v45, %v3233_v56  ;;  %v693_v2 = vrot.slane %v691_v61, 1  ;;  %v689_v6 = vor.u32 %v687_v57, %v685_v55  ;;  %v3235_v7 = vrot.slane %v9192_v58, 1  ;;  %v9206_v57 = vld [vmem:[%s9790_s28 + $0x78] sm:$0xff]  }
  0x1d   : > { %v686_v1 = vsel %vm642_vm1, %v681_v60, %v685_v55  ;;  %v701_v9 = vrot.slane %v699_v3, 1  ;;  %v3237_v10 = vrot.slane %v9194_v4, 1  ;;  %v707_v12 = vshll.u32 %v9195_v5, 16  ;;  %v9218_v3 = vld [vmem:[%s10648_s1 + $0x68] sm:$0xff]  }
  0x1e   : > { %v697_v8 = vor.u32 %v695_v0, %v693_v2  ;;  %v694_v14 = vsel %vm642_vm1, %v689_v6, %v693_v2  ;;  %v3236_v15 = vsel %vm3223_vm2, %v3233_v56, %v3235_v7  ;;  %v703_v16 = vshrl.u32 %v9193_v62, 16  ;;  %v9217_v2 = vld [vmem:[%s10648_s1 + $0x8] sm:$0xff]   ;;  %8609 = vmatprep.subr.bf16.mxu0 %v9218_v3 }
  0x1f   : > { %8476 = vmatmul.mubr.msk.bf16.gmra.mrb[4].mxu0 %vm1215_vm0, %v3232_v54  ;;  %v3238_v19 = vsel %vm3223_vm2, %v3235_v7, %v3237_v10  ;;  %v711_v20 = vshrl.u32 %v9195_v5, 16  ;;  %v715_v21 = vshll.u32 %v9197_v13, 16  ;;  %v709_v22 = vrot.slane %v707_v12, 1  ;;  %8321 = vmatprep.subr.bf16.mxu1 %v9217_v2 }
  0x20   : > { %8479 = vmatprep.mubr.msk.bf16.mxu0 %vm1215_vm0, %v3234_v63  ;;  %v702_v18 = vsel %vm642_vm1, %v697_v8, %v701_v9  ;;  %v705_v24 = vor.u32 %v703_v16, %v701_v9  ;;  %v3239_v25 = vrot.slane %v9196_v11, 1  ;;  %v3241_v26 = vrot.slane %v9198_v17, 1  ;;  %v9209_v63 = vld [vmem:[%s9790_s28 + $0x78] sm:$0xff]   ;;  %v9208_v8 = vld [vmem:[%s9790_s28 + $0x80] sm:$0xff]   ;;  %8322 = vmatpush3.bf16.msra.mxu1 %v9217_v2 }
  0x21   : > { %v713_v27 = vor.u32 %v711_v20, %v709_v22  ;;  %v717_v28 = vrot.slane %v715_v21, 1  ;;  %v723_v30 = vshll.u32 %v9199_v23, 16  ;;  %v719_v33 = vshrl.u32 %v9197_v13, 16  ;;  %v9210_v13 = vld [vmem:[%s9790_s28 + $0x88] sm:$0xff]   ;;  %8610 = vmatpush3.bf16.msra.mxu0 %v9218_v3 }
  0x22   : > { %8188 = vmatmul.mubr.msk.bf16.gmra.mrb[4].mxu1 %vm1215_vm0, %v678_v59  ;;  %v710_v31 = vsel %vm642_vm1, %v705_v24, %v709_v22  ;;  %v3240_v32 = vsel %vm3223_vm2, %v3237_v10, %v3239_v25  ;;  %v3242_v36 = vsel %vm3223_vm2, %v3239_v25, %v3241_v26  ;;  %v727_v37 = vshrl.u32 %v9199_v23, 16  ;;  %v9207_v59 = vld [vmem:[%s9790_s28 + $0x70] sm:$0xff]  }
  0x23   : > { %8191 = vmatprep.mubr.msk.bf16.mxu1 %vm1215_vm0, %v686_v1  ;;  %v718_v35 = vsel %vm642_vm1, %v713_v27, %v717_v28  ;;  %v731_v38 = vshll.u32 %v9201_v29, 16  ;;  %v725_v40 = vrot.slane %v723_v30, 1  ;;  %v721_v42 = vor.u32 %v719_v33, %v717_v28  ;;  %v9215_v33 = vld [vmem:[%s9790_s28 + $0x90] sm:$0xff]  }
  0x24   : > { %v3243_v43 = vrot.slane %v9200_v34, 1  ;;  %v3245_v47 = vrot.slane %v9202_v39, 1  ;;  %v735_v48 = vshrl.u32 %v9201_v29, 16  ;;  %v739_v49 = vshll.u32 %v9203_v41, 16  ;;  %v9219_v39 = vld [vmem:[%s9790_s28 + $0x98] sm:$0xff]  }
  0x25   : > { %v729_v45 = vor.u32 %v727_v37, %v725_v40  ;;  %v733_v46 = vrot.slane %v731_v38, 1  ;;  %v726_v50 = vsel %vm642_vm1, %v721_v42, %v725_v40  ;;  %v747_v53 = vshll.u32 %v9205_v44, 16 }
  0x26   : > { %v3244_v51 = vsel %vm3223_vm2, %v3241_v26, %v3243_v43  ;;  %v3246_v55 = vsel %vm3223_vm2, %v3243_v43, %v3245_v47  ;;  %v743_v56 = vshrl.u32 %v9203_v41, 16  ;;  %v741_v58 = vrot.slane %v739_v49, 1  ;;  %v9212_v26 = vld [vmem:[%s9790_s28 + $0x90] sm:$0xff]   ;;  %v9216_v41 = vld [vmem:[%s9790_s28 + $0xa0] sm:$0xff]  }
  0x27   : > { %8480 = vmatmul.mubr.msk.bf16.gmra.mrb[8].mxu0 %vm1215_vm0, %v3236_v15  ;;  %v734_v54 = vsel %vm642_vm1, %v729_v45, %v733_v46  ;;  %v737_v60 = vor.u32 %v735_v48, %v733_v46  ;;  %v3247_v61 = vrot.slane %v9204_v52, 1  ;;  %v749_v62 = vrot.slane %v747_v53, 1  ;;  %v9211_v15 = vld [vmem:[%s9790_s28 + $0x80] sm:$0xff]   ;;  %v9220_v45 = vld [vmem:[%s9790_s28 + $0xa8] sm:$0xff]  }
  0x28   : > { %8483 = vmatprep.mubr.msk.bf16.mxu0 %vm1215_vm0, %v3238_v19  ;;  %v745_v0 = vor.u32 %v743_v56, %v741_v58  ;;  %v3249_v1 = vrot.slane %v9206_v57, 1  ;;  %v751_v4 = vshrl.u32 %v9205_v44, 16  ;;  %v755_v5 = vshll.u32 %v9207_v59, 16  ;;  %v9223_v57 = vld [vmem:[%s9790_s28 + $0xa8] sm:$0xff]  }
  0x29   : > { %v742_v6 = vsel %vm642_vm1, %v737_v60, %v741_v58  ;;  %v3248_v7 = vsel %vm3223_vm2, %v3245_v47, %v3247_v61  ;;  %v759_v9 = vshrl.u32 %v9207_v59, 16  ;;  %v763_v12 = vshll.u32 %v9209_v63, 16  ;;  %v9222_v59 = vld [vmem:[%s9790_s28 + $0xb0] sm:$0xff]  }
  0x2a   : > { %8192 = vmatmul.mubr.msk.bf16.gmra.mrb[8].mxu1 %vm1215_vm0, %v694_v14  ;;  %v750_v10 = vsel %vm642_vm1, %v745_v0, %v749_v62  ;;  %v3250_v11 = vsel %vm3223_vm2, %v3247_v61, %v3249_v1  ;;  %v757_v14 = vrot.slane %v755_v5, 1  ;;  %v753_v16 = vor.u32 %v751_v4, %v749_v62  ;;  %v9225_v5 = vld [vmem:[%s9790_s28 + $0xb0] sm:$0xff]  }
  0x2b   : > { %8195 = vmatprep.mubr.msk.bf16.mxu1 %vm1215_vm0, %v702_v18  ;;  %v3251_v17 = vrot.slane %v9208_v8, 1  ;;  %v9213_v18 = vld [vmem:[%s9790_s28 + $0x88] sm:$0xff]   ;;  %v765_v20 = vrot.slane %v763_v12, 1  ;;  %v3253_v21 = vrot.slane %v9210_v13, 1  ;;  %v767_v22 = vshrl.u32 %v9209_v63, 16  ;;  %v9224_v63 = vld [vmem:[%s9790_s28 + $0xb8] sm:$0xff]  }
  0x2c   : > { %v761_v19 = vor.u32 %v759_v9, %v757_v14  ;;  %v771_v23 = vshll.u32 %v9211_v15, 16  ;;  %v758_v24 = vsel %vm642_vm1, %v753_v16, %v757_v14  ;;  %v779_v27 = vshll.u32 %v9213_v18, 16  ;;  %v9226_v16 = vld [vmem:[%s9790_s28 + $0xc0] sm:$0xff]  }
  0x2d   : > { %v3252_v25 = vsel %vm3223_vm2, %v3249_v1, %v3251_v17  ;;  %v3254_v29 = vsel %vm3223_vm2, %v3251_v17, %v3253_v21  ;;  %v775_v30 = vshrl.u32 %v9211_v15, 16  ;;  %v769_v34 = vor.u32 %v767_v22, %v765_v20 }
  0x2e   : > { %v766_v28 = vsel %vm642_vm1, %v761_v19, %v765_v20  ;;  %v787_v40 = vshll.u32 %v9215_v33, 16  ;;  %v783_v44 = vshrl.u32 %v9213_v18, 16  ;;  %v791_v48 = vshrl.u32 %v9215_v33, 16 }
  0x2f   : > { %8484 = vmatmul.mubr.msk.bf16.gmra.mrb[12].mxu0 %vm1215_vm0, %v3240_v32  ;;  %v773_v32 = vrot.slane %v771_v23, 1  ;;  %v795_v49 = vshll.u32 %v9219_v39, 16  ;;  %v3259_v53 = vrot.slane %v9216_v41, 1  ;;  %v799_v62 = vshrl.u32 %v9219_v39, 16  ;;  %v9229_v23 = vld [vmem:[%s9790_s28 + $0xc0] sm:$0xff]   ;;  %v9256_v41 = vld [vmem:[%s10648_s1 + $0x70] sm:$0xff]  }
  0x30   : > { %8487 = vmatprep.mubr.msk.bf16.mxu0 %vm1215_vm0, %v3242_v36  ;;  %v781_v36 = vrot.slane %v779_v27, 1  ;;  %v811_v3 = vshll.u32 %v9223_v57, 16  ;;  %v3265_v8 = vrot.slane %v9224_v63, 1  ;;  %v815_v12 = vshrl.u32 %v9223_v57, 16  ;;  %8611 = vmatprep.subr.bf16.mxu0 %v9256_v41 }
  0x31   : > { %v777_v37 = vor.u32 %v775_v30, %v773_v32  ;;  %v774_v42 = vsel %vm642_vm1, %v769_v34, %v773_v32  ;;  %v797_v56 = vrot.slane %v795_v49, 1  ;;  %v819_v13 = vshll.u32 %v9225_v5, 16  ;;  %v9232_v32 = vld [vmem:[%s9790_s28 + $0xd8] sm:$0xff]   ;;  %8612 = vmatpush3.bf16.msra.mxu0 %v9256_v41  ;;  %v9246_v41 = vld [vmem:[%s9790_s28 + $0x110] sm:$0xff]  }
  0x32   : > { %8196 = vmatmul.mubr.msk.bf16.gmra.mrb[12].mxu1 %vm1215_vm0, %v710_v31  ;;  %v9214_v31 = vld [vmem:[%s9790_s28 + $0x98] sm:$0xff]   ;;  %v785_v52 = vor.u32 %v783_v44, %v781_v36  ;;  %v823_v17 = vshrl.u32 %v9225_v5, 16  ;;  %v835_v30 = vshll.u32 %v9229_v23, 16  ;;  %v839_v39 = vshrl.u32 %v9229_v23, 16  ;;  %v9238_v5 = vld [vmem:[%s9790_s28 + $0xf0] sm:$0xff]   ;;  %v9242_v23 = vld [vmem:[%s9790_s28 + $0x100] sm:$0xff]  }
  0x33   : > { %8199 = vmatprep.mubr.msk.bf16.mxu1 %vm1215_vm0, %v718_v35  ;;  %v3255_v35 = vrot.slane %v9212_v26, 1  ;;  %v3257_v38 = vrot.slane %v9214_v31, 1  ;;  %v782_v46 = vsel %vm642_vm1, %v777_v37, %v781_v36  ;;  %v821_v22 = vrot.slane %v819_v13, 1  ;;  %v9230_v31 = vld [vmem:[%s9790_s28 + $0xd0] sm:$0xff]   ;;  %v9235_v49 = vld [vmem:[%s9790_s28 + $0xd8] sm:$0xff]  }
  0x34   : > { %v9254_v36 = vld [vmem:[%s10648_s1 + $0x10] sm:$0xff]  }
  0x35   : > { %v3256_v43 = vsel %vm3223_vm2, %v3253_v21, %v3255_v35  ;;  %v3258_v47 = vsel %vm3223_vm2, %v3255_v35, %v3257_v38  ;;  %v3260_v61 = vsel %vm3223_vm2, %v3257_v38, %v3259_v53  ;;  %v9228_v21 = vld [vmem:[%s9790_s28 + $0xc8] sm:$0xff]   ;;  %v825_v26 = vor.u32 %v823_v17, %v821_v22  ;;  %8323 = vmatprep.subr.bf16.mxu1 %v9254_v36 }
  0x36   : > { %8324 = vmatpush3.bf16.msra.mxu1 %v9254_v36  ;;  %v3279_v17 = vrot.slane %v9238_v5, 1  ;;  %v9290_v5 = vld [vmem:[%s10648_s1 + $0x78] sm:$0xff]  }
  0x37   : > { %8488 = vmatmul.mubr.msk.bf16.gmra.mrb[16].mxu0 %vm1215_vm0, %v3244_v51  ;;  %v9221_v51 = vld [vmem:[%s9790_s28 + $0xa0] sm:$0xff]   ;;  %8613 = vmatprep.subr.bf16.mxu0 %v9290_v5 }
  0x38   : > { %8491 = vmatprep.mubr.msk.bf16.mxu0 %vm1215_vm0, %v3246_v55  ;;  %v803_v58 = vshll.u32 %v9221_v51, 16  ;;  %v807_v2 = vshrl.u32 %v9221_v51, 16  ;;  %8614 = vmatpush3.bf16.msra.mxu0 %v9290_v5 }
  0x3a   : > { %8200 = vmatmul.mubr.msk.bf16.gmra.mrb[16].mxu1 %vm1215_vm0, %v726_v50  ;;  %v789_v50 = vrot.slane %v787_v40, 1  ;;  %v805_v4 = vrot.slane %v803_v58, 1  ;;  %v859_v58 = vshll.u32 %v9235_v49, 16 }
  0x3b   : > { %8203 = vmatprep.mubr.msk.bf16.mxu1 %vm1215_vm0, %v734_v54  ;;  %v3261_v54 = vrot.slane %v9220_v45, 1  ;;  %v3271_v45 = vrot.slane %v9230_v31, 1 }
  0x3c   : > { %v793_v55 = vor.u32 %v791_v48, %v789_v50  ;;  %v790_v60 = vsel %vm642_vm1, %v785_v52, %v789_v50  ;;  %v809_v9 = vor.u32 %v807_v2, %v805_v4 }
  0x3d   : > { %v3262_v1 = vsel %vm3223_vm2, %v3259_v53, %v3261_v54 }
  0x3e   : > { %v798_v0 = vsel %vm642_vm1, %v793_v55, %v797_v56 }
  0x3f   : > { %8492 = vmatmul.mubr.msk.bf16.gmra.mrb[20].mxu0 %vm1215_vm0, %v3248_v7  ;;  %v3263_v7 = vrot.slane %v9222_v59, 1  ;;  %v9236_v59 = vld [vmem:[%s9790_s28 + $0xe8] sm:$0xff]  }
  0x40   : > { %8495 = vmatprep.mubr.msk.bf16.mxu0 %vm1215_vm0, %v3250_v11  ;;  %v9227_v11 = vld [vmem:[%s9790_s28 + $0xb8] sm:$0xff]   ;;  %v3277_v2 = vrot.slane %v9236_v59, 1 }
  0x41   : > { %v3264_v15 = vsel %vm3223_vm2, %v3261_v54, %v3263_v7  ;;  %v3266_v19 = vsel %vm3223_vm2, %v3263_v7, %v3265_v8  ;;  %v827_v20 = vshll.u32 %v9227_v11, 16  ;;  %v831_v35 = vshrl.u32 %v9227_v11, 16  ;;  %v9234_v54 = vld [vmem:[%s9790_s28 + $0xe0] sm:$0xff]  }
  0x42   : > { %8204 = vmatmul.mubr.msk.bf16.gmra.mrb[20].mxu1 %vm1215_vm0, %v742_v6  ;;  %v801_v6 = vor.u32 %v799_v62, %v797_v56  ;;  %v3275_v63 = vrot.slane %v9234_v54, 1 }
  0x43   : > { %8207 = vmatprep.mubr.msk.bf16.mxu1 %vm1215_vm0, %v750_v10  ;;  %v813_v10 = vrot.slane %v811_v3, 1  ;;  %v829_v27 = vrot.slane %v827_v20, 1  ;;  %v9239_v3 = vld [vmem:[%s9790_s28 + $0xe8] sm:$0xff]  }
  0x44   : > { %v806_v14 = vsel %vm642_vm1, %v801_v6, %v805_v4  ;;  %v3278_v11 = vsel %vm3223_vm2, %v3275_v63, %v3277_v2  ;;  %v875_v13 = vshll.u32 %v9239_v3, 16 }
  0x45   : > { %v814_v18 = vsel %vm642_vm1, %v809_v9, %v813_v10  ;;  %v830_v37 = vsel %vm642_vm1, %v825_v26, %v829_v27  ;;  %v833_v44 = vor.u32 %v831_v35, %v829_v27  ;;  %v9240_v9 = vld [vmem:[%s9790_s28 + $0xf8] sm:$0xff]   ;;  %v879_v26 = vshrl.u32 %v9239_v3, 16  ;;  %v9244_v27 = vld [vmem:[%s9790_s28 + $0x108] sm:$0xff]  }
  0x46   : > { %v877_v20 = vrot.slane %v875_v13, 1  ;;  %v3283_v35 = vrot.slane %v9242_v23, 1  ;;  %v3285_v36 = vrot.slane %v9244_v27, 1  ;;  %v9257_v13 = vld [vmem:[%s9790_s28 + $0x128] sm:$0xff]  }
  0x47   : > { %8496 = vmatmul.mubr.msk.bf16.gmra.mrb[24].mxu0 %vm1215_vm0, %v3252_v25  ;;  %v3267_v25 = vrot.slane %v9226_v16, 1  ;;  %v939_v23 = vshll.u32 %v9257_v13, 16 }
  0x48   : > { %8499 = vmatprep.mubr.msk.bf16.mxu0 %vm1215_vm0, %v3254_v29  ;;  %v9231_v29 = vld [vmem:[%s9790_s28 + $0xc8] sm:$0xff]  }
  0x49   : > { %v3268_v34 = vsel %vm3223_vm2, %v3265_v8, %v3267_v25  ;;  %v843_v40 = vshll.u32 %v9231_v29, 16  ;;  %v847_v50 = vshrl.u32 %v9231_v29, 16  ;;  %v863_v8 = vshrl.u32 %v9235_v49, 16 }
  0x4a   : > { %8208 = vmatmul.mubr.msk.bf16.gmra.mrb[24].mxu1 %vm1215_vm0, %v758_v24  ;;  %v817_v24 = vor.u32 %v815_v12, %v813_v10 }
  0x4b   : > { %8211 = vmatprep.mubr.msk.bf16.mxu1 %vm1215_vm0, %v766_v28  ;;  %v3269_v28 = vrot.slane %v9228_v21, 1  ;;  %v845_v48 = vrot.slane %v843_v40, 1  ;;  %v9243_v21 = vld [vmem:[%s9790_s28 + $0xf8] sm:$0xff]  }
  0x4c   : > { %v822_v33 = vsel %vm642_vm1, %v817_v24, %v821_v22  ;;  %v891_v31 = vshll.u32 %v9243_v21, 16 }
  0x4d   : > { %v3270_v38 = vsel %vm3223_vm2, %v3267_v25, %v3269_v28  ;;  %v3272_v53 = vsel %vm3223_vm2, %v3269_v28, %v3271_v45  ;;  %v849_v62 = vor.u32 %v847_v50, %v845_v48  ;;  %v3280_v25 = vsel %vm3223_vm2, %v3277_v2, %v3279_v17 }
  0x4f   : > { %8500 = vmatmul.mubr.msk.bf16.gmra.mrb[28].mxu0 %vm1215_vm0, %v3256_v43  ;;  %v9233_v43 = vld [vmem:[%s9790_s28 + $0xd0] sm:$0xff]  }
  0x50   : > { %8503 = vmatprep.mubr.msk.bf16.mxu0 %vm1215_vm0, %v3258_v47  ;;  %v851_v51 = vshll.u32 %v9233_v43, 16  ;;  %v855_v55 = vshrl.u32 %v9233_v43, 16 }
  0x52   : > { %8212 = vmatmul.mubr.msk.bf16.gmra.mrb[28].mxu1 %vm1215_vm0, %v774_v42  ;;  %v837_v42 = vrot.slane %v835_v30, 1 }
  0x53   : > { %8215 = vmatprep.mubr.msk.bf16.mxu1 %vm1215_vm0, %v782_v46  ;;  %v3273_v46 = vrot.slane %v9232_v32, 1 }
  0x54   : > { %v841_v47 = vor.u32 %v839_v39, %v837_v42  ;;  %v838_v52 = vsel %vm642_vm1, %v833_v44, %v837_v42  ;;  %v9247_v39 = vld [vmem:[%s9790_s28 + $0x108] sm:$0xff]   ;;  %v895_v44 = vshrl.u32 %v9243_v21, 16 }
  0x55   : > { %v3274_v57 = vsel %vm3223_vm2, %v3271_v45, %v3273_v46  ;;  %v3276_v7 = vsel %vm3223_vm2, %v3273_v46, %v3275_v63  ;;  %v9248_v45 = vld [vmem:[%s9790_s28 + $0x118] sm:$0xff]   ;;  %v907_v49 = vshll.u32 %v9247_v39, 16 }
  0x56   : > { %v846_v56 = vsel %vm642_vm1, %v841_v47, %v845_v48  ;;  %v3286_v47 = vsel %vm3223_vm2, %v3283_v35, %v3285_v36  ;;  %v3289_v54 = vrot.slane %v9248_v45, 1 }
  0x57   : > { %8504 = vmatmul.mubr.msk.bf16.gmra.mrb[32].mxu0 %vm1215_vm0, %v3260_v61  ;;  %v853_v61 = vrot.slane %v851_v51, 1  ;;  %v9249_v51 = vld [vmem:[%s9790_s28 + $0x110] sm:$0xff]  }
  0x58   : > { %8507 = vmatprep.mubr.msk.bf16.mxu0 %vm1215_vm0, %v3262_v1  ;;  %v861_v1 = vrot.slane %v859_v58, 1  ;;  %v911_v58 = vshrl.u32 %v9247_v39, 16  ;;  %v915_v59 = vshll.u32 %v9249_v51, 16 }
  0x59   : > { %v854_v6 = vsel %vm642_vm1, %v849_v62, %v853_v61 }
  0x5a   : > { %8216 = vmatmul.mubr.msk.bf16.gmra.mrb[32].mxu1 %vm1215_vm0, %v790_v60  ;;  %v9237_v60 = vld [vmem:[%s9790_s28 + $0xe0] sm:$0xff]   ;;  %v865_v16 = vor.u32 %v863_v8, %v861_v1 }
  0x5b   : > { %8219 = vmatprep.mubr.msk.bf16.mxu1 %vm1215_vm0, %v798_v0  ;;  %v857_v0 = vor.u32 %v855_v55, %v853_v61  ;;  %v867_v4 = vshll.u32 %v9237_v60, 16  ;;  %v871_v12 = vshrl.u32 %v9237_v60, 16  ;;  %v9250_v60 = vld [vmem:[%s9790_s28 + $0x120] sm:$0xff]   ;;  %v9252_v61 = vld [vmem:[%s9790_s28 + $0x128] sm:$0xff]  }
  0x5d   : > { %v862_v10 = vsel %vm642_vm1, %v857_v0, %v861_v1  ;;  %v919_v0 = vshrl.u32 %v9249_v51, 16  ;;  %v9289_v1 = vld [vmem:[%s10648_s1 + $0x18] sm:$0xff]   ;;  %v9264_v51 = vld [vmem:[%s9790_s28 + $0x150] sm:$0xff]  }
  0x5e   : > { %8325 = vmatprep.subr.bf16.mxu1 %v9289_v1 }
  0x5f   : > { %8508 = vmatmul.mubr.msk.bf16.gmra.mrb[36].mxu0 %vm1215_vm0, %v3264_v15  ;;  %v9241_v15 = vld [vmem:[%s9790_s28 + $0xf0] sm:$0xff]   ;;  %8326 = vmatpush3.bf16.msra.mxu1 %v9289_v1 }
  0x60   : > { %8511 = vmatprep.mubr.msk.bf16.mxu0 %vm1215_vm0, %v3266_v19  ;;  %v883_v22 = vshll.u32 %v9241_v15, 16  ;;  %v887_v30 = vshrl.u32 %v9241_v15, 16  ;;  %v9255_v15 = vld [vmem:[%s9790_s28 + $0x130] sm:$0xff]  }
  0x61   : > { %v3295_v27 = vrot.slane %v9255_v15, 1  ;;  %v9271_v15 = vld [vmem:[%s9790_s28 + $0x160] sm:$0xff]  }
  0x62   : > { %8220 = vmatmul.mubr.msk.bf16.gmra.mrb[36].mxu1 %vm1215_vm0, %v806_v14  ;;  %v869_v14 = vrot.slane %v867_v4, 1  ;;  %v885_v32 = vrot.slane %v883_v22, 1 }
  0x63   : > { %8223 = vmatprep.mubr.msk.bf16.mxu1 %vm1215_vm0, %v814_v18  ;;  %v3281_v18 = vrot.slane %v9240_v9, 1  ;;  %v3291_v9 = vrot.slane %v9250_v60, 1 }
  0x64   : > { %v873_v19 = vor.u32 %v871_v12, %v869_v14  ;;  %v870_v24 = vsel %vm642_vm1, %v865_v16, %v869_v14 }
  0x65   : > { %v3282_v29 = vsel %vm3223_vm2, %v3279_v17, %v3281_v18  ;;  %v3284_v43 = vsel %vm3223_vm2, %v3281_v18, %v3283_v35  ;;  %v3292_v17 = vsel %vm3223_vm2, %v3289_v54, %v3291_v9 }
  0x66   : > { %v878_v28 = vsel %vm642_vm1, %v873_v19, %v877_v20  ;;  %v9258_v19 = vld [vmem:[%s9790_s28 + $0x138] sm:$0xff]  }
  0x67   : > { %8512 = vmatmul.mubr.msk.bf16.gmra.mrb[40].mxu0 %vm1215_vm0, %v3268_v34  ;;  %v881_v34 = vor.u32 %v879_v26, %v877_v20 }
  0x68   : > { %8515 = vmatprep.mubr.msk.bf16.mxu0 %vm1215_vm0, %v3270_v38  ;;  %v893_v38 = vrot.slane %v891_v31, 1  ;;  %v9261_v31 = vld [vmem:[%s9790_s28 + $0x138] sm:$0xff]  }
  0x69   : > { %v886_v42 = vsel %vm642_vm1, %v881_v34, %v885_v32 }
  0x6a   : > { %8224 = vmatmul.mubr.msk.bf16.gmra.mrb[40].mxu1 %vm1215_vm0, %v822_v33  ;;  %v9245_v33 = vld [vmem:[%s9790_s28 + $0x100] sm:$0xff]  }
  0x6b   : > { %8227 = vmatprep.mubr.msk.bf16.mxu1 %vm1215_vm0, %v830_v37  ;;  %v889_v37 = vor.u32 %v887_v30, %v885_v32  ;;  %v899_v40 = vshll.u32 %v9245_v33, 16  ;;  %v903_v48 = vshrl.u32 %v9245_v33, 16  ;;  %v941_v30 = vrot.slane %v939_v23, 1  ;;  %v9260_v33 = vld [vmem:[%s9790_s28 + $0x140] sm:$0xff]  }
  0x6c   : > { %v3299_v45 = vrot.slane %v9260_v33, 1  ;;  %v9275_v33 = vld [vmem:[%s9790_s28 + $0x170] sm:$0xff]  }
  0x6d   : > { %v894_v46 = vsel %vm642_vm1, %v889_v37, %v893_v38  ;;  %v901_v50 = vrot.slane %v899_v40, 1  ;;  %v9262_v37 = vld [vmem:[%s9790_s28 + $0x148] sm:$0xff]  }
  0x6f   : > { %8516 = vmatmul.mubr.msk.bf16.gmra.mrb[44].mxu0 %vm1215_vm0, %v3272_v53  ;;  %v3287_v53 = vrot.slane %v9246_v41, 1  ;;  %v905_v55 = vor.u32 %v903_v48, %v901_v50  ;;  %v955_v41 = vshll.u32 %v9261_v31, 16 }
  0x70   : > { %8519 = vmatprep.mubr.msk.bf16.mxu0 %vm1215_vm0, %v3274_v57  ;;  %v9251_v57 = vld [vmem:[%s9790_s28 + $0x118] sm:$0xff]  }
  0x71   : > { %v3288_v63 = vsel %vm3223_vm2, %v3285_v36, %v3287_v53  ;;  %v3290_v3 = vsel %vm3223_vm2, %v3287_v53, %v3289_v54  ;;  %v923_v4 = vshll.u32 %v9251_v57, 16  ;;  %v927_v18 = vshrl.u32 %v9251_v57, 16 }
  0x72   : > { %8228 = vmatmul.mubr.msk.bf16.gmra.mrb[44].mxu1 %vm1215_vm0, %v838_v52  ;;  %v897_v52 = vor.u32 %v895_v44, %v893_v38  ;;  %v943_v36 = vshrl.u32 %v9257_v13, 16  ;;  %v957_v48 = vrot.slane %v955_v41, 1  ;;  %v959_v54 = vshrl.u32 %v9261_v31, 16  ;;  %v9270_v13 = vld [vmem:[%s9790_s28 + $0x168] sm:$0xff]   ;;  %v9274_v31 = vld [vmem:[%s9790_s28 + $0x178] sm:$0xff]  }
  0x73   : > { %8231 = vmatprep.mubr.msk.bf16.mxu1 %vm1215_vm0, %v846_v56  ;;  %v909_v56 = vrot.slane %v907_v49, 1  ;;  %v925_v12 = vrot.slane %v923_v4, 1  ;;  %v9265_v49 = vld [vmem:[%s9790_s28 + $0x148] sm:$0xff]  }
  0x74   : > { %v902_v62 = vsel %vm642_vm1, %v897_v52, %v901_v50  ;;  %v945_v44 = vor.u32 %v943_v36, %v941_v30  ;;  %v975_v4 = vshrl.u32 %v9265_v49, 16 }
  0x75   : > { %v910_v2 = vsel %vm642_vm1, %v905_v55, %v909_v56  ;;  %v913_v8 = vor.u32 %v911_v58, %v909_v56  ;;  %v929_v26 = vor.u32 %v927_v18, %v925_v12  ;;  %v9266_v55 = vld [vmem:[%s9790_s28 + $0x158] sm:$0xff]  }
  0x77   : > { %8520 = vmatmul.mubr.msk.bf16.gmra.mrb[48].mxu0 %vm1215_vm0, %v3276_v7  ;;  %v9253_v7 = vld [vmem:[%s9790_s28 + $0x120] sm:$0xff]  }
  0x78   : > { %8523 = vmatprep.mubr.msk.bf16.mxu0 %vm1215_vm0, %v3278_v11  ;;  %v931_v14 = vshll.u32 %v9253_v7, 16  ;;  %v935_v22 = vshrl.u32 %v9253_v7, 16 }
  0x7a   : > { %8232 = vmatmul.mubr.msk.bf16.gmra.mrb[48].mxu1 %vm1215_vm0, %v854_v6  ;;  %v917_v6 = vrot.slane %v915_v59, 1  ;;  %v971_v59 = vshll.u32 %v9265_v49, 16  ;;  %v9278_v49 = vld [vmem:[%s9790_s28 + $0x188] sm:$0xff]  }
  0x7b   : > { %8235 = vmatprep.mubr.msk.bf16.mxu1 %vm1215_vm0, %v862_v10  ;;  %v3293_v10 = vrot.slane %v9252_v61, 1  ;;  %v9267_v61 = vld [vmem:[%s9790_s28 + $0x150] sm:$0xff]  }
  0x7c   : > { %v921_v11 = vor.u32 %v919_v0, %v917_v6  ;;  %v918_v16 = vsel %vm642_vm1, %v913_v8, %v917_v6  ;;  %v3305_v0 = vrot.slane %v9266_v55, 1  ;;  %v979_v5 = vshll.u32 %v9267_v61, 16  ;;  %v9268_v8 = vld [vmem:[%s9790_s28 + $0x160] sm:$0xff]  }
  0x7d   : > { %v3294_v21 = vsel %vm3223_vm2, %v3291_v9, %v3293_v10  ;;  %v3296_v35 = vsel %vm3223_vm2, %v3293_v10, %v3295_v27  ;;  %v983_v9 = vshrl.u32 %v9267_v61, 16 }
  0x7e   : > { %v926_v20 = vsel %vm642_vm1, %v921_v11, %v925_v12 }
  0x7f   : > { %8524 = vmatmul.mubr.msk.bf16.gmra.mrb[52].mxu0 %vm1215_vm0, %v3280_v25  ;;  %v9259_v25 = vld [vmem:[%s9790_s28 + $0x130] sm:$0xff]  }
  0x80   : > { %8527 = vmatprep.mubr.msk.bf16.mxu0 %vm1215_vm0, %v3282_v29  ;;  %v947_v32 = vshll.u32 %v9259_v25, 16  ;;  %v951_v40 = vshrl.u32 %v9259_v25, 16 }
  0x82   : > { %8236 = vmatmul.mubr.msk.bf16.gmra.mrb[52].mxu1 %vm1215_vm0, %v870_v24  ;;  %v933_v24 = vrot.slane %v931_v14, 1  ;;  %v981_v14 = vrot.slane %v979_v5, 1  ;;  %v9283_v5 = vld [vmem:[%s9790_s28 + $0x190] sm:$0xff]  }
  0x83   : > { %8239 = vmatprep.mubr.msk.bf16.mxu1 %vm1215_vm0, %v878_v28  ;;  %v3297_v28 = vrot.slane %v9258_v19, 1 }
  0x84   : > { %v937_v29 = vor.u32 %v935_v22, %v933_v24  ;;  %v934_v34 = vsel %vm642_vm1, %v929_v26, %v933_v24  ;;  %v985_v18 = vor.u32 %v983_v9, %v981_v14  ;;  %v995_v22 = vshll.u32 %v9271_v15, 16  ;;  %v9272_v26 = vld [vmem:[%s9790_s28 + $0x170] sm:$0xff]  }
  0x85   : > { %v3298_v39 = vsel %vm3223_vm2, %v3295_v27, %v3297_v28  ;;  %v3300_v53 = vsel %vm3223_vm2, %v3297_v28, %v3299_v45 }
  0x86   : > { %v942_v38 = vsel %vm642_vm1, %v937_v29, %v941_v30  ;;  %v999_v29 = vshrl.u32 %v9271_v15, 16 }
  0x87   : > { %8528 = vmatmul.mubr.msk.bf16.gmra.mrb[56].mxu0 %vm1215_vm0, %v3284_v43  ;;  %v9263_v43 = vld [vmem:[%s9790_s28 + $0x140] sm:$0xff]  }
  0x88   : > { %8531 = vmatprep.mubr.msk.bf16.mxu0 %vm1215_vm0, %v3286_v47  ;;  %v963_v50 = vshll.u32 %v9263_v43, 16  ;;  %v967_v58 = vshrl.u32 %v9263_v43, 16 }
  0x8a   : > { %8240 = vmatmul.mubr.msk.bf16.gmra.mrb[56].mxu1 %vm1215_vm0, %v886_v42  ;;  %v949_v42 = vrot.slane %v947_v32, 1  ;;  %v965_v60 = vrot.slane %v963_v50, 1  ;;  %v997_v32 = vrot.slane %v995_v22, 1 }
  0x8b   : > { %8243 = vmatprep.mubr.msk.bf16.mxu1 %vm1215_vm0, %v894_v46  ;;  %v3301_v46 = vrot.slane %v9262_v37, 1 }
  0x8c   : > { %v953_v47 = vor.u32 %v951_v40, %v949_v42  ;;  %v950_v52 = vsel %vm642_vm1, %v945_v44, %v949_v42  ;;  %v969_v1 = vor.u32 %v967_v58, %v965_v60  ;;  %v1001_v36 = vor.u32 %v999_v29, %v997_v32  ;;  %v9276_v44 = vld [vmem:[%s9790_s28 + $0x180] sm:$0xff]   ;;  %v9291_v29 = vld [vmem:[%s9790_s28 + $0x1a8] sm:$0xff]  }
  0x8d   : > { %v3302_v57 = vsel %vm3223_vm2, %v3299_v45, %v3301_v46  ;;  %v1011_v40 = vshll.u32 %v9275_v33, 16 }
  0x8e   : > { %v958_v56 = vsel %vm642_vm1, %v953_v47, %v957_v48  ;;  %v1015_v47 = vshrl.u32 %v9275_v33, 16 }
  0x8f   : > { %8532 = vmatmul.mubr.msk.bf16.gmra.mrb[60].mxu0 %vm1215_vm0, %v3288_v63  ;;  %v3303_v63 = vrot.slane %v9264_v51, 1  ;;  %v1013_v50 = vrot.slane %v1011_v40, 1  ;;  %v9279_v51 = vld [vmem:[%s9790_s28 + $0x180] sm:$0xff]  }
  0x90   : > { %8535 = vmatprep.mubr.msk.bf16.mxu0 %vm1215_vm0, %v3290_v3  ;;  %v9269_v3 = vld [vmem:[%s9790_s28 + $0x158] sm:$0xff]   ;;  %v1027_v58 = vshll.u32 %v9279_v51, 16 }
  0x91   : > { %v3304_v7 = vsel %vm3223_vm2, %v3301_v46, %v3303_v63  ;;  %v3306_v11 = vsel %vm3223_vm2, %v3303_v63, %v3305_v0  ;;  %v987_v12 = vshll.u32 %v9269_v3, 16  ;;  %v991_v25 = vshrl.u32 %v9269_v3, 16  ;;  %v9282_v3 = vld [vmem:[%s9790_s28 + $0x198] sm:$0xff]  }
  0x92   : > { %8244 = vmatmul.mubr.msk.bf16.gmra.mrb[60].mxu1 %vm1215_vm0, %v902_v62  ;;  %v961_v62 = vor.u32 %v959_v54, %v957_v48  ;;  %v1017_v54 = vor.u32 %v1015_v47, %v1013_v50  ;;  %v9295_v47 = vld [vmem:[%s9790_s28 + $0x1b8] sm:$0xff]  }
  0x93   : > { %8247 = vmatprep.mubr.msk.bf16.mxu1 %vm1215_vm0, %v910_v2  ;;  %v973_v2 = vrot.slane %v971_v59, 1  ;;  %v989_v19 = vrot.slane %v987_v12, 1  ;;  %v1043_v12 = vshll.u32 %v9283_v5, 16 }
  0x94   : > { %v966_v6 = vsel %vm642_vm1, %v961_v62, %v965_v60  ;;  %v9280_v62 = vld [vmem:[%s9790_s28 + $0x190] sm:$0xff]  }
  0x95   : > { %v974_v10 = vsel %vm642_vm1, %v969_v1, %v973_v2  ;;  %v990_v27 = vsel %vm642_vm1, %v985_v18, %v989_v19  ;;  %v1031_v1 = vshrl.u32 %v9279_v51, 16  ;;  %v1045_v22 = vrot.slane %v1043_v12, 1 }
  0x96   : > { %v1071_v51 = vshrl.u32 %v9291_v29, 16 }
  0x97   : > { %8536 = vmatmul.mubr.msk.bf16.gmra.mrb[64].mxu0 %vm1215_vm0, %v3292_v17  ;;  %v3307_v17 = vrot.slane %v9268_v8, 1 }
  0x98   : > { %8539 = vmatprep.mubr.msk.bf16.mxu0 %vm1215_vm0, %v3294_v21  ;;  %v9273_v21 = vld [vmem:[%s9790_s28 + $0x168] sm:$0xff]  }
  0x99   : > { %v3308_v24 = vsel %vm3223_vm2, %v3305_v0, %v3307_v17  ;;  %v1003_v30 = vshll.u32 %v9273_v21, 16  ;;  %v1007_v43 = vshrl.u32 %v9273_v21, 16  ;;  %v9286_v21 = vld [vmem:[%s9790_s28 + $0x1a8] sm:$0xff]  }
  0x9a   : > { %8248 = vmatmul.mubr.msk.bf16.gmra.mrb[64].mxu1 %vm1215_vm0, %v918_v16  ;;  %v977_v16 = vor.u32 %v975_v4, %v973_v2  ;;  %v1029_v4 = vrot.slane %v1027_v58, 1 }
  0x9b   : > { %8251 = vmatprep.mubr.msk.bf16.mxu1 %vm1215_vm0, %v926_v20  ;;  %v3309_v20 = vrot.slane %v9270_v13, 1  ;;  %v1005_v37 = vrot.slane %v1003_v30, 1 }
  0x9c   : > { %v982_v23 = vsel %vm642_vm1, %v977_v16, %v981_v14  ;;  %v1033_v8 = vor.u32 %v1031_v1, %v1029_v4  ;;  %v9284_v16 = vld [vmem:[%s9790_s28 + $0x1a0] sm:$0xff]   ;;  %v9299_v1 = vld [vmem:[%s9790_s28 + $0x1c8] sm:$0xff]  }
  0x9d   : > { %v3310_v28 = vsel %vm3223_vm2, %v3307_v17, %v3309_v20  ;;  %v1006_v45 = vsel %vm642_vm1, %v1001_v36, %v1005_v37 }
  0x9f   : > { %8540 = vmatmul.mubr.msk.bf16.gmra.mrb[68].mxu0 %vm1215_vm0, %v3296_v35  ;;  %v3311_v35 = vrot.slane %v9272_v26, 1 }
  0xa0   : > { %8543 = vmatprep.mubr.msk.bf16.mxu0 %vm1215_vm0, %v3298_v39  ;;  %v9277_v39 = vld [vmem:[%s9790_s28 + $0x178] sm:$0xff]  }
  0xa1   : > { %v3312_v42 = vsel %vm3223_vm2, %v3309_v20, %v3311_v35  ;;  %v1019_v48 = vshll.u32 %v9277_v39, 16  ;;  %v1023_v61 = vshrl.u32 %v9277_v39, 16  ;;  %v9292_v39 = vld [vmem:[%s9790_s28 + $0x1b8] sm:$0xff]  }
  0xa2   : > { %8252 = vmatmul.mubr.msk.bf16.gmra.mrb[68].mxu1 %vm1215_vm0, %v934_v34  ;;  %v993_v34 = vor.u32 %v991_v25, %v989_v19  ;;  %v1047_v19 = vshrl.u32 %v9283_v5, 16  ;;  %v3323_v25 = vrot.slane %v9284_v16, 1  ;;  %v1087_v5 = vshrl.u32 %v9295_v47, 16 }
  0xa3   : > { %8255 = vmatprep.mubr.msk.bf16.mxu1 %vm1215_vm0, %v942_v38  ;;  %v3313_v38 = vrot.slane %v9274_v31, 1  ;;  %v1021_v55 = vrot.slane %v1019_v48, 1 }
  0xa4   : > { %v998_v41 = vsel %vm642_vm1, %v993_v34, %v997_v32  ;;  %v1049_v26 = vor.u32 %v1047_v19, %v1045_v22  ;;  %v9288_v34 = vld [vmem:[%s9790_s28 + $0x1b0] sm:$0xff]   ;;  %v9303_v19 = vld [vmem:[%s9790_s28 + $0x1d8] sm:$0xff]  }
  0xa5   : > { %v3314_v46 = vsel %vm3223_vm2, %v3311_v35, %v3313_v38  ;;  %v1022_v63 = vsel %vm642_vm1, %v1017_v54, %v1021_v55 }
  0xa7   : > { %8544 = vmatmul.mubr.msk.bf16.gmra.mrb[72].mxu0 %vm1215_vm0, %v3300_v53  ;;  %v3315_v53 = vrot.slane %v9276_v44, 1 }
  0xa8   : > { %8547 = vmatprep.mubr.msk.bf16.mxu0 %vm1215_vm0, %v3302_v57  ;;  %v9281_v57 = vld [vmem:[%s9790_s28 + $0x188] sm:$0xff]  }
  0xa9   : > { %v3316_v60 = vsel %vm3223_vm2, %v3313_v38, %v3315_v53  ;;  %v1035_v2 = vshll.u32 %v9281_v57, 16  ;;  %v1039_v15 = vshrl.u32 %v9281_v57, 16  ;;  %v1067_v38 = vshll.u32 %v9291_v29, 16  ;;  %v9296_v57 = vld [vmem:[%s9790_s28 + $0x1c8] sm:$0xff]  }
  0xaa   : > { %8256 = vmatmul.mubr.msk.bf16.gmra.mrb[72].mxu1 %vm1215_vm0, %v950_v52  ;;  %v1009_v52 = vor.u32 %v1007_v43, %v1005_v37  ;;  %v3327_v43 = vrot.slane %v9288_v34, 1  ;;  %v9304_v29 = vld [vmem:[%s9790_s28 + $0x1e8] sm:$0xff]  }
  0xab   : > { %8259 = vmatprep.mubr.msk.bf16.mxu1 %vm1215_vm0, %v958_v56  ;;  %v3317_v56 = vrot.slane %v9278_v49, 1  ;;  %v1037_v9 = vrot.slane %v1035_v2, 1 }
  0xac   : > { %v1014_v59 = vsel %vm642_vm1, %v1009_v52, %v1013_v50  ;;  %v9294_v52 = vld [vmem:[%s9790_s28 + $0x1c0] sm:$0xff]  }
  0xad   : > { %v3318_v0 = vsel %vm3223_vm2, %v3315_v53, %v3317_v56  ;;  %v1038_v17 = vsel %vm642_vm1, %v1033_v8, %v1037_v9 }
  0xaf   : > { %8548 = vmatmul.mubr.msk.bf16.gmra.mrb[76].mxu0 %vm1215_vm0, %v3304_v7  ;;  %v3319_v7 = vrot.slane %v9280_v62, 1 }
  0xb0   : > { %8551 = vmatprep.mubr.msk.bf16.mxu0 %vm1215_vm0, %v3306_v11  ;;  %v9285_v11 = vld [vmem:[%s9790_s28 + $0x198] sm:$0xff]  }
  0xb1   : > { %v3320_v14 = vsel %vm3223_vm2, %v3317_v56, %v3319_v7  ;;  %v1051_v20 = vshll.u32 %v9285_v11, 16  ;;  %v1055_v33 = vshrl.u32 %v9285_v11, 16  ;;  %v1083_v56 = vshll.u32 %v9295_v47, 16  ;;  %v9300_v11 = vld [vmem:[%s9790_s28 + $0x1d8] sm:$0xff]  }
  0xb2   : > { %8260 = vmatmul.mubr.msk.bf16.gmra.mrb[76].mxu1 %vm1215_vm0, %v966_v6  ;;  %v1025_v6 = vor.u32 %v1023_v61, %v1021_v55  ;;  %v3331_v61 = vrot.slane %v9294_v52, 1  ;;  %v9308_v47 = vld [vmem:[%s9790_s28 + $0x1f8] sm:$0xff]  }
  0xb3   : > { %8263 = vmatprep.mubr.msk.bf16.mxu1 %vm1215_vm0, %v974_v10  ;;  %v3321_v10 = vrot.slane %v9282_v3, 1 }
  0xb4   : > { %v1030_v13 = vsel %vm642_vm1, %v1025_v6, %v1029_v4  ;;  %v9298_v6 = vld [vmem:[%s9790_s28 + $0x1d0] sm:$0xff]  }
  0xb5   : > { %v3322_v18 = vsel %vm3223_vm2, %v3319_v7, %v3321_v10  ;;  %v3324_v32 = vsel %vm3223_vm2, %v3321_v10, %v3323_v25  ;;  %v1099_v10 = vshll.u32 %v9299_v1, 16 }
  0xb7   : > { %8552 = vmatmul.mubr.msk.bf16.gmra.mrb[80].mxu0 %vm1215_vm0, %v3308_v24  ;;  %v1041_v24 = vor.u32 %v1039_v15, %v1037_v9  ;;  %v3335_v15 = vrot.slane %v9298_v6, 1 }
  0xb8   : > { %8555 = vmatprep.mubr.msk.bf16.mxu0 %vm1215_vm0, %v3310_v28  ;;  %v3325_v28 = vrot.slane %v9286_v21, 1 }
  0xb9   : > { %v1046_v31 = vsel %vm642_vm1, %v1041_v24, %v1045_v22  ;;  %v9302_v24 = vld [vmem:[%s9790_s28 + $0x1e0] sm:$0xff]  }
  0xba   : > { %8264 = vmatmul.mubr.msk.bf16.gmra.mrb[80].mxu1 %vm1215_vm0, %v982_v23  ;;  %v9287_v23 = vld [vmem:[%s9790_s28 + $0x1a0] sm:$0xff]   ;;  %v3326_v36 = vsel %vm3223_vm2, %v3323_v25, %v3325_v28  ;;  %v3328_v50 = vsel %vm3223_vm2, %v3325_v28, %v3327_v43  ;;  %v1115_v28 = vshll.u32 %v9303_v19, 16 }
  0xbb   : > { %8267 = vmatprep.mubr.msk.bf16.mxu1 %vm1215_vm0, %v990_v27  ;;  %v1053_v27 = vrot.slane %v1051_v20, 1  ;;  %v1059_v30 = vshll.u32 %v9287_v23, 16  ;;  %v1063_v37 = vshrl.u32 %v9287_v23, 16  ;;  %v1103_v23 = vshrl.u32 %v9299_v1, 16  ;;  %v9312_v1 = vld [vmem:[%s9790_s28 + $0x208] sm:$0xff]  }
  0xbd   : > { %v1054_v35 = vsel %vm642_vm1, %v1049_v26, %v1053_v27  ;;  %v1061_v40 = vrot.slane %v1059_v30, 1 }
  0xbf   : > { %8556 = vmatmul.mubr.msk.bf16.gmra.mrb[84].mxu0 %vm1215_vm0, %v3312_v42  ;;  %v1057_v42 = vor.u32 %v1055_v33, %v1053_v27  ;;  %v1065_v44 = vor.u32 %v1063_v37, %v1061_v40  ;;  %v3339_v33 = vrot.slane %v9302_v24, 1  ;;  %v9307_v37 = vld [vmem:[%s9790_s28 + $0x1e8] sm:$0xff]  }
  0xc0   : > { %8559 = vmatprep.mubr.msk.bf16.mxu0 %vm1215_vm0, %v3314_v46  ;;  %v3329_v46 = vrot.slane %v9292_v39, 1 }
  0xc1   : > { %v1062_v49 = vsel %vm642_vm1, %v1057_v42, %v1061_v40  ;;  %v9306_v42 = vld [vmem:[%s9790_s28 + $0x1f0] sm:$0xff]  }
  0xc2   : > { %8268 = vmatmul.mubr.msk.bf16.gmra.mrb[84].mxu1 %vm1215_vm0, %v998_v41  ;;  %v9293_v41 = vld [vmem:[%s9790_s28 + $0x1b0] sm:$0xff]   ;;  %v3330_v54 = vsel %vm3223_vm2, %v3327_v43, %v3329_v46  ;;  %v3332_v4 = vsel %vm3223_vm2, %v3329_v46, %v3331_v61  ;;  %v1131_v46 = vshll.u32 %v9307_v37, 16 }
  0xc3   : > { %8271 = vmatprep.mubr.msk.bf16.mxu1 %vm1215_vm0, %v1006_v45  ;;  %v1069_v45 = vrot.slane %v1067_v38, 1  ;;  %v1075_v48 = vshll.u32 %v9293_v41, 16  ;;  %v1079_v55 = vshrl.u32 %v9293_v41, 16  ;;  %v1119_v41 = vshrl.u32 %v9303_v19, 16  ;;  %v9316_v19 = vld [vmem:[%s9790_s28 + $0x218] sm:$0xff]  }
  0xc5   : > { %v1070_v53 = vsel %vm642_vm1, %v1065_v44, %v1069_v45  ;;  %v1077_v58 = vrot.slane %v1075_v48, 1 }
  0xc7   : > { %8560 = vmatmul.mubr.msk.bf16.gmra.mrb[88].mxu0 %vm1215_vm0, %v3316_v60  ;;  %v1073_v60 = vor.u32 %v1071_v51, %v1069_v45  ;;  %v1081_v62 = vor.u32 %v1079_v55, %v1077_v58  ;;  %v3343_v51 = vrot.slane %v9306_v42, 1  ;;  %v9311_v55 = vld [vmem:[%s9790_s28 + $0x1f8] sm:$0xff]  }
  0xc8   : > { %8563 = vmatprep.mubr.msk.bf16.mxu0 %vm1215_vm0, %v3318_v0  ;;  %v3333_v0 = vrot.slane %v9296_v57, 1 }
  0xc9   : > { %v1078_v3 = vsel %vm642_vm1, %v1073_v60, %v1077_v58  ;;  %v9310_v60 = vld [vmem:[%s9790_s28 + $0x200] sm:$0xff]  }
  0xca   : > { %8272 = vmatmul.mubr.msk.bf16.gmra.mrb[88].mxu1 %vm1215_vm0, %v1014_v59  ;;  %v9297_v59 = vld [vmem:[%s9790_s28 + $0x1c0] sm:$0xff]   ;;  %v3334_v8 = vsel %vm3223_vm2, %v3331_v61, %v3333_v0  ;;  %v3336_v22 = vsel %vm3223_vm2, %v3333_v0, %v3335_v15  ;;  %v1147_v0 = vshll.u32 %v9311_v55, 16 }
  0xcb   : > { %8275 = vmatprep.mubr.msk.bf16.mxu1 %vm1215_vm0, %v1022_v63  ;;  %v1085_v63 = vrot.slane %v1083_v56, 1  ;;  %v1091_v2 = vshll.u32 %v9297_v59, 16  ;;  %v1095_v9 = vshrl.u32 %v9297_v59, 16  ;;  %v1135_v59 = vshrl.u32 %v9307_v37, 16 }
  0xcd   : > { %v1086_v7 = vsel %vm642_vm1, %v1081_v62, %v1085_v63  ;;  %v1093_v12 = vrot.slane %v1091_v2, 1 }
  0xcf   : > { %8564 = vmatmul.mubr.msk.bf16.gmra.mrb[92].mxu0 %vm1215_vm0, %v3320_v14  ;;  %v1089_v14 = vor.u32 %v1087_v5, %v1085_v63  ;;  %v1097_v16 = vor.u32 %v1095_v9, %v1093_v12  ;;  %v3347_v5 = vrot.slane %v9310_v60, 1  ;;  %v9315_v9 = vld [vmem:[%s9790_s28 + $0x208] sm:$0xff]  }
  0xd0   : > { %8567 = vmatprep.mubr.msk.bf16.mxu0 %vm1215_vm0, %v3322_v18  ;;  %v3337_v18 = vrot.slane %v9300_v11, 1 }
  0xd1   : > { %v1094_v21 = vsel %vm642_vm1, %v1089_v14, %v1093_v12  ;;  %v9314_v14 = vld [vmem:[%s9790_s28 + $0x210] sm:$0xff]  }
  0xd2   : > { %8276 = vmatmul.mubr.msk.bf16.gmra.mrb[92].mxu1 %vm1215_vm0, %v1030_v13  ;;  %v9301_v13 = vld [vmem:[%s9790_s28 + $0x1d0] sm:$0xff]   ;;  %v3338_v26 = vsel %vm3223_vm2, %v3335_v15, %v3337_v18  ;;  %v3340_v40 = vsel %vm3223_vm2, %v3337_v18, %v3339_v33  ;;  %v1163_v18 = vshll.u32 %v9315_v9, 16 }
  0xd3   : > { %8279 = vmatprep.mubr.msk.bf16.mxu1 %vm1215_vm0, %v1038_v17  ;;  %v1101_v17 = vrot.slane %v1099_v10, 1  ;;  %v1107_v20 = vshll.u32 %v9301_v13, 16  ;;  %v1111_v27 = vshrl.u32 %v9301_v13, 16  ;;  %v1151_v13 = vshrl.u32 %v9311_v55, 16 }
  0xd5   : > { %v1102_v25 = vsel %vm642_vm1, %v1097_v16, %v1101_v17  ;;  %v1109_v30 = vrot.slane %v1107_v20, 1  ;;  %v9317_v20 = vld [vmem:[%s9790_s28 + $0x210] sm:$0xff]  }
  0xd7   : > { %8568 = vmatmul.mubr.msk.bf16.gmra.mrb[96].mxu0 %vm1215_vm0, %v3324_v32  ;;  %v1105_v32 = vor.u32 %v1103_v23, %v1101_v17  ;;  %v1113_v34 = vor.u32 %v1111_v27, %v1109_v30  ;;  %v3351_v23 = vrot.slane %v9314_v14, 1  ;;  %v9319_v27 = vld [vmem:[%s9790_s28 + $0x218] sm:$0xff]  }
  0xd8   : > { %8571 = vmatprep.mubr.msk.bf16.mxu0 %vm1215_vm0, %v3326_v36  ;;  %v3341_v36 = vrot.slane %v9304_v29, 1  ;;  %v1167_v29 = vshrl.u32 %v9315_v9, 16  ;;  %v1179_v37 = vshll.u32 %v9319_v27, 16 }
  0xd9   : > { %v1110_v39 = vsel %vm642_vm1, %v1105_v32, %v1109_v30  ;;  %v9318_v32 = vld [vmem:[%s9790_s28 + $0x220] sm:$0xff]  }
  0xda   : > { %8280 = vmatmul.mubr.msk.bf16.gmra.mrb[96].mxu1 %vm1215_vm0, %v1046_v31  ;;  %v9305_v31 = vld [vmem:[%s9790_s28 + $0x1e0] sm:$0xff]   ;;  %v3342_v44 = vsel %vm3223_vm2, %v3339_v33, %v3341_v36  ;;  %v3344_v58 = vsel %vm3223_vm2, %v3341_v36, %v3343_v51  ;;  %v1175_v33 = vshrl.u32 %v9317_v20, 16 }
  0xdb   : > { %8283 = vmatprep.mubr.msk.bf16.mxu1 %vm1215_vm0, %v1054_v35  ;;  %v1117_v35 = vrot.slane %v1115_v28, 1  ;;  %v1123_v38 = vshll.u32 %v9305_v31, 16  ;;  %v1127_v45 = vshrl.u32 %v9305_v31, 16  ;;  %v1171_v28 = vshll.u32 %v9317_v20, 16 }
  0xdd   : > { %v1118_v43 = vsel %vm642_vm1, %v1113_v34, %v1117_v35  ;;  %v1125_v48 = vrot.slane %v1123_v38, 1  ;;  %v9320_v34 = vld [vmem:[%s9790_s28 + $0x228] sm:$0xff]   ;;  %v1173_v38 = vrot.slane %v1171_v28, 1 }
  0xde   : > { %v3357_v42 = vrot.slane %v9320_v34, 1  ;;  %v9605_v34 = vld [vmem:[%s9790_s28 + $0x40] sm:$0xff]  }
  0xdf   : > { %8572 = vmatmul.mubr.msk.bf16.gmra.mrb[100].mxu0 %vm1215_vm0, %v3328_v50  ;;  %v1121_v50 = vor.u32 %v1119_v41, %v1117_v35  ;;  %v1129_v52 = vor.u32 %v1127_v45, %v1125_v48  ;;  %v1177_v41 = vor.u32 %v1175_v33, %v1173_v38 }
  0xe0   : > { %8575 = vmatprep.mubr.msk.bf16.mxu0 %vm1215_vm0, %v3330_v54  ;;  %v3345_v54 = vrot.slane %v9308_v47, 1 }
  0xe1   : > { %v1126_v57 = vsel %vm642_vm1, %v1121_v50, %v1125_v48  ;;  %v9597_v48 = vld [vmem:[%s9790_s28 + $0x18] sm:$0xff]  }
  0xe2   : > { %8284 = vmatmul.mubr.msk.bf16.gmra.mrb[100].mxu1 %vm1215_vm0, %v1062_v49  ;;  %v9309_v49 = vld [vmem:[%s9790_s28 + $0x1f0] sm:$0xff]   ;;  %v3346_v62 = vsel %vm3223_vm2, %v3343_v51, %v3345_v54  ;;  %v3348_v12 = vsel %vm3223_vm2, %v3345_v54, %v3347_v5  ;;  %v4328_v50 = vshll.u32 %v9597_v48, 16 }
  0xe3   : > { %8287 = vmatprep.mubr.msk.bf16.mxu1 %vm1215_vm0, %v1070_v53  ;;  %v1133_v53 = vrot.slane %v1131_v46, 1  ;;  %v1139_v56 = vshll.u32 %v9309_v49, 16  ;;  %v1143_v63 = vshrl.u32 %v9309_v49, 16  ;;  %v1181_v46 = vrot.slane %v1179_v37, 1 }
  0xe4   : > { %v4325_v49 = vshrl.u32 %v9597_v48, 16  ;;  %v9608_v48 = vld [vmem:[%s9790_s28 + $0x20] sm:$0xff]  }
  0xe5   : > { %v1134_v61 = vsel %vm642_vm1, %v1129_v52, %v1133_v53  ;;  %v1141_v2 = vrot.slane %v1139_v56, 1  ;;  %v1183_v52 = vshrl.u32 %v9319_v27, 16  ;;  %v9322_v56 = vld [vmem:[%s9790_s28 + $0x230] ss:$0 sps:$4 sm:$0x11]  }
  0xe6   : > { %v4327_v60 = vrot.slane %v4325_v49, 1 }
  0xe7   : > { %8576 = vmatmul.mubr.msk.bf16.gmra.mrb[104].mxu0 %vm1215_vm0, %v3332_v4  ;;  %v1137_v4 = vor.u32 %v1135_v59, %v1133_v53  ;;  %v1145_v6 = vor.u32 %v1143_v63, %v1141_v2 }
  0xe8   : > { %8579 = vmatprep.mubr.msk.bf16.mxu0 %vm1215_vm0, %v3334_v8  ;;  %v3349_v8 = vrot.slane %v9312_v1, 1  ;;  %v9598_v1 = vld [vmem:[%s9790_s28 + $0x20] sm:$0xff]  }
  0xe9   : > { %v1142_v11 = vsel %vm642_vm1, %v1137_v4, %v1141_v2  ;;  %v4334_v2 = vshrl.u32 %v9598_v1, 16 }
  0xea   : > { %8288 = vmatmul.mubr.msk.bf16.gmra.mrb[104].mxu1 %vm1215_vm0, %v1078_v3  ;;  %v9313_v3 = vld [vmem:[%s9790_s28 + $0x200] sm:$0xff]   ;;  %v3350_v16 = vsel %vm3223_vm2, %v3347_v5, %v3349_v8  ;;  %v3352_v31 = vsel %vm3223_vm2, %v3349_v8, %v3351_v23 }
  0xeb   : > { %8291 = vmatprep.mubr.msk.bf16.mxu1 %vm1215_vm0, %v1086_v7  ;;  %v1149_v7 = vrot.slane %v1147_v0, 1  ;;  %v1155_v10 = vshll.u32 %v9313_v3, 16  ;;  %v1159_v17 = vshrl.u32 %v9313_v3, 16  ;;  %v3359_v0 = vrot.slane %v9322_v56, 1 }
  0xec   : > { %v4337_v3 = vshll.u32 %v9598_v1, 16 }
  0xed   : > { %v1150_v15 = vsel %vm642_vm1, %v1145_v6, %v1149_v7  ;;  %v9599_v6 = vld [vmem:[%s9790_s28 + $0x28] sm:$0xff]  }
  0xee   : > { %v4346_v8 = vshll.u32 %v9599_v6, 16 }
  0xef   : > { %8580 = vmatmul.mubr.msk.bf16.gmra.mrb[108].mxu0 %vm1215_vm0, %v3336_v22  ;;  %v1153_v22 = vor.u32 %v1151_v13, %v1149_v7  ;;  %v4343_v7 = vshrl.u32 %v9599_v6, 16  ;;  %v9614_v6 = vld [vmem:[%s9790_s28 + $0x68] sm:$0xff]  }
  0xf0   : > { %8583 = vmatprep.mubr.msk.bf16.mxu0 %vm1215_vm0, %v3338_v26  ;;  %v3353_v26 = vrot.slane %v9316_v19, 1 }
  0xf1   : > { %v4345_v14 = vrot.slane %v4343_v7, 1  ;;  %v4415_v7 = vshrl.u32 %v9614_v6, 16 }
  0xf2   : > { %8292 = vmatmul.mubr.msk.bf16.gmra.mrb[108].mxu1 %vm1215_vm0, %v1094_v21  ;;  %v1157_v21 = vrot.slane %v1155_v10, 1  ;;  %v3354_v36 = vsel %vm3223_vm2, %v3351_v23, %v3353_v26  ;;  %v3360_v10 = vsel %vm3223_vm2, %v3357_v42, %v3359_v0  ;;  %v9612_v0 = vld [vmem:[%s9790_s28 + $0x30] sm:$0xff]  }
  0xf3   : > { %8295 = vmatprep.mubr.msk.bf16.mxu1 %vm1215_vm0, %v1102_v25  ;;  %v1165_v25 = vrot.slane %v1163_v18, 1  ;;  %v9601_v18 = vld [vmem:[%s9790_s28 + $0x30] sm:$0xff]  }
  0xf4   : > { %v1161_v24 = vor.u32 %v1159_v17, %v1157_v21  ;;  %v1158_v30 = vsel %vm642_vm1, %v1153_v22, %v1157_v21  ;;  %v4352_v19 = vshrl.u32 %v9601_v18, 16  ;;  %v4355_v20 = vshll.u32 %v9601_v18, 16  ;;  %v9602_v22 = vld [vmem:[%s9790_s28 + $0x38] sm:$0xff]   ;;  %v9617_v18 = vld [vmem:[%s9790_s28 + $0x70] sm:$0xff]  }
  0xf5   : > { %v4361_v23 = vshrl.u32 %v9602_v22, 16 }
  0xf6   : > { %v1166_v35 = vsel %vm642_vm1, %v1161_v24, %v1165_v25  ;;  %v4364_v24 = vshll.u32 %v9602_v22, 16  ;;  %v4357_v27 = vrot.slane %v4355_v20, 2  ;;  %v4427_v20 = vshll.u32 %v9617_v18, 16  ;;  %v9618_v22 = vld [vmem:[%s9790_s28 + $0x78] sm:$0xff]  }
  0xf7   : > { %8584 = vmatmul.mubr.msk.bf16.gmra.mrb[112].mxu0 %vm1215_vm0, %v3340_v40  ;;  %v3355_v40 = vrot.slane %v9318_v32, 1  ;;  %v9604_v32 = vld [vmem:[%s9790_s28 + $0x10] sm:$0xff]  }
  0xf8   : > { %8587 = vmatprep.mubr.msk.bf16.mxu0 %vm1215_vm0, %v3342_v44  ;;  %v9596_v44 = vld [vmem:[%s9790_s28 + $0x10] sm:$0xfe]  }
  0xf9   : > { %v4317_v45 = vshrl.u32 %v9596_v44, 16  ;;  %v4320_v47 = vshll.u32 %v9596_v44, 16  ;;  %v3356_v53 = vsel %vm3223_vm2, %v3353_v26, %v3355_v40  ;;  %v3358_v54 = vsel %vm3223_vm2, %v3355_v40, %v3357_v42 }
  0xfa   : > { %8296 = vmatmul.mubr.msk.bf16.gmra.mrb[112].mxu1 %vm1215_vm0, %v1110_v39  ;;  %v1169_v39 = vor.u32 %v1167_v29, %v1165_v25  ;;  %v4354_v26 = vrot.slane %v4352_v19, 1  ;;  %v4363_v29 = vrot.slane %v4361_v23, 1  ;;  %v4424_v19 = vshrl.u32 %v9617_v18, 16  ;;  %v9633_v18 = vld [vmem:[%s9790_s28 + $0xb0] sm:$0xff]  }
  0xfb   : > { %8299 = vmatprep.mubr.msk.bf16.mxu1 %vm1215_vm0, %v1118_v43  ;;  %v9321_v43 = vld [vmem:[%s9790_s28 + $0x220] ss:$0 sps:$4 sm:$0x11]   ;;  %v4322_v59 = vrot.slane %v4320_v47, 2  ;;  %v9607_v47 = vld [vmem:[%s9790_s28 + $0x18] sm:$0xff]   ;;  %v4433_v23 = vshrl.u32 %v9618_v22, 16 }
  0xfc   : > { %v1174_v51 = vsel %vm642_vm1, %v1169_v39, %v1173_v38  ;;  %v1187_v55 = vshll.u32 %v9321_v43, 16  ;;  %v4358_v33 = vor.u32 %v4357_v27, %v4354_v26  ;;  %v9606_v38 = vld [vmem:[%s9790_s28 + $0x48] sm:$0xff]   ;;  %v4426_v26 = vrot.slane %v4424_v19, 1 }
  0xfd   : > { %v4379_v39 = vshrl.u32 %v9606_v38, 16  ;;  %v4382_v40 = vshll.u32 %v9606_v38, 16  ;;  %v4429_v27 = vrot.slane %v4427_v20, 2  ;;  %v9622_v38 = vld [vmem:[%s9790_s28 + $0x88] sm:$0xff]   ;;  %v4496_v19 = vshrl.u32 %v9633_v18, 16 }
  0xfe   : > { %v1189_v63 = vrot.slane %v1187_v55, 1  ;;  %v4499_v20 = vshll.u32 %v9633_v18, 16  ;;  %v9649_v18 = vld [vmem:[%s9790_s28 + $0xf0] sm:$0xff]  }
  0xff   : > { %8588 = vmatmul.mubr.msk.bf16.gmra.mrb[116].mxu0 %vm1215_vm0, %v3344_v58  ;;  %v1182_v58 = vsel %vm642_vm1, %v1177_v41, %v1181_v46 }
 0x100   : > { %8591 = vmatprep.mubr.msk.bf16.mxu0 %vm1215_vm0, %v3346_v62  ;;  %v1185_v62 = vor.u32 %v1183_v52, %v1181_v46  ;;  %v4384_v46 = vrot.slane %v4382_v40, 2  ;;  %v4454_v40 = vshll.u32 %v9622_v38, 16 }
 0x102   : > { %8300 = vmatmul.mubr.msk.bf16.gmra.mrb[116].mxu1 %vm1215_vm0, %v1126_v57  ;;  %v4319_v57 = vrot.slane %v4317_v45, 1  ;;  %v1190_v9 = vsel %vm642_vm1, %v1185_v62, %v1189_v63  ;;  %v4381_v45 = vrot.slane %v4379_v39, 1  ;;  %v9611_v63 = vld [vmem:[%s9790_s28 + $0x28] sm:$0xff]   ;;  %v4451_v39 = vshrl.u32 %v9622_v38, 16 }
 0x103   : > { %8303 = vmatprep.mubr.msk.bf16.mxu1 %vm1215_vm0, %v1134_v61  ;;  %v4330_v61 = vrot.slane %v4328_v50, 2  ;;  %v9609_v50 = vld [vmem:[%s9790_s28 + $0x50] sm:$0xff]   ;;  %v9638_v38 = vld [vmem:[%s9790_s28 + $0xc8] sm:$0xff]  }
 0x104   : > { %v4323_v4 = vor.u32 %v4322_v59, %v4319_v57  ;;  %v4391_v52 = vshll.u32 %v9609_v50, 16 }
 0x105   : > { %v4331_v5 = vor.u32 %v4330_v61, %v4327_v60 }
 0x106   : > { %v4393_v59 = vrot.slane %v4391_v52, 2 }
 0x107   : > { %8592 = vmatmul.mubr.msk.bf16.gmra.mrb[120].mxu0 %vm1215_vm0, %v3348_v12  ;;  %v4339_v12 = vrot.slane %v4337_v3, 2  ;;  %v4332_v13 = vsel %vm4315_vm3, %v4323_v4, %v4331_v5 }
 0x108   : > { %8595 = vmatprep.mubr.msk.bf16.mxu0 %vm1215_vm0, %v3350_v16  ;;  %v9600_v16 = vld [vmem:[%s9790_s28] sm:$0xff]  }
 0x10a   : > { %8304 = vmatmul.mubr.msk.bf16.gmra.mrb[120].mxu1 %vm1215_vm0, %v1142_v11  ;;  %v4336_v11 = vrot.slane %v4334_v2, 1  ;;  %v9613_v2 = vld [vmem:[%s9790_s28 + $0x60] sm:$0xff]  }
 0x10b   : > { %8307 = vmatprep.mubr.msk.bf16.mxu1 %vm1215_vm0, %v1150_v15  ;;  %v4348_v15 = vrot.slane %v4346_v8, 2  ;;  %v4406_v3 = vshrl.u32 %v9613_v2, 16  ;;  %v4409_v4 = vshll.u32 %v9613_v2, 16  ;;  %v4418_v8 = vshll.u32 %v9614_v6, 16  ;;  %v9629_v2 = vld [vmem:[%s9790_s28 + $0xa0] sm:$0xff]   ;;  %v9630_v6 = vld [vmem:[%s9790_s28 + $0xa8] sm:$0xff]  }
 0x10c   : > { %v4340_v17 = vor.u32 %v4339_v12, %v4336_v11 }
 0x10d   : > { %v4349_v21 = vor.u32 %v4348_v15, %v4345_v14  ;;  %v4411_v11 = vrot.slane %v4409_v4, 2  ;;  %v4420_v14 = vrot.slane %v4418_v8, 2  ;;  %v9615_v15 = vld [vmem:[%s9790_s28 + $0x38] sm:$0xff]   ;;  %v4481_v4 = vshll.u32 %v9629_v2, 16 }
 0x10e   : > { %v4341_v25 = vsel %vm4315_vm3, %v4331_v5, %v4340_v17  ;;  %v4490_v8 = vshll.u32 %v9630_v6, 16 }
 0x10f   : > { %8596 = vmatmul.mubr.msk.bf16.gmra.mrb[124].mxu0 %vm1215_vm0, %v3352_v31  ;;  %v4350_v28 = vsel %vm4315_vm3, %v4340_v17, %v4349_v21  ;;  %v9603_v31 = vld [vmem:[%s9790_s28 + $0x8] sm:$0xff]   ;;  %v4359_v41 = vsel %vm4315_vm3, %v4349_v21, %v4358_v33 }
 0x110   : > { %8599 = vmatprep.mubr.msk.bf16.mxu0 %vm1215_vm0, %v3354_v36  ;;  %v4373_v36 = vshll.u32 %v9605_v34, 16 }
 0x112   : > { %8308 = vmatmul.mubr.msk.bf16.gmra.mrb[124].mxu1 %vm1215_vm0, %v1158_v30  ;;  %v4366_v30 = vrot.slane %v4364_v24, 2  ;;  %v4375_v43 = vrot.slane %v4373_v36, 2  ;;  %v4436_v24 = vshll.u32 %v9618_v22, 16  ;;  %v9634_v22 = vld [vmem:[%s9790_s28 + $0xb8] sm:$0xff]  }
 0x113   : > { %8311 = vmatprep.mubr.msk.bf16.mxu1 %vm1215_vm0, %v1166_v35  ;;  %v4370_v35 = vshrl.u32 %v9605_v34, 16  ;;  %v9621_v34 = vld [vmem:[%s9790_s28 + $0x80] sm:$0xff]  }
 0x114   : > { %v4367_v37 = vor.u32 %v4366_v30, %v4363_v29  ;;  %v4435_v29 = vrot.slane %v4433_v23, 1  ;;  %v4438_v30 = vrot.slane %v4436_v24, 2  ;;  %v4445_v36 = vshll.u32 %v9621_v34, 16 }
 0x115   : > { %v4372_v42 = vrot.slane %v4370_v35, 1  ;;  %v4442_v35 = vshrl.u32 %v9621_v34, 16  ;;  %v4505_v23 = vshrl.u32 %v9634_v22, 16  ;;  %v4508_v24 = vshll.u32 %v9634_v22, 16  ;;  %v9637_v34 = vld [vmem:[%s9790_s28 + $0xc0] sm:$0xff]   ;;  %v9650_v22 = vld [vmem:[%s9790_s28 + $0xf8] sm:$0xff]  }
 0x116   : > { %v4368_v44 = vsel %vm4315_vm3, %v4358_v33, %v4367_v37  ;;  %v4430_v33 = vor.u32 %v4429_v27, %v4426_v26  ;;  %v4498_v26 = vrot.slane %v4496_v19, 1  ;;  %v4501_v27 = vrot.slane %v4499_v20, 2 }
 0x117   : > { %8600 = vmatmul.mubr.msk.bf16.gmra.mrb[128].mxu0 %vm1215_vm0, %v3356_v53  ;;  %v4376_v49 = vor.u32 %v4375_v43, %v4372_v42  ;;  %v4385_v53 = vor.u32 %v4384_v46, %v4381_v45  ;;  %v4444_v42 = vrot.slane %v4442_v35, 1  ;;  %v4447_v43 = vrot.slane %v4445_v36, 2 }
 0x118   : > { %8603 = vmatprep.mubr.msk.bf16.mxu0 %vm1215_vm0, %v3358_v54  ;;  %v9610_v54 = vld [vmem:[%s9790_s28 + $0x58] sm:$0xff]   ;;  %v4453_v45 = vrot.slane %v4451_v39, 1  ;;  %v4456_v46 = vrot.slane %v4454_v40, 2  ;;  %v4514_v35 = vshrl.u32 %v9637_v34, 16  ;;  %v4517_v36 = vshll.u32 %v9637_v34, 16  ;;  %v9653_v34 = vld [vmem:[%s9790_s28 + $0x100] sm:$0xff]  }
 0x119   : > { %v4397_v55 = vshrl.u32 %v9610_v54, 16  ;;  %v4400_v56 = vshll.u32 %v9610_v54, 16  ;;  %v4377_v57 = vsel %vm4315_vm3, %v4367_v37, %v4376_v49  ;;  %v4386_v60 = vsel %vm4315_vm3, %v4376_v49, %v4385_v53  ;;  %v9626_v54 = vld [vmem:[%s9790_s28 + $0x98] sm:$0xff]  }
 0x11a   : > { %8312 = vmatmul.mubr.msk.bf16.gmra.mrb[128].mxu1 %vm1215_vm0, %v1174_v51  ;;  %v4388_v51 = vshrl.u32 %v9609_v50, 16  ;;  %v4439_v37 = vor.u32 %v4438_v30, %v4435_v29  ;;  %v4448_v49 = vor.u32 %v4447_v43, %v4444_v42  ;;  %v9625_v50 = vld [vmem:[%s9790_s28 + $0x90] sm:$0xff]   ;;  %v4507_v29 = vrot.slane %v4505_v23, 1 }
 0x11b   : > { %8315 = vmatprep.mubr.msk.bf16.mxu1 %vm1215_vm0, %v1182_v58  ;;  %v4399_v61 = vrot.slane %v4397_v55, 1  ;;  %v4402_v62 = vrot.slane %v4400_v56, 2  ;;  %v4463_v52 = vshll.u32 %v9625_v50, 16  ;;  %v4469_v55 = vshrl.u32 %v9626_v54, 16 }
 0x11c   : > { %v4390_v58 = vrot.slane %v4388_v51, 1  ;;  %v4460_v51 = vshrl.u32 %v9625_v50, 16  ;;  %v4472_v56 = vshll.u32 %v9626_v54, 16  ;;  %v4510_v30 = vrot.slane %v4508_v24, 2  ;;  %v9641_v50 = vld [vmem:[%s9790_s28 + $0xd0] sm:$0xff]   ;;  %v9642_v54 = vld [vmem:[%s9790_s28 + $0xd8] sm:$0xff]  }
 0x11d   : > { %v4403_v5 = vor.u32 %v4402_v62, %v4399_v61  ;;  %v4471_v61 = vrot.slane %v4469_v55, 1  ;;  %v4523_v39 = vshrl.u32 %v9638_v38, 16  ;;  %v4526_v40 = vshll.u32 %v9638_v38, 16  ;;  %v9654_v38 = vld [vmem:[%s9790_s28 + $0x108] sm:$0xff]  }
 0x11e   : > { %v4394_v1 = vor.u32 %v4393_v59, %v4390_v58  ;;  %v4462_v58 = vrot.slane %v4460_v51, 1  ;;  %v4465_v59 = vrot.slane %v4463_v52, 2  ;;  %v4474_v62 = vrot.slane %v4472_v56, 2 }
 0x11f   : > { %8604 = vmatmul.mubr.msk.bf16.gmra.mrb[132].mxu0 %vm1215_vm0, %v3360_v10  ;;  %v4408_v10 = vrot.slane %v4406_v3, 1  ;;  %v4478_v3 = vshrl.u32 %v9629_v2, 16  ;;  %v4516_v42 = vrot.slane %v4514_v35, 1  ;;  %v4519_v43 = vrot.slane %v4517_v36, 2  ;;  %v9645_v2 = vld [vmem:[%s9790_s28 + $0xe0] sm:$0xff]  }
 0x120   : > { %8615 = vmatprep.mubr.msk.bf16.mxu0 %vm1215_vm0, %v4332_v13  ;;  %v4404_v12 = vsel %vm4315_vm3, %v4394_v1, %v4403_v5  ;;  %v4417_v13 = vrot.slane %v4415_v7, 1  ;;  %v4487_v7 = vshrl.u32 %v9630_v6, 16  ;;  %v4532_v51 = vshrl.u32 %v9641_v50, 16  ;;  %v9646_v6 = vld [vmem:[%s9790_s28 + $0xe8] sm:$0xff]  }
 0x121   : > { %v4412_v17 = vor.u32 %v4411_v11, %v4408_v10  ;;  %v4480_v10 = vrot.slane %v4478_v3, 1  ;;  %v4483_v11 = vrot.slane %v4481_v4, 2  ;;  %v4535_v52 = vshll.u32 %v9641_v50, 16  ;;  %v9657_v50 = vld [vmem:[%s9790_s28 + $0x110] sm:$0xff]  }
 0x122   : > { %8316 = vmatmul.mubr.msk.bf16.gmra.mrb[132].mxu1 %vm1215_vm0, %v1190_v9  ;;  %v4395_v9 = vsel %vm4315_vm3, %v4385_v53, %v4394_v1  ;;  %v4421_v21 = vor.u32 %v4420_v14, %v4417_v13  ;;  %v4457_v53 = vor.u32 %v4456_v46, %v4453_v45  ;;  %v4466_v1 = vor.u32 %v4465_v59, %v4462_v58 }
 0x123   : > { %8327 = vmatprep.mubr.msk.bf16.mxu1 %vm1215_vm0, %v9600_v16  ;;  %v9616_v16 = vld [vmem:[%s9790_s28 + $0x40] sm:$0xff]   ;;  %v4489_v13 = vrot.slane %v4487_v7, 1  ;;  %v4492_v14 = vrot.slane %v4490_v8, 2  ;;  %v4525_v45 = vrot.slane %v4523_v39, 1  ;;  %v4528_v46 = vrot.slane %v4526_v40, 2 }
 0x124   : > { %v4541_v55 = vshrl.u32 %v9642_v54, 16  ;;  %v4544_v56 = vshll.u32 %v9642_v54, 16  ;;  %v4534_v58 = vrot.slane %v4532_v51, 1  ;;  %v4537_v59 = vrot.slane %v4535_v52, 2  ;;  %v9658_v54 = vld [vmem:[%s9790_s28 + $0x118] sm:$0xff]  }
 0x125   : > { %v4550_v3 = vshrl.u32 %v9645_v2, 16  ;;  %v4553_v4 = vshll.u32 %v9645_v2, 16  ;;  %v4559_v7 = vshrl.u32 %v9646_v6, 16  ;;  %v4562_v8 = vshll.u32 %v9646_v6, 16  ;;  %v9661_v2 = vld [vmem:[%s9790_s28 + $0x120] sm:$0xff]   ;;  %v9662_v6 = vld [vmem:[%s9790_s28 + $0x128] sm:$0xff]  }
 0x126   : > { %v4568_v19 = vshrl.u32 %v9649_v18, 16  ;;  %v4571_v20 = vshll.u32 %v9649_v18, 16  ;;  %v4577_v23 = vshrl.u32 %v9650_v22, 16  ;;  %v4580_v24 = vshll.u32 %v9650_v22, 16  ;;  %v9665_v18 = vld [vmem:[%s9790_s28 + $0x130] sm:$0xff]   ;;  %v9666_v22 = vld [vmem:[%s9790_s28 + $0x138] sm:$0xff]  }
 0x127   : > { %8616 = vmatmul.mubr.msk.bf16.vlgmr.msra.gmra.mrb[0].mxu0 %vm1215_vm0, %v4341_v25  ;;  %v4413_v25 = vsel %vm4315_vm3, %v4403_v5, %v4412_v17  ;;  %v4475_v5 = vor.u32 %v4474_v62, %v4471_v61  ;;  %v4543_v61 = vrot.slane %v4541_v55, 1  ;;  %v4546_v62 = vrot.slane %v4544_v56, 2 }
 0x128   : > { %8619 = vmatprep.mubr.msk.bf16.mxu0 %vm1215_vm0, %v4350_v28  ;;  %v4422_v28 = vsel %vm4315_vm3, %v4412_v17, %v4421_v21  ;;  %v4484_v17 = vor.u32 %v4483_v11, %v4480_v10  ;;  %v4552_v10 = vrot.slane %v4550_v3, 1  ;;  %v4555_v11 = vrot.slane %v4553_v4, 2 }
 0x129   : > { %v4586_v35 = vshrl.u32 %v9653_v34, 16  ;;  %v4589_v36 = vshll.u32 %v9653_v34, 16  ;;  %v4595_v39 = vshrl.u32 %v9654_v38, 16  ;;  %v4598_v40 = vshll.u32 %v9654_v38, 16  ;;  %v9669_v34 = vld [vmem:[%s9790_s28 + $0x140] sm:$0xff]   ;;  %v9670_v38 = vld [vmem:[%s9790_s28 + $0x148] sm:$0xff]  }
 0x12a   : > { %8328 = vmatmul.mubr.msk.bf16.vlgmr.msra.gmra.mrb[0].mxu1 %vm1215_vm0, %v9603_v31  ;;  %v9619_v31 = vld [vmem:[%s9790_s28 + $0x48] sm:$0xff]   ;;  %v4604_v51 = vshrl.u32 %v9657_v50, 16  ;;  %v4607_v52 = vshll.u32 %v9657_v50, 16  ;;  %v4613_v55 = vshrl.u32 %v9658_v54, 16  ;;  %v4616_v56 = vshll.u32 %v9658_v54, 16  ;;  %v9673_v50 = vld [vmem:[%s9790_s28 + $0x150] sm:$0xff]  }
 0x12b   : > { %8331 = vmatprep.mubr.msk.bf16.mxu1 %vm1215_vm0, %v9604_v32  ;;  %v9620_v32 = vld [vmem:[%s9790_s28 + $0x50] sm:$0xff]   ;;  %v4622_v3 = vshrl.u32 %v9661_v2, 16  ;;  %v4625_v4 = vshll.u32 %v9661_v2, 16  ;;  %v9674_v54 = vld [vmem:[%s9790_s28 + $0x158] sm:$0xff]   ;;  %v9677_v2 = vld [vmem:[%s9790_s28 + $0x160] sm:$0xff]  }
 0x12f   : > { %8620 = vmatmul.mubr.msk.bf16.gmra.mrb[4].mxu0 %vm1215_vm0, %v4359_v41  ;;  %v4431_v41 = vsel %vm4315_vm3, %v4421_v21, %v4430_v33  ;;  %v4493_v21 = vor.u32 %v4492_v14, %v4489_v13  ;;  %v4561_v13 = vrot.slane %v4559_v7, 1  ;;  %v4564_v14 = vrot.slane %v4562_v8, 2 }
 0x130   : > { %8623 = vmatprep.mubr.msk.bf16.mxu0 %vm1215_vm0, %v4368_v44  ;;  %v4440_v44 = vsel %vm4315_vm3, %v4430_v33, %v4439_v37  ;;  %v4502_v33 = vor.u32 %v4501_v27, %v4498_v26  ;;  %v4570_v26 = vrot.slane %v4568_v19, 1  ;;  %v4573_v27 = vrot.slane %v4571_v20, 2 }
 0x131   : > { %v4631_v7 = vshrl.u32 %v9662_v6, 16  ;;  %v4634_v8 = vshll.u32 %v9662_v6, 16  ;;  %v4640_v19 = vshrl.u32 %v9665_v18, 16  ;;  %v4643_v20 = vshll.u32 %v9665_v18, 16  ;;  %v9678_v6 = vld [vmem:[%s9790_s28 + $0x168] sm:$0xff]   ;;  %v9681_v18 = vld [vmem:[%s9790_s28 + $0x170] sm:$0xff]  }
 0x132   : > { %8332 = vmatmul.mubr.msk.bf16.gmra.mrb[4].mxu1 %vm1215_vm0, %v9607_v47  ;;  %v9623_v47 = vld [vmem:[%s9790_s28 + $0x58] sm:$0xff]  }
 0x133   : > { %8335 = vmatprep.mubr.msk.bf16.mxu1 %vm1215_vm0, %v9608_v48  ;;  %v9624_v48 = vld [vmem:[%s9790_s28 + $0x60] sm:$0xff]  }
 0x137   : > { %8624 = vmatmul.mubr.msk.bf16.gmra.mrb[8].mxu0 %vm1215_vm0, %v4377_v57  ;;  %v4449_v57 = vsel %vm4315_vm3, %v4439_v37, %v4448_v49  ;;  %v4511_v37 = vor.u32 %v4510_v30, %v4507_v29  ;;  %v4579_v29 = vrot.slane %v4577_v23, 1  ;;  %v4582_v30 = vrot.slane %v4580_v24, 2 }
 0x138   : > { %8627 = vmatprep.mubr.msk.bf16.mxu0 %vm1215_vm0, %v4386_v60  ;;  %v4458_v60 = vsel %vm4315_vm3, %v4448_v49, %v4457_v53  ;;  %v4520_v49 = vor.u32 %v4519_v43, %v4516_v42  ;;  %v4588_v42 = vrot.slane %v4586_v35, 1  ;;  %v4591_v43 = vrot.slane %v4589_v36, 2 }
 0x139   : > { %v4649_v23 = vshrl.u32 %v9666_v22, 16  ;;  %v4652_v24 = vshll.u32 %v9666_v22, 16  ;;  %v4658_v35 = vshrl.u32 %v9669_v34, 16  ;;  %v4661_v36 = vshll.u32 %v9669_v34, 16  ;;  %v9682_v22 = vld [vmem:[%s9790_s28 + $0x178] sm:$0xff]   ;;  %v9685_v34 = vld [vmem:[%s9790_s28 + $0x180] sm:$0xff]  }
 0x13a   : > { %8336 = vmatmul.mubr.msk.bf16.gmra.mrb[8].mxu1 %vm1215_vm0, %v9611_v63  ;;  %v9627_v63 = vld [vmem:[%s9790_s28 + $0x68] sm:$0xff]  }
 0x13b   : > { %8339 = vmatprep.mubr.msk.bf16.mxu1 %vm1215_vm0, %v9612_v0  ;;  %v9628_v0 = vld [vmem:[%s9790_s28 + $0x70] sm:$0xff]  }
 0x13f   : > { %8628 = vmatmul.mubr.msk.bf16.gmra.mrb[12].mxu0 %vm1215_vm0, %v4395_v9  ;;  %v4467_v9 = vsel %vm4315_vm3, %v4457_v53, %v4466_v1  ;;  %v4529_v53 = vor.u32 %v4528_v46, %v4525_v45  ;;  %v4597_v45 = vrot.slane %v4595_v39, 1  ;;  %v4600_v46 = vrot.slane %v4598_v40, 2 }
 0x140   : > { %8631 = vmatprep.mubr.msk.bf16.mxu0 %vm1215_vm0, %v4404_v12  ;;  %v4476_v12 = vsel %vm4315_vm3, %v4466_v1, %v4475_v5  ;;  %v4538_v1 = vor.u32 %v4537_v59, %v4534_v58  ;;  %v4606_v58 = vrot.slane %v4604_v51, 1  ;;  %v4609_v59 = vrot.slane %v4607_v52, 2 }
 0x141   : > { %v4667_v39 = vshrl.u32 %v9670_v38, 16  ;;  %v4670_v40 = vshll.u32 %v9670_v38, 16  ;;  %v4676_v51 = vshrl.u32 %v9673_v50, 16  ;;  %v4679_v52 = vshll.u32 %v9673_v50, 16  ;;  %v9686_v38 = vld [vmem:[%s9790_s28 + $0x188] sm:$0xff]   ;;  %v9689_v50 = vld [vmem:[%s9790_s28 + $0x190] sm:$0xff]  }
 0x142   : > { %8340 = vmatmul.mubr.msk.bf16.gmra.mrb[12].mxu1 %vm1215_vm0, %v9615_v15  ;;  %v9631_v15 = vld [vmem:[%s9790_s28 + $0x78] sm:$0xff]  }
 0x143   : > { %8343 = vmatprep.mubr.msk.bf16.mxu1 %vm1215_vm0, %v9616_v16  ;;  %v9632_v16 = vld [vmem:[%s9790_s28 + $0x80] sm:$0xff]  }
 0x147   : > { %8632 = vmatmul.mubr.msk.bf16.gmra.mrb[16].mxu0 %vm1215_vm0, %v4413_v25  ;;  %v4485_v25 = vsel %vm4315_vm3, %v4475_v5, %v4484_v17  ;;  %v4547_v5 = vor.u32 %v4546_v62, %v4543_v61  ;;  %v4615_v61 = vrot.slane %v4613_v55, 1  ;;  %v4618_v62 = vrot.slane %v4616_v56, 2 }
 0x148   : > { %8635 = vmatprep.mubr.msk.bf16.mxu0 %vm1215_vm0, %v4422_v28  ;;  %v4494_v28 = vsel %vm4315_vm3, %v4484_v17, %v4493_v21  ;;  %v4556_v17 = vor.u32 %v4555_v11, %v4552_v10  ;;  %v4624_v10 = vrot.slane %v4622_v3, 1  ;;  %v4627_v11 = vrot.slane %v4625_v4, 2 }
 0x149   : > { %v4685_v55 = vshrl.u32 %v9674_v54, 16  ;;  %v4688_v56 = vshll.u32 %v9674_v54, 16  ;;  %v4694_v3 = vshrl.u32 %v9677_v2, 16  ;;  %v4697_v4 = vshll.u32 %v9677_v2, 16  ;;  %v9690_v54 = vld [vmem:[%s9790_s28 + $0x198] sm:$0xff]   ;;  %v9693_v2 = vld [vmem:[%s9790_s28 + $0x1a0] sm:$0xff]  }
 0x14a   : > { %8344 = vmatmul.mubr.msk.bf16.gmra.mrb[16].mxu1 %vm1215_vm0, %v9619_v31  ;;  %v9635_v31 = vld [vmem:[%s9790_s28 + $0x88] sm:$0xff]  }
 0x14b   : > { %8347 = vmatprep.mubr.msk.bf16.mxu1 %vm1215_vm0, %v9620_v32  ;;  %v9636_v32 = vld [vmem:[%s9790_s28 + $0x90] sm:$0xff]  }
 0x14f   : > { %8636 = vmatmul.mubr.msk.bf16.gmra.mrb[20].mxu0 %vm1215_vm0, %v4431_v41  ;;  %v4503_v41 = vsel %vm4315_vm3, %v4493_v21, %v4502_v33  ;;  %v4565_v21 = vor.u32 %v4564_v14, %v4561_v13  ;;  %v4633_v13 = vrot.slane %v4631_v7, 1  ;;  %v4636_v14 = vrot.slane %v4634_v8, 2 }
 0x150   : > { %8639 = vmatprep.mubr.msk.bf16.mxu0 %vm1215_vm0, %v4440_v44  ;;  %v4512_v44 = vsel %vm4315_vm3, %v4502_v33, %v4511_v37  ;;  %v4574_v33 = vor.u32 %v4573_v27, %v4570_v26  ;;  %v4642_v26 = vrot.slane %v4640_v19, 1  ;;  %v4645_v27 = vrot.slane %v4643_v20, 2 }
 0x151   : > { %v4703_v7 = vshrl.u32 %v9678_v6, 16  ;;  %v4706_v8 = vshll.u32 %v9678_v6, 16  ;;  %v4712_v19 = vshrl.u32 %v9681_v18, 16  ;;  %v4715_v20 = vshll.u32 %v9681_v18, 16  ;;  %v9694_v6 = vld [vmem:[%s9790_s28 + $0x1a8] sm:$0xff]   ;;  %v9697_v18 = vld [vmem:[%s9790_s28 + $0x1b0] sm:$0xff]  }
 0x152   : > { %8348 = vmatmul.mubr.msk.bf16.gmra.mrb[20].mxu1 %vm1215_vm0, %v9623_v47  ;;  %v9639_v47 = vld [vmem:[%s9790_s28 + $0x98] sm:$0xff]  }
 0x153   : > { %8351 = vmatprep.mubr.msk.bf16.mxu1 %vm1215_vm0, %v9624_v48  ;;  %v9640_v48 = vld [vmem:[%s9790_s28 + $0xa0] sm:$0xff]  }
 0x157   : > { %8640 = vmatmul.mubr.msk.bf16.gmra.mrb[24].mxu0 %vm1215_vm0, %v4449_v57  ;;  %v4521_v57 = vsel %vm4315_vm3, %v4511_v37, %v4520_v49  ;;  %v4583_v37 = vor.u32 %v4582_v30, %v4579_v29  ;;  %v4651_v29 = vrot.slane %v4649_v23, 1  ;;  %v4654_v30 = vrot.slane %v4652_v24, 2 }
 0x158   : > { %8643 = vmatprep.mubr.msk.bf16.mxu0 %vm1215_vm0, %v4458_v60  ;;  %v4530_v60 = vsel %vm4315_vm3, %v4520_v49, %v4529_v53  ;;  %v4592_v49 = vor.u32 %v4591_v43, %v4588_v42  ;;  %v4660_v42 = vrot.slane %v4658_v35, 1  ;;  %v4663_v43 = vrot.slane %v4661_v36, 2 }
 0x159   : > { %v4721_v23 = vshrl.u32 %v9682_v22, 16  ;;  %v4724_v24 = vshll.u32 %v9682_v22, 16  ;;  %v4730_v35 = vshrl.u32 %v9685_v34, 16  ;;  %v4733_v36 = vshll.u32 %v9685_v34, 16  ;;  %v9698_v22 = vld [vmem:[%s9790_s28 + $0x1b8] sm:$0xff]  }
 0x15a   : > { %8352 = vmatmul.mubr.msk.bf16.gmra.mrb[24].mxu1 %vm1215_vm0, %v9627_v63  ;;  %v9643_v63 = vld [vmem:[%s9790_s28 + $0xa8] sm:$0xff]  }
 0x15b   : > { %8355 = vmatprep.mubr.msk.bf16.mxu1 %vm1215_vm0, %v9628_v0  ;;  %v9644_v0 = vld [vmem:[%s9790_s28 + $0xb0] sm:$0xff]  }
 0x15f   : > { %8644 = vmatmul.mubr.msk.bf16.gmra.mrb[28].mxu0 %vm1215_vm0, %v4467_v9  ;;  %v4539_v9 = vsel %vm4315_vm3, %v4529_v53, %v4538_v1  ;;  %v4601_v53 = vor.u32 %v4600_v46, %v4597_v45  ;;  %v4669_v45 = vrot.slane %v4667_v39, 1  ;;  %v4672_v46 = vrot.slane %v4670_v40, 2 }
 0x160   : > { %8647 = vmatprep.mubr.msk.bf16.mxu0 %vm1215_vm0, %v4476_v12  ;;  %v4548_v12 = vsel %vm4315_vm3, %v4538_v1, %v4547_v5  ;;  %v4610_v1 = vor.u32 %v4609_v59, %v4606_v58  ;;  %v4678_v58 = vrot.slane %v4676_v51, 1  ;;  %v4681_v59 = vrot.slane %v4679_v52, 2 }
 0x161   : > { %v4739_v39 = vshrl.u32 %v9686_v38, 16  ;;  %v4742_v40 = vshll.u32 %v9686_v38, 16  ;;  %v4748_v51 = vshrl.u32 %v9689_v50, 16  ;;  %v4751_v52 = vshll.u32 %v9689_v50, 16  ;;  %v9702_v38 = vld [vmem:[%s9790_s28 + $0x1c8] sm:$0xff]   ;;  %v9705_v50 = vld [vmem:[%s9790_s28 + $0x1d0] sm:$0xff]  }
 0x162   : > { %8356 = vmatmul.mubr.msk.bf16.gmra.mrb[28].mxu1 %vm1215_vm0, %v9631_v15  ;;  %v9647_v15 = vld [vmem:[%s9790_s28 + $0xb8] sm:$0xff]  }
 0x163   : > { %8359 = vmatprep.mubr.msk.bf16.mxu1 %vm1215_vm0, %v9632_v16  ;;  %v9648_v16 = vld [vmem:[%s9790_s28 + $0xc0] sm:$0xff]  }
 0x167   : > { %8648 = vmatmul.mubr.msk.bf16.gmra.mrb[32].mxu0 %vm1215_vm0, %v4485_v25  ;;  %v4557_v25 = vsel %vm4315_vm3, %v4547_v5, %v4556_v17  ;;  %v4619_v5 = vor.u32 %v4618_v62, %v4615_v61  ;;  %v4687_v61 = vrot.slane %v4685_v55, 1  ;;  %v4690_v62 = vrot.slane %v4688_v56, 2 }
 0x168   : > { %8651 = vmatprep.mubr.msk.bf16.mxu0 %vm1215_vm0, %v4494_v28  ;;  %v4566_v28 = vsel %vm4315_vm3, %v4556_v17, %v4565_v21  ;;  %v4628_v17 = vor.u32 %v4627_v11, %v4624_v10  ;;  %v4696_v10 = vrot.slane %v4694_v3, 1  ;;  %v4699_v11 = vrot.slane %v4697_v4, 2 }
 0x169   : > { %v4757_v55 = vshrl.u32 %v9690_v54, 16  ;;  %v4760_v56 = vshll.u32 %v9690_v54, 16  ;;  %v4766_v3 = vshrl.u32 %v9693_v2, 16  ;;  %v4769_v4 = vshll.u32 %v9693_v2, 16 }
 0x16a   : > { %8360 = vmatmul.mubr.msk.bf16.gmra.mrb[32].mxu1 %vm1215_vm0, %v9635_v31  ;;  %v9651_v31 = vld [vmem:[%s9790_s28 + $0xc8] sm:$0xff]  }
 0x16b   : > { %8363 = vmatprep.mubr.msk.bf16.mxu1 %vm1215_vm0, %v9636_v32  ;;  %v9652_v32 = vld [vmem:[%s9790_s28 + $0xd0] sm:$0xff]  }
 0x16f   : > { %8652 = vmatmul.mubr.msk.bf16.gmra.mrb[36].mxu0 %vm1215_vm0, %v4503_v41  ;;  %v4575_v41 = vsel %vm4315_vm3, %v4565_v21, %v4574_v33  ;;  %v4637_v21 = vor.u32 %v4636_v14, %v4633_v13  ;;  %v4705_v13 = vrot.slane %v4703_v7, 1  ;;  %v4708_v14 = vrot.slane %v4706_v8, 2 }
 0x170   : > { %8655 = vmatprep.mubr.msk.bf16.mxu0 %vm1215_vm0, %v4512_v44  ;;  %v4584_v44 = vsel %vm4315_vm3, %v4574_v33, %v4583_v37  ;;  %v4646_v33 = vor.u32 %v4645_v27, %v4642_v26  ;;  %v4714_v26 = vrot.slane %v4712_v19, 1  ;;  %v4717_v27 = vrot.slane %v4715_v20, 2 }
 0x171   : > { %v4775_v7 = vshrl.u32 %v9694_v6, 16  ;;  %v4778_v8 = vshll.u32 %v9694_v6, 16  ;;  %v4784_v19 = vshrl.u32 %v9697_v18, 16  ;;  %v4787_v20 = vshll.u32 %v9697_v18, 16  ;;  %v9710_v6 = vld [vmem:[%s9790_s28 + $0x1e8] sm:$0xff]  }
 0x172   : > { %8364 = vmatmul.mubr.msk.bf16.gmra.mrb[36].mxu1 %vm1215_vm0, %v9639_v47  ;;  %v9655_v47 = vld [vmem:[%s9790_s28 + $0xd8] sm:$0xff]  }
 0x173   : > { %8367 = vmatprep.mubr.msk.bf16.mxu1 %vm1215_vm0, %v9640_v48  ;;  %v9656_v48 = vld [vmem:[%s9790_s28 + $0xe0] sm:$0xff]  }
 0x177   : > { %8656 = vmatmul.mubr.msk.bf16.gmra.mrb[40].mxu0 %vm1215_vm0, %v4521_v57  ;;  %v4593_v57 = vsel %vm4315_vm3, %v4583_v37, %v4592_v49  ;;  %v4655_v37 = vor.u32 %v4654_v30, %v4651_v29  ;;  %v4723_v29 = vrot.slane %v4721_v23, 1  ;;  %v4726_v30 = vrot.slane %v4724_v24, 2 }
 0x178   : > { %8659 = vmatprep.mubr.msk.bf16.mxu0 %vm1215_vm0, %v4530_v60  ;;  %v4602_v60 = vsel %vm4315_vm3, %v4592_v49, %v4601_v53  ;;  %v4664_v49 = vor.u32 %v4663_v43, %v4660_v42  ;;  %v4732_v42 = vrot.slane %v4730_v35, 1  ;;  %v4735_v43 = vrot.slane %v4733_v36, 2  ;;  %v9701_v35 = vld [vmem:[%s9790_s28 + $0x190] sm:$0xff]  }
 0x179   : > { %v4793_v23 = vshrl.u32 %v9698_v22, 16  ;;  %v4796_v24 = vshll.u32 %v9698_v22, 16 }
 0x17a   : > { %8368 = vmatmul.mubr.msk.bf16.gmra.mrb[40].mxu1 %vm1215_vm0, %v9643_v63  ;;  %v9659_v63 = vld [vmem:[%s9790_s28 + $0xe8] sm:$0xff]  }
 0x17b   : > { %8371 = vmatprep.mubr.msk.bf16.mxu1 %vm1215_vm0, %v9644_v0  ;;  %v9660_v0 = vld [vmem:[%s9790_s28 + $0xf0] sm:$0xff]  }
 0x17f   : > { %8660 = vmatmul.mubr.msk.bf16.gmra.mrb[44].mxu0 %vm1215_vm0, %v4539_v9  ;;  %v4611_v9 = vsel %vm4315_vm3, %v4601_v53, %v4610_v1  ;;  %v4673_v53 = vor.u32 %v4672_v46, %v4669_v45  ;;  %v4741_v45 = vrot.slane %v4739_v39, 1  ;;  %v4744_v46 = vrot.slane %v4742_v40, 2 }
 0x180   : > { %8663 = vmatprep.mubr.msk.bf16.mxu0 %vm1215_vm0, %v4548_v12  ;;  %v4620_v12 = vsel %vm4315_vm3, %v4610_v1, %v4619_v5  ;;  %v4682_v1 = vor.u32 %v4681_v59, %v4678_v58  ;;  %v4750_v58 = vrot.slane %v4748_v51, 1  ;;  %v4753_v59 = vrot.slane %v4751_v52, 2 }
 0x181   : > { %v4811_v39 = vshrl.u32 %v9702_v38, 16  ;;  %v4814_v40 = vshll.u32 %v9702_v38, 16  ;;  %v4820_v51 = vshrl.u32 %v9705_v50, 16  ;;  %v4823_v52 = vshll.u32 %v9705_v50, 16 }
 0x182   : > { %8372 = vmatmul.mubr.msk.bf16.gmra.mrb[44].mxu1 %vm1215_vm0, %v9647_v15  ;;  %v9663_v15 = vld [vmem:[%s9790_s28 + $0xf8] sm:$0xff]  }
 0x183   : > { %8375 = vmatprep.mubr.msk.bf16.mxu1 %vm1215_vm0, %v9648_v16  ;;  %v9664_v16 = vld [vmem:[%s9790_s28 + $0x100] sm:$0xff]  }
 0x187   : > { %8664 = vmatmul.mubr.msk.bf16.gmra.mrb[48].mxu0 %vm1215_vm0, %v4557_v25  ;;  %v4629_v25 = vsel %vm4315_vm3, %v4619_v5, %v4628_v17  ;;  %v4691_v5 = vor.u32 %v4690_v62, %v4687_v61  ;;  %v4759_v61 = vrot.slane %v4757_v55, 1  ;;  %v4762_v62 = vrot.slane %v4760_v56, 2 }
 0x188   : > { %8667 = vmatprep.mubr.msk.bf16.mxu0 %vm1215_vm0, %v4566_v28  ;;  %v4638_v28 = vsel %vm4315_vm3, %v4628_v17, %v4637_v21  ;;  %v4700_v17 = vor.u32 %v4699_v11, %v4696_v10  ;;  %v4768_v10 = vrot.slane %v4766_v3, 1  ;;  %v4771_v11 = vrot.slane %v4769_v4, 2  ;;  %v9709_v3 = vld [vmem:[%s9790_s28 + $0x1b0] sm:$0xff]  }
 0x18a   : > { %8376 = vmatmul.mubr.msk.bf16.gmra.mrb[48].mxu1 %vm1215_vm0, %v9651_v31  ;;  %v9667_v31 = vld [vmem:[%s9790_s28 + $0x108] sm:$0xff]  }
 0x18b   : > { %8379 = vmatprep.mubr.msk.bf16.mxu1 %vm1215_vm0, %v9652_v32  ;;  %v9668_v32 = vld [vmem:[%s9790_s28 + $0x110] sm:$0xff]  }
 0x18f   : > { %8668 = vmatmul.mubr.msk.bf16.gmra.mrb[52].mxu0 %vm1215_vm0, %v4575_v41  ;;  %v4647_v41 = vsel %vm4315_vm3, %v4637_v21, %v4646_v33  ;;  %v4709_v21 = vor.u32 %v4708_v14, %v4705_v13  ;;  %v4777_v13 = vrot.slane %v4775_v7, 1  ;;  %v4780_v14 = vrot.slane %v4778_v8, 2 }
 0x190   : > { %8671 = vmatprep.mubr.msk.bf16.mxu0 %vm1215_vm0, %v4584_v44  ;;  %v4656_v44 = vsel %vm4315_vm3, %v4646_v33, %v4655_v37  ;;  %v4718_v33 = vor.u32 %v4717_v27, %v4714_v26  ;;  %v4786_v26 = vrot.slane %v4784_v19, 1  ;;  %v4789_v27 = vrot.slane %v4787_v20, 2 }
 0x191   : > { %v4847_v7 = vshrl.u32 %v9710_v6, 16  ;;  %v4850_v8 = vshll.u32 %v9710_v6, 16 }
 0x192   : > { %8380 = vmatmul.mubr.msk.bf16.gmra.mrb[52].mxu1 %vm1215_vm0, %v9655_v47  ;;  %v9671_v47 = vld [vmem:[%s9790_s28 + $0x118] sm:$0xff]   ;;  %v4790_v36 = vor.u32 %v4789_v27, %v4786_v26 }
 0x193   : > { %8383 = vmatprep.mubr.msk.bf16.mxu1 %vm1215_vm0, %v9656_v48  ;;  %v9672_v48 = vld [vmem:[%s9790_s28 + $0x120] sm:$0xff]   ;;  %v9711_v27 = vld [vmem:[%s9790_s28 + $0x1b8] sm:$0xff]  }
 0x197   : > { %8672 = vmatmul.mubr.msk.bf16.gmra.mrb[56].mxu0 %vm1215_vm0, %v4593_v57  ;;  %v4665_v57 = vsel %vm4315_vm3, %v4655_v37, %v4664_v49  ;;  %v4727_v37 = vor.u32 %v4726_v30, %v4723_v29  ;;  %v4795_v29 = vrot.slane %v4793_v23, 1  ;;  %v4798_v30 = vrot.slane %v4796_v24, 2 }
 0x198   : > { %8675 = vmatprep.mubr.msk.bf16.mxu0 %vm1215_vm0, %v4602_v60  ;;  %v4674_v60 = vsel %vm4315_vm3, %v4664_v49, %v4673_v53  ;;  %v4736_v49 = vor.u32 %v4735_v43, %v4732_v42  ;;  %v4849_v24 = vrot.slane %v4847_v7, 1 }
 0x19a   : > { %8384 = vmatmul.mubr.msk.bf16.gmra.mrb[56].mxu1 %vm1215_vm0, %v9659_v63  ;;  %v9675_v63 = vld [vmem:[%s9790_s28 + $0x128] sm:$0xff]  }
 0x19b   : > { %8387 = vmatprep.mubr.msk.bf16.mxu1 %vm1215_vm0, %v9660_v0  ;;  %v9676_v0 = vld [vmem:[%s9790_s28 + $0x130] sm:$0xff]  }
 0x19f   : > { %8676 = vmatmul.mubr.msk.bf16.gmra.mrb[60].mxu0 %vm1215_vm0, %v4611_v9  ;;  %v4683_v9 = vsel %vm4315_vm3, %v4673_v53, %v4682_v1  ;;  %v4745_v53 = vor.u32 %v4744_v46, %v4741_v45  ;;  %v4813_v45 = vrot.slane %v4811_v39, 1  ;;  %v4816_v46 = vrot.slane %v4814_v40, 2 }
 0x1a0   : > { %8679 = vmatprep.mubr.msk.bf16.mxu0 %vm1215_vm0, %v4620_v12  ;;  %v4692_v12 = vsel %vm4315_vm3, %v4682_v1, %v4691_v5  ;;  %v4754_v1 = vor.u32 %v4753_v59, %v4750_v58  ;;  %v4822_v58 = vrot.slane %v4820_v51, 1  ;;  %v4825_v59 = vrot.slane %v4823_v52, 2 }
 0x1a1   : > { %v4817_v56 = vor.u32 %v4816_v46, %v4813_v45 }
 0x1a2   : > { %8388 = vmatmul.mubr.msk.bf16.gmra.mrb[60].mxu1 %vm1215_vm0, %v9663_v15  ;;  %v9679_v15 = vld [vmem:[%s9790_s28 + $0x138] sm:$0xff]   ;;  %v4826_v4 = vor.u32 %v4825_v59, %v4822_v58 }
 0x1a3   : > { %8391 = vmatprep.mubr.msk.bf16.mxu1 %vm1215_vm0, %v9664_v16  ;;  %v9680_v16 = vld [vmem:[%s9790_s28 + $0x140] sm:$0xff]  }
 0x1a4   : > { %v4827_v19 = vsel %vm4315_vm3, %v4817_v56, %v4826_v4 }
 0x1a7   : > { %8680 = vmatmul.mubr.msk.bf16.gmra.mrb[64].mxu0 %vm1215_vm0, %v4629_v25  ;;  %v4701_v25 = vsel %vm4315_vm3, %v4691_v5, %v4700_v17  ;;  %v4763_v5 = vor.u32 %v4762_v62, %v4759_v61 }
 0x1a8   : > { %8683 = vmatprep.mubr.msk.bf16.mxu0 %vm1215_vm0, %v4638_v28  ;;  %v4710_v28 = vsel %vm4315_vm3, %v4700_v17, %v4709_v21  ;;  %v4772_v17 = vor.u32 %v4771_v11, %v4768_v10 }
 0x1aa   : > { %8392 = vmatmul.mubr.msk.bf16.gmra.mrb[64].mxu1 %vm1215_vm0, %v9667_v31  ;;  %v9683_v31 = vld [vmem:[%s9790_s28 + $0x148] sm:$0xff]  }
 0x1ab   : > { %8395 = vmatprep.mubr.msk.bf16.mxu1 %vm1215_vm0, %v9668_v32  ;;  %v9684_v32 = vld [vmem:[%s9790_s28 + $0x150] sm:$0xff]  }
 0x1af   : > { %8684 = vmatmul.mubr.msk.bf16.gmra.mrb[68].mxu0 %vm1215_vm0, %v4647_v41  ;;  %v4719_v41 = vsel %vm4315_vm3, %v4709_v21, %v4718_v33  ;;  %v4781_v21 = vor.u32 %v4780_v14, %v4777_v13 }
 0x1b0   : > { %8687 = vmatprep.mubr.msk.bf16.mxu0 %vm1215_vm0, %v4656_v44  ;;  %v4728_v44 = vsel %vm4315_vm3, %v4718_v33, %v4727_v37 }
 0x1b1   : > { %v4791_v43 = vsel %vm4315_vm3, %v4781_v21, %v4790_v36 }
 0x1b2   : > { %8396 = vmatmul.mubr.msk.bf16.gmra.mrb[68].mxu1 %vm1215_vm0, %v9671_v47  ;;  %v9687_v47 = vld [vmem:[%s9790_s28 + $0x158] sm:$0xff]  }
 0x1b3   : > { %8399 = vmatprep.mubr.msk.bf16.mxu1 %vm1215_vm0, %v9672_v48  ;;  %v9688_v48 = vld [vmem:[%s9790_s28 + $0x160] sm:$0xff]  }
 0x1b7   : > { %8688 = vmatmul.mubr.msk.bf16.gmra.mrb[72].mxu0 %vm1215_vm0, %v4665_v57  ;;  %v4737_v57 = vsel %vm4315_vm3, %v4727_v37, %v4736_v49  ;;  %v4799_v37 = vor.u32 %v4798_v30, %v4795_v29  ;;  %v9712_v29 = vld [vmem:[%s9790_s28 + $0x1f0] sm:$0xff]  }
 0x1b8   : > { %8691 = vmatprep.mubr.msk.bf16.mxu0 %vm1215_vm0, %v4674_v60  ;;  %v4746_v60 = vsel %vm4315_vm3, %v4736_v49, %v4745_v53  ;;  %v9704_v49 = vld [vmem:[%s9790_s28 + $0x1a0] sm:$0xff]   ;;  %v4856_v30 = vshrl.u32 %v9712_v29, 16 }
 0x1ba   : > { %8400 = vmatmul.mubr.msk.bf16.gmra.mrb[72].mxu1 %vm1215_vm0, %v9675_v63  ;;  %v9691_v63 = vld [vmem:[%s9790_s28 + $0x168] sm:$0xff]  }
 0x1bb   : > { %8403 = vmatprep.mubr.msk.bf16.mxu1 %vm1215_vm0, %v9676_v0  ;;  %v9692_v0 = vld [vmem:[%s9790_s28 + $0x170] sm:$0xff]  }
 0x1bf   : > { %8692 = vmatmul.mubr.msk.bf16.gmra.mrb[76].mxu0 %vm1215_vm0, %v4683_v9  ;;  %v4755_v9 = vsel %vm4315_vm3, %v4745_v53, %v4754_v1  ;;  %v9706_v53 = vld [vmem:[%s9790_s28 + $0x1d8] sm:$0xff]  }
 0x1c0   : > { %8695 = vmatprep.mubr.msk.bf16.mxu0 %vm1215_vm0, %v4692_v12  ;;  %v4764_v12 = vsel %vm4315_vm3, %v4754_v1, %v4763_v5  ;;  %v4829_v54 = vshrl.u32 %v9706_v53, 16  ;;  %v4832_v55 = vshll.u32 %v9706_v53, 16 }
 0x1c2   : > { %8404 = vmatmul.mubr.msk.bf16.gmra.mrb[76].mxu1 %vm1215_vm0, %v9679_v15  ;;  %v9695_v15 = vld [vmem:[%s9790_s28 + $0x178] sm:$0xff]   ;;  %v4834_v61 = vrot.slane %v4832_v55, 2 }
 0x1c3   : > { %8407 = vmatprep.mubr.msk.bf16.mxu1 %vm1215_vm0, %v9680_v16  ;;  %v9696_v16 = vld [vmem:[%s9790_s28 + $0x180] sm:$0xff]  }
 0x1c7   : > { %8696 = vmatmul.mubr.msk.bf16.gmra.mrb[80].mxu0 %vm1215_vm0, %v4701_v25  ;;  %v4773_v25 = vsel %vm4315_vm3, %v4763_v5, %v4772_v17 }
 0x1c8   : > { %8699 = vmatprep.mubr.msk.bf16.mxu0 %vm1215_vm0, %v4710_v28  ;;  %v4782_v28 = vsel %vm4315_vm3, %v4772_v17, %v4781_v21 }
 0x1ca   : > { %8408 = vmatmul.mubr.msk.bf16.gmra.mrb[80].mxu1 %vm1215_vm0, %v9683_v31  ;;  %v9699_v31 = vld [vmem:[%s9790_s28 + $0x188] sm:$0xff]  }
 0x1cb   : > { %8411 = vmatprep.mubr.msk.bf16.mxu1 %vm1215_vm0, %v9684_v32  ;;  %v9700_v32 = vld [vmem:[%s9790_s28 + $0x1c0] sm:$0xff]  }
 0x1cc   : > { %v4802_v33 = vshrl.u32 %v9700_v32, 16  ;;  %v4805_v34 = vshll.u32 %v9700_v32, 16  ;;  %v4859_v32 = vshll.u32 %v9712_v29, 16 }
 0x1ce   : > { %v4807_v42 = vrot.slane %v4805_v34, 2 }
 0x1cf   : > { %8700 = vmatmul.mubr.msk.bf16.gmra.mrb[84].mxu0 %vm1215_vm0, %v4719_v41  ;;  %v4804_v41 = vrot.slane %v4802_v33, 1  ;;  %v9714_v33 = vld [vmem:[%s9790_s28 + $0x1f8] sm:$0xff]  }
 0x1d0   : > { %8703 = vmatprep.mubr.msk.bf16.mxu0 %vm1215_vm0, %v4728_v44  ;;  %v4800_v44 = vsel %vm4315_vm3, %v4790_v36, %v4799_v37  ;;  %v4865_v34 = vshrl.u32 %v9714_v33, 16 }
 0x1d2   : > { %8412 = vmatmul.mubr.msk.bf16.gmra.mrb[84].mxu1 %vm1215_vm0, %v9687_v47  ;;  %v9703_v47 = vld [vmem:[%s9790_s28 + $0x198] sm:$0xff]  }
 0x1d3   : > { %8415 = vmatprep.mubr.msk.bf16.mxu1 %vm1215_vm0, %v9688_v48  ;;  %v4808_v48 = vor.u32 %v4807_v42, %v4804_v41 }
 0x1d5   : > { %v4818_v62 = vsel %vm4315_vm3, %v4808_v48, %v4817_v56  ;;  %v9715_v56 = vld [vmem:[%s9790_s28 + $0x1c8] sm:$0xff]  }
 0x1d7   : > { %8704 = vmatmul.mubr.msk.bf16.gmra.mrb[88].mxu0 %vm1215_vm0, %v4737_v57  ;;  %v4809_v57 = vsel %vm4315_vm3, %v4799_v37, %v4808_v48  ;;  %v4867_v48 = vrot.slane %v4865_v34, 1 }
 0x1d8   : > { %8707 = vmatprep.mubr.msk.bf16.mxu0 %vm1215_vm0, %v4746_v60  ;;  %v4831_v60 = vrot.slane %v4829_v54, 1 }
 0x1da   : > { %8416 = vmatmul.mubr.msk.bf16.gmra.mrb[88].mxu1 %vm1215_vm0, %v9691_v63  ;;  %v9707_v63 = vld [vmem:[%s9790_s28 + $0x1a8] sm:$0xff]   ;;  %v4835_v5 = vor.u32 %v4834_v61, %v4831_v60  ;;  %v9717_v61 = vld [vmem:[%s9790_s28 + $0x1d0] sm:$0xff]  }
 0x1db   : > { %8419 = vmatprep.mubr.msk.bf16.mxu1 %vm1215_vm0, %v9692_v0  ;;  %v9708_v0 = vld [vmem:[%s9790_s28 + $0x1e0] sm:$0xff]  }
 0x1dc   : > { %v4838_v1 = vshrl.u32 %v9708_v0, 16  ;;  %v4841_v2 = vshll.u32 %v9708_v0, 16  ;;  %v4836_v20 = vsel %vm4315_vm3, %v4826_v4, %v4835_v5 }
 0x1de   : > { %v4840_v14 = vrot.slane %v4838_v1, 1  ;;  %v9718_v1 = vld [vmem:[%s9790_s28 + $0x208] sm:$0xff]  }
 0x1df   : > { %8708 = vmatmul.mubr.msk.bf16.gmra.mrb[92].mxu0 %vm1215_vm0, %v4755_v9 }
 0x1e0   : > { %8711 = vmatprep.mubr.msk.bf16.mxu0 %vm1215_vm0, %v4764_v12 }
 0x1e2   : > { %8420 = vmatmul.mubr.msk.bf16.gmra.mrb[92].mxu1 %vm1215_vm0, %v9695_v15  ;;  %v4843_v15 = vrot.slane %v4841_v2, 2  ;;  %v4883_v2 = vshrl.u32 %v9718_v1, 16 }
 0x1e3   : > { %8423 = vmatprep.mubr.msk.bf16.mxu1 %vm1215_vm0, %v9696_v16 }
 0x1e7   : > { %8712 = vmatmul.mubr.msk.bf16.gmra.mrb[96].mxu0 %vm1215_vm0, %v4773_v25  ;;  %v4852_v25 = vrot.slane %v4850_v8, 2 }
 0x1e8   : > { %8715 = vmatprep.mubr.msk.bf16.mxu0 %vm1215_vm0, %v4782_v28  ;;  %v4844_v28 = vor.u32 %v4843_v15, %v4840_v14 }
 0x1e9   : > { %v4853_v36 = vor.u32 %v4852_v25, %v4849_v24 }
 0x1ea   : > { %8424 = vmatmul.mubr.msk.bf16.gmra.mrb[96].mxu1 %vm1215_vm0, %v9699_v31  ;;  %v9713_v31 = vld [vmem:[%s9790_s28 + $0x1c0] sm:$0xff]   ;;  %v4845_v42 = vsel %vm4315_vm3, %v4835_v5, %v4844_v28 }
 0x1eb   : > { %8427 = vmatprep.mubr.msk.bf16.mxu1 %vm1215_vm0, %v9701_v35  ;;  %v4868_v35 = vshll.u32 %v9714_v33, 16  ;;  %v4854_v53 = vsel %vm4315_vm3, %v4844_v28, %v4853_v36  ;;  %v9720_v28 = vld [vmem:[%s9790_s28 + $0x210] sm:$0xff]   ;;  %v9722_v33 = vld [vmem:[%s9790_s28 + $0x218] sm:$0xff]  }
 0x1ec   : > { %v4892_v29 = vshrl.u32 %v9720_v28, 16  ;;  %v4901_v34 = vshrl.u32 %v9722_v33, 16 }
 0x1ef   : > { %8716 = vmatmul.mubr.msk.bf16.gmra.mrb[100].mxu0 %vm1215_vm0, %v4791_v43  ;;  %v4858_v43 = vrot.slane %v4856_v30, 1 }
 0x1f0   : > { %8719 = vmatprep.mubr.msk.bf16.mxu0 %vm1215_vm0, %v4800_v44 }
 0x1f2   : > { %8428 = vmatmul.mubr.msk.bf16.gmra.mrb[100].mxu1 %vm1215_vm0, %v9703_v47  ;;  %v4861_v47 = vrot.slane %v4859_v32, 2  ;;  %v4895_v32 = vshll.u32 %v9720_v28, 16 }
 0x1f3   : > { %8431 = vmatprep.mubr.msk.bf16.mxu1 %vm1215_vm0, %v9704_v49  ;;  %v4870_v49 = vrot.slane %v4868_v35, 2  ;;  %v4904_v35 = vshll.u32 %v9722_v33, 16  ;;  %v9728_v33 = vld [vmem:[%s9790_s28 + $0x200] sm:$0xff]  }
 0x1f7   : > { %8720 = vmatmul.mubr.msk.bf16.gmra.mrb[104].mxu0 %vm1215_vm0, %v4809_v57  ;;  %v9716_v57 = vld [vmem:[%s9790_s28 + $0x200] sm:$0xff]  }
 0x1f8   : > { %8723 = vmatprep.mubr.msk.bf16.mxu0 %vm1215_vm0, %v4818_v62  ;;  %v4874_v58 = vshrl.u32 %v9716_v57, 16  ;;  %v4877_v59 = vshll.u32 %v9716_v57, 16  ;;  %v4862_v62 = vor.u32 %v4861_v47, %v4858_v43  ;;  %v4894_v47 = vrot.slane %v4892_v29, 1 }
 0x1fa   : > { %8432 = vmatmul.mubr.msk.bf16.gmra.mrb[104].mxu1 %vm1215_vm0, %v9707_v63  ;;  %v8617_v10 = vpop.f32.mrb[0].mxu0  ;;  %v4871_v63 = vor.u32 %v4870_v49, %v4867_v48 }
 0x1fb   : > { %8435 = vmatprep.mubr.msk.bf16.mxu1 %vm1215_vm0, %v9709_v3  ;;  %v5198_v13 = vpop.f32.mrb[1].mxu0  ;;  %v4886_v3 = vshll.u32 %v9718_v1, 16 }
 0x1fc   : > { %v8618_v18 = vpop.f32.mrb[2].mxu0 }
 0x1fd   : > { %v8329_v9 = vpop.f32.mrb[0].mxu1  ;;  %v5201_v23 = vpop.f32.mrb[3].mxu0 }
 0x1fe   : > { %v8751_v11 = vadd.f32 %v8617_v10, %v8329_v9  ;;  %v2191_v12 = vpop.f32.mrb[1].mxu1 }
 0x1ff   : > { %v8752_v16 = vadd.f32 %v5198_v13, %v2191_v12  ;;  %v8330_v17 = vpop.f32.mrb[2].mxu1  ;;  %8724 = vmatmul.mubr.msk.bf16.gmra.mrb[108].mxu0 %vm1215_vm0, %v4827_v19  ;;  %v4876_v12 = vrot.slane %v4874_v58, 1  ;;  %v4879_v13 = vrot.slane %v4877_v59, 2 }
 0x200   : > { %9324 = vtanh.f32 %v8751_v11  ;;  %v8753_v21 = vadd.f32 %v8618_v18, %v8330_v17  ;;  %v2194_v22 = vpop.f32.mrb[3].mxu1  ;;  %8727 = vmatprep.mubr.msk.bf16.mxu0 %vm1215_vm0, %v4836_v20  ;;  %v4863_v17 = vsel %vm4315_vm3, %v4853_v36, %v4862_v62  ;;  %v4872_v18 = vsel %vm4315_vm3, %v4862_v62, %v4871_v63 }
 0x201   : > { %9326 = vtanh.f32 %v8752_v16  ;;  %v8754_v26 = vadd.f32 %v5201_v23, %v2194_v22  ;;  %v4885_v22 = vrot.slane %v4883_v2, 1  ;;  %v4888_v23 = vrot.slane %v4886_v3, 2 }
 0x202   : > { %9328 = vtanh.f32 %v8753_v21  ;;  %8436 = vmatmul.mubr.msk.bf16.gmra.mrb[108].mxu1 %vm1215_vm0, %v9711_v27  ;;  %v8621_v38 = vpop.f32.mrb[4].mxu0  ;;  %v4880_v27 = vor.u32 %v4879_v13, %v4876_v12 }
 0x203   : > { %9330 = vtanh.f32 %v8754_v26  ;;  %8439 = vmatprep.mubr.msk.bf16.mxu1 %vm1215_vm0, %v9713_v31  ;;  %v5214_v41 = vpop.f32.mrb[5].mxu0  ;;  %v9719_v26 = vld [vmem:[%s9790_s28 + $0x1d8] sm:$0xff]   ;;  %v9721_v31 = vld [vmem:[%s9790_s28 + $0x1e0] sm:$0xff]  }
 0x204   : > { %v8622_v46 = vpop.f32.mrb[6].mxu0 }
 0x205   : > { %v8333_v37 = vpop.f32.mrb[4].mxu1  ;;  %v5217_v52 = vpop.f32.mrb[7].mxu0 }
 0x206   : > { %v8755_v39 = vadd.f32 %v8621_v38, %v8333_v37  ;;  %v2207_v40 = vpop.f32.mrb[5].mxu1  ;;  %v4889_v37 = vor.u32 %v4888_v23, %v4885_v22  ;;  %v9323_v23 = vld [vmem:[%s9790_s28 + $0x230] ss:$0 sps:$4 sm:$0x33]  }
 0x207   : > { %v8756_v44 = vadd.f32 %v5214_v41, %v2207_v40  ;;  %v8334_v45 = vpop.f32.mrb[6].mxu1  ;;  %8728 = vmatmul.mubr.msk.bf16.gmra.mrb[112].mxu0 %vm1215_vm0, %v4845_v42 }
 0x208   : > { %9332 = vtanh.f32 %v8755_v39  ;;  %v8757_v50 = vadd.f32 %v8622_v46, %v8334_v45  ;;  %v2210_v51 = vpop.f32.mrb[7].mxu1  ;;  %8731 = vmatprep.mubr.msk.bf16.mxu0 %vm1215_vm0, %v4854_v53  ;;  %v4881_v46 = vsel %vm4315_vm3, %v4871_v63, %v4880_v27  ;;  %v4906_v53 = vrot.slane %v4904_v35, 2 }
 0x209   : > { %9334 = vtanh.f32 %v8756_v44  ;;  %v8758_v54 = vadd.f32 %v5217_v52, %v2210_v51  ;;  %v4897_v51 = vrot.slane %v4895_v32, 2  ;;  %v4903_v52 = vrot.slane %v4901_v34, 1 }
 0x20a   : > { %v9325_v55 = vpop.eup %9324  ;;  %9336 = vtanh.f32 %v8757_v50  ;;  %8440 = vmatmul.mubr.msk.bf16.gmra.mrb[112].mxu1 %vm1215_vm0, %v9715_v56  ;;  %v8625_v7 = vpop.f32.mrb[8].mxu0  ;;  %v4890_v57 = vsel %vm4315_vm3, %v4880_v27, %v4889_v37  ;;  %v4928_v35 = vshrl.u32 %v9323_v23, 16 }
 0x20b   : > { %v9327_v60 = vpop.eup %9326  ;;  %9338 = vtanh.f32 %v8758_v54  ;;  %8443 = vmatprep.mubr.msk.bf16.mxu1 %vm1215_vm0, %v9717_v61  ;;  %v5230_v11 = vpop.f32.mrb[9].mxu0  ;;  %v9724_v61 = vld [vmem:[%s9790_s28 + $0x220] sm:$0xff]   ;;  %v4898_v1 = vor.u32 %v4897_v51, %v4894_v47  ;;  %v4907_v2 = vor.u32 %v4906_v53, %v4903_v52 }
 0x20c   : > { %v9329_v0 = vpop.eup %9328  ;;  %v8626_v16 = vpop.f32.mrb[10].mxu0  ;;  %v4910_v62 = vshrl.u32 %v9724_v61, 16  ;;  %v4913_v3 = vshll.u32 %v9724_v61, 16  ;;  %v4930_v51 = vrot.slane %v4928_v35, 1  ;;  %v9730_v61 = vld [vmem:[%s9790_s28 + $0x210] sm:$0xff]  }
 0x20d   : > { %v9331_v4 = vpop.eup %9330  ;;  %v7488_v5 = vpack.c.bf16 %v9329_v0, %v9325_v55  ;;  %v8337_v6 = vpop.f32.mrb[8].mxu1  ;;  %v9725_v0 = vld [vmem:[%s9790_s28 + $0x1f0] sm:$0xff]  }
 0x20e   : > { %v7483_v8 = vpack.c.bf16 %v9331_v4, %v9327_v60  ;;  %v8759_v9 = vadd.f32 %v8625_v7, %v8337_v6  ;;  %v2223_v10 = vpop.f32.mrb[9].mxu1  ;;  %v5233_v21 = vpop.f32.mrb[11].mxu0  ;;  %v9723_v60 = vld [vmem:[%s9790_s28 + $0x1e8] sm:$0xff]   ;;  %v4915_v22 = vrot.slane %v4913_v3, 2 }
 0x20f   : > { %7820 = vst [vmem:[%s10532_s23 + $0x8] sm:$0xff] %v7488_v5   ;;  %v8760_v14 = vadd.f32 %v5230_v11, %v2223_v10  ;;  %v8338_v15 = vpop.f32.mrb[10].mxu1  ;;  %8732 = vmatmul.mubr.msk.bf16.gmra.mrb[116].mxu0 %vm1215_vm0, %v4863_v17  ;;  %v9726_v5 = vld [vmem:[%s9790_s28 + $0x228] sm:$0xff]  }
 0x210   : > { %7484 = vst [vmem:[%s10532_s23] sm:$0xff] %v7483_v8   ;;  %9340 = vtanh.f32 %v8759_v9  ;;  %v8761_v19 = vadd.f32 %v8626_v16, %v8338_v15  ;;  %v2226_v20 = vpop.f32.mrb[11].mxu1  ;;  %8735 = vmatprep.mubr.msk.bf16.mxu0 %vm1215_vm0, %v4872_v18  ;;  %v4919_v6 = vshrl.u32 %v9726_v5, 16  ;;  %v4922_v7 = vshll.u32 %v9726_v5, 16 }
 0x211   : > { %9342 = vtanh.f32 %v8760_v14  ;;  %v8762_v24 = vadd.f32 %v5233_v21, %v2226_v20  ;;  %v4912_v16 = vrot.slane %v4910_v62, 1  ;;  %v4899_v20 = vsel %vm4315_vm3, %v4889_v37, %v4898_v1 }
 0x212   : > { %v9333_v25 = vpop.eup %9332  ;;  %9344 = vtanh.f32 %v8761_v19  ;;  %8444 = vmatmul.mubr.msk.bf16.gmra.mrb[116].mxu1 %vm1215_vm0, %v9719_v26  ;;  %v8629_v41 = vpop.f32.mrb[12].mxu0  ;;  %v4908_v21 = vsel %vm4315_vm3, %v4898_v1, %v4907_v2  ;;  %v4921_v27 = vrot.slane %v4919_v6, 1  ;;  %v4924_v28 = vrot.slane %v4922_v7, 2 }
 0x213   : > { %v9335_v30 = vpop.eup %9334  ;;  %9346 = vtanh.f32 %v8762_v24  ;;  %8447 = vmatprep.mubr.msk.bf16.mxu1 %vm1215_vm0, %v9721_v31  ;;  %v5246_v45 = vpop.f32.mrb[13].mxu0  ;;  %v9727_v31 = vld [vmem:[%s9790_s28 + $0x1f8] sm:$0xff]   ;;  %v4916_v34 = vor.u32 %v4915_v22, %v4912_v16 }
 0x214   : > { %v9337_v36 = vpop.eup %9336  ;;  %v8630_v50 = vpop.f32.mrb[14].mxu0 }
 0x215   : > { %v9339_v38 = vpop.eup %9338  ;;  %v7498_v39 = vpack.c.bf16 %v9337_v36, %v9333_v25  ;;  %v8341_v40 = vpop.f32.mrb[12].mxu1  ;;  %v4931_v36 = vshll.u32 %v9323_v23, 16 }
 0x216   : > { %v7493_v42 = vpack.c.bf16 %v9339_v38, %v9335_v30  ;;  %v8763_v43 = vadd.f32 %v8629_v41, %v8341_v40  ;;  %v2239_v44 = vpop.f32.mrb[13].mxu1  ;;  %v5249_v56 = vpop.f32.mrb[15].mxu0  ;;  %v4925_v38 = vor.u32 %v4924_v28, %v4921_v27 }
 0x217   : > { %7822 = vst [vmem:[%s10532_s23 + $0x18] sm:$0xff] %v7498_v39   ;;  %v8764_v48 = vadd.f32 %v5246_v45, %v2239_v44  ;;  %v8342_v49 = vpop.f32.mrb[14].mxu1  ;;  %8736 = vmatmul.mubr.msk.bf16.gmra.mrb[120].mxu0 %vm1215_vm0, %v4881_v46  ;;  %v4933_v52 = vrot.slane %v4931_v36, 2 }
 0x218   : > { %7821 = vst [vmem:[%s10532_s23 + $0x10] sm:$0xff] %v7493_v42   ;;  %9348 = vtanh.f32 %v8763_v43  ;;  %v8765_v54 = vadd.f32 %v8630_v50, %v8342_v49  ;;  %v2242_v55 = vpop.f32.mrb[15].mxu1  ;;  %8739 = vmatprep.mubr.msk.bf16.mxu0 %vm1215_vm0, %v4890_v57  ;;  %v4917_v50 = vsel %vm4315_vm3, %v4907_v2, %v4916_v34 }
 0x219   : > { %9350 = vtanh.f32 %v8764_v48  ;;  %v8766_v58 = vadd.f32 %v5249_v56, %v2242_v55  ;;  %v4926_v56 = vsel %vm4315_vm3, %v4916_v34, %v4925_v38  ;;  %v4934_v62 = vor.u32 %v4933_v52, %v4930_v51 }
 0x21a   : > { %v9341_v59 = vpop.eup %9340  ;;  %9352 = vtanh.f32 %v8765_v54  ;;  %8448 = vmatmul.mubr.msk.bf16.gmra.mrb[120].mxu1 %vm1215_vm0, %v9723_v60  ;;  %v8633_v11 = vpop.f32.mrb[16].mxu0 }
 0x21b   : > { %v9343_v63 = vpop.eup %9342  ;;  %9354 = vtanh.f32 %v8766_v58  ;;  %8451 = vmatprep.mubr.msk.bf16.mxu1 %vm1215_vm0, %v9725_v0  ;;  %v5262_v15 = vpop.f32.mrb[17].mxu0 }
 0x21c   : > { %v9345_v4 = vpop.eup %9344  ;;  %v8634_v19 = vpop.f32.mrb[18].mxu0 }
 0x21d   : > { %v9347_v8 = vpop.eup %9346  ;;  %v7508_v9 = vpack.c.bf16 %v9345_v4, %v9341_v59  ;;  %v8345_v10 = vpop.f32.mrb[16].mxu1  ;;  %v9729_v59 = vld [vmem:[%s9790_s28 + $0x208] sm:$0xff]  }
 0x21e   : > { %v7503_v12 = vpack.c.bf16 %v9347_v8, %v9343_v63  ;;  %v8767_v13 = vadd.f32 %v8633_v11, %v8345_v10  ;;  %v2255_v14 = vpop.f32.mrb[17].mxu1  ;;  %v5265_v26 = vpop.f32.mrb[19].mxu0  ;;  %v4935_v11 = vsel %vm4315_vm3, %v4925_v38, %v4934_v62 }
 0x21f   : > { %7824 = vst [vmem:[%s10532_s23 + $0x28] sm:$0xff] %v7508_v9   ;;  %v8768_v17 = vadd.f32 %v5262_v15, %v2255_v14  ;;  %v8346_v18 = vpop.f32.mrb[18].mxu1  ;;  %8740 = vmatmul.mubr.msk.bf16.gmra.mrb[124].mxu0 %vm1215_vm0, %v4899_v20 }
 0x220   : > { %7823 = vst [vmem:[%s10532_s23 + $0x20] sm:$0xff] %v7503_v12   ;;  %9356 = vtanh.f32 %v8767_v13  ;;  %v8769_v24 = vadd.f32 %v8634_v19, %v8346_v18  ;;  %v2258_v25 = vpop.f32.mrb[19].mxu1  ;;  %8743 = vmatprep.mubr.msk.bf16.mxu0 %vm1215_vm0, %v4908_v21 }
 0x221   : > { %9358 = vtanh.f32 %v8768_v17  ;;  %v8770_v29 = vadd.f32 %v5265_v26, %v2258_v25  ;;  %v9731_v17 = vld [vmem:[%s9790_s28 + $0x218] sm:$0xff]  }
 0x222   : > { %v9349_v30 = vpop.eup %9348  ;;  %9360 = vtanh.f32 %v8769_v24  ;;  %8452 = vmatmul.mubr.msk.bf16.gmra.mrb[124].mxu1 %vm1215_vm0, %v9727_v31  ;;  %v8637_v42 = vpop.f32.mrb[20].mxu0 }
 0x223   : > { %v9351_v32 = vpop.eup %9350  ;;  %9362 = vtanh.f32 %v8770_v29  ;;  %8455 = vmatprep.mubr.msk.bf16.mxu1 %vm1215_vm0, %v9728_v33  ;;  %v5278_v46 = vpop.f32.mrb[21].mxu0 }
 0x224   : > { %v9353_v37 = vpop.eup %9352  ;;  %v8638_v49 = vpop.f32.mrb[22].mxu0 }
 0x225   : > { %v9355_v39 = vpop.eup %9354  ;;  %v7518_v40 = vpack.c.bf16 %v9353_v37, %v9349_v30  ;;  %v8349_v41 = vpop.f32.mrb[20].mxu1 }
 0x226   : > { %v7513_v43 = vpack.c.bf16 %v9355_v39, %v9351_v32  ;;  %v8771_v44 = vadd.f32 %v8637_v42, %v8349_v41  ;;  %v2271_v45 = vpop.f32.mrb[21].mxu1  ;;  %v5281_v55 = vpop.f32.mrb[23].mxu0 }
 0x227   : > { %7826 = vst [vmem:[%s10532_s23 + $0x38] sm:$0xff] %v7518_v40   ;;  %v8772_v47 = vadd.f32 %v5278_v46, %v2271_v45  ;;  %v8350_v48 = vpop.f32.mrb[22].mxu1  ;;  %8744 = vmatmul.mubr.msk.bf16.gmra.mrb[128].mxu0 %vm1215_vm0, %v4917_v50 }
 0x228   : > { %7825 = vst [vmem:[%s10532_s23 + $0x30] sm:$0xff] %v7513_v43   ;;  %9364 = vtanh.f32 %v8771_v44  ;;  %v8773_v53 = vadd.f32 %v8638_v49, %v8350_v48  ;;  %v2274_v54 = vpop.f32.mrb[23].mxu1  ;;  %8747 = vmatprep.mubr.msk.bf16.mxu0 %vm1215_vm0, %v4926_v56 }
 0x229   : > { %9366 = vtanh.f32 %v8772_v47  ;;  %v8774_v57 = vadd.f32 %v5281_v55, %v2274_v54 }
 0x22a   : > { %v9357_v58 = vpop.eup %9356  ;;  %9368 = vtanh.f32 %v8773_v53  ;;  %8456 = vmatmul.mubr.msk.bf16.gmra.mrb[128].mxu1 %vm1215_vm0, %v9729_v59  ;;  %v8641_v3 = vpop.f32.mrb[24].mxu0 }
 0x22b   : > { %v9359_v60 = vpop.eup %9358  ;;  %9370 = vtanh.f32 %v8774_v57  ;;  %8459 = vmatprep.mubr.msk.bf16.mxu1 %vm1215_vm0, %v9730_v61  ;;  %v5294_v7 = vpop.f32.mrb[25].mxu0 }
 0x22c   : > { %v9361_v63 = vpop.eup %9360  ;;  %v8642_v10 = vpop.f32.mrb[26].mxu0 }
 0x22d   : > { %v9363_v0 = vpop.eup %9362  ;;  %v7528_v1 = vpack.c.bf16 %v9361_v63, %v9357_v58  ;;  %v8353_v2 = vpop.f32.mrb[24].mxu1 }
 0x22e   : > { %v7523_v4 = vpack.c.bf16 %v9363_v0, %v9359_v60  ;;  %v8775_v5 = vadd.f32 %v8641_v3, %v8353_v2  ;;  %v2287_v6 = vpop.f32.mrb[25].mxu1  ;;  %v5297_v14 = vpop.f32.mrb[27].mxu0 }
 0x22f   : > { %7828 = vst [vmem:[%s10532_s23 + $0x48] sm:$0xff] %v7528_v1   ;;  %v8776_v8 = vadd.f32 %v5294_v7, %v2287_v6  ;;  %v8354_v9 = vpop.f32.mrb[26].mxu1  ;;  %8748 = vmatmul.mubr.msk.bf16.gmra.mrb[132].mxu0 %vm1215_vm0, %v4935_v11 }
 0x230   : > { %7827 = vst [vmem:[%s10532_s23 + $0x40] sm:$0xff] %v7523_v4   ;;  %9372 = vtanh.f32 %v8775_v5  ;;  %v8777_v12 = vadd.f32 %v8642_v10, %v8354_v9  ;;  %v2290_v13 = vpop.f32.mrb[27].mxu1 }
 0x231   : > { %9374 = vtanh.f32 %v8776_v8  ;;  %v8778_v15 = vadd.f32 %v5297_v14, %v2290_v13 }
 0x232   : > { %v9365_v16 = vpop.eup %9364  ;;  %9376 = vtanh.f32 %v8777_v12  ;;  %8460 = vmatmul.mubr.msk.bf16.gmra.mrb[132].mxu1 %vm1215_vm0, %v9731_v17  ;;  %v8645_v23 = vpop.f32.mrb[28].mxu0 }
 0x233   : > { %v9367_v18 = vpop.eup %9366  ;;  %9378 = vtanh.f32 %v8778_v15  ;;  %v5310_v27 = vpop.f32.mrb[29].mxu0 }
 0x234   : > { %v9369_v19 = vpop.eup %9368  ;;  %v8646_v30 = vpop.f32.mrb[30].mxu0 }
 0x235   : > { %v9371_v20 = vpop.eup %9370  ;;  %v7538_v21 = vpack.c.bf16 %v9369_v19, %v9365_v16  ;;  %v8357_v22 = vpop.f32.mrb[28].mxu1 }
 0x236   : > { %v7533_v24 = vpack.c.bf16 %v9371_v20, %v9367_v18  ;;  %v8779_v25 = vadd.f32 %v8645_v23, %v8357_v22  ;;  %v2303_v26 = vpop.f32.mrb[29].mxu1  ;;  %v5313_v33 = vpop.f32.mrb[31].mxu0 }
 0x237   : > { %7830 = vst [vmem:[%s10532_s23 + $0x58] sm:$0xff] %v7538_v21   ;;  %v8780_v28 = vadd.f32 %v5310_v27, %v2303_v26  ;;  %v8358_v29 = vpop.f32.mrb[30].mxu1 }
 0x238   : > { %7829 = vst [vmem:[%s10532_s23 + $0x50] sm:$0xff] %v7533_v24   ;;  %9380 = vtanh.f32 %v8779_v25  ;;  %v8781_v31 = vadd.f32 %v8646_v30, %v8358_v29  ;;  %v2306_v32 = vpop.f32.mrb[31].mxu1 }
 0x239   : > { %9382 = vtanh.f32 %v8780_v28  ;;  %v8782_v34 = vadd.f32 %v5313_v33, %v2306_v32 }
 0x23a   : > { %v9373_v35 = vpop.eup %9372  ;;  %9384 = vtanh.f32 %v8781_v31  ;;  %v8649_v41 = vpop.f32.mrb[32].mxu0 }
 0x23b   : > { %v9375_v36 = vpop.eup %9374  ;;  %9386 = vtanh.f32 %v8782_v34  ;;  %v5326_v45 = vpop.f32.mrb[33].mxu0 }
 0x23c   : > { %v9377_v37 = vpop.eup %9376  ;;  %v8650_v48 = vpop.f32.mrb[34].mxu0 }
 0x23d   : > { %v9379_v38 = vpop.eup %9378  ;;  %v7548_v39 = vpack.c.bf16 %v9377_v37, %v9373_v35  ;;  %v8361_v40 = vpop.f32.mrb[32].mxu1 }
 0x23e   : > { %v7543_v42 = vpack.c.bf16 %v9379_v38, %v9375_v36  ;;  %v8783_v43 = vadd.f32 %v8649_v41, %v8361_v40  ;;  %v2319_v44 = vpop.f32.mrb[33].mxu1  ;;  %v5329_v51 = vpop.f32.mrb[35].mxu0 }
 0x23f   : > { %7832 = vst [vmem:[%s10532_s23 + $0x68] sm:$0xff] %v7548_v39   ;;  %v8784_v46 = vadd.f32 %v5326_v45, %v2319_v44  ;;  %v8362_v47 = vpop.f32.mrb[34].mxu1 }
 0x240   : > { %7831 = vst [vmem:[%s10532_s23 + $0x60] sm:$0xff] %v7543_v42   ;;  %9388 = vtanh.f32 %v8783_v43  ;;  %v8785_v49 = vadd.f32 %v8650_v48, %v8362_v47  ;;  %v2322_v50 = vpop.f32.mrb[35].mxu1 }
 0x241   : > { %9390 = vtanh.f32 %v8784_v46  ;;  %v8786_v52 = vadd.f32 %v5329_v51, %v2322_v50 }
 0x242   : > { %v9381_v53 = vpop.eup %9380  ;;  %9392 = vtanh.f32 %v8785_v49  ;;  %v8653_v59 = vpop.f32.mrb[36].mxu0 }
 0x243   : > { %v9383_v54 = vpop.eup %9382  ;;  %9394 = vtanh.f32 %v8786_v52  ;;  %v5342_v63 = vpop.f32.mrb[37].mxu0 }
 0x244   : > { %v9385_v55 = vpop.eup %9384  ;;  %v8654_v2 = vpop.f32.mrb[38].mxu0 }
 0x245   : > { %v9387_v56 = vpop.eup %9386  ;;  %v7558_v57 = vpack.c.bf16 %v9385_v55, %v9381_v53  ;;  %v8365_v58 = vpop.f32.mrb[36].mxu1 }
 0x246   : > { %v7553_v60 = vpack.c.bf16 %v9387_v56, %v9383_v54  ;;  %v8787_v61 = vadd.f32 %v8653_v59, %v8365_v58  ;;  %v2335_v62 = vpop.f32.mrb[37].mxu1  ;;  %v5345_v5 = vpop.f32.mrb[39].mxu0 }
 0x247   : > { %7834 = vst [vmem:[%s10532_s23 + $0x78] sm:$0xff] %v7558_v57   ;;  %v8788_v0 = vadd.f32 %v5342_v63, %v2335_v62  ;;  %v8366_v1 = vpop.f32.mrb[38].mxu1 }
 0x248   : > { %7833 = vst [vmem:[%s10532_s23 + $0x70] sm:$0xff] %v7553_v60   ;;  %9396 = vtanh.f32 %v8787_v61  ;;  %v8789_v3 = vadd.f32 %v8654_v2, %v8366_v1  ;;  %v2338_v4 = vpop.f32.mrb[39].mxu1 }
 0x249   : > { %9398 = vtanh.f32 %v8788_v0  ;;  %v8790_v6 = vadd.f32 %v5345_v5, %v2338_v4 }
 0x24a   : > { %v9389_v7 = vpop.eup %9388  ;;  %9400 = vtanh.f32 %v8789_v3  ;;  %v8657_v13 = vpop.f32.mrb[40].mxu0 }
 0x24b   : > { %v9391_v8 = vpop.eup %9390  ;;  %9402 = vtanh.f32 %v8790_v6  ;;  %v5358_v17 = vpop.f32.mrb[41].mxu0 }
 0x24c   : > { %v9393_v9 = vpop.eup %9392  ;;  %v8658_v20 = vpop.f32.mrb[42].mxu0 }
 0x24d   : > { %v9395_v10 = vpop.eup %9394  ;;  %v7568_v11 = vpack.c.bf16 %v9393_v9, %v9389_v7  ;;  %v8369_v12 = vpop.f32.mrb[40].mxu1 }
 0x24e   : > { %v7563_v14 = vpack.c.bf16 %v9395_v10, %v9391_v8  ;;  %v8791_v15 = vadd.f32 %v8657_v13, %v8369_v12  ;;  %v2351_v16 = vpop.f32.mrb[41].mxu1  ;;  %v5361_v23 = vpop.f32.mrb[43].mxu0 }
 0x24f   : > { %7836 = vst [vmem:[%s10532_s23 + $0x88] sm:$0xff] %v7568_v11   ;;  %v8792_v18 = vadd.f32 %v5358_v17, %v2351_v16  ;;  %v8370_v19 = vpop.f32.mrb[42].mxu1 }
 0x250   : > { %7835 = vst [vmem:[%s10532_s23 + $0x80] sm:$0xff] %v7563_v14   ;;  %9404 = vtanh.f32 %v8791_v15  ;;  %v8793_v21 = vadd.f32 %v8658_v20, %v8370_v19  ;;  %v2354_v22 = vpop.f32.mrb[43].mxu1 }
 0x251   : > { %9406 = vtanh.f32 %v8792_v18  ;;  %v8794_v24 = vadd.f32 %v5361_v23, %v2354_v22 }
 0x252   : > { %v9397_v25 = vpop.eup %9396  ;;  %9408 = vtanh.f32 %v8793_v21  ;;  %v8661_v31 = vpop.f32.mrb[44].mxu0 }
 0x253   : > { %v9399_v26 = vpop.eup %9398  ;;  %9410 = vtanh.f32 %v8794_v24  ;;  %v5374_v35 = vpop.f32.mrb[45].mxu0 }
 0x254   : > { %v9401_v27 = vpop.eup %9400  ;;  %v8662_v38 = vpop.f32.mrb[46].mxu0 }
 0x255   : > { %v9403_v28 = vpop.eup %9402  ;;  %v7578_v29 = vpack.c.bf16 %v9401_v27, %v9397_v25  ;;  %v8373_v30 = vpop.f32.mrb[44].mxu1 }
 0x256   : > { %v7573_v32 = vpack.c.bf16 %v9403_v28, %v9399_v26  ;;  %v8795_v33 = vadd.f32 %v8661_v31, %v8373_v30  ;;  %v2367_v34 = vpop.f32.mrb[45].mxu1  ;;  %v5377_v41 = vpop.f32.mrb[47].mxu0 }
 0x257   : > { %7838 = vst [vmem:[%s10532_s23 + $0x98] sm:$0xff] %v7578_v29   ;;  %v8796_v36 = vadd.f32 %v5374_v35, %v2367_v34  ;;  %v8374_v37 = vpop.f32.mrb[46].mxu1 }
 0x258   : > { %7837 = vst [vmem:[%s10532_s23 + $0x90] sm:$0xff] %v7573_v32   ;;  %9412 = vtanh.f32 %v8795_v33  ;;  %v8797_v39 = vadd.f32 %v8662_v38, %v8374_v37  ;;  %v2370_v40 = vpop.f32.mrb[47].mxu1 }
 0x259   : > { %9414 = vtanh.f32 %v8796_v36  ;;  %v8798_v42 = vadd.f32 %v5377_v41, %v2370_v40 }
 0x25a   : > { %v9405_v43 = vpop.eup %9404  ;;  %9416 = vtanh.f32 %v8797_v39  ;;  %v8665_v49 = vpop.f32.mrb[48].mxu0 }
 0x25b   : > { %v9407_v44 = vpop.eup %9406  ;;  %9418 = vtanh.f32 %v8798_v42  ;;  %v5390_v53 = vpop.f32.mrb[49].mxu0 }
 0x25c   : > { %v9409_v45 = vpop.eup %9408  ;;  %v8666_v56 = vpop.f32.mrb[50].mxu0 }
 0x25d   : > { %v9411_v46 = vpop.eup %9410  ;;  %v7588_v47 = vpack.c.bf16 %v9409_v45, %v9405_v43  ;;  %v8377_v48 = vpop.f32.mrb[48].mxu1 }
 0x25e   : > { %v7583_v50 = vpack.c.bf16 %v9411_v46, %v9407_v44  ;;  %v8799_v51 = vadd.f32 %v8665_v49, %v8377_v48  ;;  %v2383_v52 = vpop.f32.mrb[49].mxu1  ;;  %v5393_v59 = vpop.f32.mrb[51].mxu0 }
 0x25f   : > { %7840 = vst [vmem:[%s10532_s23 + $0xa8] sm:$0xff] %v7588_v47   ;;  %v8800_v54 = vadd.f32 %v5390_v53, %v2383_v52  ;;  %v8378_v55 = vpop.f32.mrb[50].mxu1 }
 0x260   : > { %7839 = vst [vmem:[%s10532_s23 + $0xa0] sm:$0xff] %v7583_v50   ;;  %9420 = vtanh.f32 %v8799_v51  ;;  %v8801_v57 = vadd.f32 %v8666_v56, %v8378_v55  ;;  %v2386_v58 = vpop.f32.mrb[51].mxu1 }
 0x261   : > { %9422 = vtanh.f32 %v8800_v54  ;;  %v8802_v60 = vadd.f32 %v5393_v59, %v2386_v58 }
 0x262   : > { %v9413_v61 = vpop.eup %9412  ;;  %9424 = vtanh.f32 %v8801_v57  ;;  %v8669_v3 = vpop.f32.mrb[52].mxu0 }
 0x263   : > { %v9415_v62 = vpop.eup %9414  ;;  %9426 = vtanh.f32 %v8802_v60  ;;  %v5406_v7 = vpop.f32.mrb[53].mxu0 }
 0x264   : > { %v9417_v63 = vpop.eup %9416  ;;  %v8670_v10 = vpop.f32.mrb[54].mxu0 }
 0x265   : > { %v9419_v0 = vpop.eup %9418  ;;  %v7598_v1 = vpack.c.bf16 %v9417_v63, %v9413_v61  ;;  %v8381_v2 = vpop.f32.mrb[52].mxu1 }
 0x266   : > { %v7593_v4 = vpack.c.bf16 %v9419_v0, %v9415_v62  ;;  %v8803_v5 = vadd.f32 %v8669_v3, %v8381_v2  ;;  %v2399_v6 = vpop.f32.mrb[53].mxu1  ;;  %v5409_v13 = vpop.f32.mrb[55].mxu0 }
 0x267   : > { %7842 = vst [vmem:[%s10532_s23 + $0xb8] sm:$0xff] %v7598_v1   ;;  %v8804_v8 = vadd.f32 %v5406_v7, %v2399_v6  ;;  %v8382_v9 = vpop.f32.mrb[54].mxu1 }
 0x268   : > { %7841 = vst [vmem:[%s10532_s23 + $0xb0] sm:$0xff] %v7593_v4   ;;  %9428 = vtanh.f32 %v8803_v5  ;;  %v8805_v11 = vadd.f32 %v8670_v10, %v8382_v9  ;;  %v2402_v12 = vpop.f32.mrb[55].mxu1 }
 0x269   : > { %9430 = vtanh.f32 %v8804_v8  ;;  %v8806_v14 = vadd.f32 %v5409_v13, %v2402_v12 }
 0x26a   : > { %v9421_v15 = vpop.eup %9420  ;;  %9432 = vtanh.f32 %v8805_v11  ;;  %v8673_v21 = vpop.f32.mrb[56].mxu0 }
 0x26b   : > { %v9423_v16 = vpop.eup %9422  ;;  %9434 = vtanh.f32 %v8806_v14  ;;  %v5422_v25 = vpop.f32.mrb[57].mxu0 }
 0x26c   : > { %v9425_v17 = vpop.eup %9424  ;;  %v8674_v28 = vpop.f32.mrb[58].mxu0 }
 0x26d   : > { %v9427_v18 = vpop.eup %9426  ;;  %v7608_v19 = vpack.c.bf16 %v9425_v17, %v9421_v15  ;;  %v8385_v20 = vpop.f32.mrb[56].mxu1 }
 0x26e   : > { %v7603_v22 = vpack.c.bf16 %v9427_v18, %v9423_v16  ;;  %v8807_v23 = vadd.f32 %v8673_v21, %v8385_v20  ;;  %v2415_v24 = vpop.f32.mrb[57].mxu1  ;;  %v5425_v31 = vpop.f32.mrb[59].mxu0 }
 0x26f   : > { %7844 = vst [vmem:[%s10532_s23 + $0xc8] sm:$0xff] %v7608_v19   ;;  %v8808_v26 = vadd.f32 %v5422_v25, %v2415_v24  ;;  %v8386_v27 = vpop.f32.mrb[58].mxu1 }
 0x270   : > { %7843 = vst [vmem:[%s10532_s23 + $0xc0] sm:$0xff] %v7603_v22   ;;  %9436 = vtanh.f32 %v8807_v23  ;;  %v8809_v29 = vadd.f32 %v8674_v28, %v8386_v27  ;;  %v2418_v30 = vpop.f32.mrb[59].mxu1 }
 0x271   : > { %9438 = vtanh.f32 %v8808_v26  ;;  %v8810_v32 = vadd.f32 %v5425_v31, %v2418_v30 }
 0x272   : > { %v9429_v33 = vpop.eup %9428  ;;  %9440 = vtanh.f32 %v8809_v29  ;;  %v8677_v39 = vpop.f32.mrb[60].mxu0 }
 0x273   : > { %v9431_v34 = vpop.eup %9430  ;;  %9442 = vtanh.f32 %v8810_v32  ;;  %v5438_v43 = vpop.f32.mrb[61].mxu0 }
 0x274   : > { %v9433_v35 = vpop.eup %9432  ;;  %v8678_v46 = vpop.f32.mrb[62].mxu0 }
 0x275   : > { %v9435_v36 = vpop.eup %9434  ;;  %v7618_v37 = vpack.c.bf16 %v9433_v35, %v9429_v33  ;;  %v8389_v38 = vpop.f32.mrb[60].mxu1 }
 0x276   : > { %v7613_v40 = vpack.c.bf16 %v9435_v36, %v9431_v34  ;;  %v8811_v41 = vadd.f32 %v8677_v39, %v8389_v38  ;;  %v2431_v42 = vpop.f32.mrb[61].mxu1  ;;  %v5441_v49 = vpop.f32.mrb[63].mxu0 }
 0x277   : > { %7846 = vst [vmem:[%s10532_s23 + $0xd8] sm:$0xff] %v7618_v37   ;;  %v8812_v44 = vadd.f32 %v5438_v43, %v2431_v42  ;;  %v8390_v45 = vpop.f32.mrb[62].mxu1 }
 0x278   : > { %7845 = vst [vmem:[%s10532_s23 + $0xd0] sm:$0xff] %v7613_v40   ;;  %9444 = vtanh.f32 %v8811_v41  ;;  %v8813_v47 = vadd.f32 %v8678_v46, %v8390_v45  ;;  %v2434_v48 = vpop.f32.mrb[63].mxu1 }
 0x279   : > { %9446 = vtanh.f32 %v8812_v44  ;;  %v8814_v50 = vadd.f32 %v5441_v49, %v2434_v48 }
 0x27a   : > { %v9437_v51 = vpop.eup %9436  ;;  %9448 = vtanh.f32 %v8813_v47  ;;  %v8681_v57 = vpop.f32.mrb[64].mxu0 }
 0x27b   : > { %v9439_v52 = vpop.eup %9438  ;;  %9450 = vtanh.f32 %v8814_v50  ;;  %v5454_v61 = vpop.f32.mrb[65].mxu0 }
 0x27c   : > { %v9441_v53 = vpop.eup %9440  ;;  %v8682_v0 = vpop.f32.mrb[66].mxu0 }
 0x27d   : > { %v9443_v54 = vpop.eup %9442  ;;  %v7628_v55 = vpack.c.bf16 %v9441_v53, %v9437_v51  ;;  %v8393_v56 = vpop.f32.mrb[64].mxu1 }
 0x27e   : > { %v7623_v58 = vpack.c.bf16 %v9443_v54, %v9439_v52  ;;  %v8815_v59 = vadd.f32 %v8681_v57, %v8393_v56  ;;  %v2447_v60 = vpop.f32.mrb[65].mxu1  ;;  %v5457_v3 = vpop.f32.mrb[67].mxu0 }
 0x27f   : > { %7848 = vst [vmem:[%s10532_s23 + $0xe8] sm:$0xff] %v7628_v55   ;;  %v8816_v62 = vadd.f32 %v5454_v61, %v2447_v60  ;;  %v8394_v63 = vpop.f32.mrb[66].mxu1 }
 0x280   : > { %7847 = vst [vmem:[%s10532_s23 + $0xe0] sm:$0xff] %v7623_v58   ;;  %9452 = vtanh.f32 %v8815_v59  ;;  %v8817_v1 = vadd.f32 %v8682_v0, %v8394_v63  ;;  %v2450_v2 = vpop.f32.mrb[67].mxu1 }
 0x281   : > { %9454 = vtanh.f32 %v8816_v62  ;;  %v8818_v4 = vadd.f32 %v5457_v3, %v2450_v2 }
 0x282   : > { %v9445_v5 = vpop.eup %9444  ;;  %9456 = vtanh.f32 %v8817_v1  ;;  %v8685_v11 = vpop.f32.mrb[68].mxu0 }
 0x283   : > { %v9447_v6 = vpop.eup %9446  ;;  %9458 = vtanh.f32 %v8818_v4  ;;  %v5470_v15 = vpop.f32.mrb[69].mxu0 }
 0x284   : > { %v9449_v7 = vpop.eup %9448  ;;  %v8686_v18 = vpop.f32.mrb[70].mxu0 }
 0x285   : > { %v9451_v8 = vpop.eup %9450  ;;  %v7638_v9 = vpack.c.bf16 %v9449_v7, %v9445_v5  ;;  %v8397_v10 = vpop.f32.mrb[68].mxu1 }
 0x286   : > { %v7633_v12 = vpack.c.bf16 %v9451_v8, %v9447_v6  ;;  %v8819_v13 = vadd.f32 %v8685_v11, %v8397_v10  ;;  %v2463_v14 = vpop.f32.mrb[69].mxu1  ;;  %v5473_v21 = vpop.f32.mrb[71].mxu0 }
 0x287   : > { %7850 = vst [vmem:[%s10532_s23 + $0xf8] sm:$0xff] %v7638_v9   ;;  %v8820_v16 = vadd.f32 %v5470_v15, %v2463_v14  ;;  %v8398_v17 = vpop.f32.mrb[70].mxu1 }
 0x288   : > { %7849 = vst [vmem:[%s10532_s23 + $0xf0] sm:$0xff] %v7633_v12   ;;  %9460 = vtanh.f32 %v8819_v13  ;;  %v8821_v19 = vadd.f32 %v8686_v18, %v8398_v17  ;;  %v2466_v20 = vpop.f32.mrb[71].mxu1 }
 0x289   : > { %9462 = vtanh.f32 %v8820_v16  ;;  %v8822_v22 = vadd.f32 %v5473_v21, %v2466_v20 }
 0x28a   : > { %v9453_v23 = vpop.eup %9452  ;;  %9464 = vtanh.f32 %v8821_v19  ;;  %v8689_v29 = vpop.f32.mrb[72].mxu0 }
 0x28b   : > { %v9455_v24 = vpop.eup %9454  ;;  %9466 = vtanh.f32 %v8822_v22  ;;  %v5486_v33 = vpop.f32.mrb[73].mxu0 }
 0x28c   : > { %v9457_v25 = vpop.eup %9456  ;;  %v8690_v36 = vpop.f32.mrb[74].mxu0 }
 0x28d   : > { %v9459_v26 = vpop.eup %9458  ;;  %v7648_v27 = vpack.c.bf16 %v9457_v25, %v9453_v23  ;;  %v8401_v28 = vpop.f32.mrb[72].mxu1 }
 0x28e   : > { %v7643_v30 = vpack.c.bf16 %v9459_v26, %v9455_v24  ;;  %v8823_v31 = vadd.f32 %v8689_v29, %v8401_v28  ;;  %v2479_v32 = vpop.f32.mrb[73].mxu1  ;;  %v5489_v39 = vpop.f32.mrb[75].mxu0 }
 0x28f   : > { %7852 = vst [vmem:[%s10532_s23 + $0x108] sm:$0xff] %v7648_v27   ;;  %v8824_v34 = vadd.f32 %v5486_v33, %v2479_v32  ;;  %v8402_v35 = vpop.f32.mrb[74].mxu1 }
 0x290   : > { %7851 = vst [vmem:[%s10532_s23 + $0x100] sm:$0xff] %v7643_v30   ;;  %9468 = vtanh.f32 %v8823_v31  ;;  %v8825_v37 = vadd.f32 %v8690_v36, %v8402_v35  ;;  %v2482_v38 = vpop.f32.mrb[75].mxu1 }
 0x291   : > { %9470 = vtanh.f32 %v8824_v34  ;;  %v8826_v40 = vadd.f32 %v5489_v39, %v2482_v38 }
 0x292   : > { %v9461_v41 = vpop.eup %9460  ;;  %9472 = vtanh.f32 %v8825_v37  ;;  %v8693_v47 = vpop.f32.mrb[76].mxu0 }
 0x293   : > { %v9463_v42 = vpop.eup %9462  ;;  %9474 = vtanh.f32 %v8826_v40  ;;  %v5502_v51 = vpop.f32.mrb[77].mxu0 }
 0x294   : > { %v9465_v43 = vpop.eup %9464  ;;  %v8694_v54 = vpop.f32.mrb[78].mxu0 }
 0x295   : > { %v9467_v44 = vpop.eup %9466  ;;  %v7658_v45 = vpack.c.bf16 %v9465_v43, %v9461_v41  ;;  %v8405_v46 = vpop.f32.mrb[76].mxu1 }
 0x296   : > { %v7653_v48 = vpack.c.bf16 %v9467_v44, %v9463_v42  ;;  %v8827_v49 = vadd.f32 %v8693_v47, %v8405_v46  ;;  %v2495_v50 = vpop.f32.mrb[77].mxu1  ;;  %v5505_v57 = vpop.f32.mrb[79].mxu0 }
 0x297   : > { %7854 = vst [vmem:[%s10532_s23 + $0x118] sm:$0xff] %v7658_v45   ;;  %v8828_v52 = vadd.f32 %v5502_v51, %v2495_v50  ;;  %v8406_v53 = vpop.f32.mrb[78].mxu1 }
 0x298   : > { %7853 = vst [vmem:[%s10532_s23 + $0x110] sm:$0xff] %v7653_v48   ;;  %9476 = vtanh.f32 %v8827_v49  ;;  %v8829_v55 = vadd.f32 %v8694_v54, %v8406_v53  ;;  %v2498_v56 = vpop.f32.mrb[79].mxu1 }
 0x299   : > { %9478 = vtanh.f32 %v8828_v52  ;;  %v8830_v58 = vadd.f32 %v5505_v57, %v2498_v56 }
 0x29a   : > { %v9469_v59 = vpop.eup %9468  ;;  %9480 = vtanh.f32 %v8829_v55  ;;  %v8697_v1 = vpop.f32.mrb[80].mxu0 }
 0x29b   : > { %v9471_v60 = vpop.eup %9470  ;;  %9482 = vtanh.f32 %v8830_v58  ;;  %v5518_v5 = vpop.f32.mrb[81].mxu0 }
 0x29c   : > { %v9473_v61 = vpop.eup %9472  ;;  %v8698_v8 = vpop.f32.mrb[82].mxu0 }
 0x29d   : > { %v9475_v62 = vpop.eup %9474  ;;  %v7668_v63 = vpack.c.bf16 %v9473_v61, %v9469_v59  ;;  %v8409_v0 = vpop.f32.mrb[80].mxu1 }
 0x29e   : > { %v7663_v2 = vpack.c.bf16 %v9475_v62, %v9471_v60  ;;  %v8831_v3 = vadd.f32 %v8697_v1, %v8409_v0  ;;  %v2511_v4 = vpop.f32.mrb[81].mxu1  ;;  %v5521_v11 = vpop.f32.mrb[83].mxu0 }
 0x29f   : > { %7856 = vst [vmem:[%s10532_s23 + $0x128] sm:$0xff] %v7668_v63   ;;  %v8832_v6 = vadd.f32 %v5518_v5, %v2511_v4  ;;  %v8410_v7 = vpop.f32.mrb[82].mxu1 }
 0x2a0   : > { %7855 = vst [vmem:[%s10532_s23 + $0x120] sm:$0xff] %v7663_v2   ;;  %9484 = vtanh.f32 %v8831_v3  ;;  %v8833_v9 = vadd.f32 %v8698_v8, %v8410_v7  ;;  %v2514_v10 = vpop.f32.mrb[83].mxu1 }
 0x2a1   : > { %9486 = vtanh.f32 %v8832_v6  ;;  %v8834_v12 = vadd.f32 %v5521_v11, %v2514_v10 }
 0x2a2   : > { %v9477_v13 = vpop.eup %9476  ;;  %9488 = vtanh.f32 %v8833_v9  ;;  %v8701_v19 = vpop.f32.mrb[84].mxu0 }
 0x2a3   : > { %v9479_v14 = vpop.eup %9478  ;;  %9490 = vtanh.f32 %v8834_v12  ;;  %v5534_v23 = vpop.f32.mrb[85].mxu0 }
 0x2a4   : > { %v9481_v15 = vpop.eup %9480  ;;  %v8702_v26 = vpop.f32.mrb[86].mxu0 }
 0x2a5   : > { %v9483_v16 = vpop.eup %9482  ;;  %v7678_v17 = vpack.c.bf16 %v9481_v15, %v9477_v13  ;;  %v8413_v18 = vpop.f32.mrb[84].mxu1 }
 0x2a6   : > { %v7673_v20 = vpack.c.bf16 %v9483_v16, %v9479_v14  ;;  %v8835_v21 = vadd.f32 %v8701_v19, %v8413_v18  ;;  %v2527_v22 = vpop.f32.mrb[85].mxu1  ;;  %v5537_v29 = vpop.f32.mrb[87].mxu0 }
 0x2a7   : > { %7858 = vst [vmem:[%s10532_s23 + $0x138] sm:$0xff] %v7678_v17   ;;  %v8836_v24 = vadd.f32 %v5534_v23, %v2527_v22  ;;  %v8414_v25 = vpop.f32.mrb[86].mxu1 }
 0x2a8   : > { %7857 = vst [vmem:[%s10532_s23 + $0x130] sm:$0xff] %v7673_v20   ;;  %9492 = vtanh.f32 %v8835_v21  ;;  %v8837_v27 = vadd.f32 %v8702_v26, %v8414_v25  ;;  %v2530_v28 = vpop.f32.mrb[87].mxu1 }
 0x2a9   : > { %9494 = vtanh.f32 %v8836_v24  ;;  %v8838_v30 = vadd.f32 %v5537_v29, %v2530_v28 }
 0x2aa   : > { %v9485_v31 = vpop.eup %9484  ;;  %9496 = vtanh.f32 %v8837_v27  ;;  %v8705_v37 = vpop.f32.mrb[88].mxu0 }
 0x2ab   : > { %v9487_v32 = vpop.eup %9486  ;;  %9498 = vtanh.f32 %v8838_v30  ;;  %v5550_v41 = vpop.f32.mrb[89].mxu0 }
 0x2ac   : > { %v9489_v33 = vpop.eup %9488  ;;  %v8706_v44 = vpop.f32.mrb[90].mxu0 }
 0x2ad   : > { %v9491_v34 = vpop.eup %9490  ;;  %v7688_v35 = vpack.c.bf16 %v9489_v33, %v9485_v31  ;;  %v8417_v36 = vpop.f32.mrb[88].mxu1 }
 0x2ae   : > { %v7683_v38 = vpack.c.bf16 %v9491_v34, %v9487_v32  ;;  %v8839_v39 = vadd.f32 %v8705_v37, %v8417_v36  ;;  %v2543_v40 = vpop.f32.mrb[89].mxu1  ;;  %v5553_v47 = vpop.f32.mrb[91].mxu0 }
 0x2af   : > { %7860 = vst [vmem:[%s10532_s23 + $0x148] sm:$0xff] %v7688_v35   ;;  %v8840_v42 = vadd.f32 %v5550_v41, %v2543_v40  ;;  %v8418_v43 = vpop.f32.mrb[90].mxu1 }
 0x2b0   : > { %7859 = vst [vmem:[%s10532_s23 + $0x140] sm:$0xff] %v7683_v38   ;;  %9500 = vtanh.f32 %v8839_v39  ;;  %v8841_v45 = vadd.f32 %v8706_v44, %v8418_v43  ;;  %v2546_v46 = vpop.f32.mrb[91].mxu1 }
 0x2b1   : > { %9502 = vtanh.f32 %v8840_v42  ;;  %v8842_v48 = vadd.f32 %v5553_v47, %v2546_v46 }
 0x2b2   : > { %v9493_v49 = vpop.eup %9492  ;;  %9504 = vtanh.f32 %v8841_v45  ;;  %v8709_v55 = vpop.f32.mrb[92].mxu0 }
 0x2b3   : > { %v9495_v50 = vpop.eup %9494  ;;  %9506 = vtanh.f32 %v8842_v48  ;;  %v5566_v59 = vpop.f32.mrb[93].mxu0 }
 0x2b4   : > { %v9497_v51 = vpop.eup %9496  ;;  %v8710_v62 = vpop.f32.mrb[94].mxu0 }
 0x2b5   : > { %v9499_v52 = vpop.eup %9498  ;;  %v7698_v53 = vpack.c.bf16 %v9497_v51, %v9493_v49  ;;  %v8421_v54 = vpop.f32.mrb[92].mxu1 }
 0x2b6   : > { %v7693_v56 = vpack.c.bf16 %v9499_v52, %v9495_v50  ;;  %v8843_v57 = vadd.f32 %v8709_v55, %v8421_v54  ;;  %v2559_v58 = vpop.f32.mrb[93].mxu1  ;;  %v5569_v1 = vpop.f32.mrb[95].mxu0 }
 0x2b7   : > { %7862 = vst [vmem:[%s10532_s23 + $0x158] sm:$0xff] %v7698_v53   ;;  %v8844_v60 = vadd.f32 %v5566_v59, %v2559_v58  ;;  %v8422_v61 = vpop.f32.mrb[94].mxu1 }
 0x2b8   : > { %7861 = vst [vmem:[%s10532_s23 + $0x150] sm:$0xff] %v7693_v56   ;;  %9508 = vtanh.f32 %v8843_v57  ;;  %v8845_v63 = vadd.f32 %v8710_v62, %v8422_v61  ;;  %v2562_v0 = vpop.f32.mrb[95].mxu1 }
 0x2b9   : > { %9510 = vtanh.f32 %v8844_v60  ;;  %v8846_v2 = vadd.f32 %v5569_v1, %v2562_v0 }
 0x2ba   : > { %v9501_v3 = vpop.eup %9500  ;;  %9512 = vtanh.f32 %v8845_v63  ;;  %v8713_v9 = vpop.f32.mrb[96].mxu0 }
 0x2bb   : > { %v9503_v4 = vpop.eup %9502  ;;  %9514 = vtanh.f32 %v8846_v2  ;;  %v5582_v13 = vpop.f32.mrb[97].mxu0 }
 0x2bc   : > { %v9505_v5 = vpop.eup %9504  ;;  %v8714_v16 = vpop.f32.mrb[98].mxu0 }
 0x2bd   : > { %v9507_v6 = vpop.eup %9506  ;;  %v7708_v7 = vpack.c.bf16 %v9505_v5, %v9501_v3  ;;  %v8425_v8 = vpop.f32.mrb[96].mxu1 }
 0x2be   : > { %v7703_v10 = vpack.c.bf16 %v9507_v6, %v9503_v4  ;;  %v8847_v11 = vadd.f32 %v8713_v9, %v8425_v8  ;;  %v2575_v12 = vpop.f32.mrb[97].mxu1  ;;  %v5585_v19 = vpop.f32.mrb[99].mxu0 }
 0x2bf   : > { %7864 = vst [vmem:[%s10532_s23 + $0x168] sm:$0xff] %v7708_v7   ;;  %v8848_v14 = vadd.f32 %v5582_v13, %v2575_v12  ;;  %v8426_v15 = vpop.f32.mrb[98].mxu1 }
 0x2c0   : > { %7863 = vst [vmem:[%s10532_s23 + $0x160] sm:$0xff] %v7703_v10   ;;  %9516 = vtanh.f32 %v8847_v11  ;;  %v8849_v17 = vadd.f32 %v8714_v16, %v8426_v15  ;;  %v2578_v18 = vpop.f32.mrb[99].mxu1 }
 0x2c1   : > { %9518 = vtanh.f32 %v8848_v14  ;;  %v8850_v20 = vadd.f32 %v5585_v19, %v2578_v18 }
 0x2c2   : > { %v9509_v21 = vpop.eup %9508  ;;  %9520 = vtanh.f32 %v8849_v17  ;;  %v8717_v27 = vpop.f32.mrb[100].mxu0 }
 0x2c3   : > { %v9511_v22 = vpop.eup %9510  ;;  %9522 = vtanh.f32 %v8850_v20  ;;  %v5598_v31 = vpop.f32.mrb[101].mxu0 }
 0x2c4   : > { %v9513_v23 = vpop.eup %9512  ;;  %v8718_v34 = vpop.f32.mrb[102].mxu0 }
 0x2c5   : > { %v9515_v24 = vpop.eup %9514  ;;  %v7718_v25 = vpack.c.bf16 %v9513_v23, %v9509_v21  ;;  %v8429_v26 = vpop.f32.mrb[100].mxu1 }
 0x2c6   : > { %v7713_v28 = vpack.c.bf16 %v9515_v24, %v9511_v22  ;;  %v8851_v29 = vadd.f32 %v8717_v27, %v8429_v26  ;;  %v2591_v30 = vpop.f32.mrb[101].mxu1  ;;  %v5601_v37 = vpop.f32.mrb[103].mxu0 }
 0x2c7   : > { %7866 = vst [vmem:[%s10532_s23 + $0x178] sm:$0xff] %v7718_v25   ;;  %v8852_v32 = vadd.f32 %v5598_v31, %v2591_v30  ;;  %v8430_v33 = vpop.f32.mrb[102].mxu1 }
 0x2c8   : > { %7865 = vst [vmem:[%s10532_s23 + $0x170] sm:$0xff] %v7713_v28   ;;  %9524 = vtanh.f32 %v8851_v29  ;;  %v8853_v35 = vadd.f32 %v8718_v34, %v8430_v33  ;;  %v2594_v36 = vpop.f32.mrb[103].mxu1 }
 0x2c9   : > { %9526 = vtanh.f32 %v8852_v32  ;;  %v8854_v38 = vadd.f32 %v5601_v37, %v2594_v36 }
 0x2ca   : > { %v9517_v39 = vpop.eup %9516  ;;  %9528 = vtanh.f32 %v8853_v35  ;;  %v8721_v45 = vpop.f32.mrb[104].mxu0 }
 0x2cb   : > { %v9519_v40 = vpop.eup %9518  ;;  %9530 = vtanh.f32 %v8854_v38  ;;  %v5614_v49 = vpop.f32.mrb[105].mxu0 }
 0x2cc   : > { %v9521_v41 = vpop.eup %9520  ;;  %v8722_v52 = vpop.f32.mrb[106].mxu0 }
 0x2cd   : > { %v9523_v42 = vpop.eup %9522  ;;  %v7728_v43 = vpack.c.bf16 %v9521_v41, %v9517_v39  ;;  %v8433_v44 = vpop.f32.mrb[104].mxu1 }
 0x2ce   : > { %v7723_v46 = vpack.c.bf16 %v9523_v42, %v9519_v40  ;;  %v8855_v47 = vadd.f32 %v8721_v45, %v8433_v44  ;;  %v2607_v48 = vpop.f32.mrb[105].mxu1  ;;  %v5617_v55 = vpop.f32.mrb[107].mxu0 }
 0x2cf   : > { %7868 = vst [vmem:[%s10532_s23 + $0x188] sm:$0xff] %v7728_v43   ;;  %v8856_v50 = vadd.f32 %v5614_v49, %v2607_v48  ;;  %v8434_v51 = vpop.f32.mrb[106].mxu1 }
 0x2d0   : > { %7867 = vst [vmem:[%s10532_s23 + $0x180] sm:$0xff] %v7723_v46   ;;  %9532 = vtanh.f32 %v8855_v47  ;;  %v8857_v53 = vadd.f32 %v8722_v52, %v8434_v51  ;;  %v2610_v54 = vpop.f32.mrb[107].mxu1 }
 0x2d1   : > { %9534 = vtanh.f32 %v8856_v50  ;;  %v8858_v56 = vadd.f32 %v5617_v55, %v2610_v54 }
 0x2d2   : > { %v9525_v57 = vpop.eup %9524  ;;  %9536 = vtanh.f32 %v8857_v53  ;;  %v8725_v63 = vpop.f32.mrb[108].mxu0 }
 0x2d3   : > { %v9527_v58 = vpop.eup %9526  ;;  %9538 = vtanh.f32 %v8858_v56  ;;  %v5630_v3 = vpop.f32.mrb[109].mxu0 }
 0x2d4   : > { %v9529_v59 = vpop.eup %9528  ;;  %v8726_v6 = vpop.f32.mrb[110].mxu0 }
 0x2d5   : > { %v9531_v60 = vpop.eup %9530  ;;  %v7738_v61 = vpack.c.bf16 %v9529_v59, %v9525_v57  ;;  %v8437_v62 = vpop.f32.mrb[108].mxu1 }
 0x2d6   : > { %v7733_v0 = vpack.c.bf16 %v9531_v60, %v9527_v58  ;;  %v8859_v1 = vadd.f32 %v8725_v63, %v8437_v62  ;;  %v2623_v2 = vpop.f32.mrb[109].mxu1  ;;  %v5633_v9 = vpop.f32.mrb[111].mxu0 }
 0x2d7   : > { %7870 = vst [vmem:[%s10532_s23 + $0x198] sm:$0xff] %v7738_v61   ;;  %v8860_v4 = vadd.f32 %v5630_v3, %v2623_v2  ;;  %v8438_v5 = vpop.f32.mrb[110].mxu1 }
 0x2d8   : > { %7869 = vst [vmem:[%s10532_s23 + $0x190] sm:$0xff] %v7733_v0   ;;  %9540 = vtanh.f32 %v8859_v1  ;;  %v8861_v7 = vadd.f32 %v8726_v6, %v8438_v5  ;;  %v2626_v8 = vpop.f32.mrb[111].mxu1 }
 0x2d9   : > { %9542 = vtanh.f32 %v8860_v4  ;;  %v8862_v10 = vadd.f32 %v5633_v9, %v2626_v8 }
 0x2da   : > { %v9533_v11 = vpop.eup %9532  ;;  %9544 = vtanh.f32 %v8861_v7  ;;  %v8729_v17 = vpop.f32.mrb[112].mxu0 }
 0x2db   : > { %v9535_v12 = vpop.eup %9534  ;;  %9546 = vtanh.f32 %v8862_v10  ;;  %v5646_v21 = vpop.f32.mrb[113].mxu0 }
 0x2dc   : > { %v9537_v13 = vpop.eup %9536  ;;  %v8730_v24 = vpop.f32.mrb[114].mxu0 }
 0x2dd   : > { %v9539_v14 = vpop.eup %9538  ;;  %v7748_v15 = vpack.c.bf16 %v9537_v13, %v9533_v11  ;;  %v8441_v16 = vpop.f32.mrb[112].mxu1 }
 0x2de   : > { %v7743_v18 = vpack.c.bf16 %v9539_v14, %v9535_v12  ;;  %v8863_v19 = vadd.f32 %v8729_v17, %v8441_v16  ;;  %v2639_v20 = vpop.f32.mrb[113].mxu1  ;;  %v5649_v27 = vpop.f32.mrb[115].mxu0 }
 0x2df   : > { %7872 = vst [vmem:[%s10532_s23 + $0x1a8] sm:$0xff] %v7748_v15   ;;  %v8864_v22 = vadd.f32 %v5646_v21, %v2639_v20  ;;  %v8442_v23 = vpop.f32.mrb[114].mxu1 }
 0x2e0   : > { %7871 = vst [vmem:[%s10532_s23 + $0x1a0] sm:$0xff] %v7743_v18   ;;  %9548 = vtanh.f32 %v8863_v19  ;;  %v8865_v25 = vadd.f32 %v8730_v24, %v8442_v23  ;;  %v2642_v26 = vpop.f32.mrb[115].mxu1 }
 0x2e1   : > { %9550 = vtanh.f32 %v8864_v22  ;;  %v8866_v28 = vadd.f32 %v5649_v27, %v2642_v26 }
 0x2e2   : > { %v9541_v29 = vpop.eup %9540  ;;  %9552 = vtanh.f32 %v8865_v25  ;;  %v8733_v35 = vpop.f32.mrb[116].mxu0 }
 0x2e3   : > { %v9543_v30 = vpop.eup %9542  ;;  %9554 = vtanh.f32 %v8866_v28  ;;  %v5662_v39 = vpop.f32.mrb[117].mxu0 }
 0x2e4   : > { %v9545_v31 = vpop.eup %9544  ;;  %v8734_v42 = vpop.f32.mrb[118].mxu0 }
 0x2e5   : > { %v9547_v32 = vpop.eup %9546  ;;  %v7758_v33 = vpack.c.bf16 %v9545_v31, %v9541_v29  ;;  %v8445_v34 = vpop.f32.mrb[116].mxu1 }
 0x2e6   : > { %v7753_v36 = vpack.c.bf16 %v9547_v32, %v9543_v30  ;;  %v8867_v37 = vadd.f32 %v8733_v35, %v8445_v34  ;;  %v2655_v38 = vpop.f32.mrb[117].mxu1  ;;  %v5665_v45 = vpop.f32.mrb[119].mxu0 }
 0x2e7   : > { %7874 = vst [vmem:[%s10532_s23 + $0x1b8] sm:$0xff] %v7758_v33   ;;  %v8868_v40 = vadd.f32 %v5662_v39, %v2655_v38  ;;  %v8446_v41 = vpop.f32.mrb[118].mxu1 }
 0x2e8   : > { %7873 = vst [vmem:[%s10532_s23 + $0x1b0] sm:$0xff] %v7753_v36   ;;  %9556 = vtanh.f32 %v8867_v37  ;;  %v8869_v43 = vadd.f32 %v8734_v42, %v8446_v41  ;;  %v2658_v44 = vpop.f32.mrb[119].mxu1 }
 0x2e9   : > { %9558 = vtanh.f32 %v8868_v40  ;;  %v8870_v46 = vadd.f32 %v5665_v45, %v2658_v44 }
 0x2ea   : > { %v9549_v47 = vpop.eup %9548  ;;  %9560 = vtanh.f32 %v8869_v43  ;;  %v8737_v53 = vpop.f32.mrb[120].mxu0 }
 0x2eb   : > { %v9551_v48 = vpop.eup %9550  ;;  %9562 = vtanh.f32 %v8870_v46  ;;  %v5678_v57 = vpop.f32.mrb[121].mxu0 }
 0x2ec   : > { %v9553_v49 = vpop.eup %9552  ;;  %v8738_v60 = vpop.f32.mrb[122].mxu0 }
 0x2ed   : > { %v9555_v50 = vpop.eup %9554  ;;  %v7768_v51 = vpack.c.bf16 %v9553_v49, %v9549_v47  ;;  %v8449_v52 = vpop.f32.mrb[120].mxu1 }
 0x2ee   : > { %v7763_v54 = vpack.c.bf16 %v9555_v50, %v9551_v48  ;;  %v8871_v55 = vadd.f32 %v8737_v53, %v8449_v52  ;;  %v2671_v56 = vpop.f32.mrb[121].mxu1  ;;  %v5681_v63 = vpop.f32.mrb[123].mxu0 }
 0x2ef   : > { %7876 = vst [vmem:[%s10532_s23 + $0x1c8] sm:$0xff] %v7768_v51   ;;  %v8872_v58 = vadd.f32 %v5678_v57, %v2671_v56  ;;  %v8450_v59 = vpop.f32.mrb[122].mxu1 }
 0x2f0   : > { %7875 = vst [vmem:[%s10532_s23 + $0x1c0] sm:$0xff] %v7763_v54   ;;  %9564 = vtanh.f32 %v8871_v55  ;;  %v8873_v61 = vadd.f32 %v8738_v60, %v8450_v59  ;;  %v2674_v62 = vpop.f32.mrb[123].mxu1 }
 0x2f1   : > { %9566 = vtanh.f32 %v8872_v58  ;;  %v8874_v0 = vadd.f32 %v5681_v63, %v2674_v62 }
 0x2f2   : > { %v9557_v1 = vpop.eup %9556  ;;  %9568 = vtanh.f32 %v8873_v61  ;;  %v8741_v7 = vpop.f32.mrb[124].mxu0 }
 0x2f3   : > { %v9559_v2 = vpop.eup %9558  ;;  %9570 = vtanh.f32 %v8874_v0  ;;  %v5694_v11 = vpop.f32.mrb[125].mxu0 }
 0x2f4   : > { %v9561_v3 = vpop.eup %9560  ;;  %v8742_v14 = vpop.f32.mrb[126].mxu0 }
 0x2f5   : > { %v9563_v4 = vpop.eup %9562  ;;  %v7778_v5 = vpack.c.bf16 %v9561_v3, %v9557_v1  ;;  %v8453_v6 = vpop.f32.mrb[124].mxu1 }
 0x2f6   : > { %v7773_v8 = vpack.c.bf16 %v9563_v4, %v9559_v2  ;;  %v8875_v9 = vadd.f32 %v8741_v7, %v8453_v6  ;;  %v2687_v10 = vpop.f32.mrb[125].mxu1  ;;  %v5697_v17 = vpop.f32.mrb[127].mxu0 }
 0x2f7   : > { %7878 = vst [vmem:[%s10532_s23 + $0x1d8] sm:$0xff] %v7778_v5   ;;  %v8876_v12 = vadd.f32 %v5694_v11, %v2687_v10  ;;  %v8454_v13 = vpop.f32.mrb[126].mxu1 }
 0x2f8   : > { %7877 = vst [vmem:[%s10532_s23 + $0x1d0] sm:$0xff] %v7773_v8   ;;  %9572 = vtanh.f32 %v8875_v9  ;;  %v8877_v15 = vadd.f32 %v8742_v14, %v8454_v13  ;;  %v2690_v16 = vpop.f32.mrb[127].mxu1 }
 0x2f9   : > { %9574 = vtanh.f32 %v8876_v12  ;;  %v8878_v18 = vadd.f32 %v5697_v17, %v2690_v16 }
 0x2fa   : > { %v9565_v19 = vpop.eup %9564  ;;  %9576 = vtanh.f32 %v8877_v15  ;;  %v8745_v25 = vpop.f32.mrb[128].mxu0 }
 0x2fb   : > { %v9567_v20 = vpop.eup %9566  ;;  %9578 = vtanh.f32 %v8878_v18  ;;  %v5710_v29 = vpop.f32.mrb[129].mxu0 }
 0x2fc   : > { %v9569_v21 = vpop.eup %9568  ;;  %v8746_v32 = vpop.f32.mrb[130].mxu0 }
 0x2fd   : > { %v9571_v22 = vpop.eup %9570  ;;  %v7788_v23 = vpack.c.bf16 %v9569_v21, %v9565_v19  ;;  %v8457_v24 = vpop.f32.mrb[128].mxu1 }
 0x2fe   : > { %v7783_v26 = vpack.c.bf16 %v9571_v22, %v9567_v20  ;;  %v8879_v27 = vadd.f32 %v8745_v25, %v8457_v24  ;;  %v2703_v28 = vpop.f32.mrb[129].mxu1  ;;  %v5713_v35 = vpop.f32.mrb[131].mxu0 }
 0x2ff   : > { %7880 = vst [vmem:[%s10532_s23 + $0x1e8] sm:$0xff] %v7788_v23   ;;  %v8880_v30 = vadd.f32 %v5710_v29, %v2703_v28  ;;  %v8458_v31 = vpop.f32.mrb[130].mxu1 }
 0x300   : > { %7879 = vst [vmem:[%s10532_s23 + $0x1e0] sm:$0xff] %v7783_v26   ;;  %9580 = vtanh.f32 %v8879_v27  ;;  %v8881_v33 = vadd.f32 %v8746_v32, %v8458_v31  ;;  %v2706_v34 = vpop.f32.mrb[131].mxu1 }
 0x301   : > { %9582 = vtanh.f32 %v8880_v30  ;;  %v8882_v36 = vadd.f32 %v5713_v35, %v2706_v34 }
 0x302   : > { %v9573_v37 = vpop.eup %9572  ;;  %9584 = vtanh.f32 %v8881_v33  ;;  %v8749_v43 = vpop.f32.mrb[132].mxu0 }
 0x303   : > { %v9575_v38 = vpop.eup %9574  ;;  %9586 = vtanh.f32 %v8882_v36  ;;  %v5726_v47 = vpop.f32.mrb[133].mxu0 }
 0x304   : > { %v9577_v39 = vpop.eup %9576  ;;  %v8750_v50 = vpop.f32.mrb[134].mxu0 }
 0x305   : > { %v9579_v40 = vpop.eup %9578  ;;  %v7798_v41 = vpack.c.bf16 %v9577_v39, %v9573_v37  ;;  %v8461_v42 = vpop.f32.mrb[132].mxu1 }
 0x306   : > { %v7793_v44 = vpack.c.bf16 %v9579_v40, %v9575_v38  ;;  %v8883_v45 = vadd.f32 %v8749_v43, %v8461_v42  ;;  %v2719_v46 = vpop.f32.mrb[133].mxu1  ;;  %v5729_v53 = vpop.f32.mrb[135].mxu0 }
 0x307   : > { %7882 = vst [vmem:[%s10532_s23 + $0x1f8] sm:$0xff] %v7798_v41   ;;  %v8884_v48 = vadd.f32 %v5726_v47, %v2719_v46  ;;  %v8462_v49 = vpop.f32.mrb[134].mxu1 }
 0x308   : > { %7881 = vst [vmem:[%s10532_s23 + $0x1f0] sm:$0xff] %v7793_v44   ;;  %9588 = vtanh.f32 %v8883_v45  ;;  %v8885_v51 = vadd.f32 %v8750_v50, %v8462_v49  ;;  %v2722_v52 = vpop.f32.mrb[135].mxu1 }
 0x309   : > { %9590 = vtanh.f32 %v8884_v48  ;;  %v8886_v54 = vadd.f32 %v5729_v53, %v2722_v52 }
 0x30a   : > { %v9581_v55 = vpop.eup %9580  ;;  %9592 = vtanh.f32 %v8885_v51 }
 0x30b   : > { %v9583_v56 = vpop.eup %9582  ;;  %9594 = vtanh.f32 %v8886_v54 }
 0x30c   : > { %v9585_v57 = vpop.eup %9584 }
 0x30d   : > { %v9587_v58 = vpop.eup %9586  ;;  %v7808_v59 = vpack.c.bf16 %v9585_v57, %v9581_v55 }
 0x30e   : > { %v7803_v60 = vpack.c.bf16 %v9587_v58, %v9583_v56 }
 0x30f   : > { %7884 = vst [vmem:[%s10532_s23 + $0x208] sm:$0xff] %v7808_v59  }
 0x310   : > { %7883 = vst [vmem:[%s10532_s23 + $0x200] sm:$0xff] %v7803_v60  }
 0x312   : > { %v9589_v61 = vpop.eup %9588 }
 0x313   : > { %v9591_v62 = vpop.eup %9590 }
 0x314   : > { %v9593_v63 = vpop.eup %9592 }
 0x315   : > { %v9595_v0 = vpop.eup %9594  ;;  %v7818_v1 = vpack.c.bf16 %v9593_v63, %v9589_v61 }
 0x316   : > { %v7813_v2 = vpack.c.bf16 %v9595_v0, %v9591_v62 }
 0x317   : > { %7886 = vst [vmem:[%s10532_s23 + $0x218] sm:$0xff] %v7818_v1  }
 0x318   : > { %7885 = vst [vmem:[%s10532_s23 + $0x210] sm:$0xff] %v7813_v2  }
 0x319 PF: > { %s12_s9 = sadd.s32 1, %s9738_s9  }
 0x31a   : > { %p9_p4 = scmp.ge.s32.totalorder %s12_s9, 4  }
 0x31c   :  { %11 = sbr.rel (!%p9_p4) target bundleno = 1 (0x1), region = 61 }

</bundles_post_ra>
